<compile_context>
chip_gen: v7x
topology: tpu7x:2x2x1
jax: 0.10.0
libtpu: 0.0.40
codegen_flags: <defaults>
</compile_context>

<pallas_src>
import functools

import jax
import jax.numpy as jnp
from jax.experimental import pallas as pl
from jax.experimental.pallas import tpu as pltpu


_CHANNELS = [(3, 64), (64, 64), (64, 128), (128, 128), (128, 256), (256, 256)]
_POOL_AFTER = (1, 3)            # maxpool after conv index 1 and 3 (0-based)
_OUT_C = 256


# ---------------------------------------------------------------------------
# In-kernel helpers (operate on VMEM-resident values / scratch refs)
# ---------------------------------------------------------------------------
def _store_dx_fused(buf, y, h, w, c):
    """Store y (h, w, c) f32 into a dx-fused bf16 scratch ref of shape
    (h+2, w, 3*c) such that  buf[r, x, dx*c:(dx+1)*c] == pad(y)[r, x+dx, :]
    where pad(y) is y with a 1-pixel zero halo.

    Only the halo (rows 0 and h+1; the zero columns are baked into the
    concatenated values) is zeroed -- no full-buffer zero fill -- and it is
    re-written every call, so correctness never depends on stale scratch."""
    yb = y.astype(buf.dtype)                                        # (h, w, c)
    zc = jnp.zeros((h, 1, c), buf.dtype)
    zrow = jnp.zeros((1, w, 3 * c), buf.dtype)
    buf[0:1] = zrow                                                 # top halo
    buf[h + 1:h + 2] = zrow                                         # bottom halo
    buf[1:h + 1, :, 0 * c:1 * c] = jnp.concatenate([zc, yb[:, :w - 1, :]], axis=1)
    buf[1:h + 1, :, 1 * c:2 * c] = yb
    buf[1:h + 1, :, 2 * c:3 * c] = jnp.concatenate([yb[:, 1:, :], zc], axis=1)


def _conv0_im2col(x2d, w2d, b_ref, h, w, cout):
    """Layer 0: pre-im2col'd (h*w, 27) bf16 input, single K=27 MXU dot."""
    acc = jnp.dot(x2d, w2d, preferred_element_type=jnp.float32)     # (h*w, cout)
    y = jnp.maximum(acc + b_ref[0][None, :], 0.0)
    return y.reshape(h, w, cout)


def _conv1_dy_packed(buf_in, w_ref, b_ref, h, w, c):
    """cout == cin == c (= 64) layer.  The three dy taps are packed along the
    MXU output axis: one (.,3c) x (3c,3c) dot, then a shift-add of three
    leading-axis (free) slices of the result."""
    slab = buf_in[...].reshape((h + 2) * w, 3 * c)                  # bf16
    r = jnp.dot(slab, w_ref[...], preferred_element_type=jnp.float32)
    r = r.reshape(h + 2, w, 3 * c)
    y = (r[0:h, :, 0 * c:1 * c] +
         r[1:h + 1, :, 1 * c:2 * c] +
         r[2:h + 2, :, 2 * c:3 * c])
    return jnp.maximum(y + b_ref[0][None, None, :], 0.0)            # (h, w, c)


def _conv3x3_dyloop(buf_in, w_ref, b_ref, h, w, cin, cout):
    """3x3 same conv + bias + ReLU from a dx-fused bf16 buffer.

    buf_in : (h+2, w, 3*cin) bf16, dx taps pre-fused on lanes, zero halo.
    w_ref  : (3, 3*cin, cout) bf16 in (dy, dx*cin, cout) order.
    Three MXU dots (one per dy) with K = 3*cin; no concat in the loop."""
    acc = jnp.zeros((h * w, cout), jnp.float32)
    for dy in range(3):                                             # static unroll
        band = buf_in[dy:dy + h].reshape(h * w, 3 * cin)            # free leading slice
        acc = acc + jnp.dot(band, w_ref[dy], preferred_element_type=jnp.float32)
    y = jnp.maximum(acc + b_ref[0][None, :], 0.0)
    return y.reshape(h, w, cout)


def _maxpool2x2(y, h, w, c):
    """2x2 / stride-2 max pool via reshape + reduce (no strided sublane slices)."""
    return y.reshape(h // 2, 2, w // 2, 2, c).max(axis=(1, 3))


# ---------------------------------------------------------------------------
# Fused kernel: one grid step == one batch element, everything in VMEM.
# ---------------------------------------------------------------------------
def _branch_kernel(H, W, x_ref,
                   w0, b0, w1, b1, w2, b2, w3, b3, w4, b4, w5, b5,
                   o_ref, p1, p2, p3, p4, p5):
    H2, W2 = H // 2, W // 2
    H4, W4 = H // 4, W // 4

    # conv0: K=27 im2col dot.
    y = _conv0_im2col(x_ref[0], w0[...], b0, H, W, 64)
    _store_dx_fused(p1, y, H, W, 64)

    # conv1: dy-packed (cout=64) single dot + shift-add, then pool.
    y = _conv1_dy_packed(p1, w1, b1, H, W, 64)
    y = _maxpool2x2(y, H, W, 64)
    _store_dx_fused(p2, y, H2, W2, 64)

    # conv2: 64 -> 128.
    y = _conv3x3_dyloop(p2, w2, b2, H2, W2, 64, 128)
    _store_dx_fused(p3, y, H2, W2, 128)

    # conv3: 128 -> 128, then pool.
    y = _conv3x3_dyloop(p3, w3, b3, H2, W2, 128, 128)
    y = _maxpool2x2(y, H2, W2, 128)
    _store_dx_fused(p4, y, H4, W4, 128)

    # conv4: 128 -> 256.
    y = _conv3x3_dyloop(p4, w4, b4, H4, W4, 128, 256)
    _store_dx_fused(p5, y, H4, W4, 256)

    # conv5: 256 -> 256.
    y = _conv3x3_dyloop(p5, w5, b5, H4, W4, 256, 256)

    # Global max over H and W -> (1, 1, 256).
    o_ref[...] = jnp.max(y, axis=(0, 1))[None, None, :].astype(o_ref.dtype)


# ---------------------------------------------------------------------------
# Wrapper
# ---------------------------------------------------------------------------
def _const_spec(shape):
    """Weights/biases use the same block every grid step -> single pipeline
    buffer (they are never re-fetched), reclaiming the second ~2.3 MB copy."""
    index_map = lambda n: (0,) * len(shape)
    try:
        return pl.BlockSpec(shape, index_map, pipeline_mode=pl.Buffered(1))
    except Exception:      # pipeline_mode / Buffered not available -> default
        return pl.BlockSpec(shape, index_map)


def branch_forward(x_nchw, params):
    """x_nchw: (N, 3, H, W) float32 -> (N, 1, 256) float32."""
    N, C, H, W = x_nchw.shape
    assert C == 3 and H % 4 == 0 and W % 4 == 0 and H >= 4 and W >= 4, (N, C, H, W)
    # TODO(synk): for large H, W (and to feed both v7x TensorCores at small N)
    # add a row-strip grid axis with a recomputed ~14-row input halo; this
    # whole-image-in-VMEM plan targets small/medium inputs.

    # Layer-0 im2col in the wrapper: lane-dense (N, H*W, 27) bf16 slab
    # (replaces the 3-channel lane-sparse input tile entirely).
    x = jnp.transpose(x_nchw, (0, 2, 3, 1))                       # NCHW -> NHWC
    xp = jnp.pad(x, ((0, 0), (1, 1), (1, 1), (0, 0)))
    cols = [xp[:, dy:dy + H, dx:dx + W, :] for dy in range(3) for dx in range(3)]
    x_col = jnp.concatenate(cols, axis=-1).reshape(N, H * W, 27).astype(jnp.bfloat16)

    (w0, b0), (w1, b1), (w2, b2), (w3, b3), (w4, b4), (w5, b5) = params
    # conv0: (3,3,3,64) -> (27, 64)   [(dy,dx,ci) flattened, matches im2col order]
    w0f = w0.astype(jnp.bfloat16).reshape(27, 64)
    # conv1: (3,3,64,64) -> (dx*ci, dy*co) = (192, 192) for the dy-packed dot.
    w1f = jnp.transpose(w1.astype(jnp.bfloat16), (1, 2, 0, 3)).reshape(192, 192)
    # conv2..5: (3,3,cin,cout) -> (3, 3*cin, cout), bf16 MXU operands.
    wr = [wgt.astype(jnp.bfloat16).reshape(3, 3 * cin, cout)
          for (cin, cout), wgt in zip(_CHANNELS[2:], (w2, w3, w4, w5))]
    biases = [b.astype(jnp.float32).reshape(1, -1)
              for b in (b0, b1, b2, b3, b4, b5)]

    flat_inputs = [x_col,
                   w0f, biases[0], w1f, biases[1],
                   wr[0], biases[2], wr[1], biases[3],
                   wr[2], biases[4], wr[3], biases[5]]

    in_specs = [pl.BlockSpec((1, H * W, 27), lambda n: (n, 0, 0))]
    in_specs += [_const_spec(a.shape) for a in flat_inputs[1:]]

    # dx-fused bf16 activation scratch: (h+2, w, 3*cin) per layer input.
    H2, W2, H4, W4 = H // 2, W // 2, H // 4, W // 4
    act_shapes = [(H + 2, W, 3 * 64), (H2 + 2, W2, 3 * 64), (H2 + 2, W2, 3 * 128),
                  (H4 + 2, W4, 3 * 128), (H4 + 2, W4, 3 * 256)]
    scratch_shapes = [pltpu.VMEM(s, jnp.bfloat16) for s in act_shapes]

    # Explicit scoped-VMEM budget: scratch plan + weights + pipelined input
    # block + headroom for in-kernel f32 temporaries.
    scratch_b = sum(2 * a * b * c for (a, b, c) in act_shapes)        # bf16
    weight_b = sum(int(a.size) * a.dtype.itemsize for a in flat_inputs[1:])
    input_b = 2 * (H * W * 128 * 2)               # (H*W, 27)->128-lane pad, x2 buffers
    temp_b = 4 * ((H + 2) * W * 192 + 3 * H * W * 256)               # f32 temporaries
    plan_b = scratch_b + weight_b + input_b + temp_b
    vmem_limit = int(min(max(2 * plan_b, 32 * 2 ** 20), 64 * 2 ** 20))

    return pl.pallas_call(
        functools.partial(_branch_kernel, H, W),
        out_shape=jax.ShapeDtypeStruct((N, 1, _OUT_C), jnp.float32),
        grid_spec=pltpu.PrefetchScalarGridSpec(
            num_scalar_prefetch=0,
            grid=(N,),
            in_specs=in_specs,
            out_specs=pl.BlockSpec((1, 1, _OUT_C), lambda n: (n, 0, 0)),
            scratch_shapes=scratch_shapes,
        ),
        compiler_params=pltpu.CompilerParams(
            dimension_semantics=("parallel",),
            vmem_limit_bytes=vmem_limit),
    )(*flat_inputs)


# ---------------------------------------------------------------------------
# Params + pure-JAX reference (same bf16-operand / f32-accumulate math)
# ---------------------------------------------------------------------------
def init_params(key):
    params = []
    for cin, cout in _CHANNELS:
        key, kw = jax.random.split(key)
        std = (2.0 / (9 * cin)) ** 0.5               # He init (deterministic)
        w = jax.random.normal(kw, (3, 3, cin, cout), jnp.float32) * std
        b = jnp.linspace(-0.1, 0.1, cout, dtype=jnp.float32)
        params.append((w, b))
    return params


def branch_reference(x_nchw, params):
    x = jnp.transpose(x_nchw, (0, 2, 3, 1))
    for i, (w, b) in enumerate(params):
        y = jax.lax.conv_general_dilated(
            x.astype(jnp.bfloat16), w.astype(jnp.bfloat16),
            window_strides=(1, 1), padding="SAME",
            dimension_numbers=("NHWC", "HWIO", "NHWC"),
            preferred_element_type=jnp.float32)
        x = jax.nn.relu(y + b)
        if i in _POOL_AFTER:
            x = jax.lax.reduce_window(
                x, -jnp.inf, jax.lax.max, (1, 2, 2, 1), (1, 2, 2, 1), "VALID")
    return jnp.max(x, axis=(1, 2))[:, None, :]


if __name__ == "__main__":
    key = jax.random.PRNGKey(0)
    key, kx = jax.random.split(key)
    x = jax.random.normal(kx, (2, 3, 16, 16), jnp.float32)   # NCHW like PyTorch

    params = init_params(key)

    out = jax.block_until_ready(branch_forward(x, params))
    assert out.shape == (2, 1, 256), out.shape

    ref = jax.block_until_ready(branch_reference(x, params))
    err = float(jnp.max(jnp.abs(out - ref)))
    assert jnp.allclose(out, ref, rtol=5e-3, atol=5e-3), err

    print("KERNEL_OK")
</pallas_src>

<mosaic_0001>
module attributes {stable_mosaic.version = 11 : i64} {
  func.func @_branch_kernel(%arg0: i32, %arg1: memref<1x256x27xbf16, #tpu.memory_space<vmem>>, %arg2: memref<27x64xbf16, #tpu.memory_space<vmem>>, %arg3: memref<1x64xf32, #tpu.memory_space<vmem>>, %arg4: memref<192x192xbf16, #tpu.memory_space<vmem>>, %arg5: memref<1x64xf32, #tpu.memory_space<vmem>>, %arg6: memref<3x192x128xbf16, #tpu.memory_space<vmem>>, %arg7: memref<1x128xf32, #tpu.memory_space<vmem>>, %arg8: memref<3x384x128xbf16, #tpu.memory_space<vmem>>, %arg9: memref<1x128xf32, #tpu.memory_space<vmem>>, %arg10: memref<3x384x256xbf16, #tpu.memory_space<vmem>>, %arg11: memref<1x256xf32, #tpu.memory_space<vmem>>, %arg12: memref<3x768x256xbf16, #tpu.memory_space<vmem>>, %arg13: memref<1x256xf32, #tpu.memory_space<vmem>>, %arg14: memref<1x1x256xf32, #tpu.memory_space<vmem>>, %arg15: memref<18x16x192xbf16, #tpu.memory_space<vmem>>, %arg16: memref<10x8x192xbf16, #tpu.memory_space<vmem>>, %arg17: memref<10x8x384xbf16, #tpu.memory_space<vmem>>, %arg18: memref<6x4x384xbf16, #tpu.memory_space<vmem>>, %arg19: memref<6x4x768xbf16, #tpu.memory_space<vmem>>) attributes {dimension_semantics = [#tpu.dimension_semantics<parallel>], iteration_bounds = array<i64: 2>, scalar_prefetch = 0 : i64, scratch_operands = 5 : i64, tpu.core_type = #tpu.core_type<tc>, window_params = [{transform_indices = @transform_0, window_bounds = array<i64: 1, 256, 27>}, {pipeline_mode = #tpu.pipeline_mode<synchronous>, transform_indices = @transform_1, window_bounds = array<i64: 27, 64>}, {pipeline_mode = #tpu.pipeline_mode<synchronous>, transform_indices = @transform_2, window_bounds = array<i64: 1, 64>}, {pipeline_mode = #tpu.pipeline_mode<synchronous>, transform_indices = @transform_3, window_bounds = array<i64: 192, 192>}, {pipeline_mode = #tpu.pipeline_mode<synchronous>, transform_indices = @transform_4, window_bounds = array<i64: 1, 64>}, {pipeline_mode = #tpu.pipeline_mode<synchronous>, transform_indices = @transform_5, window_bounds = array<i64: 3, 192, 128>}, {pipeline_mode = #tpu.pipeline_mode<synchronous>, transform_indices = @transform_6, window_bounds = array<i64: 1, 128>}, {pipeline_mode = #tpu.pipeline_mode<synchronous>, transform_indices = @transform_7, window_bounds = array<i64: 3, 384, 128>}, {pipeline_mode = #tpu.pipeline_mode<synchronous>, transform_indices = @transform_8, window_bounds = array<i64: 1, 128>}, {pipeline_mode = #tpu.pipeline_mode<synchronous>, transform_indices = @transform_9, window_bounds = array<i64: 3, 384, 256>}, {pipeline_mode = #tpu.pipeline_mode<synchronous>, transform_indices = @transform_10, window_bounds = array<i64: 1, 256>}, {pipeline_mode = #tpu.pipeline_mode<synchronous>, transform_indices = @transform_11, window_bounds = array<i64: 3, 768, 256>}, {pipeline_mode = #tpu.pipeline_mode<synchronous>, transform_indices = @transform_12, window_bounds = array<i64: 1, 256>}, {transform_indices = @transform_13, window_bounds = array<i64: 1, 1, 256>}]} {
    %c0 = arith.constant 0 : index
    %c0_0 = arith.constant 0 : index
    %c0_1 = arith.constant 0 : index
    %0 = vector.load %arg1[%c0, %c0_0, %c0_1] : memref<1x256x27xbf16, #tpu.memory_space<vmem>>, vector<1x256x27xbf16>
    %1 = vector.shape_cast %0 : vector<1x256x27xbf16> to vector<256x27xbf16>
    %c0_2 = arith.constant 0 : index
    %c0_3 = arith.constant 0 : index
    %2 = vector.load %arg2[%c0_2, %c0_3] : memref<27x64xbf16, #tpu.memory_space<vmem>>, vector<27x64xbf16>
    %cst = arith.constant dense<0.000000e+00> : vector<256x64xf32>
    %3 = tpu.matmul %1, %2, %cst {dimension_numbers = #tpu.dot_dimension_numbers<[1], [0], [0], [1], [0, 0, 1, 1], [], []>} : vector<256x27xbf16>, vector<27x64xbf16>, vector<256x64xf32> -> vector<256x64xf32>
    %c0_4 = arith.constant 0 : index
    %c0_5 = arith.constant 0 : index
    %4 = vector.load %arg3[%c0_4, %c0_5] : memref<1x64xf32, #tpu.memory_space<vmem>>, vector<1x64xf32>
    %5 = vector.shape_cast %4 : vector<1x64xf32> to vector<64xf32>
    %6 = vector.shape_cast %5 : vector<64xf32> to vector<1x64xf32>
    %7 = vector.broadcast %6 : vector<1x64xf32> to vector<256x64xf32>
    %8 = arith.addf %3, %7 : vector<256x64xf32>
    %cst_6 = arith.constant 0.000000e+00 : f32
    %9 = vector.broadcast %cst_6 : f32 to vector<256x64xf32>
    %10 = arith.maximumf %8, %9 : vector<256x64xf32>
    %11 = vector.shape_cast %10 : vector<256x64xf32> to vector<16x16x64xf32>
    %12 = arith.truncf %11 : vector<16x16x64xf32> to vector<16x16x64xbf16>
    %cst_7 = arith.constant 0.000000e+00 : bf16
    %13 = vector.broadcast %cst_7 : bf16 to vector<16x1x64xbf16>
    %cst_8 = arith.constant 0.000000e+00 : bf16
    %14 = vector.broadcast %cst_8 : bf16 to vector<1x16x192xbf16>
    %c0_9 = arith.constant 0 : index
    %c0_10 = arith.constant 0 : index
    %c0_11 = arith.constant 0 : index
    %15 = vector.load %arg15[%c0_9, %c0_10, %c0_11] : memref<18x16x192xbf16, #tpu.memory_space<vmem>>, vector<1x16x192xbf16>
    tpu.vector_store %arg15[%c0_9, %c0_10, %c0_11], %14 {strides = array<i32>} : memref<18x16x192xbf16, #tpu.memory_space<vmem>>, vector<1x16x192xbf16>,
    %c17 = arith.constant 17 : index
    %c0_12 = arith.constant 0 : index
    %c0_13 = arith.constant 0 : index
    %16 = vector.load %arg15[%c17, %c0_12, %c0_13] : memref<18x16x192xbf16, #tpu.memory_space<vmem>>, vector<1x16x192xbf16>
    tpu.vector_store %arg15[%c17, %c0_12, %c0_13], %14 {strides = array<i32>} : memref<18x16x192xbf16, #tpu.memory_space<vmem>>, vector<1x16x192xbf16>,
    %17 = vector.extract_strided_slice %12 {offsets = [0, 0, 0], sizes = [16, 15, 64], strides = [1, 1, 1]} : vector<16x16x64xbf16> to vector<16x15x64xbf16>
    %18 = tpu.concatenate %13, %17 in 1 : vector<16x1x64xbf16>, vector<16x15x64xbf16> -> vector<16x16x64xbf16>
    %c1 = arith.constant 1 : index
    %c0_14 = arith.constant 0 : index
    %c0_15 = arith.constant 0 : index
    %19 = vector.load %arg15[%c1, %c0_14, %c0_15] : memref<18x16x192xbf16, #tpu.memory_space<vmem>>, vector<16x16x64xbf16>
    tpu.vector_store %arg15[%c1, %c0_14, %c0_15], %18 {strides = array<i32>} : memref<18x16x192xbf16, #tpu.memory_space<vmem>>, vector<16x16x64xbf16>,
    %c1_16 = arith.constant 1 : index
    %c0_17 = arith.constant 0 : index
    %c64 = arith.constant 64 : index
    %20 = vector.load %arg15[%c1_16, %c0_17, %c64] : memref<18x16x192xbf16, #tpu.memory_space<vmem>>, vector<16x16x64xbf16>
    tpu.vector_store %arg15[%c1_16, %c0_17, %c64], %12 {strides = array<i32>} : memref<18x16x192xbf16, #tpu.memory_space<vmem>>, vector<16x16x64xbf16>,
    %21 = vector.extract_strided_slice %12 {offsets = [0, 1, 0], sizes = [16, 15, 64], strides = [1, 1, 1]} : vector<16x16x64xbf16> to vector<16x15x64xbf16>
    %22 = tpu.concatenate %21, %13 in 1 : vector<16x15x64xbf16>, vector<16x1x64xbf16> -> vector<16x16x64xbf16>
    %c1_18 = arith.constant 1 : index
    %c0_19 = arith.constant 0 : index
    %c128 = arith.constant 128 : index
    %23 = vector.load %arg15[%c1_18, %c0_19, %c128] : memref<18x16x192xbf16, #tpu.memory_space<vmem>>, vector<16x16x64xbf16>
    tpu.vector_store %arg15[%c1_18, %c0_19, %c128], %22 {strides = array<i32>} : memref<18x16x192xbf16, #tpu.memory_space<vmem>>, vector<16x16x64xbf16>,
    %c0_20 = arith.constant 0 : index
    %c0_21 = arith.constant 0 : index
    %c0_22 = arith.constant 0 : index
    %24 = vector.load %arg15[%c0_20, %c0_21, %c0_22] : memref<18x16x192xbf16, #tpu.memory_space<vmem>>, vector<18x16x192xbf16>
    %25 = vector.shape_cast %24 : vector<18x16x192xbf16> to vector<288x192xbf16>
    %c0_23 = arith.constant 0 : index
    %c0_24 = arith.constant 0 : index
    %26 = vector.load %arg4[%c0_23, %c0_24] : memref<192x192xbf16, #tpu.memory_space<vmem>>, vector<192x192xbf16>
    %cst_25 = arith.constant dense<0.000000e+00> : vector<288x192xf32>
    %27 = tpu.matmul %25, %26, %cst_25 {dimension_numbers = #tpu.dot_dimension_numbers<[1], [0], [0], [1], [0, 0, 1, 1], [], []>} : vector<288x192xbf16>, vector<192x192xbf16>, vector<288x192xf32> -> vector<288x192xf32>
    %28 = vector.shape_cast %27 : vector<288x192xf32> to vector<18x16x192xf32>
    %29 = vector.extract_strided_slice %28 {offsets = [0, 0, 0], sizes = [16, 16, 64], strides = [1, 1, 1]} : vector<18x16x192xf32> to vector<16x16x64xf32>
    %30 = vector.extract_strided_slice %28 {offsets = [1, 0, 64], sizes = [16, 16, 64], strides = [1, 1, 1]} : vector<18x16x192xf32> to vector<16x16x64xf32>
    %31 = arith.addf %29, %30 : vector<16x16x64xf32>
    %32 = vector.extract_strided_slice %28 {offsets = [2, 0, 128], sizes = [16, 16, 64], strides = [1, 1, 1]} : vector<18x16x192xf32> to vector<16x16x64xf32>
    %33 = arith.addf %31, %32 : vector<16x16x64xf32>
    %c0_26 = arith.constant 0 : index
    %c0_27 = arith.constant 0 : index
    %34 = vector.load %arg5[%c0_26, %c0_27] : memref<1x64xf32, #tpu.memory_space<vmem>>, vector<1x64xf32>
    %35 = vector.shape_cast %34 : vector<1x64xf32> to vector<64xf32>
    %36 = vector.shape_cast %35 : vector<64xf32> to vector<1x1x64xf32>
    %37 = vector.broadcast %36 : vector<1x1x64xf32> to vector<16x16x64xf32>
    %38 = arith.addf %33, %37 : vector<16x16x64xf32>
    %cst_28 = arith.constant 0.000000e+00 : f32
    %39 = vector.broadcast %cst_28 : f32 to vector<16x16x64xf32>
    %40 = arith.maximumf %38, %39 : vector<16x16x64xf32>
    %41 = vector.shape_cast %40 : vector<16x16x64xf32> to vector<8x2x8x2x64xf32>
    %cst_29 = arith.constant dense<0xFF800000> : vector<8x8x64xf32>
    %42 = vector.multi_reduction <maximumf>, %41, %cst_29 [1, 3] : vector<8x2x8x2x64xf32> to vector<8x8x64xf32>
    %43 = arith.truncf %42 : vector<8x8x64xf32> to vector<8x8x64xbf16>
    %cst_30 = arith.constant 0.000000e+00 : bf16
    %44 = vector.broadcast %cst_30 : bf16 to vector<8x1x64xbf16>
    %cst_31 = arith.constant 0.000000e+00 : bf16
    %45 = vector.broadcast %cst_31 : bf16 to vector<1x8x192xbf16>
    %c0_32 = arith.constant 0 : index
    %c0_33 = arith.constant 0 : index
    %c0_34 = arith.constant 0 : index
    %46 = vector.load %arg16[%c0_32, %c0_33, %c0_34] : memref<10x8x192xbf16, #tpu.memory_space<vmem>>, vector<1x8x192xbf16>
    tpu.vector_store %arg16[%c0_32, %c0_33, %c0_34], %45 {strides = array<i32>} : memref<10x8x192xbf16, #tpu.memory_space<vmem>>, vector<1x8x192xbf16>,
    %c9 = arith.constant 9 : index
    %c0_35 = arith.constant 0 : index
    %c0_36 = arith.constant 0 : index
    %47 = vector.load %arg16[%c9, %c0_35, %c0_36] : memref<10x8x192xbf16, #tpu.memory_space<vmem>>, vector<1x8x192xbf16>
    tpu.vector_store %arg16[%c9, %c0_35, %c0_36], %45 {strides = array<i32>} : memref<10x8x192xbf16, #tpu.memory_space<vmem>>, vector<1x8x192xbf16>,
    %48 = vector.extract_strided_slice %43 {offsets = [0, 0, 0], sizes = [8, 7, 64], strides = [1, 1, 1]} : vector<8x8x64xbf16> to vector<8x7x64xbf16>
    %49 = tpu.concatenate %44, %48 in 1 : vector<8x1x64xbf16>, vector<8x7x64xbf16> -> vector<8x8x64xbf16>
    %c1_37 = arith.constant 1 : index
    %c0_38 = arith.constant 0 : index
    %c0_39 = arith.constant 0 : index
    %50 = vector.load %arg16[%c1_37, %c0_38, %c0_39] : memref<10x8x192xbf16, #tpu.memory_space<vmem>>, vector<8x8x64xbf16>
    tpu.vector_store %arg16[%c1_37, %c0_38, %c0_39], %49 {strides = array<i32>} : memref<10x8x192xbf16, #tpu.memory_space<vmem>>, vector<8x8x64xbf16>,
    %c1_40 = arith.constant 1 : index
    %c0_41 = arith.constant 0 : index
    %c64_42 = arith.constant 64 : index
    %51 = vector.load %arg16[%c1_40, %c0_41, %c64_42] : memref<10x8x192xbf16, #tpu.memory_space<vmem>>, vector<8x8x64xbf16>
    tpu.vector_store %arg16[%c1_40, %c0_41, %c64_42], %43 {strides = array<i32>} : memref<10x8x192xbf16, #tpu.memory_space<vmem>>, vector<8x8x64xbf16>,
    %52 = vector.extract_strided_slice %43 {offsets = [0, 1, 0], sizes = [8, 7, 64], strides = [1, 1, 1]} : vector<8x8x64xbf16> to vector<8x7x64xbf16>
    %53 = tpu.concatenate %52, %44 in 1 : vector<8x7x64xbf16>, vector<8x1x64xbf16> -> vector<8x8x64xbf16>
    %c1_43 = arith.constant 1 : index
    %c0_44 = arith.constant 0 : index
    %c128_45 = arith.constant 128 : index
    %54 = vector.load %arg16[%c1_43, %c0_44, %c128_45] : memref<10x8x192xbf16, #tpu.memory_space<vmem>>, vector<8x8x64xbf16>
    tpu.vector_store %arg16[%c1_43, %c0_44, %c128_45], %53 {strides = array<i32>} : memref<10x8x192xbf16, #tpu.memory_space<vmem>>, vector<8x8x64xbf16>,
    %cst_46 = arith.constant 0.000000e+00 : f32
    %55 = vector.broadcast %cst_46 : f32 to vector<64x128xf32>
    %c0_47 = arith.constant 0 : index
    %c0_48 = arith.constant 0 : index
    %c0_49 = arith.constant 0 : index
    %56 = vector.load %arg16[%c0_47, %c0_48, %c0_49] : memref<10x8x192xbf16, #tpu.memory_space<vmem>>, vector<8x8x192xbf16>
    %57 = vector.shape_cast %56 : vector<8x8x192xbf16> to vector<64x192xbf16>
    %c0_50 = arith.constant 0 : index
    %c0_51 = arith.constant 0 : index
    %c0_52 = arith.constant 0 : index
    %58 = vector.load %arg6[%c0_50, %c0_51, %c0_52] : memref<3x192x128xbf16, #tpu.memory_space<vmem>>, vector<1x192x128xbf16>
    %59 = vector.shape_cast %58 : vector<1x192x128xbf16> to vector<192x128xbf16>
    %cst_53 = arith.constant dense<0.000000e+00> : vector<64x128xf32>
    %60 = tpu.matmul %57, %59, %cst_53 {dimension_numbers = #tpu.dot_dimension_numbers<[1], [0], [0], [1], [0, 0, 1, 1], [], []>} : vector<64x192xbf16>, vector<192x128xbf16>, vector<64x128xf32> -> vector<64x128xf32>
    %61 = arith.addf %55, %60 : vector<64x128xf32>
    %c1_54 = arith.constant 1 : index
    %c0_55 = arith.constant 0 : index
    %c0_56 = arith.constant 0 : index
    %62 = vector.load %arg16[%c1_54, %c0_55, %c0_56] : memref<10x8x192xbf16, #tpu.memory_space<vmem>>, vector<8x8x192xbf16>
    %63 = vector.shape_cast %62 : vector<8x8x192xbf16> to vector<64x192xbf16>
    %c1_57 = arith.constant 1 : index
    %c0_58 = arith.constant 0 : index
    %c0_59 = arith.constant 0 : index
    %64 = vector.load %arg6[%c1_57, %c0_58, %c0_59] : memref<3x192x128xbf16, #tpu.memory_space<vmem>>, vector<1x192x128xbf16>
    %65 = vector.shape_cast %64 : vector<1x192x128xbf16> to vector<192x128xbf16>
    %cst_60 = arith.constant dense<0.000000e+00> : vector<64x128xf32>
    %66 = tpu.matmul %63, %65, %cst_60 {dimension_numbers = #tpu.dot_dimension_numbers<[1], [0], [0], [1], [0, 0, 1, 1], [], []>} : vector<64x192xbf16>, vector<192x128xbf16>, vector<64x128xf32> -> vector<64x128xf32>
    %67 = arith.addf %61, %66 : vector<64x128xf32>
    %c2 = arith.constant 2 : index
    %c0_61 = arith.constant 0 : index
    %c0_62 = arith.constant 0 : index
    %68 = vector.load %arg16[%c2, %c0_61, %c0_62] : memref<10x8x192xbf16, #tpu.memory_space<vmem>>, vector<8x8x192xbf16>
    %69 = vector.shape_cast %68 : vector<8x8x192xbf16> to vector<64x192xbf16>
    %c2_63 = arith.constant 2 : index
    %c0_64 = arith.constant 0 : index
    %c0_65 = arith.constant 0 : index
    %70 = vector.load %arg6[%c2_63, %c0_64, %c0_65] : memref<3x192x128xbf16, #tpu.memory_space<vmem>>, vector<1x192x128xbf16>
    %71 = vector.shape_cast %70 : vector<1x192x128xbf16> to vector<192x128xbf16>
    %cst_66 = arith.constant dense<0.000000e+00> : vector<64x128xf32>
    %72 = tpu.matmul %69, %71, %cst_66 {dimension_numbers = #tpu.dot_dimension_numbers<[1], [0], [0], [1], [0, 0, 1, 1], [], []>} : vector<64x192xbf16>, vector<192x128xbf16>, vector<64x128xf32> -> vector<64x128xf32>
    %73 = arith.addf %67, %72 : vector<64x128xf32>
    %c0_67 = arith.constant 0 : index
    %c0_68 = arith.constant 0 : index
    %74 = vector.load %arg7[%c0_67, %c0_68] : memref<1x128xf32, #tpu.memory_space<vmem>>, vector<1x128xf32>
    %75 = vector.shape_cast %74 : vector<1x128xf32> to vector<128xf32>
    %76 = vector.shape_cast %75 : vector<128xf32> to vector<1x128xf32>
    %77 = vector.broadcast %76 : vector<1x128xf32> to vector<64x128xf32>
    %78 = arith.addf %73, %77 : vector<64x128xf32>
    %cst_69 = arith.constant 0.000000e+00 : f32
    %79 = vector.broadcast %cst_69 : f32 to vector<64x128xf32>
    %80 = arith.maximumf %78, %79 : vector<64x128xf32>
    %81 = vector.shape_cast %80 : vector<64x128xf32> to vector<8x8x128xf32>
    %82 = arith.truncf %81 : vector<8x8x128xf32> to vector<8x8x128xbf16>
    %cst_70 = arith.constant 0.000000e+00 : bf16
    %83 = vector.broadcast %cst_70 : bf16 to vector<8x1x128xbf16>
    %cst_71 = arith.constant 0.000000e+00 : bf16
    %84 = vector.broadcast %cst_71 : bf16 to vector<1x8x384xbf16>
    %c0_72 = arith.constant 0 : index
    %c0_73 = arith.constant 0 : index
    %c0_74 = arith.constant 0 : index
    %85 = vector.load %arg17[%c0_72, %c0_73, %c0_74] : memref<10x8x384xbf16, #tpu.memory_space<vmem>>, vector<1x8x384xbf16>
    tpu.vector_store %arg17[%c0_72, %c0_73, %c0_74], %84 {strides = array<i32>} : memref<10x8x384xbf16, #tpu.memory_space<vmem>>, vector<1x8x384xbf16>,
    %c9_75 = arith.constant 9 : index
    %c0_76 = arith.constant 0 : index
    %c0_77 = arith.constant 0 : index
    %86 = vector.load %arg17[%c9_75, %c0_76, %c0_77] : memref<10x8x384xbf16, #tpu.memory_space<vmem>>, vector<1x8x384xbf16>
    tpu.vector_store %arg17[%c9_75, %c0_76, %c0_77], %84 {strides = array<i32>} : memref<10x8x384xbf16, #tpu.memory_space<vmem>>, vector<1x8x384xbf16>,
    %87 = vector.extract_strided_slice %82 {offsets = [0, 0, 0], sizes = [8, 7, 128], strides = [1, 1, 1]} : vector<8x8x128xbf16> to vector<8x7x128xbf16>
    %88 = tpu.concatenate %83, %87 in 1 : vector<8x1x128xbf16>, vector<8x7x128xbf16> -> vector<8x8x128xbf16>
    %c1_78 = arith.constant 1 : index
    %c0_79 = arith.constant 0 : index
    %c0_80 = arith.constant 0 : index
    %89 = vector.load %arg17[%c1_78, %c0_79, %c0_80] : memref<10x8x384xbf16, #tpu.memory_space<vmem>>, vector<8x8x128xbf16>
    tpu.vector_store %arg17[%c1_78, %c0_79, %c0_80], %88 {strides = array<i32>} : memref<10x8x384xbf16, #tpu.memory_space<vmem>>, vector<8x8x128xbf16>,
    %c1_81 = arith.constant 1 : index
    %c0_82 = arith.constant 0 : index
    %c128_83 = arith.constant 128 : index
    %90 = vector.load %arg17[%c1_81, %c0_82, %c128_83] : memref<10x8x384xbf16, #tpu.memory_space<vmem>>, vector<8x8x128xbf16>
    tpu.vector_store %arg17[%c1_81, %c0_82, %c128_83], %82 {strides = array<i32>} : memref<10x8x384xbf16, #tpu.memory_space<vmem>>, vector<8x8x128xbf16>,
    %91 = vector.extract_strided_slice %82 {offsets = [0, 1, 0], sizes = [8, 7, 128], strides = [1, 1, 1]} : vector<8x8x128xbf16> to vector<8x7x128xbf16>
    %92 = tpu.concatenate %91, %83 in 1 : vector<8x7x128xbf16>, vector<8x1x128xbf16> -> vector<8x8x128xbf16>
    %c1_84 = arith.constant 1 : index
    %c0_85 = arith.constant 0 : index
    %c256 = arith.constant 256 : index
    %93 = vector.load %arg17[%c1_84, %c0_85, %c256] : memref<10x8x384xbf16, #tpu.memory_space<vmem>>, vector<8x8x128xbf16>
    tpu.vector_store %arg17[%c1_84, %c0_85, %c256], %92 {strides = array<i32>} : memref<10x8x384xbf16, #tpu.memory_space<vmem>>, vector<8x8x128xbf16>,
    %cst_86 = arith.constant 0.000000e+00 : f32
    %94 = vector.broadcast %cst_86 : f32 to vector<64x128xf32>
    %c0_87 = arith.constant 0 : index
    %c0_88 = arith.constant 0 : index
    %c0_89 = arith.constant 0 : index
    %95 = vector.load %arg17[%c0_87, %c0_88, %c0_89] : memref<10x8x384xbf16, #tpu.memory_space<vmem>>, vector<8x8x384xbf16>
    %96 = vector.shape_cast %95 : vector<8x8x384xbf16> to vector<64x384xbf16>
    %c0_90 = arith.constant 0 : index
    %c0_91 = arith.constant 0 : index
    %c0_92 = arith.constant 0 : index
    %97 = vector.load %arg8[%c0_90, %c0_91, %c0_92] : memref<3x384x128xbf16, #tpu.memory_space<vmem>>, vector<1x384x128xbf16>
    %98 = vector.shape_cast %97 : vector<1x384x128xbf16> to vector<384x128xbf16>
    %cst_93 = arith.constant dense<0.000000e+00> : vector<64x128xf32>
    %99 = tpu.matmul %96, %98, %cst_93 {dimension_numbers = #tpu.dot_dimension_numbers<[1], [0], [0], [1], [0, 0, 1, 1], [], []>} : vector<64x384xbf16>, vector<384x128xbf16>, vector<64x128xf32> -> vector<64x128xf32>
    %100 = arith.addf %94, %99 : vector<64x128xf32>
    %c1_94 = arith.constant 1 : index
    %c0_95 = arith.constant 0 : index
    %c0_96 = arith.constant 0 : index
    %101 = vector.load %arg17[%c1_94, %c0_95, %c0_96] : memref<10x8x384xbf16, #tpu.memory_space<vmem>>, vector<8x8x384xbf16>
    %102 = vector.shape_cast %101 : vector<8x8x384xbf16> to vector<64x384xbf16>
    %c1_97 = arith.constant 1 : index
    %c0_98 = arith.constant 0 : index
    %c0_99 = arith.constant 0 : index
    %103 = vector.load %arg8[%c1_97, %c0_98, %c0_99] : memref<3x384x128xbf16, #tpu.memory_space<vmem>>, vector<1x384x128xbf16>
    %104 = vector.shape_cast %103 : vector<1x384x128xbf16> to vector<384x128xbf16>
    %cst_100 = arith.constant dense<0.000000e+00> : vector<64x128xf32>
    %105 = tpu.matmul %102, %104, %cst_100 {dimension_numbers = #tpu.dot_dimension_numbers<[1], [0], [0], [1], [0, 0, 1, 1], [], []>} : vector<64x384xbf16>, vector<384x128xbf16>, vector<64x128xf32> -> vector<64x128xf32>
    %106 = arith.addf %100, %105 : vector<64x128xf32>
    %c2_101 = arith.constant 2 : index
    %c0_102 = arith.constant 0 : index
    %c0_103 = arith.constant 0 : index
    %107 = vector.load %arg17[%c2_101, %c0_102, %c0_103] : memref<10x8x384xbf16, #tpu.memory_space<vmem>>, vector<8x8x384xbf16>
    %108 = vector.shape_cast %107 : vector<8x8x384xbf16> to vector<64x384xbf16>
    %c2_104 = arith.constant 2 : index
    %c0_105 = arith.constant 0 : index
    %c0_106 = arith.constant 0 : index
    %109 = vector.load %arg8[%c2_104, %c0_105, %c0_106] : memref<3x384x128xbf16, #tpu.memory_space<vmem>>, vector<1x384x128xbf16>
    %110 = vector.shape_cast %109 : vector<1x384x128xbf16> to vector<384x128xbf16>
    %cst_107 = arith.constant dense<0.000000e+00> : vector<64x128xf32>
    %111 = tpu.matmul %108, %110, %cst_107 {dimension_numbers = #tpu.dot_dimension_numbers<[1], [0], [0], [1], [0, 0, 1, 1], [], []>} : vector<64x384xbf16>, vector<384x128xbf16>, vector<64x128xf32> -> vector<64x128xf32>
    %112 = arith.addf %106, %111 : vector<64x128xf32>
    %c0_108 = arith.constant 0 : index
    %c0_109 = arith.constant 0 : index
    %113 = vector.load %arg9[%c0_108, %c0_109] : memref<1x128xf32, #tpu.memory_space<vmem>>, vector<1x128xf32>
    %114 = vector.shape_cast %113 : vector<1x128xf32> to vector<128xf32>
    %115 = vector.shape_cast %114 : vector<128xf32> to vector<1x128xf32>
    %116 = vector.broadcast %115 : vector<1x128xf32> to vector<64x128xf32>
    %117 = arith.addf %112, %116 : vector<64x128xf32>
    %cst_110 = arith.constant 0.000000e+00 : f32
    %118 = vector.broadcast %cst_110 : f32 to vector<64x128xf32>
    %119 = arith.maximumf %117, %118 : vector<64x128xf32>
    %120 = vector.shape_cast %119 : vector<64x128xf32> to vector<8x8x128xf32>
    %121 = vector.shape_cast %120 : vector<8x8x128xf32> to vector<4x2x4x2x128xf32>
    %cst_111 = arith.constant dense<0xFF800000> : vector<4x4x128xf32>
    %122 = vector.multi_reduction <maximumf>, %121, %cst_111 [1, 3] : vector<4x2x4x2x128xf32> to vector<4x4x128xf32>
    %123 = arith.truncf %122 : vector<4x4x128xf32> to vector<4x4x128xbf16>
    %cst_112 = arith.constant 0.000000e+00 : bf16
    %124 = vector.broadcast %cst_112 : bf16 to vector<4x1x128xbf16>
    %cst_113 = arith.constant 0.000000e+00 : bf16
    %125 = vector.broadcast %cst_113 : bf16 to vector<1x4x384xbf16>
    %c0_114 = arith.constant 0 : index
    %c0_115 = arith.constant 0 : index
    %c0_116 = arith.constant 0 : index
    %126 = vector.load %arg18[%c0_114, %c0_115, %c0_116] : memref<6x4x384xbf16, #tpu.memory_space<vmem>>, vector<1x4x384xbf16>
    tpu.vector_store %arg18[%c0_114, %c0_115, %c0_116], %125 {strides = array<i32>} : memref<6x4x384xbf16, #tpu.memory_space<vmem>>, vector<1x4x384xbf16>,
    %c5 = arith.constant 5 : index
    %c0_117 = arith.constant 0 : index
    %c0_118 = arith.constant 0 : index
    %127 = vector.load %arg18[%c5, %c0_117, %c0_118] : memref<6x4x384xbf16, #tpu.memory_space<vmem>>, vector<1x4x384xbf16>
    tpu.vector_store %arg18[%c5, %c0_117, %c0_118], %125 {strides = array<i32>} : memref<6x4x384xbf16, #tpu.memory_space<vmem>>, vector<1x4x384xbf16>,
    %128 = vector.extract_strided_slice %123 {offsets = [0, 0, 0], sizes = [4, 3, 128], strides = [1, 1, 1]} : vector<4x4x128xbf16> to vector<4x3x128xbf16>
    %129 = tpu.concatenate %124, %128 in 1 : vector<4x1x128xbf16>, vector<4x3x128xbf16> -> vector<4x4x128xbf16>
    %c1_119 = arith.constant 1 : index
    %c0_120 = arith.constant 0 : index
    %c0_121 = arith.constant 0 : index
    %130 = vector.load %arg18[%c1_119, %c0_120, %c0_121] : memref<6x4x384xbf16, #tpu.memory_space<vmem>>, vector<4x4x128xbf16>
    tpu.vector_store %arg18[%c1_119, %c0_120, %c0_121], %129 {strides = array<i32>} : memref<6x4x384xbf16, #tpu.memory_space<vmem>>, vector<4x4x128xbf16>,
    %c1_122 = arith.constant 1 : index
    %c0_123 = arith.constant 0 : index
    %c128_124 = arith.constant 128 : index
    %131 = vector.load %arg18[%c1_122, %c0_123, %c128_124] : memref<6x4x384xbf16, #tpu.memory_space<vmem>>, vector<4x4x128xbf16>
    tpu.vector_store %arg18[%c1_122, %c0_123, %c128_124], %123 {strides = array<i32>} : memref<6x4x384xbf16, #tpu.memory_space<vmem>>, vector<4x4x128xbf16>,
    %132 = vector.extract_strided_slice %123 {offsets = [0, 1, 0], sizes = [4, 3, 128], strides = [1, 1, 1]} : vector<4x4x128xbf16> to vector<4x3x128xbf16>
    %133 = tpu.concatenate %132, %124 in 1 : vector<4x3x128xbf16>, vector<4x1x128xbf16> -> vector<4x4x128xbf16>
    %c1_125 = arith.constant 1 : index
    %c0_126 = arith.constant 0 : index
    %c256_127 = arith.constant 256 : index
    %134 = vector.load %arg18[%c1_125, %c0_126, %c256_127] : memref<6x4x384xbf16, #tpu.memory_space<vmem>>, vector<4x4x128xbf16>
    tpu.vector_store %arg18[%c1_125, %c0_126, %c256_127], %133 {strides = array<i32>} : memref<6x4x384xbf16, #tpu.memory_space<vmem>>, vector<4x4x128xbf16>,
    %cst_128 = arith.constant 0.000000e+00 : f32
    %135 = vector.broadcast %cst_128 : f32 to vector<16x256xf32>
    %c0_129 = arith.constant 0 : index
    %c0_130 = arith.constant 0 : index
    %c0_131 = arith.constant 0 : index
    %136 = vector.load %arg18[%c0_129, %c0_130, %c0_131] : memref<6x4x384xbf16, #tpu.memory_space<vmem>>, vector<4x4x384xbf16>
    %137 = vector.shape_cast %136 : vector<4x4x384xbf16> to vector<16x384xbf16>
    %c0_132 = arith.constant 0 : index
    %c0_133 = arith.constant 0 : index
    %c0_134 = arith.constant 0 : index
    %138 = vector.load %arg10[%c0_132, %c0_133, %c0_134] : memref<3x384x256xbf16, #tpu.memory_space<vmem>>, vector<1x384x256xbf16>
    %139 = vector.shape_cast %138 : vector<1x384x256xbf16> to vector<384x256xbf16>
    %cst_135 = arith.constant dense<0.000000e+00> : vector<16x256xf32>
    %140 = tpu.matmul %137, %139, %cst_135 {dimension_numbers = #tpu.dot_dimension_numbers<[1], [0], [0], [1], [0, 0, 1, 1], [], []>} : vector<16x384xbf16>, vector<384x256xbf16>, vector<16x256xf32> -> vector<16x256xf32>
    %141 = arith.addf %135, %140 : vector<16x256xf32>
    %c1_136 = arith.constant 1 : index
    %c0_137 = arith.constant 0 : index
    %c0_138 = arith.constant 0 : index
    %142 = vector.load %arg18[%c1_136, %c0_137, %c0_138] : memref<6x4x384xbf16, #tpu.memory_space<vmem>>, vector<4x4x384xbf16>
    %143 = vector.shape_cast %142 : vector<4x4x384xbf16> to vector<16x384xbf16>
    %c1_139 = arith.constant 1 : index
    %c0_140 = arith.constant 0 : index
    %c0_141 = arith.constant 0 : index
    %144 = vector.load %arg10[%c1_139, %c0_140, %c0_141] : memref<3x384x256xbf16, #tpu.memory_space<vmem>>, vector<1x384x256xbf16>
    %145 = vector.shape_cast %144 : vector<1x384x256xbf16> to vector<384x256xbf16>
    %cst_142 = arith.constant dense<0.000000e+00> : vector<16x256xf32>
    %146 = tpu.matmul %143, %145, %cst_142 {dimension_numbers = #tpu.dot_dimension_numbers<[1], [0], [0], [1], [0, 0, 1, 1], [], []>} : vector<16x384xbf16>, vector<384x256xbf16>, vector<16x256xf32> -> vector<16x256xf32>
    %147 = arith.addf %141, %146 : vector<16x256xf32>
    %c2_143 = arith.constant 2 : index
    %c0_144 = arith.constant 0 : index
    %c0_145 = arith.constant 0 : index
    %148 = vector.load %arg18[%c2_143, %c0_144, %c0_145] : memref<6x4x384xbf16, #tpu.memory_space<vmem>>, vector<4x4x384xbf16>
    %149 = vector.shape_cast %148 : vector<4x4x384xbf16> to vector<16x384xbf16>
    %c2_146 = arith.constant 2 : index
    %c0_147 = arith.constant 0 : index
    %c0_148 = arith.constant 0 : index
    %150 = vector.load %arg10[%c2_146, %c0_147, %c0_148] : memref<3x384x256xbf16, #tpu.memory_space<vmem>>, vector<1x384x256xbf16>
    %151 = vector.shape_cast %150 : vector<1x384x256xbf16> to vector<384x256xbf16>
    %cst_149 = arith.constant dense<0.000000e+00> : vector<16x256xf32>
    %152 = tpu.matmul %149, %151, %cst_149 {dimension_numbers = #tpu.dot_dimension_numbers<[1], [0], [0], [1], [0, 0, 1, 1], [], []>} : vector<16x384xbf16>, vector<384x256xbf16>, vector<16x256xf32> -> vector<16x256xf32>
    %153 = arith.addf %147, %152 : vector<16x256xf32>
    %c0_150 = arith.constant 0 : index
    %c0_151 = arith.constant 0 : index
    %154 = vector.load %arg11[%c0_150, %c0_151] : memref<1x256xf32, #tpu.memory_space<vmem>>, vector<1x256xf32>
    %155 = vector.shape_cast %154 : vector<1x256xf32> to vector<256xf32>
    %156 = vector.shape_cast %155 : vector<256xf32> to vector<1x256xf32>
    %157 = vector.broadcast %156 : vector<1x256xf32> to vector<16x256xf32>
    %158 = arith.addf %153, %157 : vector<16x256xf32>
    %cst_152 = arith.constant 0.000000e+00 : f32
    %159 = vector.broadcast %cst_152 : f32 to vector<16x256xf32>
    %160 = arith.maximumf %158, %159 : vector<16x256xf32>
    %161 = vector.shape_cast %160 : vector<16x256xf32> to vector<4x4x256xf32>
    %162 = arith.truncf %161 : vector<4x4x256xf32> to vector<4x4x256xbf16>
    %cst_153 = arith.constant 0.000000e+00 : bf16
    %163 = vector.broadcast %cst_153 : bf16 to vector<4x1x256xbf16>
    %cst_154 = arith.constant 0.000000e+00 : bf16
    %164 = vector.broadcast %cst_154 : bf16 to vector<1x4x768xbf16>
    %c0_155 = arith.constant 0 : index
    %c0_156 = arith.constant 0 : index
    %c0_157 = arith.constant 0 : index
    %165 = vector.load %arg19[%c0_155, %c0_156, %c0_157] : memref<6x4x768xbf16, #tpu.memory_space<vmem>>, vector<1x4x768xbf16>
    tpu.vector_store %arg19[%c0_155, %c0_156, %c0_157], %164 {strides = array<i32>} : memref<6x4x768xbf16, #tpu.memory_space<vmem>>, vector<1x4x768xbf16>,
    %c5_158 = arith.constant 5 : index
    %c0_159 = arith.constant 0 : index
    %c0_160 = arith.constant 0 : index
    %166 = vector.load %arg19[%c5_158, %c0_159, %c0_160] : memref<6x4x768xbf16, #tpu.memory_space<vmem>>, vector<1x4x768xbf16>
    tpu.vector_store %arg19[%c5_158, %c0_159, %c0_160], %164 {strides = array<i32>} : memref<6x4x768xbf16, #tpu.memory_space<vmem>>, vector<1x4x768xbf16>,
    %167 = vector.extract_strided_slice %162 {offsets = [0, 0, 0], sizes = [4, 3, 256], strides = [1, 1, 1]} : vector<4x4x256xbf16> to vector<4x3x256xbf16>
    %168 = tpu.concatenate %163, %167 in 1 : vector<4x1x256xbf16>, vector<4x3x256xbf16> -> vector<4x4x256xbf16>
    %c1_161 = arith.constant 1 : index
    %c0_162 = arith.constant 0 : index
    %c0_163 = arith.constant 0 : index
    %169 = vector.load %arg19[%c1_161, %c0_162, %c0_163] : memref<6x4x768xbf16, #tpu.memory_space<vmem>>, vector<4x4x256xbf16>
    tpu.vector_store %arg19[%c1_161, %c0_162, %c0_163], %168 {strides = array<i32>} : memref<6x4x768xbf16, #tpu.memory_space<vmem>>, vector<4x4x256xbf16>,
    %c1_164 = arith.constant 1 : index
    %c0_165 = arith.constant 0 : index
    %c256_166 = arith.constant 256 : index
    %170 = vector.load %arg19[%c1_164, %c0_165, %c256_166] : memref<6x4x768xbf16, #tpu.memory_space<vmem>>, vector<4x4x256xbf16>
    tpu.vector_store %arg19[%c1_164, %c0_165, %c256_166], %162 {strides = array<i32>} : memref<6x4x768xbf16, #tpu.memory_space<vmem>>, vector<4x4x256xbf16>,
    %171 = vector.extract_strided_slice %162 {offsets = [0, 1, 0], sizes = [4, 3, 256], strides = [1, 1, 1]} : vector<4x4x256xbf16> to vector<4x3x256xbf16>
    %172 = tpu.concatenate %171, %163 in 1 : vector<4x3x256xbf16>, vector<4x1x256xbf16> -> vector<4x4x256xbf16>
    %c1_167 = arith.constant 1 : index
    %c0_168 = arith.constant 0 : index
    %c512 = arith.constant 512 : index
    %173 = vector.load %arg19[%c1_167, %c0_168, %c512] : memref<6x4x768xbf16, #tpu.memory_space<vmem>>, vector<4x4x256xbf16>
    tpu.vector_store %arg19[%c1_167, %c0_168, %c512], %172 {strides = array<i32>} : memref<6x4x768xbf16, #tpu.memory_space<vmem>>, vector<4x4x256xbf16>,
    %cst_169 = arith.constant 0.000000e+00 : f32
    %174 = vector.broadcast %cst_169 : f32 to vector<16x256xf32>
    %c0_170 = arith.constant 0 : index
    %c0_171 = arith.constant 0 : index
    %c0_172 = arith.constant 0 : index
    %175 = vector.load %arg19[%c0_170, %c0_171, %c0_172] : memref<6x4x768xbf16, #tpu.memory_space<vmem>>, vector<4x4x768xbf16>
    %176 = vector.shape_cast %175 : vector<4x4x768xbf16> to vector<16x768xbf16>
    %c0_173 = arith.constant 0 : index
    %c0_174 = arith.constant 0 : index
    %c0_175 = arith.constant 0 : index
    %177 = vector.load %arg12[%c0_173, %c0_174, %c0_175] : memref<3x768x256xbf16, #tpu.memory_space<vmem>>, vector<1x768x256xbf16>
    %178 = vector.shape_cast %177 : vector<1x768x256xbf16> to vector<768x256xbf16>
    %cst_176 = arith.constant dense<0.000000e+00> : vector<16x256xf32>
    %179 = tpu.matmul %176, %178, %cst_176 {dimension_numbers = #tpu.dot_dimension_numbers<[1], [0], [0], [1], [0, 0, 1, 1], [], []>} : vector<16x768xbf16>, vector<768x256xbf16>, vector<16x256xf32> -> vector<16x256xf32>
    %180 = arith.addf %174, %179 : vector<16x256xf32>
    %c1_177 = arith.constant 1 : index
    %c0_178 = arith.constant 0 : index
    %c0_179 = arith.constant 0 : index
    %181 = vector.load %arg19[%c1_177, %c0_178, %c0_179] : memref<6x4x768xbf16, #tpu.memory_space<vmem>>, vector<4x4x768xbf16>
    %182 = vector.shape_cast %181 : vector<4x4x768xbf16> to vector<16x768xbf16>
    %c1_180 = arith.constant 1 : index
    %c0_181 = arith.constant 0 : index
    %c0_182 = arith.constant 0 : index
    %183 = vector.load %arg12[%c1_180, %c0_181, %c0_182] : memref<3x768x256xbf16, #tpu.memory_space<vmem>>, vector<1x768x256xbf16>
    %184 = vector.shape_cast %183 : vector<1x768x256xbf16> to vector<768x256xbf16>
    %cst_183 = arith.constant dense<0.000000e+00> : vector<16x256xf32>
    %185 = tpu.matmul %182, %184, %cst_183 {dimension_numbers = #tpu.dot_dimension_numbers<[1], [0], [0], [1], [0, 0, 1, 1], [], []>} : vector<16x768xbf16>, vector<768x256xbf16>, vector<16x256xf32> -> vector<16x256xf32>
    %186 = arith.addf %180, %185 : vector<16x256xf32>
    %c2_184 = arith.constant 2 : index
    %c0_185 = arith.constant 0 : index
    %c0_186 = arith.constant 0 : index
    %187 = vector.load %arg19[%c2_184, %c0_185, %c0_186] : memref<6x4x768xbf16, #tpu.memory_space<vmem>>, vector<4x4x768xbf16>
    %188 = vector.shape_cast %187 : vector<4x4x768xbf16> to vector<16x768xbf16>
    %c2_187 = arith.constant 2 : index
    %c0_188 = arith.constant 0 : index
    %c0_189 = arith.constant 0 : index
    %189 = vector.load %arg12[%c2_187, %c0_188, %c0_189] : memref<3x768x256xbf16, #tpu.memory_space<vmem>>, vector<1x768x256xbf16>
    %190 = vector.shape_cast %189 : vector<1x768x256xbf16> to vector<768x256xbf16>
    %cst_190 = arith.constant dense<0.000000e+00> : vector<16x256xf32>
    %191 = tpu.matmul %188, %190, %cst_190 {dimension_numbers = #tpu.dot_dimension_numbers<[1], [0], [0], [1], [0, 0, 1, 1], [], []>} : vector<16x768xbf16>, vector<768x256xbf16>, vector<16x256xf32> -> vector<16x256xf32>
    %192 = arith.addf %186, %191 : vector<16x256xf32>
    %c0_191 = arith.constant 0 : index
    %c0_192 = arith.constant 0 : index
    %193 = vector.load %arg13[%c0_191, %c0_192] : memref<1x256xf32, #tpu.memory_space<vmem>>, vector<1x256xf32>
    %194 = vector.shape_cast %193 : vector<1x256xf32> to vector<256xf32>
    %195 = vector.shape_cast %194 : vector<256xf32> to vector<1x256xf32>
    %196 = vector.broadcast %195 : vector<1x256xf32> to vector<16x256xf32>
    %197 = arith.addf %192, %196 : vector<16x256xf32>
    %cst_193 = arith.constant 0.000000e+00 : f32
    %198 = vector.broadcast %cst_193 : f32 to vector<16x256xf32>
    %199 = arith.maximumf %197, %198 : vector<16x256xf32>
    %200 = vector.shape_cast %199 : vector<16x256xf32> to vector<4x4x256xf32>
    %cst_194 = arith.constant dense<0xFF800000> : vector<256xf32>
    %201 = vector.multi_reduction <maximumf>, %200, %cst_194 [0, 1] : vector<4x4x256xf32> to vector<256xf32>
    %202 = vector.shape_cast %201 : vector<256xf32> to vector<1x1x256xf32>
    %c0_195 = arith.constant 0 : index
    %c0_196 = arith.constant 0 : index
    %c0_197 = arith.constant 0 : index
    %203 = vector.load %arg14[%c0_195, %c0_196, %c0_197] : memref<1x1x256xf32, #tpu.memory_space<vmem>>, vector<1x1x256xf32>
    tpu.vector_store %arg14[%c0_195, %c0_196, %c0_197], %202 {strides = array<i32>} : memref<1x1x256xf32, #tpu.memory_space<vmem>>, vector<1x1x256xf32>,
    return
  }
  func.func @transform_0(%arg0: i32) -> (i32, i32, i32) {
    %c0_i32 = arith.constant 0 : i32
    %c0_i32_0 = arith.constant 0 : i32
    %c0_i32_1 = arith.constant 0 : i32
    return %arg0, %c0_i32, %c0_i32_0 : i32, i32, i32
  }
  func.func @transform_1(%arg0: i32) -> (i32, i32) {
    %c0_i32 = arith.constant 0 : i32
    %c0_i32_0 = arith.constant 0 : i32
    %c0_i32_1 = arith.constant 0 : i32
    return %c0_i32, %c0_i32_0 : i32, i32
  }
  func.func @transform_2(%arg0: i32) -> (i32, i32) {
    %c0_i32 = arith.constant 0 : i32
    %c0_i32_0 = arith.constant 0 : i32
    %c0_i32_1 = arith.constant 0 : i32
    return %c0_i32, %c0_i32_0 : i32, i32
  }
  func.func @transform_3(%arg0: i32) -> (i32, i32) {
    %c0_i32 = arith.constant 0 : i32
    %c0_i32_0 = arith.constant 0 : i32
    %c0_i32_1 = arith.constant 0 : i32
    return %c0_i32, %c0_i32_0 : i32, i32
  }
  func.func @transform_4(%arg0: i32) -> (i32, i32) {
    %c0_i32 = arith.constant 0 : i32
    %c0_i32_0 = arith.constant 0 : i32
    %c0_i32_1 = arith.constant 0 : i32
    return %c0_i32, %c0_i32_0 : i32, i32
  }
  func.func @transform_5(%arg0: i32) -> (i32, i32, i32) {
    %c0_i32 = arith.constant 0 : i32
    %c0_i32_0 = arith.constant 0 : i32
    %c0_i32_1 = arith.constant 0 : i32
    %c0_i32_2 = arith.constant 0 : i32
    return %c0_i32, %c0_i32_0, %c0_i32_1 : i32, i32, i32
  }
  func.func @transform_6(%arg0: i32) -> (i32, i32) {
    %c0_i32 = arith.constant 0 : i32
    %c0_i32_0 = arith.constant 0 : i32
    %c0_i32_1 = arith.constant 0 : i32
    return %c0_i32, %c0_i32_0 : i32, i32
  }
  func.func @transform_7(%arg0: i32) -> (i32, i32, i32) {
    %c0_i32 = arith.constant 0 : i32
    %c0_i32_0 = arith.constant 0 : i32
    %c0_i32_1 = arith.constant 0 : i32
    %c0_i32_2 = arith.constant 0 : i32
    return %c0_i32, %c0_i32_0, %c0_i32_1 : i32, i32, i32
  }
  func.func @transform_8(%arg0: i32) -> (i32, i32) {
    %c0_i32 = arith.constant 0 : i32
    %c0_i32_0 = arith.constant 0 : i32
    %c0_i32_1 = arith.constant 0 : i32
    return %c0_i32, %c0_i32_0 : i32, i32
  }
  func.func @transform_9(%arg0: i32) -> (i32, i32, i32) {
    %c0_i32 = arith.constant 0 : i32
    %c0_i32_0 = arith.constant 0 : i32
    %c0_i32_1 = arith.constant 0 : i32
    %c0_i32_2 = arith.constant 0 : i32
    return %c0_i32, %c0_i32_0, %c0_i32_1 : i32, i32, i32
  }
  func.func @transform_10(%arg0: i32) -> (i32, i32) {
    %c0_i32 = arith.constant 0 : i32
    %c0_i32_0 = arith.constant 0 : i32
    %c0_i32_1 = arith.constant 0 : i32
    return %c0_i32, %c0_i32_0 : i32, i32
  }
  func.func @transform_11(%arg0: i32) -> (i32, i32, i32) {
    %c0_i32 = arith.constant 0 : i32
    %c0_i32_0 = arith.constant 0 : i32
    %c0_i32_1 = arith.constant 0 : i32
    %c0_i32_2 = arith.constant 0 : i32
    return %c0_i32, %c0_i32_0, %c0_i32_1 : i32, i32, i32
  }
  func.func @transform_12(%arg0: i32) -> (i32, i32) {
    %c0_i32 = arith.constant 0 : i32
    %c0_i32_0 = arith.constant 0 : i32
    %c0_i32_1 = arith.constant 0 : i32
    return %c0_i32, %c0_i32_0 : i32, i32
  }
  func.func @transform_13(%arg0: i32) -> (i32, i32, i32) {
    %c0_i32 = arith.constant 0 : i32
    %c0_i32_0 = arith.constant 0 : i32
    %c0_i32_1 = arith.constant 0 : i32
    return %arg0, %c0_i32, %c0_i32_0 : i32, i32, i32
  }
}

</mosaic_0001>

<bundles_post_ra>
// kernel: tpu_custom_call.1
= control target key start
LH: loop header
LB: loop body
LE: loop exit
PB: predicated region body
PF: predicated region fallthrough
CT: control target
= control target key end

     0   :  { %s16310_s0 = inlined_call_operand.vmem [shape: bf16[2,256,27], index: 0, kind: input, shape index: {}]   ;;  %s16311_s1 = inlined_call_operand.hbm [shape: bf16[27,64], index: 1, kind: input, shape index: {}]   ;;  %s16312_s2 = inlined_call_operand.hbm [shape: f32[1,64], index: 2, kind: input, shape index: {}]   ;;  %s16313_s3 = inlined_call_operand.hbm [shape: bf16[192,192], index: 3, kind: input, shape index: {}]   ;;  %s16314_s4 = inlined_call_operand.hbm [shape: f32[1,64], index: 4, kind: input, shape index: {}]   ;;  %s16315_s5 = inlined_call_operand.hbm [shape: bf16[3,192,128], index: 5, kind: input, shape index: {}]   ;;  %s16316_s6 = inlined_call_operand.hbm [shape: f32[1,128], index: 6, kind: input, shape index: {}]   ;;  %s16317_s7 = inlined_call_operand.hbm [shape: bf16[3,384,128], index: 7, kind: input, shape index: {}]   ;;  %s16318_s8 = inlined_call_operand.hbm [shape: f32[1,128], index: 8, kind: input, shape index: {}]   ;;  %s16319_s9 = inlined_call_operand.hbm [shape: bf16[3,384,256], index: 9, kind: input, shape index: {}]   ;;  %s16320_s10 = inlined_call_operand.hbm [shape: f32[1,256], index: 10, kind: input, shape index: {}]   ;;  %s16321_s11 = inlined_call_operand.hbm [shape: bf16[3,768,256], index: 11, kind: input, shape index: {}]   ;;  %s16322_s12 = inlined_call_operand.hbm [shape: f32[1,256], index: 12, kind: input, shape index: {}]   ;;  %s16323_s13 = inlined_call_operand.hbm [shape: f32[2,1,256], index: 13, kind: output, shape index: {}]  }
   0x1   :  { %16376 = sst [smem:[#allocation80_spill]] %s16311_s1 }
   0x2   :  { %16377 = sst [smem:[#allocation81_spill]] %s16312_s2 }
   0x3   :  { %16378 = sst [smem:[#allocation82_spill]] %s16314_s4 }
   0x4   :  { %16379 = sst [smem:[#allocation83_spill]] %s16316_s6 }
   0x5   :  { %16380 = sst [smem:[#allocation84_spill]] %s16323_s13 }
   0x6   :  { %18 = vsyncpa [#allocation8], 0 }
   0x7   :  { %19 = vsyncpa [#allocation11], 0 }
   0x8   :  { %20 = vsyncpa [#allocation14], 0 }
   0x9   :  { %21 = vsyncpa [#allocation17], 0 }
   0xa   :  { %22 = vsyncpa [#allocation20], 0 }
   0xb   :  { %23 = vsyncpa [#allocation23], 0 }
   0xc   :  { %24 = vsyncpa [#allocation26], 0 }
   0xd   :  { %25 = vsyncpa [#allocation9], 0 }
   0xe   :  { %27 = vsyncpa [#allocation9 + $0x1], 0  ;;  %s13740_s25 = smov 0   ;;  %s13742_s26 = smov 0  }
   0xf   :  { %s13744_s27 = smov 0   ;;  %s13746_s28 = smov 0  }
  0x10 LB: > { %16381 = sst [smem:[#allocation36_spill]] %s13634_s25  ;;  %s13761_s29 = sadd.s32 4294967295, %s13646_s28   ;;  %s13646_s28 = sphi %s13746_s28, %s16540_s28   ;;  %s13642_s27 = sphi %s13744_s27, %s16542_s27   ;;  %s13638_s26 = sphi %s13742_s26, %s16544_s26   ;;  %s13634_s25 = sphi %s13740_s25, %s16543_s25  }
  0x11   : > { %16382 = sst [smem:[#allocation37_spill]] %s13642_s27  ;;  %s10910_s30 = sadd.s32 4294967294, %s13646_s28  }
  0x12   : > { %16383 = sst [smem:[#allocation38_spill]] %s13646_s28  ;;  %s13765_s14 = sadd.s32 1, %s13646_s28  }
  0x13   : > { %16384 = sst [smem:[#allocation39_spill]] %s13765_s14  ;;  %s318_s15 = sadd.s32 1, %s13642_s27 }
  0x14   : > { %s315_s16 = ssub.s32 %s13646_s28, %s13765_s14  ;;  %p328_p0 = scmp.ne.s32.totalorder %s13642_s27, %s13638_s26 }
  0x15   : > { %p316_p1 = scmp.eq.s32.totalorder %s315_s16, 0  ;;  %p329_p2 = scmp.eq.s32.totalorder %s13761_s29, 1 }
  0x16   : > { %p334_p3 = scmp.ne.s32.totalorder %s13638_s26, %s13634_s25  ;;  %p335_p4 = scmp.eq.s32.totalorder %s10910_s30, 1 }
  0x17   : > { %s13776_s17 = scalar_select %p316_p1, %s13642_s27, %s318_s15  }
  0x18   : > { %p13778_p5 = por %p329_p2, %p328_p0  ;;  %p13782_p6 = por %p335_p4, %p334_p3 }
  0x19   : > { %16385 = sst [smem:[#allocation40_spill]] %s13776_s17  ;;  %p10911_p7 = scmp.ge.s32.totalorder %s13646_s28, 1 }
  0x1a   : > { %s16386_s18 = scalar_select %p13778_p5, 1, 0 }
  0x1b   : > { %s16387_s19 = scalar_select %p13782_p6, 1, 0 }
  0x1c   : > { %p342_p8 = scmp.lt.s32.totalorder %s13646_s28, 3  ;;  %p16329_p9 = scmp.eq.s32.totalorder %s13761_s29, 0 }
  0x1d   : > { %16388 = sst [smem:[#allocation41_spill]] %s16387_s19  ;;  %s13648_s21 = smov [#allocation10]  }
  0x1e   : > { %p13789_p10 = pnand %p10911_p7, %p342_p8  ;;  %s368_s22 = sshll.u32 %s13648_s21, 4  ;;  %s369_s22 = int_to_ptr.vmem [resolvable:$true] %s368_s22 }
  0x1f   : > { %s13649_s23 = smov [#allocation13]   ;;  %s13650_s15 = smov [#allocation16]  }
  0x20   : > { %s16389_s20 = scalar_select %p13789_p10, 1, 0 }
  0x21   : > { %p12220_p11 = pneg %p13789_p10  ;;  %s392_s24 = sshll.u32 %s13649_s23, 4  ;;  %s13801_s24 = int_to_ptr.vmem [resolvable:$true] %s392_s24 }
  0x22   : > { %s416_s16 = sshll.u32 %s13650_s15, 4  ;;  %s16391_s2 = sld [smem:[#allocation81_spill]]  ;;  %s13803_s16 = int_to_ptr.vmem [resolvable:$true] %s416_s16 }
  0x23   : > { %p13797_p12 = pnand %p16329_p9, %p12220_p11 }
  0x25   : > { %p13813_p0 = pneg %p13797_p12 }
  0x28   : > { %s13220_s21 = scalar_lea.hbm %s16391_s2, 16 }
  0x29   : > { %p13221_p13 = scmp.ne.s32.totalorder %s16391_s2, %s13220_s21  ;;  %p13227_p3 = scmp.lt.u32.totalorder %s13220_s21, %s16391_s2 }
  0x2b   : > { %p13223_p1 = pnand %p13813_p0, %p13221_p13 }
  0x2d   : > { %p13224_p2 = pneg %p13223_p1 }
  0x2f   : > { %p13229_p4 = pnand %p13227_p3, %p13224_p2 }
  0x31   : > { %13232 = shalt.err (!%p13229_p4)
}
  0x32   : > { %s13233_s27 = scalar_lea.vmem %s369_s22, 16  ;;  %s13240_s14 = scalar_lea.vmem %s369_s22, 32 }
  0x33   : > { %p13234_p7 = scmp.ne.s32.totalorder %s369_s22, %s13233_s27  ;;  %p13241_p9 = scmp.lt.s32.totalorder %s369_s22, %s369_s22 }
  0x34   : > { %p13242_p6 = scmp.lt.s32.totalorder %s13240_s14, %s13233_s27 }
  0x35   : > { %p13236_p8 = pnand %p13234_p7, %p13813_p0 }
  0x36   : > { %p13243_p5 = por %p13242_p6, %p13241_p9 }
  0x37   : > { %p13237_p11 = pneg %p13236_p8 }
  0x39   : > { %p13244_p10 = pnand %p13243_p5, %p13237_p11 }
  0x3b   : > { %13247 = shalt.err (!%p13244_p10)
}
  0x3c   : > { %12226 = dma.hbm_to_vmem [thread:$0]  (!%p13797_p12), %s16391_s2, 16, %s369_s22, [#allocation11]  }
  0x3d   : > { %s16393_s4 = sld [smem:[#allocation82_spill]] }
  0x43   : > { %s13248_s15 = scalar_lea.hbm %s16393_s4, 16 }
  0x44   : > { %p13249_p13 = scmp.ne.s32.totalorder %s16393_s4, %s13248_s15  ;;  %p13255_p5 = scmp.lt.u32.totalorder %s13248_s15, %s16393_s4 }
  0x46   : > { %p13251_p1 = pnand %p13249_p13, %p13813_p0 }
  0x48   : > { %p13252_p6 = pneg %p13251_p1 }
  0x4a   : > { %p13257_p9 = pnand %p13255_p5, %p13252_p6 }
  0x4c   : > { %13260 = shalt.err (!%p13257_p9)
}
  0x4d   : > { %s13261_s22 = scalar_lea.vmem %s13801_s24, 16  ;;  %s13268_s13 = scalar_lea.vmem %s13801_s24, 32 }
  0x4e   : > { %p13262_p10 = scmp.ne.s32.totalorder %s13801_s24, %s13261_s22  ;;  %p13269_p4 = scmp.lt.s32.totalorder %s13801_s24, %s13801_s24 }
  0x4f   : > { %p13270_p7 = scmp.lt.s32.totalorder %s13268_s13, %s13261_s22 }
  0x50   : > { %p13264_p2 = pnand %p13262_p10, %p13813_p0 }
  0x51   : > { %p13271_p8 = por %p13270_p7, %p13269_p4 }
  0x52   : > { %p13265_p3 = pneg %p13264_p2 }
  0x54   : > { %p13272_p11 = pnand %p13271_p8, %p13265_p3 }
  0x56   : > { %13275 = shalt.err (!%p13272_p11)
}
  0x57   : > { %12232 = dma.hbm_to_vmem [thread:$0]  (!%p13797_p12), %s16393_s4, 16, %s13801_s24, [#allocation14]  }
  0x58   : > { %s16394_s6 = sld [smem:[#allocation83_spill]] }
  0x5e   : > { %s13276_s21 = scalar_lea.hbm %s16394_s6, 16 }
  0x5f   : > { %p13277_p13 = scmp.ne.s32.totalorder %s16394_s6, %s13276_s21  ;;  %p13283_p5 = scmp.lt.u32.totalorder %s13276_s21, %s16394_s6 }
  0x61   : > { %p13279_p1 = pnand %p13277_p13, %p13813_p0 }
  0x63   : > { %p13280_p6 = pneg %p13279_p1 }
  0x65   : > { %p13285_p9 = pnand %p13283_p5, %p13280_p6 }
  0x67   : > { %13288 = shalt.err (!%p13285_p9)
}
  0x68   : > { %s13289_s24 = scalar_lea.vmem %s13803_s16, 16  ;;  %s13296_s13 = scalar_lea.vmem %s13803_s16, 32 }
  0x69   : > { %p13290_p10 = scmp.ne.s32.totalorder %s13803_s16, %s13289_s24  ;;  %p13297_p4 = scmp.lt.s32.totalorder %s13803_s16, %s13803_s16 }
  0x6a   : > { %p13298_p7 = scmp.lt.s32.totalorder %s13296_s13, %s13289_s24 }
  0x6b   : > { %p13292_p2 = pnand %p13290_p10, %p13813_p0 }
  0x6c   : > { %p13299_p8 = por %p13298_p7, %p13297_p4 }
  0x6d   : > { %p13293_p3 = pneg %p13292_p2 }
  0x6f   : > { %p13300_p11 = pnand %p13299_p8, %p13293_p3 }
  0x71   : > { %13303 = shalt.err (!%p13300_p11)
}
  0x72   : > { %12238 = dma.hbm_to_vmem [thread:$0]  (!%p13797_p12), %s16394_s6, 16, %s13803_s16, [#allocation17]  }
  0x73   : > { %s13651_s19 = smov [#allocation19]   ;;  %s13652_s21 = smov [#allocation22]  }
  0x74   : > { %s440_s25 = sshll.u32 %s13651_s19, 4  ;;  %s464_s15 = sshll.u32 %s13652_s21, 4  ;;  %s441_s25 = int_to_ptr.vmem [resolvable:$true] %s440_s25  ;;  %s465_s15 = int_to_ptr.vmem [resolvable:$true] %s464_s15 }
  0x75   : > { %s13304_s22 = scalar_lea.hbm %s16318_s8, 16 }
  0x76   : > { %p13305_p13 = scmp.ne.s32.totalorder %s16318_s8, %s13304_s22  ;;  %p13311_p5 = scmp.lt.u32.totalorder %s13304_s22, %s16318_s8 }
  0x78   : > { %p13307_p1 = pnand %p13305_p13, %p13813_p0 }
  0x7a   : > { %p13308_p6 = pneg %p13307_p1 }
  0x7c   : > { %p13313_p9 = pnand %p13311_p5, %p13308_p6 }
  0x7e   : > { %13316 = shalt.err (!%p13313_p9)
}
  0x7f   : > { %s13317_s16 = scalar_lea.vmem %s441_s25, 16  ;;  %s13324_s17 = scalar_lea.vmem %s441_s25, 32 }
  0x80   : > { %p13318_p10 = scmp.ne.s32.totalorder %s441_s25, %s13317_s16  ;;  %p13325_p4 = scmp.lt.s32.totalorder %s441_s25, %s441_s25 }
  0x81   : > { %p13326_p7 = scmp.lt.s32.totalorder %s13324_s17, %s13317_s16 }
  0x82   : > { %p13320_p2 = pnand %p13318_p10, %p13813_p0 }
  0x83   : > { %p13327_p8 = por %p13326_p7, %p13325_p4 }
  0x84   : > { %p13321_p3 = pneg %p13320_p2 }
  0x86   : > { %p13328_p11 = pnand %p13327_p8, %p13321_p3 }
  0x88   : > { %13331 = shalt.err (!%p13328_p11)
}
  0x89   : > { %12244 = dma.hbm_to_vmem [thread:$0]  (!%p13797_p12), %s16318_s8, 16, %s441_s25, [#allocation20]  }
  0x8a   : > { %s13332_s14 = scalar_lea.hbm %s16320_s10, 32 }
  0x8b   : > { %p13333_p13 = scmp.ne.s32.totalorder %s16320_s10, %s13332_s14  ;;  %p13339_p5 = scmp.lt.u32.totalorder %s13332_s14, %s16320_s10 }
  0x8d   : > { %p13335_p1 = pnand %p13333_p13, %p13813_p0 }
  0x8f   : > { %p13336_p6 = pneg %p13335_p1 }
  0x91   : > { %p13341_p9 = pnand %p13339_p5, %p13336_p6 }
  0x93   : > { %13344 = shalt.err (!%p13341_p9)
}
  0x94   : > { %s13345_s16 = scalar_lea.vmem %s465_s15, 32  ;;  %p13353_p4 = scmp.lt.s32.totalorder %s465_s15, %s465_s15 }
  0x95   : > { %p13346_p10 = scmp.ne.s32.totalorder %s465_s15, %s13345_s16  ;;  %p13354_p7 = scmp.lt.s32.totalorder %s13345_s16, %s13345_s16 }
  0x97   : > { %p13348_p2 = pnand %p13346_p10, %p13813_p0  ;;  %p13355_p8 = por %p13354_p7, %p13353_p4 }
  0x99   : > { %p13349_p3 = pneg %p13348_p2 }
  0x9b   : > { %p13356_p11 = pnand %p13355_p8, %p13349_p3 }
  0x9d   : > { %13359 = shalt.err (!%p13356_p11)
}
  0x9e   : > { %12250 = dma.hbm_to_vmem [thread:$0]  (!%p13797_p12), %s16320_s10, 32, %s465_s15, [#allocation23]  }
  0x9f   : > { %s13653_s19 = smov [#allocation7]   ;;  %s16395_s1 = sld [smem:[#allocation80_spill]] }
  0xa0   : > { %s354_s21 = sshll.u32 %s13653_s19, 4  ;;  %s355_s21 = int_to_ptr.vmem [resolvable:$true] %s354_s21 }
  0xa5   : > { %s13360_s14 = scalar_lea.hbm %s16395_s1, 256 }
  0xa6   : > { %p13361_p13 = scmp.ne.s32.totalorder %s16395_s1, %s13360_s14  ;;  %p13367_p5 = scmp.lt.u32.totalorder %s13360_s14, %s16395_s1 }
  0xa8   : > { %p13363_p1 = pnand %p13361_p13, %p13813_p0 }
  0xaa   : > { %p13364_p6 = pneg %p13363_p1 }
  0xac   : > { %p13369_p9 = pnand %p13367_p5, %p13364_p6 }
  0xae   : > { %13372 = shalt.err (!%p13369_p9)
}
  0xaf   : > { %s13373_s15 = scalar_lea.vmem %s355_s21, 256  ;;  %p13381_p4 = scmp.lt.s32.totalorder %s355_s21, %s355_s21 }
  0xb0   : > { %p13374_p10 = scmp.ne.s32.totalorder %s355_s21, %s13373_s15  ;;  %p13382_p7 = scmp.lt.s32.totalorder %s13373_s15, %s13373_s15 }
  0xb2   : > { %p13376_p2 = pnand %p13374_p10, %p13813_p0  ;;  %p13383_p8 = por %p13382_p7, %p13381_p4 }
  0xb4   : > { %p13377_p3 = pneg %p13376_p2 }
  0xb6   : > { %p13384_p11 = pnand %p13383_p8, %p13377_p3 }
  0xb8   : > { %13387 = shalt.err (!%p13384_p11)
}
  0xb9   : > { %s16334_s16 = smov 64   ;;  %s16336_s25 = smov 4  }
  0xba   : > { %12223 = dma.hbm_to_vmem [thread:$0]  (!%p13797_p12), %s16395_s1, 256, %s355_s21, [#allocation8], %s16334_s16, %s16334_s16, %s16336_s25  }
  0xbb   : > { %s13656_s2 = smov [#allocation12]   ;;  %s13388_s24 = scalar_lea.hbm %s16313_s3, 3072 }
  0xbc   : > { %s378_s27 = sshll.u32 %s13656_s2, 4  ;;  %p13389_p13 = scmp.ne.s32.totalorder %s16313_s3, %s13388_s24  ;;  %s379_s27 = int_to_ptr.vmem [resolvable:$true] %s378_s27 }
  0xbd   : > { %p13395_p5 = scmp.lt.u32.totalorder %s13388_s24, %s16313_s3 }
  0xbe   : > { %p13391_p1 = pnand %p13389_p13, %p13813_p0 }
  0xc0   : > { %p13392_p6 = pneg %p13391_p1 }
  0xc2   : > { %p13397_p9 = pnand %p13395_p5, %p13392_p6 }
  0xc4   : > { %13400 = shalt.err (!%p13397_p9)
}
  0xc5   : > { %s13401_s21 = scalar_lea.vmem %s379_s27, 3072  ;;  %p13409_p4 = scmp.lt.s32.totalorder %s379_s27, %s379_s27 }
  0xc6   : > { %p13402_p10 = scmp.ne.s32.totalorder %s379_s27, %s13401_s21  ;;  %p13410_p7 = scmp.lt.s32.totalorder %s13401_s21, %s13401_s21 }
  0xc8   : > { %p13404_p2 = pnand %p13402_p10, %p13813_p0  ;;  %p13411_p8 = por %p13410_p7, %p13409_p4 }
  0xca   : > { %p13405_p3 = pneg %p13404_p2 }
  0xcc   : > { %p13412_p11 = pnand %p13411_p8, %p13405_p3 }
  0xce   : > { %13415 = shalt.err (!%p13412_p11)
}
  0xcf   : > { %s16338_s17 = smov 128   ;;  %s13658_s19 = smov 8  }
  0xd0   : > { %12229 = dma.hbm_to_vmem [thread:$0]  (!%p13797_p12), %s16313_s3, 3072, %s379_s27, [#allocation11], %s16338_s17, %s16338_s17, %s13658_s19  }
  0xd1   : > { %s13659_s14 = smov [#allocation15]   ;;  %s13660_s24 = smov [#allocation18]  }
  0xd2   : > { %s402_s22 = sshll.u32 %s13659_s14, 4  ;;  %s426_s13 = sshll.u32 %s13660_s24, 4  ;;  %s403_s22 = int_to_ptr.vmem [resolvable:$true] %s402_s22  ;;  %s427_s13 = int_to_ptr.vmem [resolvable:$true] %s426_s13 }
  0xd3   : > { %s13416_s21 = scalar_lea.hbm %s16315_s5, 4608 }
  0xd4   : > { %p13417_p13 = scmp.ne.s32.totalorder %s16315_s5, %s13416_s21  ;;  %p13423_p5 = scmp.lt.u32.totalorder %s13416_s21, %s16315_s5 }
  0xd6   : > { %p13419_p1 = pnand %p13417_p13, %p13813_p0 }
  0xd8   : > { %p13420_p6 = pneg %p13419_p1 }
  0xda   : > { %p13425_p9 = pnand %p13423_p5, %p13420_p6 }
  0xdc   : > { %13428 = shalt.err (!%p13425_p9)
}
  0xdd   : > { %s13429_s27 = scalar_lea.vmem %s403_s22, 4608  ;;  %p13437_p4 = scmp.lt.s32.totalorder %s403_s22, %s403_s22 }
  0xde   : > { %p13430_p10 = scmp.ne.s32.totalorder %s403_s22, %s13429_s27  ;;  %p13438_p7 = scmp.lt.s32.totalorder %s13429_s27, %s13429_s27 }
  0xe0   : > { %p13432_p2 = pnand %p13430_p10, %p13813_p0  ;;  %p13439_p8 = por %p13438_p7, %p13437_p4 }
  0xe2   : > { %p13433_p3 = pneg %p13432_p2 }
  0xe4   : > { %p13440_p11 = pnand %p13439_p8, %p13433_p3 }
  0xe6   : > { %13443 = shalt.err (!%p13440_p11)
}
  0xe7   : > { %s16396_s16 = smov 4   ;;  %s16397_s25 = smov 64  }
  0xe8   : > { %12235 = dma.hbm_to_vmem [thread:$0]  (!%p13797_p12), %s16315_s5, 4608, %s403_s22, [#allocation14], %s16397_s25, %s16397_s25, %s16396_s16  }
  0xe9   : > { %s13444_s14 = scalar_lea.hbm %s16317_s7, 9216 }
  0xea   : > { %p13445_p13 = scmp.ne.s32.totalorder %s16317_s7, %s13444_s14  ;;  %p13451_p5 = scmp.lt.u32.totalorder %s13444_s14, %s16317_s7 }
  0xec   : > { %p13447_p1 = pnand %p13445_p13, %p13813_p0 }
  0xee   : > { %p13448_p6 = pneg %p13447_p1 }
  0xf0   : > { %p13453_p9 = pnand %p13451_p5, %p13448_p6 }
  0xf2   : > { %13456 = shalt.err (!%p13453_p9)
}
  0xf3   : > { %s13457_s27 = scalar_lea.vmem %s427_s13, 9216  ;;  %p13465_p4 = scmp.lt.s32.totalorder %s427_s13, %s427_s13 }
  0xf4   : > { %p13458_p10 = scmp.ne.s32.totalorder %s427_s13, %s13457_s27  ;;  %p13466_p7 = scmp.lt.s32.totalorder %s13457_s27, %s13457_s27 }
  0xf6   : > { %p13460_p2 = pnand %p13458_p10, %p13813_p0  ;;  %p13467_p8 = por %p13466_p7, %p13465_p4 }
  0xf8   : > { %p13461_p3 = pneg %p13460_p2 }
  0xfa   : > { %p13468_p11 = pnand %p13467_p8, %p13461_p3 }
  0xfc   : > { %13471 = shalt.err (!%p13468_p11)
}
  0xfd   : > { %12241 = dma.hbm_to_vmem [thread:$0]  (!%p13797_p12), %s16317_s7, 9216, %s427_s13, [#allocation17], %s16397_s25, %s16397_s25, %s16396_s16  }
  0xfe   : > { %s13661_s6 = smov [#allocation21]   ;;  %s13662_s2 = smov [#allocation24]  }
  0xff   : > { %s450_s4 = sshll.u32 %s13661_s6, 4  ;;  %s474_s14 = sshll.u32 %s13662_s2, 4  ;;  %s451_s4 = int_to_ptr.vmem [resolvable:$true] %s450_s4  ;;  %s475_s14 = int_to_ptr.vmem [resolvable:$true] %s474_s14 }
 0x100   : > { %s13472_s15 = scalar_lea.hbm %s16319_s9, 18432 }
 0x101   : > { %p13473_p13 = scmp.ne.s32.totalorder %s16319_s9, %s13472_s15  ;;  %p13479_p5 = scmp.lt.u32.totalorder %s13472_s15, %s16319_s9 }
 0x103   : > { %p13475_p1 = pnand %p13473_p13, %p13813_p0 }
 0x105   : > { %p13476_p6 = pneg %p13475_p1 }
 0x107   : > { %p13481_p9 = pnand %p13479_p5, %p13476_p6 }
 0x109   : > { %13484 = shalt.err (!%p13481_p9)
}
 0x10a   : > { %s13485_s13 = scalar_lea.vmem %s451_s4, 18432  ;;  %p13493_p4 = scmp.lt.s32.totalorder %s451_s4, %s451_s4 }
 0x10b   : > { %p13486_p10 = scmp.ne.s32.totalorder %s451_s4, %s13485_s13  ;;  %p13494_p7 = scmp.lt.s32.totalorder %s13485_s13, %s13485_s13 }
 0x10d   : > { %p13488_p2 = pnand %p13486_p10, %p13813_p0  ;;  %p13495_p8 = por %p13494_p7, %p13493_p4 }
 0x10f   : > { %p13489_p3 = pneg %p13488_p2 }
 0x111   : > { %p13496_p11 = pnand %p13495_p8, %p13489_p3 }
 0x113   : > { %13499 = shalt.err (!%p13496_p11)
}
 0x114   : > { %s16398_s16 = smov 128   ;;  %s13500_s2 = scalar_lea.hbm %s16321_s11, 36864 }
 0x115   : > { %12247 = dma.hbm_to_vmem [thread:$0]  (!%p13797_p12), %s16319_s9, 18432, %s451_s4, [#allocation20], %s16398_s16, %s16398_s16, %s13658_s19  }
 0x116   : > { %p13501_p13 = scmp.ne.s32.totalorder %s16321_s11, %s13500_s2  ;;  %p13507_p5 = scmp.lt.u32.totalorder %s13500_s2, %s16321_s11 }
 0x118   : > { %p13503_p1 = pnand %p13501_p13, %p13813_p0 }
 0x11a   : > { %p13504_p6 = pneg %p13503_p1 }
 0x11c   : > { %p13509_p9 = pnand %p13507_p5, %p13504_p6 }
 0x11e   : > { %13512 = shalt.err (!%p13509_p9)
}
 0x11f   : > { %s13513_s27 = scalar_lea.vmem %s475_s14, 36864  ;;  %p13521_p4 = scmp.lt.s32.totalorder %s475_s14, %s475_s14 }
 0x120   : > { %p13514_p10 = scmp.ne.s32.totalorder %s475_s14, %s13513_s27  ;;  %p13522_p7 = scmp.lt.s32.totalorder %s13513_s27, %s13513_s27 }
 0x122   : > { %p13516_p2 = pnand %p13514_p10, %p13813_p0  ;;  %p13523_p8 = por %p13522_p7, %p13521_p4 }
 0x124   : > { %p13517_p3 = pneg %p13516_p2 }
 0x126   : > { %p13524_p11 = pnand %p13523_p8, %p13517_p3 }
 0x128   : > { %13527 = shalt.err (!%p13524_p11)
}
 0x129   : > { %12253 = dma.hbm_to_vmem [thread:$0]  (!%p13797_p12), %s16321_s11, 36864, %s475_s14, [#allocation23], %s16398_s16, %s16398_s16, %s13658_s19  }
 0x12a   : > { %s13663_s13 = smov [#allocation25]   ;;  %s13528_s6 = scalar_lea.hbm %s16322_s12, 32 }
 0x12b   : > { %s488_s17 = sshll.u32 %s13663_s13, 4  ;;  %p13529_p13 = scmp.ne.s32.totalorder %s16322_s12, %s13528_s6  ;;  %s489_s17 = int_to_ptr.vmem [resolvable:$true] %s488_s17 }
 0x12c   : > { %p13535_p5 = scmp.lt.u32.totalorder %s13528_s6, %s16322_s12 }
 0x12d   : > { %p13531_p1 = pnand %p13529_p13, %p13813_p0 }
 0x12f   : > { %p13532_p6 = pneg %p13531_p1 }
 0x131   : > { %p13537_p9 = pnand %p13535_p5, %p13532_p6 }
 0x133   : > { %13540 = shalt.err (!%p13537_p9)
}
 0x134   : > { %s13541_s19 = scalar_lea.vmem %s489_s17, 32  ;;  %p13549_p4 = scmp.lt.s32.totalorder %s489_s17, %s489_s17 }
 0x135   : > { %p13542_p10 = scmp.ne.s32.totalorder %s489_s17, %s13541_s19  ;;  %p13550_p7 = scmp.lt.s32.totalorder %s13541_s19, %s13541_s19 }
 0x137   : > { %p13544_p2 = pnand %p13542_p10, %p13813_p0  ;;  %p13551_p8 = por %p13550_p7, %p13549_p4 }
 0x139   : > { %p13545_p3 = pneg %p13544_p2 }
 0x13b   : > { %p13552_p11 = pnand %p13551_p8, %p13545_p3 }
 0x13d   : > { %13555 = shalt.err (!%p13552_p11)
}
 0x13e   : > { %12256 = dma.hbm_to_vmem [thread:$0]  (!%p13797_p12), %s16322_s12, 32, %s489_s17, [#allocation26]  }
 0x13f   : > { %p16399_p13 = scmp.ne.s32.totalorder %s16389_s20, 0 }
 0x141   : > { %509 = sbr.rel (%p16399_p13) target bundleno = 3288 (0xcd8), region = 72 }
 0x148   : > { %p16400_p1 = scmp.eq.s32.totalorder %s13761_s29, 0 }
 0x14a   : > { %13601 = dma.done.wait (%p16400_p1), [#allocation8], 256   ;;  %p16401_p0 = pmov %p16400_p1 }
 0x14c   : > { %13603 = vsyncadd (%p16401_p0), [#allocation8], 4294967040  ;;  %p16402_p6 = pmov %p16401_p0 }
 0x14d   : > { %p16403_p5 = pmov %p16401_p0 }
 0x14e   : > { %13605 = dma.done.wait (%p16402_p6), [#allocation11], 3088  }
 0x14f   : > { %13607 = vsyncadd (%p16403_p5), [#allocation11], 4294964208  ;;  %p16404_p9 = pmov %p16401_p0 }
 0x150   : > { %p16405_p12 = pmov %p16401_p0 }
 0x151   : > { %13609 = dma.done.wait (%p16404_p9), [#allocation14], 4624  }
 0x152   : > { %13611 = vsyncadd (%p16405_p12), [#allocation14], 4294962672  ;;  %p16406_p10 = pmov %p16401_p0 }
 0x153   : > { %p16407_p2 = pmov %p16401_p0 }
 0x154   : > { %13613 = dma.done.wait (%p16406_p10), [#allocation17], 9232  }
 0x155   : > { %13615 = vsyncadd (%p16407_p2), [#allocation17], 4294958064  ;;  %p16408_p3 = pmov %p16401_p0 }
 0x156   : > { %p16409_p4 = pmov %p16401_p0 }
 0x157   : > { %13617 = dma.done.wait (%p16408_p3), [#allocation20], 18448  }
 0x158   : > { %13619 = vsyncadd (%p16409_p4), [#allocation20], 4294948848  ;;  %p16410_p7 = pmov %p16401_p0 }
 0x159   : > { %p16411_p8 = pmov %p16401_p0 }
 0x15a   : > { %13621 = dma.done.wait (%p16410_p7), [#allocation23], 36896  }
 0x15b   : > { %13623 = vsyncadd (%p16411_p8), [#allocation23], 4294930400  ;;  %p16412_p11 = pmov %p16401_p0 }
 0x15c   : > { %p16413_p13 = pmov %p16401_p0 }
 0x15d   : > { %13625 = dma.done.wait (%p16412_p11), [#allocation26], 32  }
 0x15e   : > { %13627 = vsyncadd (%p16413_p13), [#allocation26], 4294967264  ;;  %p597_p1 = scmp.lt.s32.totalorder %s13761_s29, 1  ;;  %vm786_vm0 = vcmask 1044480   ;;  %vm787_vm1 = vcmask 1045504   ;;  %v13664_v0 = vmov 65535  }
 0x15f   : > { %v788_v1 = vsel %vm786_vm0, 4294967295, %v13664_v0  ;;  %vm737_vm2 = vcmask 220160   ;;  %v12339_v2 = vld [vmem:[#allocation7] sm:$0xff]   ;;  %v12340_v4 = vld [vmem:[#allocation7 + $0x8] sm:$0x3f]   ;;  %vm1003_vm3 = vcmask 523264  }
 0x160   : > { %s598_s20 = scalar_select %p597_p1, %s13761_s29, 1  ;;  %v789_v3 = vsel %vm787_vm1, %v788_v1, 0  ;;  %11970 = vmatprep.subr.bf16.mxu1 %v12339_v2  ;;  %v12357_v11 = vld [vmem:[#allocation12] ss:$8 sps:$4 sm:$0xff]   ;;  %v12359_v12 = vld [vmem:[#allocation12 + $0x4] ss:$8 sps:$4 sm:$0xff]  }
 0x161   : > { %11971 = vmatpush3.bf16.msra.mxu1 %v12339_v2  ;;  %v791_v6 = vand.u32 %v12340_v4, %v789_v3  ;;  %v12362_v13 = vld [vmem:[#allocation12 + $0x14] ss:$8 sps:$4 sm:$0xff]   ;;  %v12360_v16 = vld [vmem:[#allocation12 + $0x10] ss:$8 sps:$4 sm:$0xff]   ;;  %v12365_v17 = vld [vmem:[#allocation12 + $0x24] ss:$8 sps:$4 sm:$0xff]  }
 0x162   : > { %s11730_s30 = sshll.u32 %s598_s20, 7  ;;  %v12363_v18 = vld [vmem:[#allocation12 + $0x20] ss:$8 sps:$4 sm:$0xff]   ;;  %v12368_v19 = vld [vmem:[#allocation12 + $0x34] ss:$8 sps:$4 sm:$0xff]   ;;  %v13665_v44 = vmov 0  }
 0x163   : > { %s14092_s27 = scalar_lea.vmem %s16310_s0, %s11730_s30  ;;  %11972 = vmatprep.subr.bf16.mxu1 %v791_v6  ;;  %v12366_v22 = vld [vmem:[#allocation12 + $0x30] ss:$8 sps:$4 sm:$0xff]   ;;  %v12371_v23 = vld [vmem:[#allocation12 + $0x44] ss:$8 sps:$4 sm:$0xff]   ;;  %v12369_v24 = vld [vmem:[#allocation12 + $0x40] ss:$8 sps:$4 sm:$0xff]   ;;  %4101 = vmatprep.subr.bf16.mxu0 %v13665_v44 }
 0x164   : > { %v12341_v5 = vld [vmem:[%s14092_s27] sm:$0xff]   ;;  %v12342_v7 = vld [vmem:[%s14092_s27 + $0x8] sm:$0xff]   ;;  %v12343_v8 = vld [vmem:[%s14092_s27 + $0x10] sm:$0xff]   ;;  %1004 = vst.msk [vmem:[#allocation2 + $0x8] sm:$0xff] %vm1003_vm3, %v13665_v44  ;;  %vm1301_vm4 = vcmask 1047552   ;;  %vm1136_vm7 = vcmask 1040384  }
 0x165   : > { %11974 = vmatprep.mubr.msk.bf16.mxu1 %vm737_vm2, %v12341_v5  ;;  %11973 = vmatpush3.bf16.msra.mxu1 %v791_v6  ;;  %v12344_v9 = vld [vmem:[%s14092_s27 + $0x18] sm:$0xff]   ;;  %v12345_v10 = vld [vmem:[%s14092_s27 + $0x20] sm:$0xff]   ;;  %v12346_v14 = vld [vmem:[%s14092_s27 + $0x28] sm:$0xff]   ;;  %1002 = vst [vmem:[#allocation2] sm:$0xff] %v13665_v44  ;;  %vm1302_vm5 = vsmask.f32 7424 }
 0x166   : > { %1570 = vmatprep.subr.bf16.mxu1 %v12359_v12  ;;  %v12347_v15 = vld [vmem:[%s14092_s27 + $0x30] sm:$0xff]   ;;  %v12348_v20 = vld [vmem:[%s14092_s27 + $0x38] sm:$0xff]   ;;  %v12349_v21 = vld [vmem:[%s14092_s27 + $0x40] sm:$0xff]   ;;  %1007 = vst.msk [vmem:[#allocation2 + $0x118] sm:$0xff] %vm1003_vm3, %v13665_v44  ;;  %vm1137_vm8 = vsmask.f32 256 }
 0x167   : > { %v12374_v25 = vld [vmem:[#allocation12 + $0x54] ss:$8 sps:$4 sm:$0xff]   ;;  %v12350_v26 = vld [vmem:[%s14092_s27 + $0x48] sm:$0xff]   ;;  %v12351_v27 = vld [vmem:[%s14092_s27 + $0x50] sm:$0xff]   ;;  %4610 = vst [vmem:[#allocation4 + $0x8] sm:$0xf] %v13665_v44 }
 0x168   : > { %11975 = vmatmul.mubr.msk.bf16.vlgmr.msra.gmra.mrb[0].mxu1 %vm737_vm2, %v12342_v7  ;;  %v12372_v28 = vld [vmem:[#allocation12 + $0x50] ss:$8 sps:$4 sm:$0xff]   ;;  %v12354_v31 = vld [vmem:[%s14092_s27 + $0x68] sm:$0xff]   ;;  %v12380_v36 = vld [vmem:[#allocation12 + $0x74] ss:$8 sps:$4 sm:$0xff]   ;;  %s13666_s4 = smov 64  }
 0x169   : > { %11978 = vmatprep.mubr.msk.bf16.mxu1 %vm737_vm2, %v12343_v8  ;;  %1571 = vmatpush1.bf16.msra.mxu1 %v12357_v11  ;;  %v12352_v29 = vld [vmem:[%s14092_s27 + $0x58] sm:$0xff]   ;;  %v12353_v30 = vld [vmem:[%s14092_s27 + $0x60] sm:$0xff]   ;;  %v12355_v32 = vld [vmem:[%s14092_s27 + $0x70] sm:$0xff]   ;;  %4613 = vst [vmem:[#allocation4 + $0x74] sm:$0xf] %v13665_v44  ;;  %vm1236_vm10 = vcmask 1048064  }
 0x16a   : > { %1572 = vmatprep.subr.bf16.mxu1 %v12362_v13  ;;  %v12356_v33 = vld [vmem:[%s14092_s27 + $0x78] sm:$0xff]   ;;  %v12377_v34 = vld [vmem:[#allocation12 + $0x64] ss:$8 sps:$4 sm:$0xff]   ;;  %v12375_v35 = vld [vmem:[#allocation12 + $0x60] ss:$8 sps:$4 sm:$0xff]   ;;  %vm2744_vm11 = vcmask 517120  }
 0x16b   : > { %v12378_v37 = vld [vmem:[#allocation12 + $0x70] ss:$8 sps:$4 sm:$0xff]   ;;  %v12383_v38 = vld [vmem:[#allocation12 + $0x84] ss:$8 sps:$4 sm:$0xff]   ;;  %v12381_v39 = vld [vmem:[#allocation12 + $0x80] ss:$8 sps:$4 sm:$0xff]  }
 0x16c   : > { %v12386_v40 = vld [vmem:[#allocation12 + $0x94] ss:$8 sps:$4 sm:$0xff]   ;;  %v12384_v41 = vld [vmem:[#allocation12 + $0x90] ss:$8 sps:$4 sm:$0xff]   ;;  %v12389_v42 = vld [vmem:[#allocation12 + $0xa4] ss:$8 sps:$4 sm:$0xff]  }
 0x16d   : > { %1573 = vmatpush1.bf16.msra.mxu1 %v12360_v16  ;;  %v12387_v43 = vld [vmem:[#allocation12 + $0xa0] ss:$8 sps:$4 sm:$0xff]   ;;  %6320 = vst [vmem:[#allocation5] sm:$0x3f] %v13665_v44  ;;  %6322 = vst [vmem:[#allocation5 + $0x1e] sm:$0x3f] %v13665_v44 }
 0x16e   : > { %1574 = vmatprep.subr.bf16.mxu1 %v12365_v17  ;;  %8027 = vst [vmem:[#allocation6 + $0x8] sm:$0xf] %v13665_v44  ;;  %8030 = vst [vmem:[#allocation6 + $0x44] sm:$0xf] %v13665_v44  ;;  %v12392_v45 = vld [vmem:[#allocation12 + $0xb4] ss:$8 sps:$4 sm:$0xff]  }
 0x16f   : > { %v12390_v46 = vld [vmem:[#allocation12 + $0xb0] ss:$8 sps:$4 sm:$0xff]   ;;  %v1337_v47 = vld [vmem:[#allocation2 + $0x8] sm:$0xff]  ;;  %v14129_v48 = vld [vmem:[#allocation10] ss:$0 sm:$0xff]  ;;  %vm3503_vm12 = vcmask 1042434  }
 0x170   : > { %11979 = vmatmul.mubr.msk.bf16.gmra.mrb[4].mxu1 %vm737_vm2, %v12344_v9  ;;  %vm14134_vm6 = vmand %vm1301_vm4, %vm1302_vm5  ;;  %vm3735_vm13 = vcmask 1041409   ;;  %vm3505_vm14 = vcmask 1043459   ;;  %vm3507_vm15 = vcmask 1044484   ;;  %vm3509_vm0 = vcmask 1045509   ;;  %s594_s22 = sand.u32 1, %s13638_s26   ;;  %s11795_s17 = sshll.u32 %s13761_s29, 5 }
 0x171   : > { %11982 = vmatprep.mubr.msk.bf16.mxu1 %vm737_vm2, %v12345_v10  ;;  %1575 = vmatpush1.bf16.msra.mxu1 %v12363_v18  ;;  %vm14145_vm9 = vmand %vm1136_vm7, %vm1137_vm8  ;;  %vm3511_vm1 = vcmask 1046534   ;;  %vm3513_vm4 = vcmask 1047559   ;;  %vm3898_vm5 = vsmask.f32 3328  ;;  %vm3824_vm8 = vcmask 1043968   ;;  %s10938_s13 = sshll.u32 %s594_s22, 1 }
 0x172   : > { %1576 = vmatprep.subr.bf16.mxu1 %v12368_v19  ;;  %s596_s25 = scalar_lea.vmem [#allocation27], %s10938_s13  ;;  %s16534_s24 = sld [smem:[#allocation84_spill]] }
 0x173   : > { %s10734_s1 = sshll.u32 %s596_s25, 4  ;;  %s10720_s15 = scalar_lea.sflag [#allocation9], %s594_s22  ;;  %s16270_s1 = int_to_ptr.vmem [resolvable:$true] %s10734_s1 }
 0x174   : > { %s13556_s19 = scalar_lea.vmem %s16270_s1, 32  ;;  %p16535_p6 = scmp.ne.s32.totalorder %s16386_s18, 0 }
 0x175   : > { %1577 = vmatpush1.bf16.msra.mxu1 %v12366_v22  ;;  %p13557_p0 = scmp.ne.s32.totalorder %s16270_s1, %s13556_s19  ;;  %s13669_s29 = smov [#allocation27]  }
 0x176   : > { %1578 = vmatprep.subr.bf16.mxu1 %v12371_v23  ;;  %s13560_s14 = sshll.u32 %s13669_s29, 4  ;;  %s13561_s14 = int_to_ptr.vmem [resolvable:$false] %s13560_s14 }
 0x177   : > { %p13558_p5 = pnand %p13557_p0, %p16535_p6  ;;  %s13562_s16 = scalar_lea.vmem %s13561_s14, 64 }
 0x178   : > { %11983 = vmatmul.mubr.msk.bf16.gmra.mrb[8].mxu1 %vm737_vm2, %v12346_v14  ;;  %v16416_v14 = vmov 0  ;;  %s16268_s28 = scalar_lea.hbm %s16534_s24, %s11795_s17  ;;  %p13563_p12 = scmp.lt.s32.totalorder %s16270_s1, %s13561_s14 }
 0x179   : > { %11986 = vmatprep.mubr.msk.bf16.mxu1 %vm737_vm2, %v12347_v15  ;;  %1579 = vmatpush1.bf16.msra.mxu1 %v12369_v24  ;;  %v16417_v14 = vsel %vm14145_vm9, 4294967295, %v16416_v14  ;;  %p13559_p9 = pneg %p13558_p5  ;;  %p13564_p10 = scmp.lt.s32.totalorder %s13562_s16, %s13556_s19 }
 0x17a   : > { %1580 = vmatprep.subr.bf16.mxu1 %v12374_v25  ;;  %16418 = vst [vmem:[#allocation42_spill] sm:$0xff] %v16417_v14 }
 0x17b   : > { %p13565_p2 = por %p13564_p10, %p13563_p12 }
 0x17d   : > { %1581 = vmatpush1.bf16.msra.mxu1 %v12372_v28  ;;  %p13566_p3 = pnand %p13565_p2, %p13559_p9 }
 0x17e   : > { %1582 = vmatprep.subr.bf16.mxu1 %v12377_v34 }
 0x180   : > { %11987 = vmatmul.mubr.msk.bf16.gmra.mrb[12].mxu1 %vm737_vm2, %v12348_v20 }
 0x181   : > { %11990 = vmatprep.mubr.msk.bf16.mxu1 %vm737_vm2, %v12349_v21  ;;  %1583 = vmatpush1.bf16.msra.mxu1 %v12375_v35 }
 0x182   : > { %1584 = vmatprep.subr.bf16.mxu1 %v12380_v36 }
 0x185   : > { %1585 = vmatpush1.bf16.msra.mxu1 %v12378_v37 }
 0x186   : > { %1586 = vmatprep.subr.bf16.mxu1 %v12383_v38 }
 0x188   : > { %11991 = vmatmul.mubr.msk.bf16.gmra.mrb[16].mxu1 %vm737_vm2, %v12350_v26 }
 0x189   : > { %11994 = vmatprep.mubr.msk.bf16.mxu1 %vm737_vm2, %v12351_v27  ;;  %1587 = vmatpush1.bf16.msra.mxu1 %v12381_v39 }
 0x18a   : > { %1588 = vmatprep.subr.bf16.mxu1 %v12386_v40 }
 0x18d   : > { %1589 = vmatpush1.bf16.msra.mxu1 %v12384_v41 }
 0x18e   : > { %1590 = vmatprep.subr.bf16.mxu1 %v12389_v42 }
 0x190   : > { %11995 = vmatmul.mubr.msk.bf16.gmra.mrb[20].mxu1 %vm737_vm2, %v12352_v29 }
 0x191   : > { %11998 = vmatprep.mubr.msk.bf16.mxu1 %vm737_vm2, %v12353_v30  ;;  %1591 = vmatpush1.bf16.msra.mxu1 %v12387_v43 }
 0x192   : > { %1592 = vmatprep.subr.bf16.mxu1 %v12392_v45 }
 0x195   : > { %1593 = vmatpush1.bf16.msra.mxu1 %v12390_v46 }
 0x198   : > { %11999 = vmatmul.mubr.msk.bf16.gmra.mrb[24].mxu1 %vm737_vm2, %v12354_v31 }
 0x199   : > { %12002 = vmatprep.mubr.msk.bf16.mxu1 %vm737_vm2, %v12355_v32 }
 0x1a0   : > { %12003 = vmatmul.mubr.msk.bf16.gmra.mrb[28].mxu1 %vm737_vm2, %v12356_v33  ;;  %vm3385_vm2 = vcmask 1043456  }
 0x1a1   : > { %11000 = vmatprep.mubr.msk.bf16.mxu1 %vm1003_vm3, %v1337_v47  ;;  %vm14816_vm7 = vmand %vm3385_vm2, %vm3898_vm5 }
 0x1a8   : > { %1603 = vmatmul.mubr.bf16.vlgmr.msra.gmra.mrb[32].mxu1 %v13665_v44 }
 0x23b   : > { %v11976_v49 = vpop.f32.mrb[0].mxu1 }
 0x23c   : > { %v836_v50 = vadd.f32 %v11976_v49, %v14129_v48  ;;  %v827_v51 = vpop.f32.mrb[1].mxu1 }
 0x23d   : > { %v828_v52 = vadd.f32 %v14129_v48, %v827_v51  ;;  %v11977_v53 = vpop.f32.mrb[2].mxu1 }
 0x23e   : > { %v839_v54 = vadd.f32 %v11977_v53, %v14129_v48  ;;  %v830_v55 = vpop.f32.mrb[3].mxu1  ;;  %v956_v58 = vmax.f32 %v836_v50, 0.0 }
 0x23f   : > { %v831_v57 = vadd.f32 %v14129_v48, %v830_v55  ;;  %v954_v60 = vmax.f32 %v828_v52, 0.0 }
 0x240   : > { %v957_v59 = vmax.f32 %v839_v54, 0.0 }
 0x241   : > { %v955_v61 = vmax.f32 %v831_v57, 0.0 }
 0x242   : > { %v987_v62 = vpack.c.bf16 %v957_v59, %v956_v58 }
 0x243   : > { %v986_v63 = vpack.c.bf16 %v955_v61, %v954_v60  ;;  %v11980_v0 = vpop.f32.mrb[4].mxu1 }
 0x244   : > { %v1016_v1 = vshrl.u32 %v987_v62, 16  ;;  %v1019_v2 = vshll.u32 %v987_v62, 16  ;;  %v852_v3 = vadd.f32 %v11980_v0, %v14129_v48  ;;  %v843_v4 = vpop.f32.mrb[5].mxu1 }
 0x245   : > { %v1009_v5 = vshrl.u32 %v986_v63, 16  ;;  %v1012_v6 = vshll.u32 %v986_v63, 16  ;;  %v844_v7 = vadd.f32 %v14129_v48, %v843_v4  ;;  %1188 = vrot.lane.b32.xlu0 %v986_v63, %s13666_s4  ;;  %v11981_v8 = vpop.f32.mrb[6].mxu1 }
 0x246   : > { %v1018_v9 = vrot.slane %v1016_v1, 7  ;;  %v1255_v10 = vrot.slane %v1019_v2, 1  ;;  %v960_v11 = vmax.f32 %v852_v3, 0.0  ;;  %v855_v12 = vadd.f32 %v11981_v8, %v14129_v48  ;;  %v846_v13 = vpop.f32.mrb[7].mxu1 }
 0x247   : > { %v1011_v15 = vrot.slane %v1009_v5, 7  ;;  %v1253_v16 = vrot.slane %v1012_v6, 1  ;;  %v958_v17 = vmax.f32 %v844_v7, 0.0  ;;  %v847_v18 = vadd.f32 %v14129_v48, %v846_v13 }
 0x248   : > { %v1021_v19 = vor.u32 %v1019_v2, %v1018_v9  ;;  %v1256_v20 = vor.u32 %v1255_v10, %v1016_v1  ;;  %v961_v21 = vmax.f32 %v855_v12, 0.0 }
 0x249   : > { %v1014_v22 = vor.u32 %v1012_v6, %v1011_v15  ;;  %v1254_v23 = vor.u32 %v1253_v16, %v1009_v5  ;;  %v959_v24 = vmax.f32 %v847_v18, 0.0  ;;  %1190 = vrot.lane.b32.xlu0 %v987_v62, %s13666_s4 }
 0x24a   : > { %v1305_v25 = vsel %vm14134_vm6, %v1256_v20, 0  ;;  %v989_v26 = vpack.c.bf16 %v961_v21, %v960_v11  ;;  %v1140_v27 = vsel %vm14145_vm9, 0, %v1021_v19 }
 0x24b   : > { %1321 = vst.msk [vmem:[#allocation2 + $0x28] sm:$0xff] %vm1003_vm3, %v1305_v25  ;;  %v1304_v28 = vsel %vm14134_vm6, %v1254_v23, 0  ;;  %v988_v29 = vpack.c.bf16 %v959_v24, %v958_v17  ;;  %v11984_v30 = vpop.f32.mrb[8].mxu1  ;;  %v1139_v31 = vsel %vm14145_vm9, 0, %v1014_v22  ;;  %1157 = vst.msk [vmem:[#allocation2 + $0x20] sm:$0xff] %vm1003_vm3, %v1140_v27 }
 0x24c   : > { %1320 = vst.msk [vmem:[#allocation2 + $0x18] sm:$0xff] %vm1003_vm3, %v1304_v28  ;;  %v1030_v32 = vshrl.u32 %v989_v26, 16  ;;  %v1033_v33 = vshll.u32 %v989_v26, 16  ;;  %v868_v34 = vadd.f32 %v11984_v30, %v14129_v48  ;;  %v859_v35 = vpop.f32.mrb[9].mxu1  ;;  %1156 = vst.msk [vmem:[#allocation2 + $0x10] sm:$0xff] %vm1003_vm3, %v1139_v31 }
 0x24d   : > { %v1023_v36 = vshrl.u32 %v988_v29, 16  ;;  %v1026_v37 = vshll.u32 %v988_v29, 16  ;;  %1192 = vrot.lane.b32.xlu1 %v988_v29, %s13666_s4  ;;  %v860_v38 = vadd.f32 %v14129_v48, %v859_v35  ;;  %v11985_v39 = vpop.f32.mrb[10].mxu1 }
 0x24e   : > { %v1032_v40 = vrot.slane %v1030_v32, 7  ;;  %v1259_v41 = vrot.slane %v1033_v33, 1  ;;  %v964_v42 = vmax.f32 %v868_v34, 0.0  ;;  %v871_v43 = vadd.f32 %v11985_v39, %v14129_v48  ;;  %v862_v44 = vpop.f32.mrb[11].mxu1 }
 0x24f   : > { %v1025_v45 = vrot.slane %v1023_v36, 7  ;;  %v1257_v46 = vrot.slane %v1026_v37, 1  ;;  %v962_v47 = vmax.f32 %v860_v38, 0.0  ;;  %v863_v49 = vadd.f32 %v14129_v48, %v862_v44 }
 0x250   : > { %v1035_v50 = vor.u32 %v1033_v33, %v1032_v40  ;;  %v1260_v51 = vor.u32 %v1259_v41, %v1030_v32  ;;  %v965_v52 = vmax.f32 %v871_v43, 0.0 }
 0x251   : > { %v1028_v53 = vor.u32 %v1026_v37, %v1025_v45  ;;  %v1258_v54 = vor.u32 %v1257_v46, %v1023_v36  ;;  %1194 = vrot.lane.b32.xlu1 %v989_v26, %s13666_s4  ;;  %v963_v55 = vmax.f32 %v863_v49, 0.0 }
 0x252   : > { %v1307_v57 = vsel %vm14134_vm6, %v1260_v51, 0  ;;  %v991_v58 = vpack.c.bf16 %v965_v52, %v964_v42  ;;  %v1142_v59 = vsel %vm14145_vm9, 0, %v1035_v50 }
 0x253   : > { %1323 = vst.msk [vmem:[#allocation2 + $0x48] sm:$0xff] %vm1003_vm3, %v1307_v57  ;;  %v1306_v60 = vsel %vm14134_vm6, %v1258_v54, 0  ;;  %v1339_v61 = vld [vmem:[#allocation2 + $0x18] sm:$0xff]  ;;  %v990_v62 = vpack.c.bf16 %v963_v55, %v962_v47  ;;  %v11988_v63 = vpop.f32.mrb[12].mxu1  ;;  %v1141_v0 = vsel %vm14145_vm9, 0, %v1028_v53  ;;  %1159 = vst.msk [vmem:[#allocation2 + $0x40] sm:$0xff] %vm1003_vm3, %v1142_v59 }
 0x254   : > { %1322 = vst.msk [vmem:[#allocation2 + $0x38] sm:$0xff] %vm1003_vm3, %v1306_v60  ;;  %11001 = vmatprep.mubr.msk.bf16.mxu1 %vm1003_vm3, %v1339_v61  ;;  %v1044_v1 = vshrl.u32 %v991_v58, 16  ;;  %v1047_v2 = vshll.u32 %v991_v58, 16  ;;  %v884_v3 = vadd.f32 %v11988_v63, %v14129_v48  ;;  %v875_v4 = vpop.f32.mrb[13].mxu1  ;;  %1158 = vst.msk [vmem:[#allocation2 + $0x30] sm:$0xff] %vm1003_vm3, %v1141_v0 }
 0x255   : > { %v1037_v5 = vshrl.u32 %v990_v62, 16  ;;  %v1040_v6 = vshll.u32 %v990_v62, 16  ;;  %1198 = vrot.lane.b32.xlu1 %v991_v58, %s13666_s4  ;;  %1196 = vrot.lane.b32.xlu0 %v990_v62, %s13666_s4  ;;  %v876_v7 = vadd.f32 %v14129_v48, %v875_v4  ;;  %v11989_v8 = vpop.f32.mrb[14].mxu1 }
 0x256   : > { %v1046_v9 = vrot.slane %v1044_v1, 7  ;;  %v1263_v10 = vrot.slane %v1047_v2, 1  ;;  %v968_v11 = vmax.f32 %v884_v3, 0.0  ;;  %v887_v12 = vadd.f32 %v11989_v8, %v14129_v48  ;;  %v878_v13 = vpop.f32.mrb[15].mxu1 }
 0x257   : > { %v1039_v15 = vrot.slane %v1037_v5, 7  ;;  %v1261_v16 = vrot.slane %v1040_v6, 1  ;;  %v966_v17 = vmax.f32 %v876_v7, 0.0  ;;  %v879_v18 = vadd.f32 %v14129_v48, %v878_v13 }
 0x258   : > { %v1049_v19 = vor.u32 %v1047_v2, %v1046_v9  ;;  %v1264_v20 = vor.u32 %v1263_v10, %v1044_v1  ;;  %v969_v21 = vmax.f32 %v887_v12, 0.0 }
 0x259   : > { %v1042_v22 = vor.u32 %v1040_v6, %v1039_v15  ;;  %v1262_v23 = vor.u32 %v1261_v16, %v1037_v5  ;;  %v967_v24 = vmax.f32 %v879_v18, 0.0 }
 0x25a   : > { %v1309_v25 = vsel %vm14134_vm6, %v1264_v20, 0  ;;  %v993_v26 = vpack.c.bf16 %v969_v21, %v968_v11  ;;  %v1144_v27 = vsel %vm14145_vm9, 0, %v1049_v19 }
 0x25b   : > { %1325 = vst.msk [vmem:[#allocation2 + $0x68] sm:$0xff] %vm1003_vm3, %v1309_v25  ;;  %v1308_v28 = vsel %vm14134_vm6, %v1262_v23, 0  ;;  %v992_v29 = vpack.c.bf16 %v967_v24, %v966_v17  ;;  %v11992_v30 = vpop.f32.mrb[16].mxu1  ;;  %1161 = vst.msk [vmem:[#allocation2 + $0x60] sm:$0xff] %vm1003_vm3, %v1144_v27  ;;  %v1143_v31 = vsel %vm14145_vm9, 0, %v1042_v22 }
 0x25c   : > { %1324 = vst.msk [vmem:[#allocation2 + $0x58] sm:$0xff] %vm1003_vm3, %v1308_v28  ;;  %v1058_v32 = vshrl.u32 %v993_v26, 16  ;;  %v1061_v33 = vshll.u32 %v993_v26, 16  ;;  %1202 = vrot.lane.b32.xlu1 %v993_v26, %s13666_s4  ;;  %v900_v34 = vadd.f32 %v11992_v30, %v14129_v48  ;;  %v891_v35 = vpop.f32.mrb[17].mxu1  ;;  %1160 = vst.msk [vmem:[#allocation2 + $0x50] sm:$0xff] %vm1003_vm3, %v1143_v31 }
 0x25d   : > { %v1051_v36 = vshrl.u32 %v992_v29, 16  ;;  %v1054_v37 = vshll.u32 %v992_v29, 16  ;;  %1200 = vrot.lane.b32.xlu0 %v992_v29, %s13666_s4  ;;  %v892_v38 = vadd.f32 %v14129_v48, %v891_v35  ;;  %v11993_v39 = vpop.f32.mrb[18].mxu1 }
 0x25e   : > { %v1060_v40 = vrot.slane %v1058_v32, 7  ;;  %v1267_v41 = vrot.slane %v1061_v33, 1  ;;  %v972_v42 = vmax.f32 %v900_v34, 0.0  ;;  %v903_v43 = vadd.f32 %v11993_v39, %v14129_v48  ;;  %v894_v44 = vpop.f32.mrb[19].mxu1 }
 0x25f   : > { %v1053_v45 = vrot.slane %v1051_v36, 7  ;;  %v1265_v46 = vrot.slane %v1054_v37, 1  ;;  %v970_v47 = vmax.f32 %v892_v38, 0.0  ;;  %v895_v49 = vadd.f32 %v14129_v48, %v894_v44 }
 0x260   : > { %v1063_v50 = vor.u32 %v1061_v33, %v1060_v40  ;;  %v1268_v51 = vor.u32 %v1267_v41, %v1058_v32  ;;  %v973_v52 = vmax.f32 %v903_v43, 0.0 }
 0x261   : > { %v1056_v53 = vor.u32 %v1054_v37, %v1053_v45  ;;  %v1266_v54 = vor.u32 %v1265_v46, %v1051_v36  ;;  %v971_v55 = vmax.f32 %v895_v49, 0.0 }
 0x262   : > { %v1311_v57 = vsel %vm14134_vm6, %v1268_v51, 0  ;;  %v995_v58 = vpack.c.bf16 %v973_v52, %v972_v42  ;;  %v1146_v59 = vsel %vm14145_vm9, 0, %v1063_v50 }
 0x263   : > { %1327 = vst.msk [vmem:[#allocation2 + $0x88] sm:$0xff] %vm1003_vm3, %v1311_v57  ;;  %v1310_v60 = vsel %vm14134_vm6, %v1266_v54, 0  ;;  %v994_v61 = vpack.c.bf16 %v971_v55, %v970_v47  ;;  %v11996_v62 = vpop.f32.mrb[20].mxu1  ;;  %1163 = vst.msk [vmem:[#allocation2 + $0x80] sm:$0xff] %vm1003_vm3, %v1146_v59  ;;  %v1145_v63 = vsel %vm14145_vm9, 0, %v1056_v53 }
 0x264   : > { %1326 = vst.msk [vmem:[#allocation2 + $0x78] sm:$0xff] %vm1003_vm3, %v1310_v60  ;;  %v1072_v0 = vshrl.u32 %v995_v58, 16  ;;  %v1075_v1 = vshll.u32 %v995_v58, 16  ;;  %1206 = vrot.lane.b32.xlu1 %v995_v58, %s13666_s4  ;;  %v916_v2 = vadd.f32 %v11996_v62, %v14129_v48  ;;  %v907_v3 = vpop.f32.mrb[21].mxu1  ;;  %1162 = vst.msk [vmem:[#allocation2 + $0x70] sm:$0xff] %vm1003_vm3, %v1145_v63 }
 0x265   : > { %v1065_v4 = vshrl.u32 %v994_v61, 16  ;;  %v1068_v5 = vshll.u32 %v994_v61, 16  ;;  %1204 = vrot.lane.b32.xlu0 %v994_v61, %s13666_s4  ;;  %v908_v6 = vadd.f32 %v14129_v48, %v907_v3  ;;  %v11997_v7 = vpop.f32.mrb[22].mxu1 }
 0x266   : > { %v1074_v8 = vrot.slane %v1072_v0, 7  ;;  %v1271_v9 = vrot.slane %v1075_v1, 1  ;;  %v976_v10 = vmax.f32 %v916_v2, 0.0  ;;  %v919_v11 = vadd.f32 %v11997_v7, %v14129_v48  ;;  %v910_v12 = vpop.f32.mrb[23].mxu1 }
 0x267   : > { %v1067_v13 = vrot.slane %v1065_v4, 7  ;;  %v1269_v15 = vrot.slane %v1068_v5, 1  ;;  %v974_v16 = vmax.f32 %v908_v6, 0.0  ;;  %v911_v17 = vadd.f32 %v14129_v48, %v910_v12 }
 0x268   : > { %v1077_v18 = vor.u32 %v1075_v1, %v1074_v8  ;;  %v1272_v19 = vor.u32 %v1271_v9, %v1072_v0  ;;  %v977_v20 = vmax.f32 %v919_v11, 0.0 }
 0x269   : > { %v1070_v21 = vor.u32 %v1068_v5, %v1067_v13  ;;  %v1270_v22 = vor.u32 %v1269_v15, %v1065_v4  ;;  %v975_v23 = vmax.f32 %v911_v17, 0.0 }
 0x26a   : > { %v1313_v24 = vsel %vm14134_vm6, %v1272_v19, 0  ;;  %v997_v25 = vpack.c.bf16 %v977_v20, %v976_v10  ;;  %v1148_v26 = vsel %vm14145_vm9, 0, %v1077_v18 }
 0x26b   : > { %1329 = vst.msk [vmem:[#allocation2 + $0xa8] sm:$0xff] %vm1003_vm3, %v1313_v24  ;;  %v1312_v27 = vsel %vm14134_vm6, %v1270_v22, 0  ;;  %v996_v28 = vpack.c.bf16 %v975_v23, %v974_v16  ;;  %v12000_v29 = vpop.f32.mrb[24].mxu1  ;;  %1165 = vst.msk [vmem:[#allocation2 + $0xa0] sm:$0xff] %vm1003_vm3, %v1148_v26  ;;  %v1147_v30 = vsel %vm14145_vm9, 0, %v1070_v21 }
 0x26c   : > { %1328 = vst.msk [vmem:[#allocation2 + $0x98] sm:$0xff] %vm1003_vm3, %v1312_v27  ;;  %v1086_v31 = vshrl.u32 %v997_v25, 16  ;;  %v1089_v32 = vshll.u32 %v997_v25, 16  ;;  %1210 = vrot.lane.b32.xlu1 %v997_v25, %s13666_s4  ;;  %v932_v33 = vadd.f32 %v12000_v29, %v14129_v48  ;;  %v923_v34 = vpop.f32.mrb[25].mxu1  ;;  %1164 = vst.msk [vmem:[#allocation2 + $0x90] sm:$0xff] %vm1003_vm3, %v1147_v30 }
 0x26d   : > { %v1079_v35 = vshrl.u32 %v996_v28, 16  ;;  %v1082_v36 = vshll.u32 %v996_v28, 16  ;;  %1208 = vrot.lane.b32.xlu0 %v996_v28, %s13666_s4  ;;  %v924_v37 = vadd.f32 %v14129_v48, %v923_v34  ;;  %v12001_v38 = vpop.f32.mrb[26].mxu1 }
 0x26e   : > { %v1088_v39 = vrot.slane %v1086_v31, 7  ;;  %v1275_v40 = vrot.slane %v1089_v32, 1  ;;  %v980_v41 = vmax.f32 %v932_v33, 0.0  ;;  %v935_v42 = vadd.f32 %v12001_v38, %v14129_v48  ;;  %v926_v43 = vpop.f32.mrb[27].mxu1 }
 0x26f   : > { %v1081_v44 = vrot.slane %v1079_v35, 7  ;;  %v1273_v45 = vrot.slane %v1082_v36, 1  ;;  %v978_v46 = vmax.f32 %v924_v37, 0.0  ;;  %v927_v47 = vadd.f32 %v14129_v48, %v926_v43 }
 0x270   : > { %v1091_v49 = vor.u32 %v1089_v32, %v1088_v39  ;;  %v1276_v50 = vor.u32 %v1275_v40, %v1086_v31  ;;  %v981_v51 = vmax.f32 %v935_v42, 0.0 }
 0x271   : > { %v1084_v52 = vor.u32 %v1082_v36, %v1081_v44  ;;  %v1274_v53 = vor.u32 %v1273_v45, %v1079_v35  ;;  %v979_v54 = vmax.f32 %v927_v47, 0.0 }
 0x272   : > { %v1315_v55 = vsel %vm14134_vm6, %v1276_v50, 0  ;;  %v999_v57 = vpack.c.bf16 %v981_v51, %v980_v41  ;;  %v1150_v58 = vsel %vm14145_vm9, 0, %v1091_v49 }
 0x273   : > { %1331 = vst.msk [vmem:[#allocation2 + $0xc8] sm:$0xff] %vm1003_vm3, %v1315_v55  ;;  %v1314_v59 = vsel %vm14134_vm6, %v1274_v53, 0  ;;  %v998_v60 = vpack.c.bf16 %v979_v54, %v978_v46  ;;  %v12004_v61 = vpop.f32.mrb[28].mxu1  ;;  %1167 = vst.msk [vmem:[#allocation2 + $0xc0] sm:$0xff] %vm1003_vm3, %v1150_v58  ;;  %v1149_v62 = vsel %vm14145_vm9, 0, %v1084_v52  ;;  %v1341_v52 = vld [vmem:[#allocation2 + $0x28] sm:$0xff] }
 0x274   : > { %1330 = vst.msk [vmem:[#allocation2 + $0xb8] sm:$0xff] %vm1003_vm3, %v1314_v59  ;;  %v1100_v63 = vshrl.u32 %v999_v57, 16  ;;  %v1103_v0 = vshll.u32 %v999_v57, 16  ;;  %1214 = vrot.lane.b32.xlu1 %v999_v57, %s13666_s4  ;;  %v948_v1 = vadd.f32 %v12004_v61, %v14129_v48  ;;  %v939_v2 = vpop.f32.mrb[29].mxu1  ;;  %1166 = vst.msk [vmem:[#allocation2 + $0xb0] sm:$0xff] %vm1003_vm3, %v1149_v62  ;;  %v1343_v58 = vld [vmem:[#allocation2 + $0x38] sm:$0xff] }
 0x275   : > { %v1093_v3 = vshrl.u32 %v998_v60, 16  ;;  %v1096_v4 = vshll.u32 %v998_v60, 16  ;;  %1212 = vrot.lane.b32.xlu0 %v998_v60, %s13666_s4  ;;  %v940_v5 = vadd.f32 %v14129_v48, %v939_v2  ;;  %v12005_v6 = vpop.f32.mrb[30].mxu1  ;;  %v1345_v62 = vld [vmem:[#allocation2 + $0x48] sm:$0xff]  ;;  %v1347_v2 = vld [vmem:[#allocation2 + $0x58] sm:$0xff] }
 0x276   : > { %v1102_v7 = vrot.slane %v1100_v63, 7  ;;  %v1279_v8 = vrot.slane %v1103_v0, 1  ;;  %v984_v9 = vmax.f32 %v948_v1, 0.0  ;;  %v951_v10 = vadd.f32 %v12005_v6, %v14129_v48  ;;  %v942_v11 = vpop.f32.mrb[31].mxu1  ;;  %v1349_v6 = vld [vmem:[#allocation2 + $0x68] sm:$0xff] }
 0x277   : > { %v1095_v12 = vrot.slane %v1093_v3, 7  ;;  %v1277_v13 = vrot.slane %v1096_v4, 1  ;;  %v982_v15 = vmax.f32 %v940_v5, 0.0  ;;  %v943_v16 = vadd.f32 %v14129_v48, %v942_v11 }
 0x278   : > { %v1105_v17 = vor.u32 %v1103_v0, %v1102_v7  ;;  %v1280_v18 = vor.u32 %v1279_v8, %v1100_v63  ;;  %v985_v19 = vmax.f32 %v951_v10, 0.0  ;;  %v1351_v10 = vld [vmem:[#allocation2 + $0x78] sm:$0xff] }
 0x279   : > { %v1098_v20 = vor.u32 %v1096_v4, %v1095_v12  ;;  %v1278_v21 = vor.u32 %v1277_v13, %v1093_v3  ;;  %v983_v22 = vmax.f32 %v943_v16, 0.0 }
 0x27a   : > { %v1317_v23 = vsel %vm14134_vm6, %v1280_v18, 0  ;;  %v1001_v24 = vpack.c.bf16 %v985_v19, %v984_v9  ;;  %v1152_v25 = vsel %vm14145_vm9, 0, %v1105_v17  ;;  %v1355_v17 = vld [vmem:[#allocation2 + $0x98] sm:$0xff]  ;;  %v1357_v19 = vld [vmem:[#allocation2 + $0xa8] sm:$0xff] }
 0x27b   : > { %1333 = vst.msk [vmem:[#allocation2 + $0xe8] sm:$0xff] %vm1003_vm3, %v1317_v23  ;;  %v1316_v26 = vsel %vm14134_vm6, %v1278_v21, 0  ;;  %v1000_v27 = vpack.c.bf16 %v983_v22, %v982_v15  ;;  %1169 = vst.msk [vmem:[#allocation2 + $0xe0] sm:$0xff] %vm1003_vm3, %v1152_v25  ;;  %v1151_v48 = vsel %vm14145_vm9, 0, %v1098_v20  ;;  %v14287_v45 = vpop.f32.mrb[32].mxu1  ;;  %v1353_v15 = vld [vmem:[#allocation2 + $0x88] sm:$0xff] }
 0x27c   : > { %1332 = vst.msk [vmem:[#allocation2 + $0xd8] sm:$0xff] %vm1003_vm3, %v1316_v26  ;;  %v1114_v28 = vshrl.u32 %v1001_v24, 16  ;;  %v1117_v29 = vshll.u32 %v1001_v24, 16  ;;  %1218 = vrot.lane.b32.xlu1 %v1001_v24, %s13666_s4  ;;  %1168 = vst.msk [vmem:[#allocation2 + $0xd0] sm:$0xff] %vm1003_vm3, %v1151_v48  ;;  %v1606_v46 = vpop.f32.mrb[33].mxu1  ;;  %v1359_v21 = vld [vmem:[#allocation2 + $0xb8] sm:$0xff] }
 0x27d   : > { %v1107_v30 = vshrl.u32 %v1000_v27, 16  ;;  %v1110_v31 = vshll.u32 %v1000_v27, 16  ;;  %1216 = vrot.lane.b32.xlu0 %v1000_v27, %s13666_s4  ;;  %v14289_v47 = vpop.f32.mrb[34].mxu1  ;;  %v1361_v23 = vld [vmem:[#allocation2 + $0xc8] sm:$0xff] }
 0x27e   : > { %v1116_v32 = vrot.slane %v1114_v28, 7  ;;  %v1283_v33 = vrot.slane %v1117_v29, 1  ;;  %v1609_v49 = vpop.f32.mrb[35].mxu1 }
 0x27f   : > { %v1109_v34 = vrot.slane %v1107_v30, 7  ;;  %v1281_v35 = vrot.slane %v1110_v31, 1 }
 0x280   : > { %v1119_v36 = vor.u32 %v1117_v29, %v1116_v32  ;;  %v1284_v37 = vor.u32 %v1283_v33, %v1114_v28  ;;  %v13213_v33 = vld [vmem:[#allocation2] sm:$0xff] }
 0x281   : > { %v1112_v38 = vor.u32 %v1110_v31, %v1109_v34  ;;  %v1282_v39 = vor.u32 %v1281_v35, %v1107_v30  ;;  %v1371_v31 = vld [vmem:[#allocation2 + $0x118] sm:$0xff] }
 0x282   : > { %v1319_v40 = vsel %vm14134_vm6, %v1284_v37, 0  ;;  %v1154_v41 = vsel %vm14145_vm9, 0, %v1119_v36  ;;  %v1365_v27 = vld [vmem:[#allocation2 + $0xe8] sm:$0xff] }
 0x283   : > { %1335 = vst.msk [vmem:[#allocation2 + $0x108] sm:$0xff] %vm1003_vm3, %v1319_v40  ;;  %v1318_v42 = vsel %vm14134_vm6, %v1282_v39, 0  ;;  %1171 = vst.msk [vmem:[#allocation2 + $0x100] sm:$0xff] %vm1003_vm3, %v1154_v41  ;;  %v1153_v43 = vsel %vm14145_vm9, 0, %v1112_v38  ;;  %v1363_v25 = vld [vmem:[#allocation2 + $0xd8] sm:$0xff]  ;;  %vm3582_vm6 = vcmask 519168  }
 0x284   : > { %1334 = vst.msk [vmem:[#allocation2 + $0xf8] sm:$0xff] %vm1003_vm3, %v1318_v42  ;;  %1170 = vst.msk [vmem:[#allocation2 + $0xf0] sm:$0xff] %vm1003_vm3, %v1153_v43 }
 0x28a   : > { %v1369_v30 = vld [vmem:[#allocation2 + $0x108] sm:$0xff] }
 0x28b   : > { %v1367_v28 = vld [vmem:[#allocation2 + $0xf8] sm:$0xff] }
 0x2b7   : > { %v1189_v44 = vpop.permute.xlu0 %1188 }
 0x2b8   : > { %1237 = vst.msk [vmem:[#allocation2 + $0x10] sm:$0xff] %vm1236_vm10, %v1189_v44 }
 0x2bb   : > { %v1191_v56 = vpop.permute.xlu0 %1190 }
 0x2bc   : > { %1238 = vst.msk [vmem:[#allocation2 + $0x20] sm:$0xff] %vm1236_vm10, %v1191_v56 }
 0x2bf   : > { %v1193_v50 = vpop.permute.xlu1 %1192  ;;  %v1338_v51 = vld [vmem:[#allocation2 + $0x10] sm:$0xff] }
 0x2c0   : > { %1239 = vst.msk [vmem:[#allocation2 + $0x30] sm:$0xff] %vm1236_vm10, %v1193_v50  ;;  %1611 = vmatmul.mubr.bf16.gmra.mrb[36].mxu1 %v1338_v51 }
 0x2c1   : > { %11002 = vmatprep.mubr.msk.bf16.mxu1 %vm1003_vm3, %v1341_v52 }
 0x2c3   : > { %v1195_v53 = vpop.permute.xlu1 %1194  ;;  %v1340_v54 = vld [vmem:[#allocation2 + $0x20] sm:$0xff] }
 0x2c4   : > { %1240 = vst.msk [vmem:[#allocation2 + $0x40] sm:$0xff] %vm1236_vm10, %v1195_v53 }
 0x2c7   : > { %v1199_v55 = vpop.permute.xlu1 %1198  ;;  %v1197_v57 = vpop.permute.xlu0 %1196  ;;  %v1342_v60 = vld [vmem:[#allocation2 + $0x30] sm:$0xff] }
 0x2c8   : > { %1619 = vmatmul.mubr.bf16.gmra.mrb[40].mxu1 %v1340_v54  ;;  %1242 = vst.msk [vmem:[#allocation2 + $0x60] sm:$0xff] %vm1236_vm10, %v1199_v55  ;;  %1241 = vst.msk [vmem:[#allocation2 + $0x50] sm:$0xff] %vm1236_vm10, %v1197_v57 }
 0x2c9   : > { %11003 = vmatprep.mubr.msk.bf16.mxu1 %vm1003_vm3, %v1343_v58 }
 0x2cb   : > { %v1344_v0 = vld [vmem:[#allocation2 + $0x40] sm:$0xff] }
 0x2ce   : > { %v1203_v59 = vpop.permute.xlu1 %1202 }
 0x2cf   : > { %1244 = vst.msk [vmem:[#allocation2 + $0x80] sm:$0xff] %vm1236_vm10, %v1203_v59  ;;  %v1201_v61 = vpop.permute.xlu0 %1200  ;;  %v1346_v4 = vld [vmem:[#allocation2 + $0x50] sm:$0xff]  ;;  %v1348_v8 = vld [vmem:[#allocation2 + $0x60] sm:$0xff] }
 0x2d0   : > { %1629 = vmatmul.mubr.bf16.gmra.mrb[44].mxu1 %v1342_v60  ;;  %1243 = vst.msk [vmem:[#allocation2 + $0x70] sm:$0xff] %vm1236_vm10, %v1201_v61 }
 0x2d1   : > { %11004 = vmatprep.mubr.msk.bf16.mxu1 %vm1003_vm3, %v1345_v62 }
 0x2d6   : > { %v1207_v63 = vpop.permute.xlu1 %1206  ;;  %v1352_v16 = vld [vmem:[#allocation2 + $0x80] sm:$0xff] }
 0x2d7   : > { %1246 = vst.msk [vmem:[#allocation2 + $0xa0] sm:$0xff] %vm1236_vm10, %v1207_v63  ;;  %v1205_v1 = vpop.permute.xlu0 %1204  ;;  %v1350_v12 = vld [vmem:[#allocation2 + $0x70] sm:$0xff] }
 0x2d8   : > { %1639 = vmatmul.mubr.bf16.gmra.mrb[48].mxu1 %v1344_v0  ;;  %1245 = vst.msk [vmem:[#allocation2 + $0x90] sm:$0xff] %vm1236_vm10, %v1205_v1 }
 0x2d9   : > { %11005 = vmatprep.mubr.msk.bf16.mxu1 %vm1003_vm3, %v1347_v2 }
 0x2de   : > { %v1211_v3 = vpop.permute.xlu1 %1210  ;;  %v1356_v20 = vld [vmem:[#allocation2 + $0xa0] sm:$0xff] }
 0x2df   : > { %1248 = vst.msk [vmem:[#allocation2 + $0xc0] sm:$0xff] %vm1236_vm10, %v1211_v3  ;;  %v1209_v5 = vpop.permute.xlu0 %1208  ;;  %v1354_v18 = vld [vmem:[#allocation2 + $0x90] sm:$0xff] }
 0x2e0   : > { %1649 = vmatmul.mubr.bf16.gmra.mrb[52].mxu1 %v1346_v4  ;;  %1247 = vst.msk [vmem:[#allocation2 + $0xb0] sm:$0xff] %vm1236_vm10, %v1209_v5 }
 0x2e1   : > { %11006 = vmatprep.mubr.msk.bf16.mxu1 %vm1003_vm3, %v1349_v6 }
 0x2e6   : > { %v1215_v7 = vpop.permute.xlu1 %1214  ;;  %v1360_v24 = vld [vmem:[#allocation2 + $0xc0] sm:$0xff] }
 0x2e7   : > { %1250 = vst.msk [vmem:[#allocation2 + $0xe0] sm:$0xff] %vm1236_vm10, %v1215_v7  ;;  %v1213_v9 = vpop.permute.xlu0 %1212  ;;  %v1358_v22 = vld [vmem:[#allocation2 + $0xb0] sm:$0xff] }
 0x2e8   : > { %1659 = vmatmul.mubr.bf16.gmra.mrb[56].mxu1 %v1348_v8  ;;  %1249 = vst.msk [vmem:[#allocation2 + $0xd0] sm:$0xff] %vm1236_vm10, %v1213_v9 }
 0x2e9   : > { %11007 = vmatprep.mubr.msk.bf16.mxu1 %vm1003_vm3, %v1351_v10 }
 0x2ee   : > { %v1219_v11 = vpop.permute.xlu1 %1218  ;;  %v1364_v48 = vld [vmem:[#allocation2 + $0xe0] sm:$0xff] }
 0x2ef   : > { %1252 = vst.msk [vmem:[#allocation2 + $0x100] sm:$0xff] %vm1236_vm10, %v1219_v11  ;;  %v1217_v13 = vpop.permute.xlu0 %1216  ;;  %v1362_v26 = vld [vmem:[#allocation2 + $0xd0] sm:$0xff] }
 0x2f0   : > { %1669 = vmatmul.mubr.bf16.gmra.mrb[60].mxu1 %v1350_v12  ;;  %1251 = vst.msk [vmem:[#allocation2 + $0xf0] sm:$0xff] %vm1236_vm10, %v1217_v13  ;;  %vm3386_vm10 = vcmask 523268  }
 0x2f1   : > { %11008 = vmatprep.mubr.msk.bf16.mxu1 %vm1003_vm3, %v1353_v15 }
 0x2f6   : > { %v1368_v32 = vld [vmem:[#allocation2 + $0x100] sm:$0xff] }
 0x2f7   : > { %v1366_v29 = vld [vmem:[#allocation2 + $0xf0] sm:$0xff] }
 0x2f8   : > { %1679 = vmatmul.mubr.bf16.gmra.mrb[64].mxu1 %v1352_v16 }
 0x2f9   : > { %11009 = vmatprep.mubr.msk.bf16.mxu1 %vm1003_vm3, %v1355_v17 }
 0x300   : > { %1689 = vmatmul.mubr.bf16.gmra.mrb[68].mxu1 %v1354_v18 }
 0x301   : > { %11010 = vmatprep.mubr.msk.bf16.mxu1 %vm1003_vm3, %v1357_v19 }
 0x308   : > { %1699 = vmatmul.mubr.bf16.gmra.mrb[72].mxu1 %v1356_v20 }
 0x309   : > { %11011 = vmatprep.mubr.msk.bf16.mxu1 %vm1003_vm3, %v1359_v21 }
 0x310   : > { %1709 = vmatmul.mubr.bf16.gmra.mrb[76].mxu1 %v1358_v22 }
 0x311   : > { %11012 = vmatprep.mubr.msk.bf16.mxu1 %vm1003_vm3, %v1361_v23 }
 0x318   : > { %1719 = vmatmul.mubr.bf16.gmra.mrb[80].mxu1 %v1360_v24 }
 0x319   : > { %11013 = vmatprep.mubr.msk.bf16.mxu1 %vm1003_vm3, %v1363_v25 }
 0x320   : > { %1729 = vmatmul.mubr.bf16.gmra.mrb[84].mxu1 %v1362_v26 }
 0x321   : > { %11014 = vmatprep.mubr.msk.bf16.mxu1 %vm1003_vm3, %v1365_v27 }
 0x328   : > { %1739 = vmatmul.mubr.bf16.gmra.mrb[88].mxu1 %v1364_v48 }
 0x329   : > { %11015 = vmatprep.mubr.msk.bf16.mxu1 %vm1003_vm3, %v1367_v28 }
 0x330   : > { %1749 = vmatmul.mubr.bf16.gmra.mrb[92].mxu1 %v1366_v29 }
 0x331   : > { %11016 = vmatprep.mubr.msk.bf16.mxu1 %vm1003_vm3, %v1369_v30  ;;  %v13667_v30 = vmov 1983009808  }
 0x338   : > { %1759 = vmatmul.mubr.bf16.gmra.mrb[96].mxu1 %v1368_v32  ;;  %v16347_v32 = vlaneseq }
 0x339   : > { %11017 = vmatprep.mubr.msk.bf16.mxu1 %vm1003_vm3, %v1371_v31  ;;  %v2074_v31 = vunpack.c.l.s4 %v13667_v30 }
 0x340   : > { %1769 = vmatmul.mubr.bf16.gmra.mrb[100].mxu1 %v13213_v33 }
 0x393   : > { %v14322_v34 = vpop.f32.mrb[36].mxu1 }
 0x394   : > { %1809 = vrot.lane.b32.xlu0 %v14322_v34, %s13666_s4  ;;  %v1614_v35 = vpop.f32.mrb[37].mxu1 }
 0x395   : > { %v14326_v36 = vpop.f32.mrb[38].mxu1 }
 0x396   : > { %v1617_v37 = vpop.f32.mrb[39].mxu1 }
 0x398   : > { %1811 = vrot.lane.b32.xlu0 %v14326_v36, %s13666_s4 }
 0x39b   : > { %v14330_v38 = vpop.f32.mrb[40].mxu1 }
 0x39c   : > { %1813 = vrot.lane.b32.xlu1 %v14330_v38, %s13666_s4  ;;  %v14334_v39 = vpop.f32.mrb[41].mxu1 }
 0x39d   : > { %v14336_v40 = vpop.f32.mrb[42].mxu1 }
 0x39e   : > { %v14338_v41 = vpop.f32.mrb[43].mxu1 }
 0x3a0   : > { %1815 = vrot.lane.b32.xlu1 %v14336_v40, %s13666_s4 }
 0x3a3   : > { %v14342_v42 = vpop.f32.mrb[44].mxu1 }
 0x3a4   : > { %1817 = vrot.lane.b32.xlu0 %v14342_v42, %s13666_s4  ;;  %v14346_v43 = vpop.f32.mrb[45].mxu1 }
 0x3a5   : > { %v14348_v44 = vpop.f32.mrb[46].mxu1 }
 0x3a6   : > { %v14350_v46 = vpop.f32.mrb[47].mxu1 }
 0x3a8   : > { %1819 = vrot.lane.b32.xlu0 %v14348_v44, %s13666_s4 }
 0x3ab   : > { %v14354_v56 = vpop.f32.mrb[48].mxu1 }
 0x3ac   : > { %1821 = vrot.lane.b32.xlu1 %v14354_v56, %s13666_s4  ;;  %v14358_v49 = vpop.f32.mrb[49].mxu1 }
 0x3ad   : > { %v14360_v50 = vpop.f32.mrb[50].mxu1 }
 0x3ae   : > { %v14362_v51 = vpop.f32.mrb[51].mxu1 }
 0x3b0   : > { %1823 = vrot.lane.b32.xlu1 %v14360_v50, %s13666_s4 }
 0x3b3   : > { %v14366_v52 = vpop.f32.mrb[52].mxu1 }
 0x3b4   : > { %1825 = vrot.lane.b32.xlu0 %v14366_v52, %s13666_s4  ;;  %v14370_v53 = vpop.f32.mrb[53].mxu1 }
 0x3b5   : > { %v14372_v54 = vpop.f32.mrb[54].mxu1 }
 0x3b6   : > { %v14374_v55 = vpop.f32.mrb[55].mxu1 }
 0x3b8   : > { %1827 = vrot.lane.b32.xlu0 %v14372_v54, %s13666_s4 }
 0x3bb   : > { %v14378_v57 = vpop.f32.mrb[56].mxu1 }
 0x3bc   : > { %1829 = vrot.lane.b32.xlu1 %v14378_v57, %s13666_s4  ;;  %v14382_v58 = vpop.f32.mrb[57].mxu1 }
 0x3bd   : > { %v14384_v59 = vpop.f32.mrb[58].mxu1 }
 0x3be   : > { %v14386_v60 = vpop.f32.mrb[59].mxu1 }
 0x3c0   : > { %1831 = vrot.lane.b32.xlu1 %v14384_v59, %s13666_s4 }
 0x3c3   : > { %v14390_v61 = vpop.f32.mrb[60].mxu1 }
 0x3c4   : > { %1833 = vrot.lane.b32.xlu0 %v14390_v61, %s13666_s4  ;;  %v14394_v62 = vpop.f32.mrb[61].mxu1 }
 0x3c5   : > { %v14396_v63 = vpop.f32.mrb[62].mxu1 }
 0x3c6   : > { %v14398_v0 = vpop.f32.mrb[63].mxu1 }
 0x3c8   : > { %1835 = vrot.lane.b32.xlu0 %v14396_v63, %s13666_s4 }
 0x3cb   : > { %v14402_v1 = vpop.f32.mrb[64].mxu1 }
 0x3cc   : > { %1837 = vrot.lane.b32.xlu1 %v14402_v1, %s13666_s4  ;;  %v14406_v2 = vpop.f32.mrb[65].mxu1 }
 0x3cd   : > { %v14408_v3 = vpop.f32.mrb[66].mxu1 }
 0x3ce   : > { %v14410_v4 = vpop.f32.mrb[67].mxu1 }
 0x3d0   : > { %1839 = vrot.lane.b32.xlu1 %v14408_v3, %s13666_s4 }
 0x3d3   : > { %v14414_v5 = vpop.f32.mrb[68].mxu1 }
 0x3d4   : > { %16419 = vst [vmem:[#allocation43_spill] sm:$0xff] %v14414_v5  ;;  %1841 = vrot.lane.b32.xlu0 %v14414_v5, %s13666_s4  ;;  %v14418_v6 = vpop.f32.mrb[69].mxu1 }
 0x3d5   : > { %v14420_v7 = vpop.f32.mrb[70].mxu1 }
 0x3d6   : > { %16420 = vst [vmem:[#allocation44_spill] sm:$0xff] %v14420_v7  ;;  %v14422_v8 = vpop.f32.mrb[71].mxu1 }
 0x3d8   : > { %1843 = vrot.lane.b32.xlu0 %v14420_v7, %s13666_s4 }
 0x3db   : > { %v14426_v9 = vpop.f32.mrb[72].mxu1 }
 0x3dc   : > { %16421 = vst [vmem:[#allocation45_spill] sm:$0xff] %v14426_v9  ;;  %1845 = vrot.lane.b32.xlu1 %v14426_v9, %s13666_s4  ;;  %v14430_v10 = vpop.f32.mrb[73].mxu1 }
 0x3dd   : > { %v14432_v11 = vpop.f32.mrb[74].mxu1 }
 0x3de   : > { %16422 = vst [vmem:[#allocation46_spill] sm:$0xff] %v14432_v11  ;;  %v14434_v12 = vpop.f32.mrb[75].mxu1 }
 0x3e0   : > { %1847 = vrot.lane.b32.xlu1 %v14432_v11, %s13666_s4 }
 0x3e3   : > { %v14438_v13 = vpop.f32.mrb[76].mxu1 }
 0x3e4   : > { %16423 = vst [vmem:[#allocation47_spill] sm:$0xff] %v14438_v13  ;;  %1849 = vrot.lane.b32.xlu0 %v14438_v13, %s13666_s4  ;;  %v14442_v15 = vpop.f32.mrb[77].mxu1 }
 0x3e5   : > { %16424 = vst [vmem:[#allocation48_spill] sm:$0xff] %v14442_v15  ;;  %v14444_v16 = vpop.f32.mrb[78].mxu1 }
 0x3e6   : > { %16425 = vst [vmem:[#allocation49_spill] sm:$0xff] %v14444_v16  ;;  %v14446_v17 = vpop.f32.mrb[79].mxu1 }
 0x3e7   : > { %16426 = vst [vmem:[#allocation50_spill] sm:$0xff] %v14446_v17 }
 0x3e8   : > { %1851 = vrot.lane.b32.xlu0 %v14444_v16, %s13666_s4 }
 0x3eb   : > { %v14450_v18 = vpop.f32.mrb[80].mxu1 }
 0x3ec   : > { %16427 = vst [vmem:[#allocation51_spill] sm:$0xff] %v14450_v18  ;;  %1853 = vrot.lane.b32.xlu1 %v14450_v18, %s13666_s4  ;;  %v14454_v19 = vpop.f32.mrb[81].mxu1 }
 0x3ed   : > { %16428 = vst [vmem:[#allocation52_spill] sm:$0xff] %v14454_v19  ;;  %v14456_v20 = vpop.f32.mrb[82].mxu1 }
 0x3ee   : > { %16429 = vst [vmem:[#allocation53_spill] sm:$0xff] %v14456_v20  ;;  %v14458_v21 = vpop.f32.mrb[83].mxu1 }
 0x3ef   : > { %16430 = vst [vmem:[#allocation54_spill] sm:$0xff] %v14458_v21 }
 0x3f0   : > { %1855 = vrot.lane.b32.xlu1 %v14456_v20, %s13666_s4 }
 0x3f3   : > { %v14462_v22 = vpop.f32.mrb[84].mxu1 }
 0x3f4   : > { %16431 = vst [vmem:[#allocation55_spill] sm:$0xff] %v14462_v22  ;;  %1857 = vrot.lane.b32.xlu0 %v14462_v22, %s13666_s4  ;;  %v14466_v23 = vpop.f32.mrb[85].mxu1 }
 0x3f5   : > { %16432 = vst [vmem:[#allocation56_spill] sm:$0xff] %v14466_v23  ;;  %v14468_v24 = vpop.f32.mrb[86].mxu1 }
 0x3f6   : > { %16433 = vst [vmem:[#allocation57_spill] sm:$0xff] %v14468_v24  ;;  %v14470_v25 = vpop.f32.mrb[87].mxu1 }
 0x3f7   : > { %16434 = vst [vmem:[#allocation58_spill] sm:$0xff] %v14470_v25 }
 0x3f8   : > { %1859 = vrot.lane.b32.xlu0 %v14468_v24, %s13666_s4  ;;  %v14497_v24 = vshrl.u32 %v16347_v32, 7 }
 0x3fa   : > { %16443 = vst [vmem:[#allocation67_spill] sm:$0xff] %v14497_v24 }
 0x3fb   : > { %v14474_v26 = vpop.f32.mrb[88].mxu1 }
 0x3fc   : > { %16435 = vst [vmem:[#allocation59_spill] sm:$0xff] %v14474_v26  ;;  %1861 = vrot.lane.b32.xlu1 %v14474_v26, %s13666_s4  ;;  %v14478_v27 = vpop.f32.mrb[89].mxu1  ;;  %v2075_v26 = vunpack.c.0.s8 %v2074_v31 }
 0x3fd   : > { %16436 = vst [vmem:[#allocation60_spill] sm:$0xff] %v14478_v27  ;;  %v14480_v48 = vpop.f32.mrb[90].mxu1 }
 0x3fe   : > { %16437 = vst [vmem:[#allocation61_spill] sm:$0xff] %v14480_v48  ;;  %v14482_v28 = vpop.f32.mrb[91].mxu1 }
 0x3ff   : > { %16438 = vst [vmem:[#allocation62_spill] sm:$0xff] %v14482_v28  ;;  %v14500_v28 = vld [vmem:[#allocation13] ss:$0 sm:$0xff] }
 0x400   : > { %1863 = vrot.lane.b32.xlu1 %v14480_v48, %s13666_s4 }
 0x403   : > { %v14486_v29 = vpop.f32.mrb[92].mxu1 }
 0x404   : > { %16439 = vst [vmem:[#allocation63_spill] sm:$0xff] %v14486_v29  ;;  %1865 = vrot.lane.b32.xlu0 %v14486_v29, %s13666_s4  ;;  %v14490_v33 = vpop.f32.mrb[93].mxu1 }
 0x405   : > { %16440 = vst [vmem:[#allocation64_spill] sm:$0xff] %v14490_v33  ;;  %v14492_v35 = vpop.f32.mrb[94].mxu1  ;;  %v14506_v33 = vsub.s32 %v2075_v26, %v14497_v24 }
 0x406   : > { %16441 = vst [vmem:[#allocation65_spill] sm:$0xff] %v14492_v35  ;;  %v1810_v37 = vpop.permute.xlu0 %1809  ;;  %v14494_v14 = vpop.f32.mrb[95].mxu1 }
 0x407   : > { %16442 = vst [vmem:[#allocation66_spill] sm:$0xff] %v14494_v14  ;;  %v1905_v48 = vadd.f32 %v1810_v37, %v14287_v45  ;;  %16444 = vst [vmem:[#allocation68_spill] sm:$0xff] %v14506_v33 }
 0x408   : > { %1867 = vrot.lane.b32.xlu0 %v14492_v35, %s13666_s4 }
 0x409   : > { %v1937_v30 = vadd.f32 %v1905_v48, %v14334_v39 }
 0x40a   : > { %v1812_v29 = vpop.permute.xlu0 %1811 }
 0x40b   : > { %v1976_v22 = vadd.f32 %v14500_v28, %v1937_v30  ;;  %v1906_v31 = vadd.f32 %v1812_v29, %v14289_v47  ;;  %v1760_v14 = vpop.f32.mrb[96].mxu1 }
 0x40c   : > { %1869 = vrot.lane.b32.xlu1 %v1760_v14, %s13666_s4  ;;  %v14511_v32 = vpop.f32.mrb[97].mxu1 }
 0x40d   : > { %16445 = vst [vmem:[#allocation69_spill] sm:$0xff] %v14511_v32  ;;  %v2008_v45 = vmax.f32 %v1976_v22, 0.0  ;;  %v1938_v37 = vadd.f32 %v1906_v31, %v14338_v41  ;;  %v1764_v20 = vpop.f32.mrb[98].mxu1 }
 0x40e   : > { %v1814_v35 = vpop.permute.xlu1 %1813  ;;  %v14514_v27 = vpop.f32.mrb[99].mxu1 }
 0x40f   : > { %16446 = vst [vmem:[#allocation70_spill] sm:$0xff] %v14514_v27  ;;  %v2072_v39 = vcombine.high %v2008_v45, %v2008_v45  ;;  %v2079_v26 = vrot.slane %v2008_v45, %v14506_v33  ;;  %v1977_v48 = vadd.f32 %v14500_v28, %v1938_v37  ;;  %v1907_v30 = vadd.f32 %v1814_v35, %v14322_v34 }
 0x410   : > { %1871 = vrot.lane.b32.xlu1 %v1764_v20, %s13666_s4 }
 0x411   : > { %v2086_v14 = vrot.slane %v2072_v39, %v14506_v33  ;;  %v2009_v47 = vmax.f32 %v1977_v48, 0.0  ;;  %v1939_v22 = vadd.f32 %v1907_v30, %v14346_v43  ;;  %v2087_v41 = vcombine.high %v2079_v26, %v2079_v26 }
 0x412   : > { %v1816_v29 = vpop.permute.xlu1 %1815  ;;  %v2745_v20 = vsel %vm2744_vm11, %v2079_v26, -inf }
 0x413   : > { %v2089_v31 = vcombine.high %v2009_v47, %v2009_v47  ;;  %v1770_v24 = vpop.f32.mrb[100].mxu1  ;;  %v2088_v27 = vcombine.high %v2086_v14, %v2086_v14  ;;  %v2096_v32 = vrot.slane %v2009_v47, %v14506_v33  ;;  %v1978_v45 = vadd.f32 %v14500_v28, %v1939_v22 }
 0x414   : > { %v1908_v37 = vadd.f32 %v1816_v29, %v14326_v36  ;;  %v2754_v30 = vsel %vm2744_vm11, %v2087_v41, -inf  ;;  %v2763_v24 = vsel %vm2744_vm11, %v2086_v14, -inf }
 0x415   : > { %v2103_v34 = vrot.slane %v2089_v31, %v14506_v33  ;;  %v2104_v35 = vcombine.high %v2096_v32, %v2096_v32  ;;  %v2010_v39 = vmax.f32 %v1978_v45, 0.0  ;;  %v2772_v22 = vsel %vm2744_vm11, %v2088_v27, -inf }
 0x416   : > { %v1940_v43 = vadd.f32 %v1908_v37, %v14350_v46  ;;  %v1818_v48 = vpop.permute.xlu0 %1817  ;;  %v2781_v26 = vsel %vm2744_vm11, %v2096_v32, -inf }
 0x417   : > { %v2105_v25 = vcombine.high %v2103_v34, %v2103_v34  ;;  %v1909_v47 = vadd.f32 %v1818_v48, %v14330_v38  ;;  %v2106_v18 = vcombine.high %v2010_v39, %v2010_v39  ;;  %v2113_v36 = vrot.slane %v2010_v39, %v14506_v33 }
 0x418   : > { %v1979_v29 = vadd.f32 %v14500_v28, %v1940_v43  ;;  %v2790_v31 = vsel %vm2744_vm11, %v2104_v35, -inf  ;;  %v2799_v46 = vsel %vm2744_vm11, %v2103_v34, -inf }
 0x419   : > { %v1941_v41 = vadd.f32 %v1909_v47, %v14358_v49  ;;  %v2120_v14 = vrot.slane %v2106_v18, %v14506_v33  ;;  %v2121_v45 = vcombine.high %v2113_v36, %v2113_v36  ;;  %v2746_v38 = vsel %vm2744_vm11, %v2113_v36, -inf }
 0x41a   : > { %v2011_v37 = vmax.f32 %v1979_v29, 0.0  ;;  %v1820_v27 = vpop.permute.xlu0 %1819  ;;  %v2808_v48 = vsel %vm2744_vm11, %v2105_v25, -inf  ;;  %v2747_v39 = vmax.f32 %v2745_v20, %v2746_v38 }
 0x41b   : > { %v1980_v43 = vadd.f32 %v14500_v28, %v1941_v41  ;;  %v1910_v32 = vadd.f32 %v1820_v27, %v14336_v40  ;;  %v2122_v16 = vcombine.high %v2120_v14, %v2120_v14  ;;  %v2755_v35 = vsel %vm2744_vm11, %v2121_v45, -inf }
 0x41c   : > { %v2764_v34 = vsel %vm2744_vm11, %v2120_v14, -inf  ;;  %v2123_v49 = vcombine.high %v2011_v37, %v2011_v37  ;;  %v2748_v47 = vrot.slane %v2747_v39, 4  ;;  %v2756_v18 = vmax.f32 %v2754_v30, %v2755_v35 }
 0x41d   : > { %v2765_v23 = vmax.f32 %v2763_v24, %v2764_v34  ;;  %v2130_v36 = vrot.slane %v2011_v37, %v14506_v33  ;;  %v2773_v29 = vsel %vm2744_vm11, %v2122_v16, -inf  ;;  %v2012_v20 = vmax.f32 %v1980_v43, 0.0 }
 0x41e   : > { %v2137_v25 = vrot.slane %v2123_v49, %v14506_v33  ;;  %v14549_v41 = vadd.f32 %v1910_v32, %v14362_v51  ;;  %v2749_v40 = vmax.f32 %v2747_v39, %v2748_v47  ;;  %v2757_v38 = vrot.slane %v2756_v18, 4 }
 0x41f   : > { %v2766_v27 = vrot.slane %v2765_v23, 4  ;;  %v2774_v45 = vmax.f32 %v2772_v22, %v2773_v29  ;;  %v2138_v21 = vcombine.high %v2130_v36, %v2130_v36  ;;  %v2782_v13 = vsel %vm2744_vm11, %v2130_v36, -inf }
 0x420   : > { %v2139_v14 = vcombine.high %v2137_v25, %v2137_v25  ;;  %v2800_v30 = vsel %vm2744_vm11, %v2137_v25, -inf  ;;  %v2750_v24 = vrot.slane %v2749_v40, 2  ;;  %v2758_v37 = vmax.f32 %v2756_v18, %v2757_v38  ;;  %v1822_v18 = vpop.permute.xlu1 %1821 }
 0x421   : > { %v2767_v35 = vmax.f32 %v2765_v23, %v2766_v27  ;;  %v2775_v16 = vrot.slane %v2774_v45, 4  ;;  %v2783_v34 = vmax.f32 %v2781_v26, %v2782_v13  ;;  %v2791_v43 = vsel %vm2744_vm11, %v2138_v21, -inf }
 0x422   : > { %v2801_v49 = vmax.f32 %v2799_v46, %v2800_v30  ;;  %v2809_v51 = vsel %vm2744_vm11, %v2139_v14, -inf  ;;  %v2751_v39 = vmax.f32 %v2749_v40, %v2750_v24  ;;  %v2759_v32 = vrot.slane %v2758_v37, 2 }
 0x423   : > { %v2768_v47 = vrot.slane %v2767_v35, 2  ;;  %v2776_v22 = vmax.f32 %v2774_v45, %v2775_v16  ;;  %v2784_v29 = vrot.slane %v2783_v34, 4  ;;  %v2792_v36 = vmax.f32 %v2790_v31, %v2791_v43 }
 0x424   : > { %v2802_v11 = vrot.slane %v2801_v49, 4  ;;  %v14555_v25 = vmax.f32 %v2808_v48, %v2809_v51  ;;  %v2752_v23 = vrot.slane %v2751_v39, 1  ;;  %v2760_v38 = vmax.f32 %v2758_v37, %v2759_v32 }
 0x425   : > { %v2769_v13 = vmax.f32 %v2767_v35, %v2768_v47  ;;  %v2777_v26 = vrot.slane %v2776_v22, 2  ;;  %v2785_v21 = vmax.f32 %v2783_v34, %v2784_v29  ;;  %v2793_v46 = vrot.slane %v2792_v36, 4  ;;  %v1824_v29 = vpop.permute.xlu1 %1823 }
 0x426   : > { %v14557_v27 = vmax.f32 %v2801_v49, %v2802_v11  ;;  %v2140_v40 = vcombine.high %v2012_v20, %v2012_v20  ;;  %v1826_v14 = vpop.permute.xlu0 %1825  ;;  %v2753_v30 = vmax.f32 %v2751_v39, %v2752_v23  ;;  %v2761_v45 = vrot.slane %v2760_v38, 1 }
 0x427   : > { %v2770_v24 = vrot.slane %v2769_v13, 1  ;;  %v2778_v16 = vmax.f32 %v2776_v22, %v2777_v26  ;;  %v2786_v19 = vrot.slane %v2785_v21, 2  ;;  %v2794_v31 = vmax.f32 %v2792_v36, %v2793_v46 }
 0x428   : > { %v2147_v48 = vrot.slane %v2012_v20, %v14506_v33  ;;  %v2154_v43 = vrot.slane %v2140_v40, %v14506_v33  ;;  %v2762_v51 = vmax.f32 %v2760_v38, %v2761_v45  ;;  %v3321_v32 = vpack.c.bf16 %v2753_v30, %v2753_v30 }
 0x429   : > { %v2771_v37 = vmax.f32 %v2769_v13, %v2770_v24  ;;  %v2779_v35 = vrot.slane %v2778_v16, 1  ;;  %v2787_v34 = vmax.f32 %v2785_v21, %v2786_v19  ;;  %v2795_v47 = vrot.slane %v2794_v31, 2 }
 0x42a   : > { %v2155_v11 = vcombine.high %v2147_v48, %v2147_v48  ;;  %v2156_v49 = vcombine.high %v2154_v43, %v2154_v43  ;;  %v3322_v9 = vpack.c.bf16 %v2762_v51, %v2762_v51  ;;  %v14561_v23 = vunpack.c.l.b16 %v3321_v32  ;;  %v1828_v13 = vpop.permute.xlu0 %1827 }
 0x42b   : > { %v3323_v39 = vpack.c.bf16 %v2771_v37, %v2771_v37  ;;  %v2817_v22 = vsel %vm2744_vm11, %v2147_v48, -inf  ;;  %v2788_v36 = vrot.slane %v2787_v34, 1  ;;  %v14564_v26 = vmax.f32 %v2794_v31, %v2795_v47 }
 0x42c   : > { %v2826_v20 = vsel %vm2744_vm11, %v2155_v11, -inf  ;;  %v2835_v38 = vsel %vm2744_vm11, %v2154_v43, -inf  ;;  %v14568_v46 = vunpack.c.l.b16 %v3322_v9  ;;  %v14573_v21 = vsel %vm2744_vm11, %v2156_v49, -inf }
 0x42d   : > { %v14570_v19 = vunpack.c.l.b16 %v3323_v39  ;;  %v1981_v40 = vadd.f32 %v14500_v28, %v14549_v41  ;;  %v14577_v30 = vmax.f32 %v2787_v34, %v2788_v36  ;;  %v1911_v45 = vadd.f32 %v1822_v18, %v14342_v42 }
 0x42e   : > { %v1912_v24 = vadd.f32 %v1824_v29, %v14348_v44  ;;  %v1913_v31 = vadd.f32 %v1826_v14, %v14354_v56  ;;  %v1830_v48 = vpop.permute.xlu1 %1829  ;;  %v14585_v9 = vsel %vm3503_vm12, %v14568_v46, %v14561_v23  ;;  %v1914_v51 = vadd.f32 %v1828_v13, %v14360_v50 }
 0x42f   : > { %16447 = vst [vmem:[#allocation71_spill] sm:$0xff] %v14585_v9  ;;  %v14590_v43 = vsel %vm3735_vm13, %v14570_v19, %v14568_v46  ;;  %v2013_v41 = vmax.f32 %v1981_v40, 0.0  ;;  %v1943_v42 = vadd.f32 %v1911_v45, %v14370_v53  ;;  %v1915_v18 = vadd.f32 %v1830_v48, %v14366_v52 }
 0x430   : > { %v1944_v44 = vadd.f32 %v1912_v24, %v14374_v55  ;;  %v1945_v56 = vadd.f32 %v1913_v31, %v14382_v58  ;;  %v1946_v32 = vadd.f32 %v1914_v51, %v14386_v60  ;;  %v14599_v34 = vmax.f32 %v2778_v16, %v2779_v35 }
 0x431   : > { %v2157_v14 = vcombine.high %v2013_v41, %v2013_v41  ;;  %v2164_v37 = vrot.slane %v2013_v41, %v14506_v33  ;;  %v1982_v47 = vadd.f32 %v14500_v28, %v1943_v42  ;;  %v1947_v53 = vadd.f32 %v1915_v18, %v14394_v62 }
 0x432   : > { %v1983_v11 = vadd.f32 %v14500_v28, %v1944_v44  ;;  %v1984_v50 = vadd.f32 %v14500_v28, %v1945_v56  ;;  %v1985_v49 = vadd.f32 %v14500_v28, %v1946_v32 }
 0x433   : > { %v2171_v55 = vrot.slane %v2157_v14, %v14506_v33  ;;  %v2172_v58 = vcombine.high %v2164_v37, %v2164_v37  ;;  %v2853_v52 = vsel %vm2744_vm11, %v2164_v37, -inf  ;;  %v2014_v29 = vmax.f32 %v1982_v47, 0.0 }
 0x434   : > { %v2015_v39 = vmax.f32 %v1983_v11, 0.0  ;;  %v2016_v60 = vmax.f32 %v1984_v50, 0.0  ;;  %v14609_v16 = vadd.f32 %v14500_v28, %v1947_v53  ;;  %v14613_v40 = vmax.f32 %v1985_v49, 0.0 }
 0x435   : > { %v2173_v35 = vcombine.high %v2171_v55, %v2171_v55  ;;  %v2862_v36 = vsel %vm2744_vm11, %v2172_v58, -inf  ;;  %v2871_v13 = vsel %vm2744_vm11, %v2171_v55, -inf  ;;  %v2174_v62 = vcombine.high %v2014_v29, %v2014_v29 }
 0x436   : > { %v2181_v45 = vrot.slane %v2014_v29, %v14506_v33  ;;  %v2191_v24 = vcombine.high %v2015_v39, %v2015_v39  ;;  %v2198_v31 = vrot.slane %v2015_v39, %v14506_v33  ;;  %v2208_v41 = vcombine.high %v2016_v60, %v2016_v60 }
 0x437   : > { %v2880_v48 = vsel %vm2744_vm11, %v2173_v35, -inf  ;;  %v2215_v51 = vrot.slane %v2016_v60, %v14506_v33  ;;  %v2188_v44 = vrot.slane %v2174_v62, %v14506_v33 }
 0x438   : > { %v2189_v56 = vcombine.high %v2181_v45, %v2181_v45  ;;  %v2818_v18 = vsel %vm2744_vm11, %v2181_v45, -inf  ;;  %v2205_v14 = vrot.slane %v2191_v24, %v14506_v33  ;;  %v2206_v32 = vcombine.high %v2198_v31, %v2198_v31 }
 0x439   : > { %v2819_v37 = vmax.f32 %v2817_v22, %v2818_v18  ;;  %v2854_v47 = vsel %vm2744_vm11, %v2198_v31, -inf  ;;  %v2222_v11 = vrot.slane %v2208_v41, %v14506_v33  ;;  %v2190_v50 = vcombine.high %v2188_v44, %v2188_v44 }
 0x43a   : > { %v2827_v53 = vsel %vm2744_vm11, %v2189_v56, -inf  ;;  %v2836_v55 = vsel %vm2744_vm11, %v2188_v44, -inf  ;;  %v2207_v58 = vcombine.high %v2205_v14, %v2205_v14  ;;  %v2855_v60 = vmax.f32 %v2853_v52, %v2854_v47 }
 0x43b   : > { %v2820_v49 = vrot.slane %v2819_v37, 4  ;;  %v2828_v29 = vmax.f32 %v2826_v20, %v2827_v53  ;;  %v2837_v39 = vmax.f32 %v2835_v38, %v2836_v55  ;;  %v2845_v35 = vsel %vm2744_vm11, %v2190_v50, -inf }
 0x43c   : > { %v2863_v62 = vsel %vm2744_vm11, %v2206_v32, -inf  ;;  %v2872_v22 = vsel %vm2744_vm11, %v2205_v14, -inf  ;;  %v2881_v45 = vsel %vm2744_vm11, %v2207_v58, -inf  ;;  %v2846_v56 = vmax.f32 %v14573_v21, %v2845_v35 }
 0x43d   : > { %v2821_v24 = vmax.f32 %v2819_v37, %v2820_v49  ;;  %v2829_v31 = vrot.slane %v2828_v29, 4  ;;  %v2838_v41 = vrot.slane %v2837_v39, 4  ;;  %v2856_v18 = vrot.slane %v2855_v60, 4 }
 0x43e   : > { %v2864_v44 = vmax.f32 %v2862_v36, %v2863_v62  ;;  %v2873_v42 = vmax.f32 %v2871_v13, %v2872_v22  ;;  %v14633_v9 = vmax.f32 %v2880_v48, %v2881_v45  ;;  %v2847_v47 = vrot.slane %v2846_v56, 4 }
 0x43f   : > { %v2822_v20 = vrot.slane %v2821_v24, 2  ;;  %v2830_v38 = vmax.f32 %v2828_v29, %v2829_v31  ;;  %v2839_v52 = vmax.f32 %v2837_v39, %v2838_v41  ;;  %v2857_v50 = vmax.f32 %v2855_v60, %v2856_v18 }
 0x440   : > { %v2865_v32 = vrot.slane %v2864_v44, 4  ;;  %v2874_v53 = vrot.slane %v2873_v42, 4  ;;  %v2223_v14 = vcombine.high %v2215_v51, %v2215_v51  ;;  %v2848_v49 = vmax.f32 %v2846_v56, %v2847_v47 }
 0x441   : > { %v2823_v55 = vmax.f32 %v2821_v24, %v2822_v20  ;;  %v2831_v58 = vrot.slane %v2830_v38, 2  ;;  %v2840_v37 = vrot.slane %v2839_v52, 2  ;;  %v2858_v17 = vrot.slane %v2857_v50, 2  ;;  %v1832_v20 = vpop.permute.xlu1 %1831 }
 0x442   : > { %v2866_v15 = vmax.f32 %v2864_v44, %v2865_v32  ;;  %v14635_v21 = vmax.f32 %v2873_v42, %v2874_v53  ;;  %v2224_v36 = vcombine.high %v2222_v11, %v2222_v11  ;;  %v2849_v62 = vrot.slane %v2848_v49, 2 }
 0x443   : > { %v2824_v13 = vrot.slane %v2823_v55, 1  ;;  %v2832_v48 = vmax.f32 %v2830_v38, %v2831_v58  ;;  %v2841_v35 = vmax.f32 %v2839_v52, %v2840_v37  ;;  %v2859_v29 = vmax.f32 %v2857_v50, %v2858_v17  ;;  %v1834_v37 = vpop.permute.xlu0 %1833 }
 0x444   : > { %v2867_v39 = vrot.slane %v2866_v15, 2  ;;  %v2889_v60 = vsel %vm2744_vm11, %v2215_v51, -inf  ;;  %v2898_v22 = vsel %vm2744_vm11, %v2223_v14, -inf  ;;  %v14639_v41 = vmax.f32 %v2848_v49, %v2849_v62 }
 0x445   : > { %v2825_v45 = vmax.f32 %v2823_v55, %v2824_v13  ;;  %v2833_v24 = vrot.slane %v2832_v48, 1  ;;  %v2842_v31 = vrot.slane %v2841_v35, 1  ;;  %v2860_v56 = vrot.slane %v2859_v29, 1 }
 0x446   : > { %v14641_v18 = vmax.f32 %v2866_v15, %v2867_v39  ;;  %v2907_v42 = vsel %vm2744_vm11, %v2222_v11, -inf  ;;  %v2916_v44 = vsel %vm2744_vm11, %v2224_v36, -inf  ;;  %v2232_v50 = vrot.slane %v14613_v40, %v14506_v33 }
 0x447   : > { %v2834_v38 = vmax.f32 %v2832_v48, %v2833_v24  ;;  %v2843_v17 = vmax.f32 %v2841_v35, %v2842_v31  ;;  %v3329_v51 = vpack.c.bf16 %v2825_v45, %v2825_v45  ;;  %v14646_v47 = vmax.f32 %v2859_v29, %v2860_v56 }
 0x448   : > { %v16448_v15 = vcombine.high %v14613_v40, %v14613_v40  ;;  %v2018_v11 = vmax.f32 %v14609_v16, 0.0  ;;  %v1916_v58 = vadd.f32 %v1832_v20, %v14372_v54  ;;  %v2240_v49 = vcombine.high %v2232_v50, %v2232_v50 }
 0x449   : > { %v3330_v53 = vpack.c.bf16 %v2834_v38, %v2834_v38  ;;  %v3331_v14 = vpack.c.bf16 %v2843_v17, %v2843_v17  ;;  %v14655_v55 = vunpack.c.l.b16 %v3329_v51  ;;  %v2925_v13 = vsel %vm2744_vm11, %v2232_v50, -inf }
 0x44a   : > { %v2239_v32 = vrot.slane %v16448_v15, %v14506_v33  ;;  %v2242_v40 = vcombine.high %v2018_v11, %v2018_v11  ;;  %v2249_v16 = vrot.slane %v2018_v11, %v14506_v33  ;;  %v2934_v29 = vsel %vm2744_vm11, %v2240_v49, -inf }
 0x44b   : > { %v14660_v35 = vunpack.c.l.b16 %v3330_v53  ;;  %v14662_v62 = vunpack.c.l.b16 %v3331_v14  ;;  %v1948_v54 = vadd.f32 %v1916_v58, %v14398_v0  ;;  %v1917_v45 = vadd.f32 %v1834_v37, %v14378_v57 }
 0x44c   : > { %v2241_v36 = vcombine.high %v2239_v32, %v2239_v32  ;;  %v2943_v48 = vsel %vm2744_vm11, %v2239_v32, -inf  ;;  %v2256_v56 = vrot.slane %v2242_v40, %v14506_v33  ;;  %v2257_v20 = vcombine.high %v2249_v16, %v2249_v16 }
 0x44d   : > { %v14672_v24 = vsel %vm3503_vm12, %v14660_v35, %v14655_v55  ;;  %v14677_v31 = vsel %vm3735_vm13, %v14662_v62, %v14660_v35  ;;  %v2890_v38 = vsel %vm2744_vm11, %v2249_v16, -inf  ;;  %v1987_v17 = vadd.f32 %v14500_v28, %v1948_v54 }
 0x44e   : > { %v2952_v39 = vsel %vm2744_vm11, %v2241_v36, -inf  ;;  %16449 = vst [vmem:[#allocation72_spill] sm:$0xff] %v14672_v24  ;;  %v1949_v0 = vadd.f32 %v1917_v45, %v14406_v2  ;;  %v2797_v57 = vrot.slane %v14564_v26, 1  ;;  %v2258_v51 = vcombine.high %v2256_v56, %v2256_v56 }
 0x44f   : > { %v2891_v50 = vmax.f32 %v2889_v60, %v2890_v38  ;;  %v2899_v15 = vsel %vm2744_vm11, %v2257_v20, -inf  ;;  %v2908_v32 = vsel %vm2744_vm11, %v2256_v56, -inf  ;;  %v2019_v14 = vmax.f32 %v1987_v17, 0.0 }
 0x450   : > { %v2900_v11 = vmax.f32 %v2898_v22, %v2899_v15  ;;  %v2909_v53 = vmax.f32 %v2907_v42, %v2908_v32  ;;  %v1988_v58 = vadd.f32 %v14500_v28, %v1949_v0  ;;  %v2917_v49 = vsel %vm2744_vm11, %v2258_v51, -inf }
 0x451   : > { %v2892_v37 = vrot.slane %v2891_v50, 4  ;;  %v14689_v36 = vmax.f32 %v14564_v26, %v2797_v57  ;;  %v2804_v2 = vrot.slane %v14557_v27, 2  ;;  %v2918_v60 = vmax.f32 %v2916_v44, %v2917_v49 }
 0x452   : > { %v2901_v40 = vrot.slane %v2900_v11, 4  ;;  %v2910_v16 = vrot.slane %v2909_v53, 4  ;;  %v2259_v54 = vcombine.high %v2019_v14, %v2019_v14  ;;  %v2266_v56 = vrot.slane %v2019_v14, %v14506_v33 }
 0x453   : > { %v2893_v45 = vmax.f32 %v2891_v50, %v2892_v37  ;;  %v2020_v22 = vmax.f32 %v1988_v58, 0.0  ;;  %v14694_v42 = vmax.f32 %v14557_v27, %v2804_v2  ;;  %v2919_v17 = vrot.slane %v2918_v60, 4 }
 0x454   : > { %v2902_v20 = vmax.f32 %v2900_v11, %v2901_v40  ;;  %v2911_v38 = vmax.f32 %v2909_v53, %v2910_v16  ;;  %v2273_v0 = vrot.slane %v2259_v54, %v14506_v33  ;;  %v2274_v57 = vcombine.high %v2266_v56, %v2266_v56 }
 0x455   : > { %v2894_v26 = vrot.slane %v2893_v45, 2  ;;  %v2926_v51 = vsel %vm2744_vm11, %v2266_v56, -inf  ;;  %v2276_v15 = vcombine.high %v2020_v22, %v2020_v22  ;;  %v2920_v49 = vmax.f32 %v2918_v60, %v2919_v17 }
 0x456   : > { %v2903_v32 = vrot.slane %v2902_v20, 2  ;;  %v2912_v44 = vrot.slane %v2911_v38, 2  ;;  %v2275_v50 = vcombine.high %v2273_v0, %v2273_v0  ;;  %v2927_v14 = vmax.f32 %v2925_v13, %v2926_v51 }
 0x457   : > { %v2895_v37 = vmax.f32 %v2893_v45, %v2894_v26  ;;  %v2935_v58 = vsel %vm2744_vm11, %v2274_v57, -inf  ;;  %v2944_v27 = vsel %vm2744_vm11, %v2273_v0, -inf  ;;  %v2921_v2 = vrot.slane %v2920_v49, 2 }
 0x458   : > { %v2904_v11 = vmax.f32 %v2902_v20, %v2903_v32  ;;  %v2913_v53 = vmax.f32 %v2911_v38, %v2912_v44  ;;  %v2936_v40 = vmax.f32 %v2934_v29, %v2935_v58  ;;  %v2928_v54 = vrot.slane %v2927_v14, 4 }
 0x459   : > { %v2896_v16 = vrot.slane %v2895_v37, 1  ;;  %v2945_v52 = vmax.f32 %v2943_v48, %v2944_v27  ;;  %v2953_v56 = vsel %vm2744_vm11, %v2275_v50, -inf  ;;  %v14701_v5 = vmax.f32 %v2920_v49, %v2921_v2 }
 0x45a   : > { %v2905_v24 = vrot.slane %v2904_v11, 1  ;;  %v2914_v7 = vrot.slane %v2913_v53, 1  ;;  %v2937_v60 = vrot.slane %v2936_v40, 4  ;;  %v2929_v13 = vmax.f32 %v2927_v14, %v2928_v54 }
 0x45b   : > { %v2897_v45 = vmax.f32 %v2895_v37, %v2896_v16  ;;  %v2946_v17 = vrot.slane %v2945_v52, 4  ;;  %v14703_v26 = vmax.f32 %v2952_v39, %v2953_v56  ;;  %v2283_v32 = vrot.slane %v2020_v22, %v14506_v33  ;;  %v1838_v39 = vpop.permute.xlu1 %1837  ;;  %v1836_v16 = vpop.permute.xlu0 %1835 }
 0x45c   : > { %v2906_v0 = vmax.f32 %v2904_v11, %v2905_v24  ;;  %v2915_v20 = vmax.f32 %v2913_v53, %v2914_v7  ;;  %v2938_v29 = vmax.f32 %v2936_v40, %v2937_v60  ;;  %v2930_v48 = vrot.slane %v2929_v13, 2 }
 0x45d   : > { %v3337_v57 = vpack.c.bf16 %v2897_v45, %v2897_v45  ;;  %v14706_v51 = vmax.f32 %v2945_v52, %v2946_v17  ;;  %v2290_v37 = vrot.slane %v2276_v15, %v14506_v33  ;;  %v2291_v14 = vcombine.high %v2283_v32, %v2283_v32 }
 0x45e   : > { %v3338_v44 = vpack.c.bf16 %v2906_v0, %v2906_v0  ;;  %v3339_v49 = vpack.c.bf16 %v2915_v20, %v2915_v20  ;;  %v2939_v50 = vrot.slane %v2938_v29, 2  ;;  %v2931_v7 = vmax.f32 %v2929_v13, %v2930_v48 }
 0x45f   : > { %v14710_v24 = vunpack.c.l.b16 %v3337_v57  ;;  %v14713_v58 = vsel %vm2744_vm11, %v2283_v32, -inf  ;;  %v2292_v11 = vcombine.high %v2290_v37, %v2290_v37  ;;  %v14722_v15 = vsel %vm2744_vm11, %v2291_v14, -inf }
 0x460   : > { %v14715_v52 = vunpack.c.l.b16 %v3338_v44  ;;  %v14717_v27 = vunpack.c.l.b16 %v3339_v49  ;;  %v14719_v22 = vmax.f32 %v2938_v29, %v2939_v50  ;;  %v2932_v53 = vrot.slane %v2931_v7, 1  ;;  %v1840_v44 = vpop.permute.xlu1 %1839 }
 0x461   : > { %v14725_v2 = vsel %vm2744_vm11, %v2290_v37, -inf  ;;  %v2806_v40 = vrot.slane %v14694_v42, 1  ;;  %v14739_v60 = vsel %vm2744_vm11, %v2292_v11, -inf  ;;  %v2811_v45 = vrot.slane %v14555_v25, 4  ;;  %v1842_v11 = vpop.permute.xlu0 %1841 }
 0x462   : > { %16450 = vst [vmem:[#allocation73_spill] sm:$0xff] %v14717_v27  ;;  %v14731_v54 = vsel %vm3503_vm12, %v14715_v52, %v14710_v24  ;;  %v14736_v56 = vsel %vm3735_vm13, %v14717_v27, %v14715_v52  ;;  %v14742_v13 = vmax.f32 %v2931_v7, %v2932_v53  ;;  %v3324_v0 = vpack.c.bf16 %v14599_v34, %v14599_v34 }
 0x463   : > { %v2807_v17 = vmax.f32 %v14694_v42, %v2806_v40  ;;  %v3325_v20 = vpack.c.bf16 %v14577_v30, %v14577_v30  ;;  %v2812_v29 = vmax.f32 %v14555_v25, %v2811_v45  ;;  %v3326_v57 = vpack.c.bf16 %v14689_v36, %v14689_v36 }
 0x464   : > { %v3736_v48 = vsel %vm3735_vm13, %v14568_v46, %v14561_v23  ;;  %v1918_v32 = vadd.f32 %v1836_v16, %v14384_v59  ;;  %v14756_v42 = vunpack.c.l.b16 %v3324_v0  ;;  %v1919_v37 = vadd.f32 %v1838_v39, %v14390_v61 }
 0x465   : > { %v3327_v49 = vpack.c.bf16 %v2807_v17, %v2807_v17  ;;  %v14758_v50 = vunpack.c.l.b16 %v3325_v20  ;;  %v3737_v30 = vsel %vm3503_vm12, %v14570_v19, %v3736_v48  ;;  %v2813_v34 = vrot.slane %v2812_v29, 2 }
 0x466   : > { %v14762_v25 = vunpack.c.l.b16 %v3326_v57  ;;  %v1950_v36 = vadd.f32 %v1918_v32, %v14410_v4  ;;  %v3738_v59 = vsel %vm3505_vm14, %v14756_v42, %v3737_v30  ;;  %v3834_v46 = vsel %vm3503_vm12, %v14756_v42, %v14590_v43 }
 0x467   : > { %v14766_v23 = vunpack.c.l.b16 %v3327_v49  ;;  %v1920_v7 = vadd.f32 %v1840_v44, %v14396_v63  ;;  %v2814_v14 = vmax.f32 %v2812_v29, %v2813_v34  ;;  %v3739_v4 = vsel %vm3507_vm15, %v14758_v50, %v3738_v59 }
 0x468   : > { %v3835_v61 = vsel %vm3505_vm14, %v14758_v50, %v3834_v46  ;;  %v1989_v39 = vadd.f32 %v14500_v28, %v1950_v36  ;;  %v3740_v53 = vsel %vm3509_vm0, %v14762_v25, %v3739_v4  ;;  %v1951_v43 = vadd.f32 %v1919_v37, %v14418_v6 }
 0x469   : > { %16451 = vst [vmem:[#allocation74_spill] sm:$0xff] %v14766_v23  ;;  %v3836_v40 = vsel %vm3507_vm15, %v14762_v25, %v3835_v61  ;;  %v1952_v63 = vadd.f32 %v1920_v7, %v14422_v8  ;;  %v2815_v16 = vrot.slane %v2814_v14, 1  ;;  %v3741_v45 = vsel %vm3511_vm1, %v14766_v23, %v3740_v53 }
 0x46a   : > { %v3837_v17 = vsel %vm3509_vm0, %v14766_v23, %v3836_v40  ;;  %v2021_v0 = vmax.f32 %v1989_v39, 0.0  ;;  %v1990_v20 = vadd.f32 %v14500_v28, %v1951_v43  ;;  %v1921_v57 = vadd.f32 %v1842_v11, %v14402_v1 }
 0x46b   : > { %v1991_v29 = vadd.f32 %v14500_v28, %v1952_v63  ;;  %v16452_v48 = vrot.slane %v14639_v41, 1  ;;  %v2816_v8 = vmax.f32 %v2814_v14, %v2815_v16  ;;  %v2869_v49 = vrot.slane %v14641_v18, 1 }
 0x46c   : > { %v2293_v32 = vcombine.high %v2021_v0, %v2021_v0  ;;  %v2300_v44 = vrot.slane %v2021_v0, %v14506_v33  ;;  %v2022_v30 = vmax.f32 %v1990_v20, 0.0  ;;  %v14800_v36 = vadd.f32 %v1921_v57, %v14430_v10 }
 0x46d   : > { %v14795_v6 = vmax.f32 %v14639_v41, %v16452_v48  ;;  %v2023_v34 = vmax.f32 %v1991_v29, 0.0  ;;  %v2876_v37 = vrot.slane %v14635_v21, 2  ;;  %v3328_v59 = vpack.c.bf16 %v2816_v8, %v2816_v8  ;;  %v12485_v29 = vld [vmem:[#allocation18 + $0x28] sm:$0xff]  }
 0x46e   : > { %v2307_v1 = vrot.slane %v2293_v32, %v14506_v33  ;;  %v2308_v46 = vcombine.high %v2300_v44, %v2300_v44  ;;  %v2997_v41 = vsel %vm2744_vm11, %v2300_v44, -inf  ;;  %v2310_v7 = vcombine.high %v2022_v30, %v2022_v30 }
 0x46f   : > { %v2317_v14 = vrot.slane %v2022_v30, %v14506_v33  ;;  %v2327_v4 = vcombine.high %v2023_v34, %v2023_v34  ;;  %v2334_v61 = vrot.slane %v2023_v34, %v14506_v33  ;;  %v3599_v39 = vunpack.c.l.b16 %v3328_v59 }
 0x470   : > { %v2309_v11 = vcombine.high %v2307_v1, %v2307_v1  ;;  %v3006_v53 = vsel %vm2744_vm11, %v2308_v46, -inf  ;;  %v3015_v10 = vsel %vm2744_vm11, %v2307_v1, -inf  ;;  %v2324_v40 = vrot.slane %v2310_v7, %v14506_v33 }
 0x471   : > { %v2325_v43 = vcombine.high %v2317_v14, %v2317_v14  ;;  %v2962_v63 = vsel %vm2744_vm11, %v2317_v14, -inf  ;;  %v2341_v16 = vrot.slane %v2327_v4, %v14506_v33  ;;  %v3742_v0 = vsel %vm3513_vm4, %v3599_v39, %v3741_v45 }
 0x472   : > { %v3838_v20 = vsel %vm3511_vm1, %v3599_v39, %v3837_v17  ;;  %v3024_v57 = vsel %vm2744_vm11, %v2309_v11, -inf  ;;  %v2963_v48 = vmax.f32 %v14713_v58, %v2962_v63  ;;  %v3792_v8 = vpack.c.b16 %v3742_v0, %v3742_v0 }
 0x473   : > { %v3881_v32 = vpack.c.b16 %v3838_v20, %v3838_v20  ;;  %v2326_v44 = vcombine.high %v2324_v40, %v2324_v40  ;;  %v2971_v30 = vsel %vm2744_vm11, %v2325_v43, -inf  ;;  %v2980_v17 = vsel %vm2744_vm11, %v2324_v40, -inf }
 0x474   : > { %v2964_v34 = vrot.slane %v2963_v48, 4  ;;  %v2972_v45 = vmax.f32 %v14722_v15, %v2971_v30  ;;  %v2342_v59 = vcombine.high %v2334_v61, %v2334_v61  ;;  %3800 = vrot.lane.b32.xlu0 %v3792_v8, %s13666_s4  ;;  %v2981_v46 = vmax.f32 %v14725_v2, %v2980_v17 }
 0x475   : > { %v3900_v1 = vsel %vm14816_vm7, %v3881_v32, 0  ;;  %v2989_v58 = vsel %vm2744_vm11, %v2326_v44, -inf  ;;  %v2343_v7 = vcombine.high %v2341_v16, %v2341_v16  ;;  %v2998_v15 = vsel %vm2744_vm11, %v2334_v61, -inf }
 0x476   : > { %3908 = vst.msk [vmem:[#allocation3 + $0xc] sm:$0xf] %vm3582_vm6, %v3900_v1  ;;  %v2965_v14 = vmax.f32 %v2963_v48, %v2964_v34  ;;  %v2973_v4 = vrot.slane %v2972_v45, 4  ;;  %v2990_v39 = vmax.f32 %v14739_v60, %v2989_v58  ;;  %v2982_v11 = vrot.slane %v2981_v46, 4 }
 0x477   : > { %v2999_v40 = vmax.f32 %v2997_v41, %v2998_v15  ;;  %v3007_v43 = vsel %vm2744_vm11, %v2342_v59, -inf  ;;  %v3016_v63 = vsel %vm2744_vm11, %v2341_v16, -inf  ;;  %v3025_v48 = vsel %vm2744_vm11, %v2343_v7, -inf }
 0x478   : > { %v2966_v0 = vrot.slane %v2965_v14, 2  ;;  %v2974_v20 = vmax.f32 %v2972_v45, %v2973_v4  ;;  %v2991_v2 = vrot.slane %v2990_v39, 4  ;;  %v3008_v8 = vmax.f32 %v3006_v53, %v3007_v43 }
 0x479   : > { %v2983_v32 = vmax.f32 %v2981_v46, %v2982_v11  ;;  %v3000_v44 = vrot.slane %v2999_v40, 4  ;;  %v3017_v30 = vmax.f32 %v3015_v10, %v3016_v63  ;;  %v14836_v15 = vmax.f32 %v3024_v57, %v3025_v48 }
 0x47a   : > { %v2967_v34 = vmax.f32 %v2965_v14, %v2966_v0  ;;  %v2975_v17 = vrot.slane %v2974_v20, 2  ;;  %v2992_v60 = vmax.f32 %v2990_v39, %v2991_v2  ;;  %v3009_v1 = vrot.slane %v3008_v8, 4 }
 0x47b   : > { %v2984_v61 = vrot.slane %v2983_v32, 2  ;;  %v3001_v58 = vmax.f32 %v2999_v40, %v3000_v44  ;;  %v3018_v41 = vrot.slane %v3017_v30, 4  ;;  %v1992_v10 = vadd.f32 %v14500_v28, %v14800_v36 }
 0x47c   : > { %v2968_v59 = vrot.slane %v2967_v34, 1  ;;  %v2976_v16 = vmax.f32 %v2974_v20, %v2975_v17  ;;  %v2993_v38 = vrot.slane %v2992_v60, 2  ;;  %v3010_v45 = vmax.f32 %v3008_v8, %v3009_v1  ;;  %v1846_v1 = vpop.permute.xlu1 %1845 }
 0x47d   : > { %v2985_v4 = vmax.f32 %v2983_v32, %v2984_v61  ;;  %v3002_v53 = vrot.slane %v3001_v58, 2  ;;  %v14838_v46 = vmax.f32 %v3017_v30, %v3018_v41  ;;  %v2024_v57 = vmax.f32 %v1992_v10, 0.0  ;;  %v14860_v61 = vpop.f32.mrb[101].mxu1 }
 0x47e   : > { %v2969_v7 = vmax.f32 %v2967_v34, %v2968_v59  ;;  %v2977_v14 = vrot.slane %v2976_v16, 1  ;;  %v14842_v39 = vmax.f32 %v2992_v60, %v2993_v38  ;;  %v3011_v11 = vrot.slane %v3010_v45, 2 }
 0x47f   : > { %v2986_v40 = vrot.slane %v2985_v4, 1  ;;  %v3003_v43 = vmax.f32 %v3001_v58, %v3002_v53  ;;  %v2870_v63 = vmax.f32 %v14641_v18, %v2869_v49  ;;  %v2344_v36 = vcombine.high %v2024_v57, %v2024_v57 }
 0x480   : > { %v2978_v0 = vmax.f32 %v2976_v16, %v2977_v14  ;;  %v3345_v2 = vpack.c.bf16 %v2969_v7, %v2969_v7  ;;  %v14848_v8 = vmax.f32 %v3010_v45, %v3011_v11  ;;  %v2351_v38 = vrot.slane %v2024_v57, %v14506_v33  ;;  %v1844_v11 = vpop.permute.xlu0 %1843 }
 0x481   : > { %v2987_v32 = vmax.f32 %v2985_v4, %v2986_v40  ;;  %v3004_v28 = vrot.slane %v3003_v43, 1  ;;  %v2877_v48 = vmax.f32 %v14635_v21, %v2876_v37  ;;  %v2883_v18 = vrot.slane %v14633_v9, 4  ;;  %v1773_v21 = vpop.f32.mrb[102].mxu1 }
 0x482   : > { %v3346_v44 = vpack.c.bf16 %v2978_v0, %v2978_v0  ;;  %v14851_v30 = vunpack.c.l.b16 %v3345_v2  ;;  %v2358_v17 = vrot.slane %v2344_v36, %v14506_v33  ;;  %v2359_v60 = vcombine.high %v2351_v38, %v2351_v38 }
 0x483   : > { %v3347_v49 = vpack.c.bf16 %v2987_v32, %v2987_v32  ;;  %v14857_v34 = vmax.f32 %v3003_v43, %v3004_v28  ;;  %v14865_v41 = vsel %vm2744_vm11, %v2351_v38, -inf  ;;  %v2878_v59 = vrot.slane %v2877_v48, 1 }
 0x484   : > { %v14862_v58 = vunpack.c.l.b16 %v3346_v44  ;;  %v2884_v16 = vmax.f32 %v14633_v9, %v2883_v18  ;;  %v2360_v45 = vcombine.high %v2358_v17, %v2358_v17  ;;  %v14871_v4 = vsel %vm2744_vm11, %v2359_v60, -inf  ;;  %v1848_v18 = vpop.permute.xlu1 %1847  ;;  %v1850_v21 = vpop.permute.xlu0 %1849 }
 0x485   : > { %v14868_v37 = vunpack.c.l.b16 %v3347_v49  ;;  %v14874_v53 = vsel %vm2744_vm11, %v2358_v17, -inf  ;;  %v2879_v7 = vmax.f32 %v2877_v48, %v2878_v59  ;;  %v3332_v9 = vpack.c.bf16 %v14795_v6, %v14795_v6  ;;  %v16460_v59 = vld [vmem:[#allocation43_spill] sm:$0xff] }
 0x486   : > { %v14879_v10 = vsel %vm3503_vm12, %v14862_v58, %v14851_v30  ;;  %v2885_v14 = vrot.slane %v2884_v16, 2  ;;  %v14889_v43 = vsel %vm2744_vm11, %v2360_v45, -inf  ;;  %v3333_v57 = vpack.c.bf16 %v14646_v47, %v14646_v47 }
 0x487   : > { %16455 = vst [vmem:[#allocation75_spill] sm:$0xff] %v14868_v37  ;;  %16456 = vst [vmem:[#allocation76_spill] sm:$0xff] %v14879_v10  ;;  %v14886_v40 = vsel %vm3735_vm13, %v14868_v37, %v14862_v58  ;;  %v3334_v0 = vpack.c.bf16 %v2870_v63, %v2870_v63  ;;  %v3335_v32 = vpack.c.bf16 %v2879_v7, %v2879_v7  ;;  %v14893_v28 = vunpack.c.l.b16 %v3332_v9 }
 0x488   : > { %v2886_v2 = vmax.f32 %v2884_v16, %v2885_v14  ;;  %v3743_v6 = vsel %vm3735_vm13, %v14660_v35, %v14655_v55  ;;  %v14898_v36 = vunpack.c.l.b16 %v3333_v57  ;;  %v1922_v48 = vadd.f32 %v1844_v11, %v14408_v3  ;;  %v14912_v35 = vpop.f32.mrb[103].mxu1  ;;  %v16461_v14 = vld [vmem:[#allocation44_spill] sm:$0xff] }
 0x489   : > { %v14900_v38 = vunpack.c.l.b16 %v3334_v0  ;;  %v3744_v44 = vsel %vm3503_vm12, %v14662_v62, %v3743_v6  ;;  %v14905_v63 = vunpack.c.l.b16 %v3335_v32  ;;  %v3840_v55 = vsel %vm3503_vm12, %v14893_v28, %v14677_v31  ;;  %v14929_v0 = vld [vmem:[#allocation13] ss:$0 sm:$0xff]  ;;  %v16463_v6 = vld [vmem:[#allocation50_spill] sm:$0xff] }
 0x48a   : > { %16457 = vst [vmem:[#allocation77_spill] sm:$0xff] %v14898_v36  ;;  %v2887_v47 = vrot.slane %v2886_v2, 1  ;;  %v3745_v49 = vsel %vm3505_vm14, %v14893_v28, %v3744_v44  ;;  %v3841_v60 = vsel %vm3505_vm14, %v14898_v36, %v3840_v55  ;;  %v1954_v3 = vadd.f32 %v1922_v48, %v14434_v12  ;;  %v16464_v48 = vld [vmem:[#allocation45_spill] sm:$0xff] }
 0x48b   : > { %16458 = vst [vmem:[#allocation78_spill] sm:$0xff] %v14900_v38  ;;  %16459 = vst [vmem:[#allocation79_spill] sm:$0xff] %v14905_v63  ;;  %v3746_v17 = vsel %vm3507_vm15, %v14898_v36, %v3745_v49  ;;  %v1923_v16 = vadd.f32 %v1846_v1, %v16460_v59  ;;  %v3842_v31 = vsel %vm3507_vm15, %v14900_v38, %v3841_v60  ;;  %v16462_v1 = vld [vmem:[#allocation48_spill] sm:$0xff]  ;;  %v16465_v49 = vrot.slane %v14701_v5, 1 }
 0x48c   : > { %v2888_v45 = vmax.f32 %v2886_v2, %v2887_v47  ;;  %v3747_v7 = vsel %vm3509_vm0, %v14900_v38, %v3746_v17  ;;  %v1924_v9 = vadd.f32 %v1848_v18, %v16461_v14  ;;  %v3843_v57 = vsel %vm3509_vm0, %v14905_v63, %v3842_v31 }
 0x48d   : > { %v3748_v11 = vsel %vm3511_vm1, %v14905_v63, %v3747_v7  ;;  %v1993_v12 = vadd.f32 %v14929_v0, %v1954_v3  ;;  %v1955_v2 = vadd.f32 %v1923_v16, %v16462_v1  ;;  %v1925_v47 = vadd.f32 %v1850_v21, %v16464_v48 }
 0x48e   : > { %v3336_v32 = vpack.c.bf16 %v2888_v45, %v2888_v45  ;;  %v1956_v44 = vadd.f32 %v1924_v9, %v16463_v6  ;;  %v14938_v18 = vmax.f32 %v14701_v5, %v16465_v49  ;;  %v2941_v60 = vrot.slane %v14719_v22, 1  ;;  %v16466_v45 = vld [vmem:[#allocation52_spill] sm:$0xff] }
 0x48f   : > { %v2025_v55 = vmax.f32 %v1993_v12, 0.0  ;;  %v1994_v17 = vadd.f32 %v14929_v0, %v1955_v2  ;;  %v1957_v7 = vadd.f32 %v1925_v47, %v16466_v45 }
 0x490   : > { %v3600_v3 = vunpack.c.l.b16 %v3336_v32  ;;  %v1995_v16 = vadd.f32 %v14929_v0, %v1956_v44  ;;  %v14948_v5 = vmax.f32 %v14719_v22, %v2941_v60 }
 0x491   : > { %v2361_v21 = vcombine.high %v2025_v55, %v2025_v55  ;;  %v2368_v14 = vrot.slane %v2025_v55, %v14506_v33  ;;  %v2026_v9 = vmax.f32 %v1994_v17, 0.0  ;;  %v1996_v32 = vadd.f32 %v14929_v0, %v1957_v7 }
 0x492   : > { %v3749_v12 = vsel %vm3513_vm4, %v3600_v3, %v3748_v11  ;;  %v3844_v1 = vsel %vm3511_vm1, %v3600_v3, %v3843_v57  ;;  %v2027_v2 = vmax.f32 %v1995_v16, 0.0 }
 0x493   : > { %v3793_v6 = vpack.c.b16 %v3749_v12, %v3749_v12  ;;  %v3882_v44 = vpack.c.b16 %v3844_v1, %v3844_v1  ;;  %v2375_v48 = vrot.slane %v2361_v21, %v14506_v33  ;;  %v2376_v47 = vcombine.high %v2368_v14, %v2368_v14 }
 0x494   : > { %v3069_v49 = vsel %vm2744_vm11, %v2368_v14, -inf  ;;  %v2378_v45 = vcombine.high %v2026_v9, %v2026_v9  ;;  %v2385_v55 = vrot.slane %v2026_v9, %v14506_v33  ;;  %v2395_v17 = vcombine.high %v2027_v2, %v2027_v2 }
 0x495   : > { %v3901_v22 = vsel %vm14816_vm7, %v3882_v44, 0  ;;  %3802 = vrot.lane.b32.xlu1 %v3793_v6, %s13666_s4  ;;  %v2377_v11 = vcombine.high %v2375_v48, %v2375_v48  ;;  %v3078_v57 = vsel %vm2744_vm11, %v2376_v47, -inf  ;;  %v3087_v60 = vsel %vm2744_vm11, %v2375_v48, -inf }
 0x496   : > { %3909 = vst.msk [vmem:[#allocation3 + $0x14] sm:$0xf] %vm3582_vm6, %v3901_v22  ;;  %v2392_v3 = vrot.slane %v2378_v45, %v14506_v33  ;;  %v2393_v16 = vcombine.high %v2385_v55, %v2385_v55  ;;  %v3034_v7 = vsel %vm2744_vm11, %v2385_v55, -inf  ;;  %v2402_v21 = vrot.slane %v2027_v2, %v14506_v33 }
 0x497   : > { %v3096_v14 = vsel %vm2744_vm11, %v2377_v11, -inf  ;;  %v3035_v9 = vmax.f32 %v14865_v41, %v3034_v7  ;;  %v2409_v12 = vrot.slane %v2395_v17, %v14506_v33  ;;  %v2028_v1 = vmax.f32 %v1996_v32, 0.0 }
 0x498   : > { %v2394_v6 = vcombine.high %v2392_v3, %v2392_v3  ;;  %v3043_v44 = vsel %vm2744_vm11, %v2393_v16, -inf  ;;  %v3052_v48 = vsel %vm2744_vm11, %v2392_v3, -inf  ;;  %v2410_v47 = vcombine.high %v2402_v21, %v2402_v21 }
 0x499   : > { %v3036_v22 = vrot.slane %v3035_v9, 4  ;;  %v3044_v45 = vmax.f32 %v14871_v4, %v3043_v44  ;;  %v3053_v55 = vmax.f32 %v14874_v53, %v3052_v48  ;;  %v2411_v20 = vcombine.high %v2409_v12, %v2409_v12  ;;  %v12393_v53 = vld [vmem:[#allocation15 + $0x60] sm:$0xff]  }
 0x49a   : > { %v3061_v2 = vsel %vm2744_vm11, %v2394_v6, -inf  ;;  %v3070_v11 = vsel %vm2744_vm11, %v2402_v21, -inf  ;;  %v3079_v41 = vsel %vm2744_vm11, %v2410_v47, -inf  ;;  %v3088_v32 = vsel %vm2744_vm11, %v2409_v12, -inf  ;;  %4102 = vmatpush1.bf16.msra.mxu0 %v12393_v53 }
 0x49b   : > { %v3037_v17 = vmax.f32 %v3035_v9, %v3036_v22  ;;  %v3045_v7 = vrot.slane %v3044_v45, 4  ;;  %v3054_v16 = vrot.slane %v3053_v55, 4  ;;  %v3062_v3 = vmax.f32 %v14889_v43, %v3061_v2 }
 0x49c   : > { %v3071_v31 = vmax.f32 %v3069_v49, %v3070_v11  ;;  %v3080_v59 = vmax.f32 %v3078_v57, %v3079_v41  ;;  %v3089_v63 = vmax.f32 %v3087_v60, %v3088_v32  ;;  %v3097_v4 = vsel %vm2744_vm11, %v2411_v20, -inf  ;;  %v14980_v49 = vld [vmem:[#allocation2] sm:$0xff] }
 0x49d   : > { %v3038_v44 = vrot.slane %v3037_v17, 2  ;;  %v3046_v48 = vmax.f32 %v3044_v45, %v3045_v7  ;;  %v3055_v6 = vmax.f32 %v3053_v55, %v3054_v16  ;;  %v3063_v38 = vrot.slane %v3062_v3, 4  ;;  %4103 = vmatprep.subr.bf16.mxu0 %v14980_v49 }
 0x49e   : > { %v3072_v21 = vrot.slane %v3071_v31, 4  ;;  %v3081_v36 = vrot.slane %v3080_v59, 4  ;;  %v3090_v47 = vrot.slane %v3089_v63, 4  ;;  %v14978_v23 = vmax.f32 %v3096_v14, %v3097_v4 }
 0x49f   : > { %v3039_v9 = vmax.f32 %v3037_v17, %v3038_v44  ;;  %v3047_v12 = vrot.slane %v3046_v48, 2  ;;  %v3056_v22 = vrot.slane %v3055_v6, 2  ;;  %v3064_v43 = vmax.f32 %v3062_v3, %v3063_v38 }
 0x4a0   : > { %v3073_v20 = vmax.f32 %v3071_v31, %v3072_v21  ;;  %v3082_v57 = vmax.f32 %v3080_v59, %v3081_v36  ;;  %v14983_v60 = vmax.f32 %v3089_v63, %v3090_v47  ;;  %v2412_v45 = vcombine.high %v2028_v1, %v2028_v1 }
 0x4a1   : > { %v3040_v55 = vrot.slane %v3039_v9, 1  ;;  %v3048_v2 = vmax.f32 %v3046_v48, %v3047_v12  ;;  %v3057_v11 = vmax.f32 %v3055_v6, %v3056_v22  ;;  %v3065_v41 = vrot.slane %v3064_v43, 2  ;;  %v1854_v12 = vpop.permute.xlu1 %1853  ;;  %v16479_v48 = vld [vmem:[#allocation51_spill] sm:$0xff] }
 0x4a2   : > { %v3074_v14 = vrot.slane %v3073_v20, 2  ;;  %v3083_v32 = vrot.slane %v3082_v57, 2  ;;  %v2419_v17 = vrot.slane %v2028_v1, %v14506_v33  ;;  %v2426_v7 = vrot.slane %v2412_v45, %v14506_v33 }
 0x4a3   : > { %v3041_v38 = vmax.f32 %v3039_v9, %v3040_v55  ;;  %v3049_v16 = vrot.slane %v3048_v2, 1  ;;  %v3058_v3 = vrot.slane %v3057_v11, 1  ;;  %v14987_v4 = vmax.f32 %v3064_v43, %v3065_v41 }
 0x4a4   : > { %v3075_v31 = vmax.f32 %v3073_v20, %v3074_v14  ;;  %v14989_v36 = vmax.f32 %v3082_v57, %v3083_v32  ;;  %v2427_v63 = vcombine.high %v2419_v17, %v2419_v17  ;;  %v2428_v59 = vcombine.high %v2426_v7, %v2426_v7 }
 0x4a5   : > { %v3050_v53 = vmax.f32 %v3048_v2, %v3049_v16  ;;  %v3059_v44 = vmax.f32 %v3057_v11, %v3058_v3  ;;  %v3353_v6 = vpack.c.bf16 %v3041_v38, %v3041_v38  ;;  %v14993_v1 = vsel %vm2744_vm11, %v2419_v17, -inf  ;;  %v1852_v16 = vpop.permute.xlu0 %1851 }
 0x4a6   : > { %v3076_v21 = vrot.slane %v3075_v31, 1  ;;  %v14996_v47 = vsel %vm2744_vm11, %v2427_v63, -inf  ;;  %v14999_v9 = vsel %vm2744_vm11, %v2426_v7, -inf  ;;  %v15004_v57 = vsel %vm2744_vm11, %v2428_v59, -inf }
 0x4a7   : > { %v3354_v22 = vpack.c.bf16 %v3050_v53, %v3050_v53  ;;  %v3355_v43 = vpack.c.bf16 %v3059_v44, %v3059_v44  ;;  %v15001_v20 = vunpack.c.l.b16 %v3353_v6  ;;  %v16467_v55 = vrot.slane %v14706_v51, 2  ;;  %v1856_v6 = vpop.permute.xlu1 %1855 }
 0x4a8   : > { %v15006_v45 = vmax.f32 %v3075_v31, %v3076_v21  ;;  %v16468_v11 = vrot.slane %v14703_v26, 4  ;;  %v3340_v14 = vpack.c.bf16 %v14938_v18, %v14938_v18  ;;  %v3341_v7 = vpack.c.bf16 %v14742_v13, %v14742_v13  ;;  %v12394_v18 = vld [vmem:[#allocation15 + $0x68] sm:$0xff]   ;;  %v12395_v21 = vld [vmem:[#allocation15 + $0x70] sm:$0xff]  }
 0x4a9   : > { %v2949_v2 = vmax.f32 %v14706_v51, %v16467_v55  ;;  %v15016_v32 = vunpack.c.l.b16 %v3354_v22  ;;  %v15018_v17 = vunpack.c.l.b16 %v3355_v43  ;;  %v3342_v38 = vpack.c.bf16 %v14948_v5, %v14948_v5  ;;  %4104 = vmatpush1.bf16.msra.mxu0 %v12394_v18  ;;  %v16473_v55 = vld [vmem:[#allocation46_spill] sm:$0xff] }
 0x4aa   : > { %v2956_v41 = vmax.f32 %v14703_v26, %v16468_v11  ;;  %v15024_v31 = vunpack.c.l.b16 %v3340_v14  ;;  %v3750_v26 = vsel %vm3735_vm13, %v14715_v52, %v14710_v24  ;;  %v15039_v5 = vunpack.c.l.b16 %v3341_v7  ;;  %v1858_v14 = vpop.permute.xlu0 %1857  ;;  %4105 = vmatprep.subr.bf16.mxu0 %v14980_v49 }
 0x4ab   : > { %v2950_v3 = vrot.slane %v2949_v2, 1  ;;  %v15032_v63 = vsel %vm3503_vm12, %v15016_v32, %v15001_v20  ;;  %v15037_v13 = vsel %vm3735_vm13, %v15018_v17, %v15016_v32  ;;  %v15041_v59 = vunpack.c.l.b16 %v3342_v38 }
 0x4ac   : > { %v2957_v51 = vrot.slane %v2956_v41, 2  ;;  %16469 = vst [vmem:[#allocation43_spill] sm:$0xff] %v15024_v31  ;;  %16470 = vst [vmem:[#allocation44_spill] sm:$0xff] %v15032_v63  ;;  %v3751_v24 = vsel %vm3503_vm12, %v14717_v27, %v3750_v26  ;;  %v3846_v52 = vsel %vm3503_vm12, %v15024_v31, %v14736_v56  ;;  %v1926_v11 = vadd.f32 %v1852_v16, %v16473_v55  ;;  %v16475_v26 = vld [vmem:[#allocation54_spill] sm:$0xff]  ;;  %v12401_v27 = vld [vmem:[#allocation15 + $0xa0] sm:$0xff]  }
 0x4ad   : > { %16471 = vst [vmem:[#allocation48_spill] sm:$0xff] %v15039_v5  ;;  %16472 = vst [vmem:[#allocation50_spill] sm:$0xff] %v15041_v59  ;;  %v2951_v53 = vmax.f32 %v2949_v2, %v2950_v3  ;;  %v3752_v22 = vsel %vm3505_vm14, %v15024_v31, %v3751_v24  ;;  %v3847_v43 = vsel %vm3505_vm14, %v15039_v5, %v3846_v52  ;;  %v16474_v2 = vld [vmem:[#allocation47_spill] sm:$0xff]  ;;  %v16476_v24 = vld [vmem:[#allocation56_spill] sm:$0xff]  ;;  %v16480_v63 = vrot.slane %v14842_v39, 1 }
 0x4ae   : > { %v2958_v44 = vmax.f32 %v2956_v41, %v2957_v51  ;;  %v1927_v41 = vadd.f32 %v1854_v12, %v16474_v2  ;;  %v3753_v56 = vsel %vm3507_vm15, %v15039_v5, %v3752_v22  ;;  %v3848_v3 = vsel %vm3507_vm15, %v15041_v59, %v3847_v43  ;;  %v16477_v52 = vld [vmem:[#allocation49_spill] sm:$0xff]  ;;  %4106 = vmatpush1.bf16.msra.mxu0 %v12395_v21  ;;  %v12396_v43 = vld [vmem:[#allocation15 + $0x78] sm:$0xff]  }
 0x4af   : > { %v3343_v38 = vpack.c.bf16 %v2951_v53, %v2951_v53  ;;  %v3754_v51 = vsel %vm3509_vm0, %v15041_v59, %v3753_v56  ;;  %v1958_v18 = vadd.f32 %v1926_v11, %v16475_v26  ;;  %v1928_v12 = vadd.f32 %v1856_v6, %v16477_v52  ;;  %v16481_v26 = vld [vmem:[#allocation58_spill] sm:$0xff]  ;;  %4107 = vmatprep.subr.bf16.mxu0 %v14980_v49 }
 0x4b0   : > { %v2959_v7 = vrot.slane %v2958_v44, 1  ;;  %v1959_v16 = vadd.f32 %v1927_v41, %v16476_v24  ;;  %v1929_v53 = vadd.f32 %v1858_v14, %v16479_v48  ;;  %v15070_v22 = vmax.f32 %v14842_v39, %v16480_v63  ;;  %v16482_v63 = vld [vmem:[#allocation60_spill] sm:$0xff]  ;;  %v12398_v52 = vld [vmem:[#allocation15 + $0x88] sm:$0xff]  }
 0x4b1   : > { %v15064_v2 = vunpack.c.l.b16 %v3343_v38  ;;  %v1997_v56 = vadd.f32 %v14929_v0, %v1958_v18  ;;  %v1960_v41 = vadd.f32 %v1928_v12, %v16481_v26  ;;  %v3013_v6 = vrot.slane %v14848_v8, 1 }
 0x4b2   : > { %v2960_v55 = vmax.f32 %v2958_v44, %v2959_v7  ;;  %v1998_v11 = vadd.f32 %v14929_v0, %v1959_v16  ;;  %v1961_v21 = vadd.f32 %v1929_v53, %v16482_v63  ;;  %4108 = vmatpush1.bf16.msra.mxu0 %v12396_v43 }
 0x4b3   : > { %16478 = vst [vmem:[#allocation45_spill] sm:$0xff] %v15064_v2  ;;  %v3755_v48 = vsel %vm3511_vm1, %v15064_v2, %v3754_v51  ;;  %v3849_v39 = vsel %vm3509_vm0, %v15064_v2, %v3848_v3  ;;  %v2029_v14 = vmax.f32 %v1997_v56, 0.0  ;;  %v1999_v38 = vadd.f32 %v14929_v0, %v1960_v41  ;;  %v12397_v51 = vld [vmem:[#allocation15 + $0x80] sm:$0xff]   ;;  %4109 = vmatprep.subr.bf16.mxu0 %v14980_v49 }
 0x4b4   : > { %v3344_v44 = vpack.c.bf16 %v2960_v55, %v2960_v55  ;;  %v2030_v7 = vmax.f32 %v1998_v11, 0.0  ;;  %v15084_v18 = vmax.f32 %v14848_v8, %v3013_v6  ;;  %v2000_v16 = vadd.f32 %v14929_v0, %v1961_v21 }
 0x4b5   : > { %v2429_v55 = vcombine.high %v2029_v14, %v2029_v14  ;;  %v2436_v3 = vrot.slane %v2029_v14, %v14506_v33  ;;  %v2031_v26 = vmax.f32 %v1999_v38, 0.0 }
 0x4b6   : > { %v3601_v24 = vunpack.c.l.b16 %v3344_v44  ;;  %v2446_v53 = vcombine.high %v2030_v7, %v2030_v7  ;;  %v2453_v56 = vrot.slane %v2030_v7, %v14506_v33  ;;  %v15094_v41 = vmax.f32 %v2000_v16, 0.0  ;;  %4110 = vmatpush1.bf16.msra.mxu0 %v12397_v51 }
 0x4b7   : > { %v2443_v43 = vrot.slane %v2429_v55, %v14506_v33  ;;  %v2444_v63 = vcombine.high %v2436_v3, %v2436_v3  ;;  %v3141_v21 = vsel %vm2744_vm11, %v2436_v3, -inf  ;;  %4111 = vmatprep.subr.bf16.mxu0 %v14980_v49 }
 0x4b8   : > { %v3756_v8 = vsel %vm3513_vm4, %v3601_v24, %v3755_v48  ;;  %v3850_v11 = vsel %vm3511_vm1, %v3601_v24, %v3849_v39  ;;  %v2460_v14 = vrot.slane %v2446_v53, %v14506_v33  ;;  %v2461_v12 = vcombine.high %v2453_v56, %v2453_v56 }
 0x4b9   : > { %v3794_v6 = vpack.c.b16 %v3756_v8, %v3756_v8  ;;  %v3883_v44 = vpack.c.b16 %v3850_v11, %v3850_v11  ;;  %v3106_v7 = vsel %vm2744_vm11, %v2453_v56, -inf  ;;  %v2445_v39 = vcombine.high %v2443_v43, %v2443_v43 }
 0x4ba   : > { %v3150_v38 = vsel %vm2744_vm11, %v2444_v63, -inf  ;;  %v3159_v24 = vsel %vm2744_vm11, %v2443_v43, -inf  ;;  %v2462_v16 = vcombine.high %v2460_v14, %v2460_v14  ;;  %v3107_v55 = vmax.f32 %v14993_v1, %v3106_v7  ;;  %4112 = vmatpush1.bf16.msra.mxu0 %v12398_v52  ;;  %v12399_v1 = vld [vmem:[#allocation15 + $0x90] sm:$0xff]  }
 0x4bb   : > { %v3902_v48 = vsel %vm14816_vm7, %v3883_v44, 0  ;;  %3804 = vrot.lane.b32.xlu0 %v3794_v6, %s13666_s4  ;;  %v3115_v51 = vsel %vm2744_vm11, %v2461_v12, -inf  ;;  %v3124_v3 = vsel %vm2744_vm11, %v2460_v14, -inf  ;;  %v3168_v53 = vsel %vm2744_vm11, %v2445_v39, -inf  ;;  %4113 = vmatprep.subr.bf16.mxu0 %v14980_v49 }
 0x4bc   : > { %3910 = vst.msk [vmem:[#allocation3 + $0x1c] sm:$0xf] %vm3582_vm6, %v3902_v48  ;;  %v3116_v56 = vmax.f32 %v14996_v47, %v3115_v51  ;;  %v3125_v8 = vmax.f32 %v14999_v9, %v3124_v3  ;;  %v2463_v11 = vcombine.high %v2031_v26, %v2031_v26  ;;  %v3108_v6 = vrot.slane %v3107_v55, 4 }
 0x4bd   : > { %v3133_v44 = vsel %vm2744_vm11, %v2462_v16, -inf  ;;  %v2470_v43 = vrot.slane %v2031_v26, %v14506_v33  ;;  %v2480_v63 = vcombine.high %v15094_v41, %v15094_v41  ;;  %v2487_v26 = vrot.slane %v15094_v41, %v14506_v33 }
 0x4be   : > { %v3117_v12 = vrot.slane %v3116_v56, 4  ;;  %v3126_v7 = vrot.slane %v3125_v8, 4  ;;  %v3134_v14 = vmax.f32 %v15004_v57, %v3133_v44  ;;  %v2477_v48 = vrot.slane %v2463_v11, %v14506_v33  ;;  %4114 = vmatpush1.bf16.msra.mxu0 %v12399_v1  ;;  %v12400_v11 = vld [vmem:[#allocation15 + $0x98] sm:$0xff]  }
 0x4bf   : > { %v3109_v47 = vmax.f32 %v3107_v55, %v3108_v6  ;;  %v2478_v9 = vcombine.high %v2470_v43, %v2470_v43  ;;  %v3142_v39 = vsel %vm2744_vm11, %v2470_v43, -inf  ;;  %4115 = vmatprep.subr.bf16.mxu0 %v14980_v49 }
 0x4c0   : > { %v3118_v16 = vmax.f32 %v3116_v56, %v3117_v12  ;;  %v3127_v51 = vmax.f32 %v3125_v8, %v3126_v7  ;;  %v3135_v3 = vrot.slane %v3134_v14, 4  ;;  %v2479_v52 = vcombine.high %v2477_v48, %v2477_v48 }
 0x4c1   : > { %v3110_v2 = vrot.slane %v3109_v47, 2  ;;  %v3143_v59 = vmax.f32 %v3141_v21, %v3142_v39  ;;  %v3151_v5 = vsel %vm2744_vm11, %v2478_v9, -inf  ;;  %v3160_v57 = vsel %vm2744_vm11, %v2477_v48, -inf }
 0x4c2   : > { %v3119_v44 = vrot.slane %v3118_v16, 2  ;;  %v3128_v55 = vrot.slane %v3127_v51, 2  ;;  %v3136_v6 = vmax.f32 %v3134_v14, %v3135_v3  ;;  %v3152_v31 = vmax.f32 %v3150_v38, %v3151_v5  ;;  %4116 = vmatpush1.bf16.msra.mxu0 %v12400_v11 }
 0x4c3   : > { %v3111_v43 = vmax.f32 %v3109_v47, %v3110_v2  ;;  %v3144_v41 = vrot.slane %v3143_v59, 4  ;;  %v3161_v56 = vmax.f32 %v3159_v24, %v3160_v57  ;;  %v3169_v8 = vsel %vm2744_vm11, %v2479_v52, -inf  ;;  %4117 = vmatprep.subr.bf16.mxu0 %v14980_v49 }
 0x4c4   : > { %v3120_v12 = vmax.f32 %v3118_v16, %v3119_v44  ;;  %v3129_v7 = vmax.f32 %v3127_v51, %v3128_v55  ;;  %v3137_v21 = vrot.slane %v3136_v6, 2  ;;  %v3153_v39 = vrot.slane %v3152_v31, 4 }
 0x4c5   : > { %v3112_v9 = vrot.slane %v3111_v43, 1  ;;  %v3145_v10 = vmax.f32 %v3143_v59, %v3144_v41  ;;  %v3162_v48 = vrot.slane %v3161_v56, 4  ;;  %v15127_v1 = vmax.f32 %v3168_v53, %v3169_v8 }
 0x4c6   : > { %v3121_v14 = vrot.slane %v3120_v12, 1  ;;  %v3130_v5 = vrot.slane %v3129_v7, 1  ;;  %v15129_v38 = vmax.f32 %v3136_v6, %v3137_v21  ;;  %v3154_v2 = vmax.f32 %v3152_v31, %v3153_v39  ;;  %4118 = vmatpush1.bf16.msra.mxu0 %v12401_v27  ;;  %v12402_v6 = vld [vmem:[#allocation15 + $0xa8] sm:$0xff]   ;;  %v1862_v27 = vpop.permute.xlu1 %1861 }
 0x4c7   : > { %v3113_v24 = vmax.f32 %v3111_v43, %v3112_v9  ;;  %v3146_v47 = vrot.slane %v3145_v10, 2  ;;  %v15132_v16 = vmax.f32 %v3161_v56, %v3162_v48  ;;  %v2494_v51 = vrot.slane %v2480_v63, %v14506_v33  ;;  %4119 = vmatprep.subr.bf16.mxu0 %v14980_v49 }
 0x4c8   : > { %v3122_v3 = vmax.f32 %v3120_v12, %v3121_v14  ;;  %v3131_v59 = vmax.f32 %v3129_v7, %v3130_v5  ;;  %v3155_v52 = vrot.slane %v3154_v2, 2  ;;  %v2495_v44 = vcombine.high %v2487_v26, %v2487_v26 }
 0x4c9   : > { %v3361_v57 = vpack.c.bf16 %v3113_v24, %v3113_v24  ;;  %v3147_v11 = vmax.f32 %v3145_v10, %v3146_v47  ;;  %v2496_v55 = vcombine.high %v2494_v51, %v2494_v51  ;;  %v15139_v43 = vsel %vm2744_vm11, %v2487_v26, -inf  ;;  %v1860_v47 = vpop.permute.xlu0 %1859 }
 0x4ca   : > { %v3362_v31 = vpack.c.bf16 %v3122_v3, %v3122_v3  ;;  %v3363_v41 = vpack.c.bf16 %v3131_v59, %v3131_v59  ;;  %v15136_v8 = vmax.f32 %v3154_v2, %v3155_v52  ;;  %v15145_v12 = vsel %vm2744_vm11, %v2495_v44, -inf  ;;  %4120 = vmatpush1.bf16.msra.mxu0 %v12402_v6  ;;  %v16489_v6 = vld [vmem:[#allocation53_spill] sm:$0xff] }
 0x4cb   : > { %v15142_v63 = vunpack.c.l.b16 %v3361_v57  ;;  %v3148_v56 = vrot.slane %v3147_v11, 1  ;;  %v15148_v10 = vsel %vm2744_vm11, %v2494_v51, -inf  ;;  %v15155_v39 = vsel %vm2744_vm11, %v2496_v55, -inf  ;;  %v12403_v51 = vld [vmem:[#allocation15 + $0xb0] sm:$0xff]   ;;  %4121 = vmatprep.subr.bf16.mxu0 %v14980_v49 }
 0x4cc   : > { %v15150_v7 = vunpack.c.l.b16 %v3362_v31  ;;  %v15152_v21 = vunpack.c.l.b16 %v3363_v41  ;;  %v16483_v26 = vrot.slane %v14838_v46, 2  ;;  %v16484_v14 = vrot.slane %v14836_v15, 4 }
 0x4cd   : > { %v15160_v48 = vmax.f32 %v3147_v11, %v3148_v56  ;;  %v3348_v2 = vpack.c.bf16 %v15070_v22, %v15070_v22  ;;  %v3349_v24 = vpack.c.bf16 %v14857_v34, %v14857_v34  ;;  %v3350_v22 = vpack.c.bf16 %v15084_v18, %v15084_v18 }
 0x4ce   : > { %v3021_v9 = vmax.f32 %v14838_v46, %v16483_v26  ;;  %v3028_v5 = vmax.f32 %v14836_v15, %v16484_v14  ;;  %v15172_v3 = vsel %vm3503_vm12, %v15150_v7, %v15142_v63  ;;  %v15177_v46 = vsel %vm3735_vm13, %v15152_v21, %v15150_v7  ;;  %v16490_v26 = vld [vmem:[#allocation55_spill] sm:$0xff]  ;;  %4122 = vmatpush1.bf16.msra.mxu0 %v12403_v51  ;;  %v16492_v51 = vld [vmem:[#allocation64_spill] sm:$0xff] }
 0x4cf   : > { %16485 = vst [vmem:[#allocation52_spill] sm:$0xff] %v15172_v3  ;;  %v15182_v59 = vunpack.c.l.b16 %v3348_v2  ;;  %v15184_v52 = vunpack.c.l.b16 %v3349_v24  ;;  %v3757_v57 = vsel %vm3735_vm13, %v14862_v58, %v14851_v30  ;;  %v15189_v44 = vunpack.c.l.b16 %v3350_v22  ;;  %v1864_v2 = vpop.permute.xlu1 %1863  ;;  %v1866_v30 = vpop.permute.xlu0 %1865  ;;  %v12404_v58 = vld [vmem:[#allocation15 + $0xb8] sm:$0xff]   ;;  %4123 = vmatprep.subr.bf16.mxu0 %v14980_v49 }
 0x4d0   : > { %v3022_v15 = vrot.slane %v3021_v9, 1  ;;  %v3029_v34 = vrot.slane %v3028_v5, 2  ;;  %v3758_v55 = vsel %vm3503_vm12, %v14868_v37, %v3757_v57  ;;  %v1930_v31 = vadd.f32 %v1860_v47, %v16489_v6  ;;  %v16491_v47 = vld [vmem:[#allocation62_spill] sm:$0xff] }
 0x4d1   : > { %16486 = vst [vmem:[#allocation46_spill] sm:$0xff] %v15182_v59  ;;  %16487 = vst [vmem:[#allocation47_spill] sm:$0xff] %v15184_v52  ;;  %v3759_v41 = vsel %vm3505_vm14, %v15182_v59, %v3758_v55  ;;  %v3852_v56 = vsel %vm3503_vm12, %v15182_v59, %v14886_v40  ;;  %v1931_v14 = vadd.f32 %v1862_v27, %v16490_v26  ;;  %v16494_v55 = vld [vmem:[#allocation57_spill] sm:$0xff] }
 0x4d2   : > { %v3023_v11 = vmax.f32 %v3021_v9, %v3022_v15  ;;  %16488 = vst [vmem:[#allocation54_spill] sm:$0xff] %v15189_v44  ;;  %v3030_v18 = vmax.f32 %v3028_v5, %v3029_v34  ;;  %v3760_v24 = vsel %vm3507_vm15, %v15184_v52, %v3759_v41  ;;  %v3853_v5 = vsel %vm3505_vm14, %v15184_v52, %v3852_v56  ;;  %v16495_v41 = vld [vmem:[#allocation59_spill] sm:$0xff] }
 0x4d3   : > { %v1962_v15 = vadd.f32 %v1930_v31, %v16491_v47  ;;  %v3761_v40 = vsel %vm3509_vm0, %v15189_v44, %v3760_v24  ;;  %v3854_v27 = vsel %vm3507_vm15, %v15189_v44, %v3853_v5  ;;  %v1963_v34 = vadd.f32 %v1931_v14, %v16492_v51  ;;  %4124 = vmatpush1.bf16.msra.mxu0 %v12404_v58  ;;  %v16498_v51 = vld [vmem:[#allocation69_spill] sm:$0xff] }
 0x4d4   : > { %v3351_v9 = vpack.c.bf16 %v3023_v11, %v3023_v11  ;;  %v3031_v22 = vrot.slane %v3030_v18, 1  ;;  %v1932_v6 = vadd.f32 %v1864_v2, %v16494_v55  ;;  %v1933_v56 = vadd.f32 %v1866_v30, %v16495_v41  ;;  %4286 = vmatprep.subr.bf16.mxu0 %v14980_v49 }
 0x4d5   : > { %v2001_v11 = vadd.f32 %v14929_v0, %v1962_v15  ;;  %v2002_v26 = vadd.f32 %v14929_v0, %v1963_v34  ;;  %v16496_v47 = vrot.slane %v14987_v4, 1  ;;  %v3085_v5 = vrot.slane %v14989_v36, 1  ;;  %v16497_v15 = vld [vmem:[#allocation66_spill] sm:$0xff] }
 0x4d6   : > { %v15211_v57 = vunpack.c.l.b16 %v3351_v9  ;;  %v3032_v31 = vmax.f32 %v3030_v18, %v3031_v22  ;;  %v1964_v30 = vadd.f32 %v1932_v6, %v16497_v15  ;;  %v1965_v34 = vadd.f32 %v1933_v56, %v16498_v51 }
 0x4d7   : > { %v15220_v24 = vmax.f32 %v14987_v4, %v16496_v47  ;;  %v2033_v2 = vmax.f32 %v2001_v11, 0.0  ;;  %v2034_v22 = vmax.f32 %v2002_v26, 0.0  ;;  %v15231_v4 = vmax.f32 %v14989_v36, %v3085_v5 }
 0x4d8   : > { %16493 = vst [vmem:[#allocation56_spill] sm:$0xff] %v15211_v57  ;;  %v3762_v14 = vsel %vm3511_vm1, %v15211_v57, %v3761_v40  ;;  %v3855_v9 = vsel %vm3509_vm0, %v15211_v57, %v3854_v27  ;;  %v3352_v18 = vpack.c.bf16 %v3032_v31, %v3032_v31  ;;  %v2003_v40 = vadd.f32 %v14929_v0, %v1964_v30 }
 0x4d9   : > { %v2497_v55 = vcombine.high %v2033_v2, %v2033_v2  ;;  %v2504_v58 = vrot.slane %v2033_v2, %v14506_v33  ;;  %v2514_v11 = vcombine.high %v2034_v22, %v2034_v22  ;;  %v2521_v6 = vrot.slane %v2034_v22, %v14506_v33 }
 0x4da   : > { %v3602_v27 = vunpack.c.l.b16 %v3352_v18  ;;  %v2004_v49 = vadd.f32 %v14929_v0, %v1965_v34  ;;  %v2035_v36 = vmax.f32 %v2003_v40, 0.0 }
 0x4db   : > { %v2511_v31 = vrot.slane %v2497_v55, %v14506_v33  ;;  %v2512_v26 = vcombine.high %v2504_v58, %v2504_v58  ;;  %v3213_v56 = vsel %vm2744_vm11, %v2504_v58, -inf  ;;  %v2528_v2 = vrot.slane %v2514_v11, %v14506_v33 }
 0x4dc   : > { %v3763_v47 = vsel %vm3513_vm4, %v3602_v27, %v3762_v14  ;;  %v3856_v5 = vsel %vm3511_vm1, %v3602_v27, %v3855_v9  ;;  %v2529_v15 = vcombine.high %v2521_v6, %v2521_v6  ;;  %v3178_v55 = vsel %vm2744_vm11, %v2521_v6, -inf }
 0x4dd   : > { %v3795_v30 = vpack.c.b16 %v3763_v47, %v3763_v47  ;;  %v3884_v18 = vpack.c.b16 %v3856_v5, %v3856_v5  ;;  %v2513_v51 = vcombine.high %v2511_v31, %v2511_v31  ;;  %v3222_v22 = vsel %vm2744_vm11, %v2512_v26, -inf }
 0x4de   : > { %v3231_v34 = vsel %vm2744_vm11, %v2511_v31, -inf  ;;  %v2530_v53 = vcombine.high %v2528_v2, %v2528_v2  ;;  %v3187_v58 = vsel %vm2744_vm11, %v2529_v15, -inf  ;;  %v3179_v40 = vmax.f32 %v15139_v43, %v3178_v55 }
 0x4df   : > { %v3903_v14 = vsel %vm14816_vm7, %v3884_v18, 0  ;;  %3806 = vrot.lane.b32.xlu1 %v3795_v30, %s13666_s4  ;;  %v3240_v9 = vsel %vm2744_vm11, %v2513_v51, -inf  ;;  %v3188_v27 = vmax.f32 %v15145_v12, %v3187_v58  ;;  %v3196_v11 = vsel %vm2744_vm11, %v2528_v2, -inf }
 0x4e0   : > { %3911 = vst.msk [vmem:[#allocation3 + $0x24] sm:$0xf] %vm3582_vm6, %v3903_v14  ;;  %v3205_v31 = vsel %vm2744_vm11, %v2530_v53, -inf  ;;  %v2531_v6 = vcombine.high %v2035_v36, %v2035_v36  ;;  %v2538_v26 = vrot.slane %v2035_v36, %v14506_v33  ;;  %v3180_v47 = vrot.slane %v3179_v40, 4 }
 0x4e1   : > { %v3189_v5 = vrot.slane %v3188_v27, 4  ;;  %v3197_v15 = vmax.f32 %v15148_v10, %v3196_v11  ;;  %v3206_v30 = vmax.f32 %v15155_v39, %v3205_v31  ;;  %v2036_v51 = vmax.f32 %v2004_v49, 0.0 }
 0x4e2   : > { %v2545_v18 = vrot.slane %v2531_v6, %v14506_v33  ;;  %v2546_v43 = vcombine.high %v2538_v26, %v2538_v26  ;;  %v3214_v12 = vsel %vm2744_vm11, %v2538_v26, -inf  ;;  %v3181_v55 = vmax.f32 %v3179_v40, %v3180_v47 }
 0x4e3   : > { %v3190_v58 = vmax.f32 %v3188_v27, %v3189_v5  ;;  %v3198_v2 = vrot.slane %v3197_v15, 4  ;;  %v3207_v14 = vrot.slane %v3206_v30, 4  ;;  %v3215_v41 = vmax.f32 %v3213_v56, %v3214_v12 }
 0x4e4   : > { %v2547_v53 = vcombine.high %v2545_v18, %v2545_v18  ;;  %v3223_v36 = vsel %vm2744_vm11, %v2546_v43, -inf  ;;  %v3232_v3 = vsel %vm2744_vm11, %v2545_v18, -inf  ;;  %v3182_v57 = vrot.slane %v3181_v55, 2 }
 0x4e5   : > { %v3191_v10 = vrot.slane %v3190_v58, 2  ;;  %v3199_v11 = vmax.f32 %v3197_v15, %v3198_v2  ;;  %v3208_v39 = vmax.f32 %v3206_v30, %v3207_v14  ;;  %v3216_v31 = vrot.slane %v3215_v41, 4 }
 0x4e6   : > { %v3224_v6 = vmax.f32 %v3222_v22, %v3223_v36  ;;  %v3233_v44 = vmax.f32 %v3231_v34, %v3232_v3  ;;  %v3241_v26 = vsel %vm2744_vm11, %v2547_v53, -inf  ;;  %v3183_v49 = vmax.f32 %v3181_v55, %v3182_v57  ;;  %v1870_v53 = vpop.permute.xlu1 %1869 }
 0x4e7   : > { %v3192_v40 = vmax.f32 %v3190_v58, %v3191_v10  ;;  %v3200_v27 = vrot.slane %v3199_v11, 2  ;;  %v3209_v47 = vrot.slane %v3208_v39, 2  ;;  %v3217_v5 = vmax.f32 %v3215_v41, %v3216_v31 }
 0x4e8   : > { %v3225_v52 = vrot.slane %v3224_v6, 4  ;;  %v3234_v56 = vrot.slane %v3233_v44, 4  ;;  %v15264_v12 = vmax.f32 %v3240_v9, %v3241_v26  ;;  %v3184_v43 = vrot.slane %v3183_v49, 1 }
 0x4e9   : > { %v3193_v18 = vrot.slane %v3192_v40, 1  ;;  %v3201_v59 = vmax.f32 %v3199_v11, %v3200_v27  ;;  %v15266_v37 = vmax.f32 %v3208_v39, %v3209_v47  ;;  %v3218_v15 = vrot.slane %v3217_v5, 2 }
 0x4ea   : > { %v3226_v30 = vmax.f32 %v3224_v6, %v3225_v52  ;;  %v15268_v22 = vmax.f32 %v3233_v44, %v3234_v56  ;;  %v2548_v3 = vcombine.high %v2036_v51, %v2036_v51  ;;  %v3185_v34 = vmax.f32 %v3183_v49, %v3184_v43 }
 0x4eb   : > { %v3194_v57 = vmax.f32 %v3192_v40, %v3193_v18  ;;  %v3202_v55 = vrot.slane %v3201_v59, 1  ;;  %v3219_v41 = vmax.f32 %v3217_v5, %v3218_v15  ;;  %v2555_v9 = vrot.slane %v2036_v51, %v14506_v33 }
 0x4ec   : > { %v3227_v2 = vrot.slane %v3226_v30, 2  ;;  %v2562_v14 = vrot.slane %v2548_v3, %v14506_v33  ;;  %v3369_v10 = vpack.c.bf16 %v3185_v34, %v3185_v34  ;;  %v16499_v52 = vrot.slane %v14983_v60, 2 }
 0x4ed   : > { %v3203_v36 = vmax.f32 %v3201_v59, %v3202_v55  ;;  %v3370_v11 = vpack.c.bf16 %v3194_v57, %v3194_v57  ;;  %v3220_v39 = vrot.slane %v3219_v41, 1  ;;  %v2563_v6 = vcombine.high %v2555_v9, %v2555_v9 }
 0x4ee   : > { %v3093_v44 = vmax.f32 %v14983_v60, %v16499_v52  ;;  %v15276_v31 = vmax.f32 %v3226_v30, %v3227_v2  ;;  %v2564_v26 = vcombine.high %v2562_v14, %v2562_v14  ;;  %v15278_v40 = vunpack.c.l.b16 %v3369_v10  ;;  %v1868_v30 = vpop.permute.xlu0 %1867  ;;  %v16500_v10 = vld [vmem:[#allocation61_spill] sm:$0xff]  ;;  %v16501_v52 = vld [vmem:[#allocation63_spill] sm:$0xff] }
 0x4ef   : > { %v3371_v49 = vpack.c.bf16 %v3203_v36, %v3203_v36  ;;  %v15280_v27 = vunpack.c.l.b16 %v3370_v11  ;;  %v15283_v51 = vsel %vm2744_vm11, %v2555_v9, -inf  ;;  %v15285_v59 = vmax.f32 %v3219_v41, %v3220_v39  ;;  %v1872_v41 = vpop.permute.xlu1 %1871 }
 0x4f0   : > { %v15288_v47 = vsel %vm2744_vm11, %v2563_v6, -inf  ;;  %v15291_v60 = vsel %vm2744_vm11, %v2562_v14, -inf  ;;  %v15294_v5 = vsel %vm2744_vm11, %v2564_v26, -inf  ;;  %v3094_v18 = vrot.slane %v3093_v44, 1  ;;  %v16502_v6 = vld [vmem:[#allocation65_spill] sm:$0xff] }
 0x4f1   : > { %v15296_v56 = vunpack.c.l.b16 %v3371_v49  ;;  %v15301_v43 = vsel %vm3503_vm12, %v15280_v27, %v15278_v40  ;;  %v3099_v15 = vrot.slane %v14978_v23, 4  ;;  %v3356_v3 = vpack.c.bf16 %v15220_v24, %v15220_v24  ;;  %v16503_v49 = vld [vmem:[#allocation70_spill] sm:$0xff] }
 0x4f2   : > { %v3357_v34 = vpack.c.bf16 %v15006_v45, %v15006_v45  ;;  %v3358_v57 = vpack.c.bf16 %v15231_v4, %v15231_v4  ;;  %v3764_v55 = vsel %vm3735_vm13, %v15016_v32, %v15001_v20  ;;  %v3095_v9 = vmax.f32 %v3093_v44, %v3094_v18 }
 0x4f3   : > { %v15316_v2 = vsel %vm3735_vm13, %v15296_v56, %v15280_v27  ;;  %v3100_v14 = vmax.f32 %v14978_v23, %v3099_v15  ;;  %v3765_v24 = vsel %vm3503_vm12, %v15018_v17, %v3764_v55  ;;  %v15321_v45 = vunpack.c.l.b16 %v3356_v3 }
 0x4f4   : > { %v15323_v36 = vunpack.c.l.b16 %v3357_v34  ;;  %v15325_v4 = vunpack.c.l.b16 %v3358_v57  ;;  %v1934_v20 = vadd.f32 %v1868_v30, %v16500_v10  ;;  %v3359_v11 = vpack.c.bf16 %v3095_v9, %v3095_v9 }
 0x4f5   : > { %v3101_v32 = vrot.slane %v3100_v14, 2  ;;  %v1935_v39 = vadd.f32 %v1870_v53, %v16501_v52  ;;  %v1936_v26 = vadd.f32 %v1872_v41, %v16502_v6  ;;  %v3766_v23 = vsel %vm3505_vm14, %v15321_v45, %v3765_v24 }
 0x4f6   : > { %v3858_v44 = vsel %vm3503_vm12, %v15321_v45, %v15037_v13  ;;  %v1966_v18 = vadd.f32 %v1934_v20, %v16503_v49  ;;  %v16504_v15 = vrot.slane %v15129_v38, 1  ;;  %v15341_v34 = vunpack.c.l.b16 %v3359_v11 }
 0x4f7   : > { %v3102_v30 = vmax.f32 %v3100_v14, %v3101_v32  ;;  %v3767_v53 = vsel %vm3507_vm15, %v15323_v36, %v3766_v23  ;;  %v3859_v57 = vsel %vm3505_vm14, %v15323_v36, %v3858_v44  ;;  %v1968_v10 = vadd.f32 %v1936_v26, %v14912_v35 }
 0x4f8   : > { %v15339_v3 = vmax.f32 %v15129_v38, %v16504_v15  ;;  %16505 = vst [vmem:[#allocation49_spill] sm:$0xff] %v15341_v34  ;;  %v3768_v55 = vsel %vm3509_vm0, %v15325_v4, %v3767_v53  ;;  %v3860_v13 = vsel %vm3507_vm15, %v15325_v4, %v3859_v57  ;;  %v2005_v41 = vadd.f32 %v14929_v0, %v1966_v18 }
 0x4f9   : > { %v1967_v38 = vadd.f32 %v1935_v39, %v14860_v61  ;;  %v3103_v9 = vrot.slane %v3102_v30, 1  ;;  %v3769_v14 = vsel %vm3511_vm1, %v15341_v34, %v3768_v55  ;;  %v3861_v24 = vsel %vm3509_vm0, %v15341_v34, %v3860_v13 }
 0x4fa   : > { %v2037_v20 = vmax.f32 %v2005_v41, 0.0  ;;  %v3157_v11 = vrot.slane %v15136_v8, 1  ;;  %v3164_v52 = vrot.slane %v15132_v16, 2  ;;  %v2007_v23 = vadd.f32 %v14929_v0, %v1968_v10 }
 0x4fb   : > { %v2006_v32 = vadd.f32 %v14929_v0, %v1967_v38  ;;  %v3104_v6 = vmax.f32 %v3102_v30, %v3103_v9  ;;  %v3171_v61 = vrot.slane %v15127_v1, 4 }
 0x4fc   : > { %v2565_v44 = vcombine.high %v2037_v20, %v2037_v20  ;;  %v2572_v49 = vrot.slane %v2037_v20, %v14506_v33  ;;  %v15367_v35 = vmax.f32 %v15136_v8, %v3157_v11  ;;  %v2039_v15 = vmax.f32 %v2007_v23, 0.0 }
 0x4fd   : > { %v2038_v18 = vmax.f32 %v2006_v32, 0.0  ;;  %v3360_v26 = vpack.c.bf16 %v3104_v6, %v3104_v6  ;;  %v15370_v53 = vmax.f32 %v15132_v16, %v3164_v52  ;;  %v15373_v30 = vmax.f32 %v15127_v1, %v3171_v61 }
 0x4fe   : > { %v2579_v0 = vrot.slane %v2565_v44, %v14506_v33  ;;  %v2580_v57 = vcombine.high %v2572_v49, %v2572_v49  ;;  %v3285_v55 = vsel %vm2744_vm11, %v2572_v49, -inf  ;;  %v2599_v9 = vcombine.high %v2039_v15, %v2039_v15 }
 0x4ff   : > { %v2582_v13 = vcombine.high %v2038_v18, %v2038_v18  ;;  %v3603_v41 = vunpack.c.l.b16 %v3360_v26  ;;  %v2589_v38 = vrot.slane %v2038_v18, %v14506_v33  ;;  %v2606_v8 = vrot.slane %v2039_v15, %v14506_v33 }
 0x500   : > { %v2581_v10 = vcombine.high %v2579_v0, %v2579_v0  ;;  %v3294_v20 = vsel %vm2744_vm11, %v2580_v57, -inf  ;;  %v3303_v16 = vsel %vm2744_vm11, %v2579_v0, -inf  ;;  %v2613_v0 = vrot.slane %v2599_v9, %v14506_v33 }
 0x501   : > { %v2596_v1 = vrot.slane %v2582_v13, %v14506_v33  ;;  %v3770_v32 = vsel %vm3513_vm4, %v3603_v41, %v3769_v14  ;;  %v3862_v11 = vsel %vm3511_vm1, %v3603_v41, %v3861_v24  ;;  %v2597_v52 = vcombine.high %v2589_v38, %v2589_v38 }
 0x502   : > { %v3250_v6 = vsel %vm2744_vm11, %v2589_v38, -inf  ;;  %v3796_v23 = vpack.c.b16 %v3770_v32, %v3770_v32  ;;  %v3885_v61 = vpack.c.b16 %v3862_v11, %v3862_v11  ;;  %v3312_v44 = vsel %vm2744_vm11, %v2581_v10, -inf }
 0x503   : > { %v2598_v49 = vcombine.high %v2596_v1, %v2596_v1  ;;  %v3251_v18 = vmax.f32 %v15283_v51, %v3250_v6  ;;  %v3259_v26 = vsel %vm2744_vm11, %v2597_v52, -inf  ;;  %v3268_v15 = vsel %vm2744_vm11, %v2596_v1, -inf }
 0x504   : > { %v3904_v14 = vsel %vm14816_vm7, %v3885_v61, 0  ;;  %3808 = vrot.lane.b32.xlu0 %v3796_v23, %s13666_s4  ;;  %v3260_v24 = vmax.f32 %v15288_v47, %v3259_v26  ;;  %v3269_v57 = vmax.f32 %v15291_v60, %v3268_v15  ;;  %v2614_v38 = vcombine.high %v2606_v8, %v2606_v8 }
 0x505   : > { %v3277_v13 = vsel %vm2744_vm11, %v2598_v49, -inf  ;;  %3912 = vst.msk [vmem:[#allocation3 + $0x2c] sm:$0xf] %vm3582_vm6, %v3904_v14  ;;  %v3252_v51 = vrot.slane %v3251_v18, 4  ;;  %v2615_v10 = vcombine.high %v2613_v0, %v2613_v0  ;;  %v3286_v32 = vsel %vm2744_vm11, %v2606_v8, -inf }
 0x506   : > { %v3278_v41 = vmax.f32 %v15294_v5, %v3277_v13  ;;  %v3261_v1 = vrot.slane %v3260_v24, 4  ;;  %v3270_v9 = vrot.slane %v3269_v57, 4  ;;  %v3304_v11 = vsel %vm2744_vm11, %v2613_v0, -inf }
 0x507   : > { %v3253_v52 = vmax.f32 %v3251_v18, %v3252_v51  ;;  %v3287_v47 = vmax.f32 %v3285_v55, %v3286_v32  ;;  %v3295_v60 = vsel %vm2744_vm11, %v2614_v38, -inf  ;;  %v3305_v26 = vmax.f32 %v3303_v16, %v3304_v11 }
 0x508   : > { %v3279_v6 = vrot.slane %v3278_v41, 4  ;;  %v3262_v23 = vmax.f32 %v3260_v24, %v3261_v1  ;;  %v3271_v61 = vmax.f32 %v3269_v57, %v3270_v9  ;;  %v3296_v49 = vmax.f32 %v3294_v20, %v3295_v60 }
 0x509   : > { %v3254_v15 = vrot.slane %v3253_v52, 2  ;;  %v3288_v5 = vrot.slane %v3287_v47, 4  ;;  %v3313_v13 = vsel %vm2744_vm11, %v2615_v10, -inf  ;;  %v3306_v8 = vrot.slane %v3305_v26, 4  ;;  %vm3387_vm11 = vmor %vm3386_vm10, %vm3385_vm2 }
 0x50a   : > { %v3280_v14 = vmax.f32 %v3278_v41, %v3279_v6  ;;  %v3263_v58 = vrot.slane %v3262_v23, 2  ;;  %v3272_v39 = vrot.slane %v3271_v61, 2  ;;  %v3297_v33 = vrot.slane %v3296_v49, 4 }
 0x50b   : > { %v3255_v34 = vmax.f32 %v3253_v52, %v3254_v15  ;;  %v3289_v18 = vmax.f32 %v3287_v47, %v3288_v5  ;;  %v15402_v51 = vmax.f32 %v3312_v44, %v3313_v13  ;;  %v15404_v57 = vmax.f32 %v3305_v26, %v3306_v8 }
 0x50c   : > { %v3281_v0 = vrot.slane %v3280_v14, 2  ;;  %v3264_v55 = vmax.f32 %v3262_v23, %v3263_v58  ;;  %v3273_v38 = vmax.f32 %v3271_v61, %v3272_v39  ;;  %v3298_v24 = vmax.f32 %v3296_v49, %v3297_v33 }
 0x50d   : > { %v3256_v20 = vrot.slane %v3255_v34, 1  ;;  %v3290_v41 = vrot.slane %v3289_v18, 2  ;;  %v3166_v10 = vrot.slane %v15370_v53, 1  ;;  %v3173_v11 = vrot.slane %v15373_v30, 2 }
 0x50e   : > { %v15406_v16 = vmax.f32 %v3280_v14, %v3281_v0  ;;  %v3265_v1 = vrot.slane %v3264_v55, 1  ;;  %v3274_v9 = vrot.slane %v3273_v38, 1  ;;  %v3299_v32 = vrot.slane %v3298_v24, 2 }
 0x50f   : > { %v3257_v52 = vmax.f32 %v3255_v34, %v3256_v20  ;;  %v3291_v6 = vmax.f32 %v3289_v18, %v3290_v41  ;;  %v3167_v58 = vmax.f32 %v15370_v53, %v3166_v10  ;;  %v3174_v60 = vmax.f32 %v15373_v30, %v3173_v11 }
 0x510   : > { %v3283_v44 = vrot.slane %v15406_v16, 1  ;;  %v3266_v33 = vmax.f32 %v3264_v55, %v3265_v1  ;;  %v3275_v39 = vmax.f32 %v3273_v38, %v3274_v9  ;;  %v15412_v47 = vmax.f32 %v3298_v24, %v3299_v32 }
 0x511   : > { %v3377_v23 = vpack.c.bf16 %v3257_v52, %v3257_v52  ;;  %v3292_v61 = vrot.slane %v3291_v6, 1  ;;  %v3365_v49 = vpack.c.bf16 %v15160_v48, %v15160_v48  ;;  %v3366_v26 = vpack.c.bf16 %v15367_v35, %v15367_v35 }
 0x512   : > { %v3378_v34 = vpack.c.bf16 %v3266_v33, %v3266_v33  ;;  %v3379_v15 = vpack.c.bf16 %v3275_v39, %v3275_v39  ;;  %v3175_v14 = vrot.slane %v3174_v60, 1  ;;  %v3367_v5 = vpack.c.bf16 %v3167_v58, %v3167_v58 }
 0x513   : > { %v15419_v13 = vunpack.c.l.b16 %v3377_v23  ;;  %v15421_v53 = vmax.f32 %v3291_v6, %v3292_v61  ;;  %v16506_v8 = vpack.c.bf16 %v15339_v3, %v15339_v3  ;;  %v15428_v0 = vunpack.c.l.b16 %v3365_v49 }
 0x514   : > { %v15430_v18 = vunpack.c.l.b16 %v3378_v34  ;;  %v15432_v48 = vunpack.c.l.b16 %v3379_v15  ;;  %v3176_v35 = vmax.f32 %v3174_v60, %v3175_v14  ;;  %v15434_v55 = vunpack.c.l.b16 %v3366_v26 }
 0x515   : > { %v15426_v30 = vunpack.c.l.b16 %v16506_v8  ;;  %v15436_v38 = vunpack.c.l.b16 %v3367_v5  ;;  %v3771_v24 = vsel %vm3735_vm13, %v15150_v7, %v15142_v63  ;;  %v16507_v20 = vrot.slane %v15266_v37, 1 }
 0x516   : > { %v15450_v10 = vsel %vm3503_vm12, %v15430_v18, %v15419_v13  ;;  %v15455_v1 = vsel %vm3735_vm13, %v15432_v48, %v15430_v18  ;;  %v3368_v9 = vpack.c.bf16 %v3176_v35, %v3176_v35  ;;  %v3772_v63 = vsel %vm3503_vm12, %v15152_v21, %v3771_v24 }
 0x517   : > { %v3864_v3 = vsel %vm3503_vm12, %v15426_v30, %v15177_v46  ;;  %v3212_v41 = vmax.f32 %v15266_v37, %v16507_v20  ;;  %v3773_v7 = vsel %vm3505_vm14, %v15426_v30, %v3772_v63  ;;  %v3229_v46 = vrot.slane %v15276_v31, 1 }
 0x518   : > { %v3865_v37 = vsel %vm3505_vm14, %v15428_v0, %v3864_v3  ;;  %v3236_v32 = vrot.slane %v15268_v22, 2  ;;  %v3604_v11 = vunpack.c.l.b16 %v3368_v9  ;;  %v3774_v52 = vsel %vm3507_vm15, %v15428_v0, %v3773_v7 }
 0x519   : > { %v3866_v6 = vsel %vm3507_vm15, %v15434_v55, %v3865_v37  ;;  %v3243_v58 = vrot.slane %v15264_v12, 4  ;;  %v3775_v33 = vsel %vm3509_vm0, %v15434_v55, %v3774_v52  ;;  %v3230_v60 = vmax.f32 %v15276_v31, %v3229_v46 }
 0x51a   : > { %v3867_v39 = vsel %vm3509_vm0, %v15436_v38, %v3866_v6  ;;  %v3237_v23 = vmax.f32 %v15268_v22, %v3236_v32  ;;  %v3776_v61 = vsel %vm3511_vm1, %v15436_v38, %v3775_v33  ;;  %v3372_v34 = vpack.c.bf16 %v3212_v41, %v3212_v41 }
 0x51b   : > { %v3868_v49 = vsel %vm3511_vm1, %v3604_v11, %v3867_v39  ;;  %v3244_v26 = vmax.f32 %v15264_v12, %v3243_v58  ;;  %v3777_v15 = vsel %vm3513_vm4, %v3604_v11, %v3776_v61  ;;  %v3373_v8 = vpack.c.bf16 %v15285_v59, %v15285_v59 }
 0x51c   : > { %v3886_v14 = vpack.c.b16 %v3868_v49, %v3868_v49  ;;  %v3238_v5 = vrot.slane %v3237_v23, 1  ;;  %v3797_v35 = vpack.c.b16 %v3777_v15, %v3777_v15  ;;  %v3374_v31 = vpack.c.bf16 %v3230_v60, %v3230_v60 }
 0x51d   : > { %v3245_v24 = vrot.slane %v3244_v26, 2  ;;  %v15483_v3 = vunpack.c.l.b16 %v3372_v34  ;;  %v15487_v9 = vunpack.c.l.b16 %v3373_v8  ;;  %v3778_v12 = vsel %vm3735_vm13, %v15280_v27, %v15278_v40 }
 0x51e   : > { %v3905_v22 = vsel %vm14816_vm7, %v3886_v14, 0  ;;  %v3239_v20 = vmax.f32 %v3237_v23, %v3238_v5  ;;  %3810 = vrot.lane.b32.xlu1 %v3797_v35, %s13666_s4  ;;  %v15494_v41 = vunpack.c.l.b16 %v3374_v31  ;;  %v3779_v63 = vsel %vm3503_vm12, %v15296_v56, %v3778_v12 }
 0x51f   : > { %3913 = vst.msk [vmem:[#allocation3 + $0x34] sm:$0xf] %vm3582_vm6, %v3905_v22  ;;  %v3246_v59 = vmax.f32 %v3244_v26, %v3245_v24  ;;  %v3870_v7 = vsel %vm3503_vm12, %v15483_v3, %v15316_v2  ;;  %v3780_v46 = vsel %vm3505_vm14, %v15483_v3, %v3779_v63  ;;  %v3284_v27 = vmax.f32 %v15406_v16, %v3283_v44  ;;  %v16508_v24 = vld [vmem:[#allocation71_spill] sm:$0xff] }
 0x520   : > { %v3375_v37 = vpack.c.bf16 %v3239_v20, %v3239_v20  ;;  %v3871_v40 = vsel %vm3505_vm14, %v15487_v9, %v3870_v7  ;;  %v3781_v11 = vsel %vm3507_vm15, %v15487_v9, %v3780_v46  ;;  %v3301_v2 = vrot.slane %v15412_v47, 1 }
 0x521   : > { %v3247_v32 = vrot.slane %v3246_v59, 1  ;;  %v3872_v52 = vsel %vm3507_vm15, %v15494_v41, %v3871_v40  ;;  %v3782_v58 = vsel %vm3509_vm0, %v15494_v41, %v3781_v11  ;;  %v3308_v33 = vrot.slane %v15404_v57, 2 }
 0x522   : > { %v15513_v6 = vunpack.c.l.b16 %v3375_v37  ;;  %v3315_v39 = vrot.slane %v15402_v51, 4  ;;  %v3302_v16 = vmax.f32 %v15412_v47, %v3301_v2  ;;  %v3380_v44 = vpack.c.bf16 %v3284_v27, %v3284_v27 }
 0x523   : > { %v3248_v60 = vmax.f32 %v3246_v59, %v3247_v32  ;;  %v3381_v23 = vpack.c.bf16 %v15421_v53, %v15421_v53  ;;  %v3309_v26 = vmax.f32 %v15404_v57, %v3308_v33  ;;  %v3785_v53 = vsel %vm3735_vm13, %v15430_v18, %v15419_v13 }
 0x524   : > { %v3783_v61 = vsel %vm3511_vm1, %v15513_v6, %v3782_v58  ;;  %v3873_v49 = vsel %vm3509_vm0, %v15513_v6, %v3872_v52  ;;  %v3316_v34 = vmax.f32 %v15402_v51, %v3315_v39  ;;  %v3382_v14 = vpack.c.bf16 %v3302_v16, %v3302_v16  ;;  %v16509_v52 = vld [vmem:[#allocation72_spill] sm:$0xff] }
 0x525   : > { %v3376_v15 = vpack.c.bf16 %v3248_v60, %v3248_v60  ;;  %v15528_v5 = vunpack.c.l.b16 %v3380_v44  ;;  %v15530_v8 = vunpack.c.l.b16 %v3381_v23  ;;  %v3310_v47 = vrot.slane %v3309_v26, 1  ;;  %v16511_v23 = vld [vmem:[#allocation76_spill] sm:$0xff] }
 0x526   : > { %v3317_v35 = vrot.slane %v3316_v34, 2  ;;  %v3506_v31 = vsel %vm3505_vm14, %v14570_v19, %v16508_v24  ;;  %v15538_v57 = vunpack.c.l.b16 %v3382_v14  ;;  %v3786_v51 = vsel %vm3503_vm12, %v15432_v48, %v3785_v53  ;;  %v16516_v53 = vld [vmem:[#allocation46_spill] sm:$0xff] }
 0x527   : > { %v3605_v22 = vunpack.c.l.b16 %v3376_v15  ;;  %v3876_v20 = vsel %vm3503_vm12, %v15528_v5, %v15455_v1  ;;  %v3311_v12 = vmax.f32 %v3309_v26, %v3310_v47  ;;  %v3787_v63 = vsel %vm3505_vm14, %v15528_v5, %v3786_v51  ;;  %v16513_v15 = vld [vmem:[#allocation74_spill] sm:$0xff] }
 0x528   : > { %v3318_v59 = vmax.f32 %v3316_v34, %v3317_v35  ;;  %v3877_v13 = vsel %vm3505_vm14, %v15530_v8, %v3876_v20  ;;  %v3788_v7 = vsel %vm3507_vm15, %v15530_v8, %v3787_v63  ;;  %v3508_v11 = vsel %vm3507_vm15, %v14756_v42, %v3506_v31  ;;  %v16515_v35 = vld [vmem:[#allocation43_spill] sm:$0xff]  ;;  %v16517_v51 = vld [vmem:[#allocation78_spill] sm:$0xff] }
 0x529   : > { %v3784_v19 = vsel %vm3513_vm4, %v3605_v22, %v3783_v61  ;;  %v3874_v18 = vsel %vm3511_vm1, %v3605_v22, %v3873_v49  ;;  %v3878_v37 = vsel %vm3507_vm15, %v15538_v57, %v3877_v13  ;;  %v3383_v27 = vpack.c.bf16 %v3311_v12, %v3311_v12  ;;  %v16512_v61 = vld [vmem:[#allocation75_spill] sm:$0xff]  ;;  %v3801_v22 = vpop.permute.xlu0 %3800  ;;  %v16518_v12 = vld [vmem:[#allocation48_spill] sm:$0xff] }
 0x52a   : > { %v3798_v46 = vpack.c.b16 %v3784_v19, %v3784_v19  ;;  %v3887_v1 = vpack.c.b16 %v3874_v18, %v3874_v18  ;;  %v3319_v40 = vrot.slane %v3318_v59, 1  ;;  %v3789_v32 = vsel %vm3509_vm0, %v15538_v57, %v3788_v7  ;;  %v16519_v63 = vld [vmem:[#allocation47_spill] sm:$0xff] }
 0x52b   : > { %v3516_v2 = vsel %vm3505_vm14, %v14662_v62, %v16509_v52  ;;  %v15565_v39 = vunpack.c.l.b16 %v3383_v27  ;;  %v3510_v60 = vsel %vm3509_vm0, %v14758_v50, %v3508_v11  ;;  %v16510_v62 = vld [vmem:[#allocation73_spill] sm:$0xff]  ;;  %v3528_v49 = vsel %vm3505_vm14, %v16512_v61, %v16511_v23  ;;  %v16521_v7 = vld [vmem:[#allocation79_spill] sm:$0xff] }
 0x52c   : > { %v3906_v58 = vsel %vm14816_vm7, %v3887_v1, 0  ;;  %3812 = vrot.lane.b32.xlu0 %v3798_v46, %s13666_s4  ;;  %v3320_v33 = vmax.f32 %v3318_v59, %v3319_v40  ;;  %v3512_v42 = vsel %vm3511_vm1, %v14762_v25, %v3510_v60  ;;  %v3517_v16 = vsel %vm3507_vm15, %v14893_v28, %v3516_v2  ;;  %v16514_v28 = vld [vmem:[#allocation77_spill] sm:$0xff]  ;;  %v16522_v46 = vld [vmem:[#allocation50_spill] sm:$0xff] }
 0x52d   : > { %3914 = vst.msk [vmem:[#allocation3 + $0x3c] sm:$0xf] %vm3582_vm6, %v3906_v58  ;;  %v3522_v44 = vsel %vm3505_vm14, %v16510_v62, %v14731_v54  ;;  %v3790_v50 = vsel %vm3511_vm1, %v15565_v39, %v3789_v32  ;;  %v3879_v34 = vsel %vm3509_vm0, %v15565_v39, %v3878_v37  ;;  %v3514_v25 = vsel %vm3513_vm4, %v16513_v15, %v3512_v42  ;;  %v16523_v40 = vld [vmem:[#allocation54_spill] sm:$0xff]  ;;  %v16524_v2 = vld [vmem:[#allocation45_spill] sm:$0xff]  ;;  %v3803_v42 = vpop.permute.xlu1 %3802  ;;  %v16525_v62 = vld [vmem:[#allocation56_spill] sm:$0xff]  ;;  %v3805_v61 = vpop.permute.xlu0 %3804 }
 0x52e   : > { %v3384_v26 = vpack.c.bf16 %v3320_v33, %v3320_v33  ;;  %v3557_v14 = vpack.c.b16 %v3514_v25, %v3514_v25  ;;  %v3518_v47 = vsel %vm3509_vm0, %v16514_v28, %v3517_v16  ;;  %v3523_v54 = vsel %vm3507_vm15, %v16515_v35, %v3522_v44 }
 0x52f   : > { %v3529_v24 = vsel %vm3507_vm15, %v16516_v53, %v3528_v49  ;;  %v3519_v20 = vsel %vm3511_vm1, %v16517_v51, %v3518_v47  ;;  %v3524_v59 = vsel %vm3509_vm0, %v16518_v12, %v3523_v54  ;;  %v16528_v53 = vld [vmem:[#allocation49_spill] sm:$0xff] }
 0x530   : > { %v3606_v31 = vunpack.c.l.b16 %v3384_v26  ;;  %v3530_v13 = vsel %vm3509_vm0, %v16519_v63, %v3529_v24  ;;  %v3573_v18 = vsel %vm14145_vm9, 0, %v3557_v14  ;;  %v3520_v37 = vsel %vm3513_vm4, %v16521_v7, %v3519_v20  ;;  %v16526_v26 = vld [vmem:[#allocation44_spill] sm:$0xff] }
 0x531   : > { %v3525_v1 = vsel %vm3511_vm1, %v16522_v46, %v3524_v59  ;;  %v3531_v27 = vsel %vm3511_vm1, %v16523_v40, %v3530_v13  ;;  %3583 = vst.msk [vmem:[#allocation3 + $0x8] sm:$0xf] %vm3582_vm6, %v3573_v18  ;;  %v3558_v52 = vpack.c.b16 %v3520_v37, %v3520_v37  ;;  %v12409_v63 = vld [vmem:[#allocation15] sm:$0xff]   ;;  %v12410_v37 = vld [vmem:[#allocation15 + $0x8] sm:$0xff]   ;;  %v12413_v46 = vld [vmem:[#allocation15 + $0x10] sm:$0xff]  }
 0x532   : > { %v3791_v32 = vsel %vm3513_vm4, %v3606_v31, %v3790_v50  ;;  %v3880_v11 = vsel %vm3511_vm1, %v3606_v31, %v3879_v34  ;;  %v3526_v58 = vsel %vm3513_vm4, %v16524_v2, %v3525_v1  ;;  %3825 = vst.msk [vmem:[#allocation3 + $0x8] sm:$0xf] %vm3824_vm8, %v3801_v22  ;;  %v3532_v44 = vsel %vm3513_vm4, %v16525_v62, %v3531_v27  ;;  %v16527_v34 = vld [vmem:[#allocation52_spill] sm:$0xff] }
 0x533   : > { %v3799_v33 = vpack.c.b16 %v3791_v32, %v3791_v32  ;;  %v3888_v60 = vpack.c.b16 %v3880_v11, %v3880_v11  ;;  %v3559_v16 = vpack.c.b16 %v3526_v58, %v3526_v58  ;;  %v3574_v23 = vsel %vm14145_vm9, 0, %v3558_v52  ;;  %v12414_v1 = vld [vmem:[#allocation15 + $0x18] sm:$0xff]   ;;  %v12415_v40 = vld [vmem:[#allocation15 + $0x20] sm:$0xff]   ;;  %v12416_v32 = vld [vmem:[#allocation15 + $0x28] sm:$0xff]  }
 0x534   : > { %v3560_v49 = vpack.c.b16 %v3532_v44, %v3532_v44  ;;  %v3534_v50 = vsel %vm3505_vm14, %v15018_v17, %v16526_v26  ;;  %v3540_v15 = vsel %vm3505_vm14, %v15152_v21, %v16527_v34  ;;  %3584 = vst.msk [vmem:[#allocation3 + $0x10] sm:$0xf] %vm3582_vm6, %v3574_v23  ;;  %v12417_v11 = vld [vmem:[#allocation15 + $0x30] sm:$0xff]   ;;  %v12424_v62 = vld [vmem:[#allocation15 + $0x58] sm:$0xff]  }
 0x535   : > { %v3907_v25 = vsel %vm14816_vm7, %v3888_v60, 0  ;;  %3814 = vrot.lane.b32.xlu1 %v3799_v33, %s13666_s4  ;;  %v3575_v14 = vsel %vm14145_vm9, 0, %v3559_v16  ;;  %v3535_v28 = vsel %vm3507_vm15, %v15321_v45, %v3534_v50  ;;  %v3541_v17 = vsel %vm3507_vm15, %v15426_v30, %v3540_v15  ;;  %3826 = vst.msk [vmem:[#allocation3 + $0x10] sm:$0xf] %vm3824_vm8, %v3803_v42  ;;  %v12418_v33 = vld [vmem:[#allocation15 + $0x38] sm:$0xff]   ;;  %v12419_v60 = vld [vmem:[#allocation15 + $0x40] sm:$0xff]  }
 0x536   : > { %3915 = vst.msk [vmem:[#allocation3 + $0x44] sm:$0xf] %vm3582_vm6, %v3907_v25  ;;  %3585 = vst.msk [vmem:[#allocation3 + $0x18] sm:$0xf] %vm3582_vm6, %v3575_v14  ;;  %v3576_v21 = vsel %vm14145_vm9, 0, %v3560_v49  ;;  %v3536_v47 = vsel %vm3509_vm0, %v15323_v36, %v3535_v28  ;;  %v3542_v35 = vsel %vm3509_vm0, %v15428_v0, %v3541_v17  ;;  %v3546_v45 = vsel %vm3505_vm14, %v15296_v56, %v15301_v43  ;;  %v12420_v42 = vld [vmem:[#allocation15 + $0x48] sm:$0xff]  }
 0x537   : > { %3827 = vst.msk [vmem:[#allocation3 + $0x18] sm:$0xf] %vm3824_vm8, %v3805_v61  ;;  %v3537_v30 = vsel %vm3511_vm1, %v15325_v4, %v3536_v47  ;;  %v3543_v54 = vsel %vm3511_vm1, %v15434_v55, %v3542_v35  ;;  %v3547_v36 = vsel %vm3507_vm15, %v15483_v3, %v3546_v45  ;;  %v3552_v0 = vsel %vm3505_vm14, %v15432_v48, %v15450_v10  ;;  %v12423_v16 = vld [vmem:[#allocation15 + $0x50] sm:$0xff]   ;;  %v12437_v35 = vld [vmem:[#allocation18 + $0x100] sm:$0xff]  }
 0x538   : > { %3586 = vst.msk [vmem:[#allocation3 + $0x20] sm:$0xf] %vm3582_vm6, %v3576_v21  ;;  %v3538_v56 = vsel %vm3513_vm4, %v16528_v53, %v3537_v30  ;;  %v3544_v43 = vsel %vm3513_vm4, %v15436_v38, %v3543_v54  ;;  %v3548_v24 = vsel %vm3509_vm0, %v15487_v9, %v3547_v36  ;;  %v3553_v4 = vsel %vm3507_vm15, %v15528_v5, %v3552_v0  ;;  %v12438_v45 = vld [vmem:[#allocation18 + $0xc0] sm:$0xff]   ;;  %v12439_v30 = vld [vmem:[#allocation18 + $0x108] sm:$0xff]  }
 0x539   : > { %v3561_v55 = vpack.c.b16 %v3538_v56, %v3538_v56  ;;  %v3562_v31 = vpack.c.b16 %v3544_v43, %v3544_v43  ;;  %v3549_v3 = vsel %vm3511_vm1, %v15494_v41, %v3548_v24  ;;  %v3554_v48 = vsel %vm3509_vm0, %v15530_v8, %v3553_v4  ;;  %v15680_v8 = vld [vmem:[#allocation2] sm:$0xff]  ;;  %11814 = vmatprep.subr.bf16.mxu1 %v12437_v35  ;;  %v12440_v54 = vld [vmem:[#allocation18 + $0xc8] sm:$0xff]   ;;  %v12425_v36 = vld [vmem:[#allocation15 + $0xc0] sm:$0xff]  }
 0x53a   : > { %v3550_v10 = vsel %vm3513_vm4, %v15513_v6, %v3549_v3  ;;  %v3555_v38 = vsel %vm3511_vm1, %v15538_v57, %v3554_v48  ;;  %3388 = vst.msk [vmem:[#allocation3] sm:$0xff] %vm3387_vm11, %v15680_v8  ;;  %3390 = vst.msk [vmem:[#allocation3 + $0x48] sm:$0xff] %vm3387_vm11, %v15680_v8  ;;  %v15684_v57 = vld [vmem:[#allocation3 + $0x8] sm:$0xff]  ;;  %11815 = vmatpush3.bf16.msra.mxu1 %v12438_v45  ;;  %v12426_v53 = vld [vmem:[#allocation15 + $0xc8] sm:$0xff]   ;;  %vm6701_vm15 = vsmask.f32 1280 }
 0x53b   : > { %v3577_v9 = vsel %vm14145_vm9, 0, %v3561_v55  ;;  %v3578_v5 = vsel %vm14145_vm9, 0, %v3562_v31  ;;  %v3563_v22 = vpack.c.b16 %v3550_v10, %v3550_v10  ;;  %v3556_v41 = vsel %vm3513_vm4, %v15565_v39, %v3555_v38  ;;  %11816 = vmatprep.subr.bf16.mxu1 %v12439_v30  ;;  %v12427_v56 = vld [vmem:[#allocation15 + $0xd0] sm:$0xff]   ;;  %v12428_v24 = vld [vmem:[#allocation15 + $0xd8] sm:$0xff]   ;;  %v12429_v4 = vld [vmem:[#allocation15 + $0xe0] sm:$0xff]  }
 0x53c   : > { %3587 = vst.msk [vmem:[#allocation3 + $0x28] sm:$0xf] %vm3582_vm6, %v3577_v9  ;;  %3588 = vst.msk [vmem:[#allocation3 + $0x30] sm:$0xf] %vm3582_vm6, %v3578_v5  ;;  %v3564_v6 = vpack.c.b16 %v3556_v41, %v3556_v41  ;;  %v3949_v51 = vld [vmem:[#allocation3 + $0x10] sm:$0xff]  ;;  %v12431_v48 = vld [vmem:[#allocation15 + $0xf0] sm:$0xff]  }
 0x53d   : > { %v3579_v20 = vsel %vm14145_vm9, 0, %v3563_v22  ;;  %v11083_v39 = vcombine.low %v15684_v57, %v3949_v51  ;;  %v11084_v12 = vcombine.high %v15684_v57, %v3949_v51  ;;  %v12430_v3 = vld [vmem:[#allocation15 + $0xe8] sm:$0xff]   ;;  %v12432_v38 = vld [vmem:[#allocation15 + $0xf8] sm:$0xff]   ;;  %v12433_v9 = vld [vmem:[#allocation15 + $0x100] sm:$0xff]  }
 0x53e   : > { %v3950_v59 = vld [vmem:[#allocation3 + $0x18] sm:$0xff]  ;;  %3589 = vst.msk [vmem:[#allocation3 + $0x38] sm:$0xf] %vm3582_vm6, %v3579_v20  ;;  %v3580_v13 = vsel %vm14145_vm9, 0, %v3564_v6  ;;  %11817 = vmatpush3.bf16.msra.mxu1 %v12440_v54  ;;  %v12434_v5 = vld [vmem:[#allocation15 + $0x108] sm:$0xff]   ;;  %v12436_v41 = vld [vmem:[#allocation15 + $0x118] sm:$0xff]  }
 0x53f   : > { %3590 = vst.msk [vmem:[#allocation3 + $0x40] sm:$0xf] %vm3582_vm6, %v3580_v13  ;;  %v15694_v18 = vcombine.high %v3949_v51, %v3950_v59  ;;  %11103 = vmatprep.mubr.msk.bf16.mxu0 %vm1003_vm3, %v11084_v12  ;;  %v15697_v7 = vcombine.low %v3949_v51, %v3950_v59  ;;  %v12435_v22 = vld [vmem:[#allocation15 + $0x110] sm:$0xff]   ;;  %v12443_v51 = vld [vmem:[#allocation18 + $0x118] sm:$0xff]   ;;  %v12446_v13 = vld [vmem:[#allocation18 + $0xe0] sm:$0xff]  }
 0x540   : > { %4134 = vmatmul.mubr.bf16.vlgmr.msra.gmra.mrb[0].mxu0 %v11083_v39  ;;  %v12441_v6 = vld [vmem:[#allocation18 + $0x110] sm:$0xff]   ;;  %v12444_v20 = vld [vmem:[#allocation18 + $0xd8] sm:$0xff]  }
 0x541   : > { %4287 = vmatpush1.bf16.msra.mxu0 %v12409_v63  ;;  %v3916_v28 = vld [vmem:[#allocation3] sm:$0xff]  ;;  %11818 = vmatprep.subr.bf16.mxu1 %v12441_v6  ;;  %v4359_v39 = vld [vmem:[#allocation3 + $0x48] sm:$0xff] }
 0x542   : > { %4288 = vmatprep.subr.bf16.mxu0 %v15680_v8  ;;  %v11108_v47 = vcombine.high %v3916_v28, %v15684_v57  ;;  %v11107_v0 = vcombine.low %v3916_v28, %v15684_v57  ;;  %v12442_v57 = vld [vmem:[#allocation18 + $0xd0] sm:$0xff]   ;;  %v12445_v63 = vld [vmem:[#allocation18 + $0x120] sm:$0xff]  }
 0x543   : > { %11819 = vmatpush3.bf16.msra.mxu1 %v12442_v57 }
 0x544   : > { %11820 = vmatprep.subr.bf16.mxu1 %v12443_v51 }
 0x545   : > { %4289 = vmatpush1.bf16.msra.mxu0 %v12410_v37 }
 0x546   : > { %4290 = vmatprep.subr.bf16.mxu0 %v15680_v8 }
 0x547   : > { %11821 = vmatpush3.bf16.msra.mxu1 %v12444_v20 }
 0x548   : > { %11822 = vmatprep.subr.bf16.mxu1 %v12445_v63 }
 0x549   : > { %4291 = vmatpush1.bf16.msra.mxu0 %v12413_v46 }
 0x54a   : > { %4292 = vmatprep.subr.bf16.mxu0 %v15680_v8 }
 0x54b   : > { %11823 = vmatpush3.bf16.msra.mxu1 %v12446_v13 }
 0x54d   : > { %4293 = vmatpush1.bf16.msra.mxu0 %v12414_v1  ;;  %v12447_v1 = vld [vmem:[#allocation18 + $0x128] sm:$0xff]  }
 0x54e   : > { %4294 = vmatprep.subr.bf16.mxu0 %v15680_v8  ;;  %11824 = vmatprep.subr.bf16.mxu1 %v12447_v1 }
 0x551   : > { %v3807_v27 = vpop.permute.xlu1 %3806  ;;  %4295 = vmatpush1.bf16.msra.mxu0 %v12415_v40  ;;  %v12448_v40 = vld [vmem:[#allocation18 + $0xe8] sm:$0xff]  }
 0x552   : > { %3828 = vst.msk [vmem:[#allocation3 + $0x20] sm:$0xf] %vm3824_vm8, %v3807_v27  ;;  %4296 = vmatprep.subr.bf16.mxu0 %v15680_v8  ;;  %11825 = vmatpush3.bf16.msra.mxu1 %v12448_v40  ;;  %v12449_v27 = vld [vmem:[#allocation18 + $0x130] sm:$0xff]  }
 0x553   : > { %11826 = vmatprep.subr.bf16.mxu1 %v12449_v27 }
 0x555   : > { %4297 = vmatpush1.bf16.msra.mxu0 %v12416_v32  ;;  %v12450_v32 = vld [vmem:[#allocation18 + $0xf0] sm:$0xff]  }
 0x556   : > { %4298 = vmatprep.subr.bf16.mxu0 %v15680_v8  ;;  %11827 = vmatpush3.bf16.msra.mxu1 %v12450_v32 }
 0x559   : > { %v15706_v52 = vld [vmem:[#allocation3 + $0x20] sm:$0xff]  ;;  %4299 = vmatpush1.bf16.msra.mxu0 %v12417_v11 }
 0x55a   : > { %v11086_v2 = vcombine.high %v3950_v59, %v15706_v52  ;;  %v11085_v58 = vcombine.low %v3950_v59, %v15706_v52  ;;  %4300 = vmatprep.subr.bf16.mxu0 %v15680_v8 }
 0x55c   : > { %11104 = vmatprep.mubr.msk.bf16.mxu0 %vm1003_vm3, %v11086_v2 }
 0x55d   : > { %4142 = vmatmul.mubr.bf16.gmra.mrb[4].mxu0 %v11085_v58 }
 0x55e   : > { %4301 = vmatpush1.bf16.msra.mxu0 %v12418_v33  ;;  %v12451_v33 = vld [vmem:[#allocation18 + $0x140] sm:$0xff]  }
 0x55f   : > { %4302 = vmatprep.subr.bf16.mxu0 %v15680_v8 }
 0x562   : > { %4303 = vmatpush1.bf16.msra.mxu0 %v12419_v60  ;;  %v12452_v60 = vld [vmem:[#allocation18 + $0x148] sm:$0xff]  }
 0x563   : > { %4304 = vmatprep.subr.bf16.mxu0 %v15680_v8 }
 0x566   : > { %4305 = vmatpush1.bf16.msra.mxu0 %v12420_v42  ;;  %v12453_v42 = vld [vmem:[#allocation18 + $0x138] sm:$0xff]  }
 0x567   : > { %4306 = vmatprep.subr.bf16.mxu0 %v15680_v8  ;;  %11828 = vmatprep.subr.bf16.mxu1 %v12453_v42 }
 0x56a   : > { %4307 = vmatpush1.bf16.msra.mxu0 %v12423_v16  ;;  %v12454_v16 = vld [vmem:[#allocation18 + $0xf8] sm:$0xff]  }
 0x56b   : > { %4308 = vmatprep.subr.bf16.mxu0 %v15680_v8  ;;  %11829 = vmatpush3.bf16.msra.mxu1 %v12454_v16 }
 0x56e   : > { %4309 = vmatpush1.bf16.msra.mxu0 %v12424_v62  ;;  %v12455_v62 = vld [vmem:[#allocation18 + $0x150] sm:$0xff]  }
 0x56f   : > { %4505 = vmatprep.subr.bf16.mxu0 %v15680_v8 }
 0x576   : > { %v3809_v44 = vpop.permute.xlu0 %3808 }
 0x577   : > { %3829 = vst.msk [vmem:[#allocation3 + $0x28] sm:$0xf] %vm3824_vm8, %v3809_v44  ;;  %v12456_v44 = vld [vmem:[#allocation18 + $0x158] sm:$0xff]  }
 0x57e   : > { %v3952_v61 = vld [vmem:[#allocation3 + $0x28] sm:$0xff] }
 0x57f   : > { %v11112_v43 = vcombine.high %v15706_v52, %v3952_v61  ;;  %v11111_v55 = vcombine.low %v15706_v52, %v3952_v61 }
 0x590   : > { %v3811_v23 = vpop.permute.xlu1 %3810 }
 0x591   : > { %3830 = vst.msk [vmem:[#allocation3 + $0x30] sm:$0xf] %vm3824_vm8, %v3811_v23  ;;  %v12457_v23 = vld [vmem:[#allocation18 + $0x160] sm:$0xff]  }
 0x598   : > { %v3953_v49 = vld [vmem:[#allocation3 + $0x30] sm:$0xff] }
 0x599   : > { %v11088_v26 = vcombine.high %v3952_v61, %v3953_v49  ;;  %v11087_v50 = vcombine.low %v3952_v61, %v3953_v49  ;;  %v12458_v61 = vld [vmem:[#allocation18 + $0x168] sm:$0xff]  }
 0x59b   : > { %11105 = vmatprep.mubr.msk.bf16.mxu0 %vm1003_vm3, %v11088_v26  ;;  %v12463_v26 = vld [vmem:[#allocation18 + $0x40] sm:$0xff]  }
 0x59c   : > { %4150 = vmatmul.mubr.bf16.gmra.mrb[8].mxu0 %v11087_v50  ;;  %v12465_v50 = vld [vmem:[#allocation18 + $0x178] sm:$0xff]   ;;  %11866 = vmatprep.subr.bf16.mxu1 %v12463_v26 }
 0x59e   : > { %v3813_v34 = vpop.permute.xlu0 %3812 }
 0x59f   : > { %3831 = vst.msk [vmem:[#allocation3 + $0x38] sm:$0xf] %vm3824_vm8, %v3813_v34  ;;  %v15756_v34 = vld [vmem:[#allocation18 + $0x80] sm:$0xff]  }
 0x5a6   : > { %v3954_v25 = vld [vmem:[#allocation3 + $0x38] sm:$0xff] }
 0x5a7   : > { %v3815_v15 = vpop.permute.xlu1 %3814  ;;  %v11114_v31 = vcombine.high %v3953_v49, %v3954_v25  ;;  %v11113_v10 = vcombine.low %v3953_v49, %v3954_v25  ;;  %v12459_v49 = vld [vmem:[#allocation18 + $0x170] sm:$0xff]  }
 0x5a8   : > { %3832 = vst.msk [vmem:[#allocation3 + $0x40] sm:$0xf] %vm3824_vm8, %v3815_v15 }
 0x5af   : > { %v15722_v14 = vld [vmem:[#allocation3 + $0x40] sm:$0xff] }
 0x5b0   : > { %v11090_v17 = vcombine.high %v3954_v25, %v15722_v14  ;;  %v11089_v21 = vcombine.low %v3954_v25, %v15722_v14  ;;  %v11138_v12 = vcombine.high %v15722_v14, %v4359_v39  ;;  %v11137_v59 = vcombine.low %v15722_v14, %v4359_v39 }
 0x5b2   : > { %11106 = vmatprep.mubr.msk.bf16.mxu0 %vm1003_vm3, %v11090_v17 }
 0x5b3   : > { %4158 = vmatmul.mubr.bf16.gmra.mrb[12].mxu0 %v11089_v21 }
 0x5b4   : > { %11127 = vmatprep.mubr.msk.bf16.mxu0 %vm1003_vm3, %v11108_v47 }
 0x5bb   : > { %4319 = vmatmul.mubr.bf16.vlgmr.msra.gmra.mrb[16].mxu0 %v11107_v0 }
 0x5bc   : > { %4506 = vmatpush1.bf16.msra.mxu0 %v12425_v36  ;;  %11128 = vmatprep.mubr.msk.bf16.mxu0 %vm1003_vm3, %v15694_v18 }
 0x5bd   : > { %4507 = vmatprep.subr.bf16.mxu0 %v15680_v8 }
 0x5c0   : > { %4508 = vmatpush1.bf16.msra.mxu0 %v12426_v53 }
 0x5c1   : > { %4509 = vmatprep.subr.bf16.mxu0 %v15680_v8 }
 0x5c3   : > { %4327 = vmatmul.mubr.bf16.gmra.mrb[20].mxu0 %v15697_v7 }
 0x5c4   : > { %4510 = vmatpush1.bf16.msra.mxu0 %v12427_v56  ;;  %11129 = vmatprep.mubr.msk.bf16.mxu0 %vm1003_vm3, %v11112_v43 }
 0x5c5   : > { %4511 = vmatprep.subr.bf16.mxu0 %v15680_v8 }
 0x5c8   : > { %4512 = vmatpush1.bf16.msra.mxu0 %v12428_v24 }
 0x5c9   : > { %4513 = vmatprep.subr.bf16.mxu0 %v15680_v8 }
 0x5cb   : > { %4335 = vmatmul.mubr.bf16.gmra.mrb[24].mxu0 %v11111_v55 }
 0x5cc   : > { %4514 = vmatpush1.bf16.msra.mxu0 %v12429_v4  ;;  %11130 = vmatprep.mubr.msk.bf16.mxu0 %vm1003_vm3, %v11114_v31 }
 0x5cd   : > { %4515 = vmatprep.subr.bf16.mxu0 %v15680_v8 }
 0x5d0   : > { %4516 = vmatpush1.bf16.msra.mxu0 %v12430_v3 }
 0x5d1   : > { %4517 = vmatprep.subr.bf16.mxu0 %v15680_v8 }
 0x5d3   : > { %4343 = vmatmul.mubr.bf16.gmra.mrb[28].mxu0 %v11113_v10 }
 0x5d4   : > { %4518 = vmatpush1.bf16.msra.mxu0 %v12431_v48  ;;  %11151 = vmatprep.mubr.msk.bf16.mxu0 %vm1003_vm3, %v15694_v18 }
 0x5d5   : > { %4519 = vmatprep.subr.bf16.mxu0 %v15680_v8 }
 0x5d8   : > { %4520 = vmatpush1.bf16.msra.mxu0 %v12432_v38 }
 0x5d9   : > { %4521 = vmatprep.subr.bf16.mxu0 %v15680_v8 }
 0x5dc   : > { %4522 = vmatpush1.bf16.msra.mxu0 %v12433_v9 }
 0x5dd   : > { %4523 = vmatprep.subr.bf16.mxu0 %v15680_v8 }
 0x5e0   : > { %4524 = vmatpush1.bf16.msra.mxu0 %v12434_v5 }
 0x5e1   : > { %4525 = vmatprep.subr.bf16.mxu0 %v15680_v8 }
 0x5e4   : > { %4526 = vmatpush1.bf16.msra.mxu0 %v12435_v22 }
 0x5e5   : > { %4527 = vmatprep.subr.bf16.mxu0 %v15680_v8 }
 0x5e8   : > { %4528 = vmatpush1.bf16.msra.mxu0 %v12436_v41 }
 0x5e9   : > { %12006 = vmatprep.subr.bf16.mxu0 %v12451_v33 }
 0x5eb   : > { %4538 = vmatmul.mubr.bf16.vlgmr.msra.gmra.mrb[32].mxu0 %v15697_v7 }
 0x5ec   : > { %11152 = vmatprep.mubr.msk.bf16.mxu0 %vm1003_vm3, %v11112_v43  ;;  %12007 = vmatpush3.bf16.msra.mxu0 %v12451_v33 }
 0x5ed   : > { %12008 = vmatprep.subr.bf16.mxu0 %v12452_v60 }
 0x5f0   : > { %12009 = vmatpush3.bf16.msra.mxu0 %v12452_v60 }
 0x5f1   : > { %12010 = vmatprep.subr.bf16.mxu0 %v12455_v62 }
 0x5f3   : > { %4546 = vmatmul.mubr.bf16.gmra.mrb[36].mxu0 %v11111_v55 }
 0x5f4   : > { %11153 = vmatprep.mubr.msk.bf16.mxu0 %vm1003_vm3, %v11114_v31  ;;  %12011 = vmatpush3.bf16.msra.mxu0 %v12455_v62 }
 0x5f5   : > { %12012 = vmatprep.subr.bf16.mxu0 %v12456_v44 }
 0x5f8   : > { %12013 = vmatpush3.bf16.msra.mxu0 %v12456_v44 }
 0x5f9   : > { %12014 = vmatprep.subr.bf16.mxu0 %v12457_v23 }
 0x5fb   : > { %4554 = vmatmul.mubr.bf16.gmra.mrb[40].mxu0 %v11113_v10 }
 0x5fc   : > { %11154 = vmatprep.mubr.msk.bf16.mxu0 %vm1003_vm3, %v11138_v12  ;;  %12015 = vmatpush3.bf16.msra.mxu0 %v12457_v23  ;;  %v15765_v12 = vld [vmem:[#allocation16] ss:$0 sm:$0xff]  ;;  %vm6159_vm3 = vcmask 1041408  }
 0x5fd   : > { %12016 = vmatprep.subr.bf16.mxu0 %v12458_v61  ;;  %vm15945_vm0 = vmand %vm6159_vm3, %vm6701_vm15 }
 0x600   : > { %12017 = vmatpush3.bf16.msra.mxu0 %v12458_v61 }
 0x601   : > { %12018 = vmatprep.subr.bf16.mxu0 %v12459_v49 }
 0x603   : > { %4562 = vmatmul.mubr.bf16.gmra.mrb[44].mxu0 %v11137_v59 }
 0x604   : > { %12019 = vmatpush3.bf16.msra.mxu0 %v12459_v49 }
 0x605   : > { %12020 = vmatprep.subr.bf16.mxu0 %v12465_v50 }
 0x608   : > { %12021 = vmatpush3.bf16.msra.mxu0 %v12465_v50 }
 0x609   : > { %12030 = vmatprep.subr.bf16.mxu0 %v15756_v34 }
 0x613   : > { %v4135_v18 = vpop.f32.mrb[0].mxu0 }
 0x614   : > { %v4137_v7 = vpop.f32.mrb[1].mxu0 }
 0x615   : > { %v4138_v37 = vpop.f32.mrb[2].mxu0 }
 0x616   : > { %v4140_v46 = vpop.f32.mrb[3].mxu0 }
 0x630   : > { %v4143_v11 = vpop.f32.mrb[4].mxu0 }
 0x631   : > { %v4145_v52 = vpop.f32.mrb[5].mxu0 }
 0x632   : > { %v4146_v2 = vpop.f32.mrb[6].mxu0 }
 0x633   : > { %v4148_v58 = vpop.f32.mrb[7].mxu0 }
 0x66f   : > { %v4151_v15 = vpop.f32.mrb[8].mxu0 }
 0x670   : > { %v4153_v25 = vpop.f32.mrb[9].mxu0 }
 0x671   : > { %v4154_v14 = vpop.f32.mrb[10].mxu0 }
 0x672   : > { %v4156_v28 = vpop.f32.mrb[11].mxu0 }
 0x686   : > { %v4159_v17 = vpop.f32.mrb[12].mxu0 }
 0x687   : > { %v4161_v21 = vpop.f32.mrb[13].mxu0 }
 0x688   : > { %v4162_v47 = vpop.f32.mrb[14].mxu0 }
 0x689   : > { %v4164_v35 = vpop.f32.mrb[15].mxu0 }
 0x68e   : > { %v4320_v45 = vpop.f32.mrb[16].mxu0 }
 0x68f   : > { %v4321_v30 = vadd.f32 %v4320_v45, %v4135_v18  ;;  %v4322_v54 = vpop.f32.mrb[17].mxu0 }
 0x690   : > { %v4323_v36 = vpop.f32.mrb[18].mxu0 }
 0x691   : > { %v4324_v0 = vadd.f32 %v4323_v36, %v4138_v37  ;;  %v4325_v53 = vpop.f32.mrb[19].mxu0 }
 0x696   : > { %v4328_v56 = vpop.f32.mrb[20].mxu0 }
 0x697   : > { %v4329_v43 = vadd.f32 %v4328_v56, %v4143_v11  ;;  %v4330_v24 = vpop.f32.mrb[21].mxu0 }
 0x698   : > { %v4331_v4 = vpop.f32.mrb[22].mxu0 }
 0x699   : > { %v4332_v55 = vadd.f32 %v4331_v4, %v4146_v2  ;;  %v4333_v31 = vpop.f32.mrb[23].mxu0 }
 0x69e   : > { %v4336_v3 = vpop.f32.mrb[24].mxu0 }
 0x69f   : > { %v4337_v48 = vadd.f32 %v4336_v3, %v4151_v15  ;;  %v4338_v10 = vpop.f32.mrb[25].mxu0 }
 0x6a0   : > { %v4339_v38 = vpop.f32.mrb[26].mxu0 }
 0x6a1   : > { %v15759_v9 = vadd.f32 %v4339_v38, %v4154_v14  ;;  %v4341_v5 = vpop.f32.mrb[27].mxu0 }
 0x6a6   : > { %v4344_v22 = vpop.f32.mrb[28].mxu0 }
 0x6a7   : > { %v15761_v41 = vadd.f32 %v4344_v22, %v4159_v17  ;;  %v4346_v6 = vpop.f32.mrb[29].mxu0 }
 0x6a8   : > { %v4347_v57 = vpop.f32.mrb[30].mxu0 }
 0x6a9   : > { %v15763_v51 = vadd.f32 %v4347_v57, %v4162_v47  ;;  %v4349_v20 = vpop.f32.mrb[31].mxu0 }
 0x6be   : > { %v4539_v39 = vpop.f32.mrb[32].mxu0 }
 0x6bf   : > { %v4570_v59 = vadd.f32 %v4539_v39, %v4321_v30  ;;  %v4541_v63 = vpop.f32.mrb[33].mxu0 }
 0x6c0   : > { %v4542_v13 = vpop.f32.mrb[34].mxu0 }
 0x6c1   : > { %v4585_v18 = vadd.f32 %v15765_v12, %v4570_v59  ;;  %v4571_v7 = vadd.f32 %v4542_v13, %v4324_v0  ;;  %v4544_v37 = vpop.f32.mrb[35].mxu0 }
 0x6c3   : > { %v4593_v46 = vmax.f32 %v4585_v18, 0.0  ;;  %v4586_v1 = vadd.f32 %v15765_v12, %v4571_v7 }
 0x6c5   : > { %v4601_v40 = vpack.c.bf16 %v4593_v46, %v4593_v46  ;;  %v4594_v27 = vmax.f32 %v4586_v1, 0.0 }
 0x6c6   : > { %v4547_v32 = vpop.f32.mrb[36].mxu0 }
 0x6c7   : > { %v4615_v11 = vshrl.u32 %v4601_v40, 16  ;;  %v4618_v52 = vshll.u32 %v4601_v40, 16  ;;  %4695 = vst [vmem:[#allocation4 + $0x10] sm:$0xf] %v4601_v40  ;;  %v4602_v2 = vpack.c.bf16 %v4594_v27, %v4594_v27  ;;  %v4572_v58 = vadd.f32 %v4547_v32, %v4329_v43  ;;  %v4549_v33 = vpop.f32.mrb[37].mxu0 }
 0x6c8   : > { %v4550_v60 = vpop.f32.mrb[38].mxu0 }
 0x6c9   : > { %v4617_v42 = vrot.slane %v4615_v11, 7  ;;  %v4703_v16 = vrot.slane %v4618_v52, 1  ;;  %v4622_v62 = vshrl.u32 %v4602_v2, 16  ;;  %v4625_v44 = vshll.u32 %v4602_v2, 16  ;;  %4696 = vst [vmem:[#allocation4 + $0x1c] sm:$0xf] %v4602_v2 }
 0x6ca   : > { %v4552_v23 = vpop.f32.mrb[39].mxu0  ;;  %v4587_v61 = vadd.f32 %v15765_v12, %v4572_v58  ;;  %v4573_v49 = vadd.f32 %v4550_v60, %v4332_v55 }
 0x6cb   : > { %v4620_v26 = vor.u32 %v4618_v52, %v4617_v42  ;;  %v4704_v50 = vor.u32 %v4703_v16, %v4615_v11  ;;  %v4624_v15 = vrot.slane %v4622_v62, 7  ;;  %v4705_v25 = vrot.slane %v4625_v44, 1  ;;  %v12464_v23 = vld [vmem:[#allocation18] sm:$0xff]  }
 0x6cc   : > { %v4595_v14 = vmax.f32 %v4587_v61, 0.0  ;;  %v4588_v28 = vadd.f32 %v15765_v12, %v4573_v49 }
 0x6cd   : > { %v4678_v17 = vsel %vm14145_vm9, 0, %v4620_v26  ;;  %v4727_v21 = vsel %vm14816_vm7, %v4704_v50, 0  ;;  %v4627_v47 = vor.u32 %v4625_v44, %v4624_v15  ;;  %v4706_v35 = vor.u32 %v4705_v25, %v4622_v62  ;;  %v12466_v15 = vld [vmem:[#allocation18 + $0x48] sm:$0xff]  }
 0x6ce   : > { %4687 = vst [vmem:[#allocation4 + $0xc] sm:$0xf] %v4678_v17  ;;  %4735 = vst [vmem:[#allocation4 + $0x14] sm:$0xf] %v4727_v21  ;;  %v4603_v45 = vpack.c.bf16 %v4595_v14, %v4595_v14  ;;  %v4596_v30 = vmax.f32 %v4588_v28, 0.0  ;;  %v4555_v54 = vpop.f32.mrb[40].mxu0 }
 0x6cf   : > { %v4679_v36 = vsel %vm14145_vm9, 0, %v4627_v47  ;;  %v4728_v0 = vsel %vm14816_vm7, %v4706_v35, 0  ;;  %v4574_v53 = vadd.f32 %v4555_v54, %v4337_v48  ;;  %v4557_v56 = vpop.f32.mrb[41].mxu0 }
 0x6d0   : > { %4688 = vst [vmem:[#allocation4 + $0x18] sm:$0xf] %v4679_v36  ;;  %4736 = vst [vmem:[#allocation4 + $0x20] sm:$0xf] %v4728_v0  ;;  %v4629_v43 = vshrl.u32 %v4603_v45, 16  ;;  %v4632_v24 = vshll.u32 %v4603_v45, 16  ;;  %v4604_v4 = vpack.c.bf16 %v4596_v30, %v4596_v30 }
 0x6d1   : > { %4697 = vst [vmem:[#allocation4 + $0x28] sm:$0xf] %v4603_v45  ;;  %v4558_v55 = vpop.f32.mrb[42].mxu0  ;;  %v4589_v31 = vadd.f32 %v15765_v12, %v4574_v53  ;;  %v12467_v30 = vld [vmem:[#allocation18 + $0x8] sm:$0xff]   ;;  %v12471_v53 = vld [vmem:[#allocation18 + $0x50] sm:$0xff]  }
 0x6d2   : > { %v4575_v3 = vadd.f32 %v4558_v55, %v15759_v9  ;;  %v4560_v10 = vpop.f32.mrb[43].mxu0  ;;  %v4631_v38 = vrot.slane %v4629_v43, 7  ;;  %v4707_v5 = vrot.slane %v4632_v24, 1  ;;  %v4636_v22 = vshrl.u32 %v4604_v4, 16  ;;  %4698 = vst [vmem:[#allocation4 + $0x34] sm:$0xf] %v4604_v4 }
 0x6d3   : > { %v4639_v6 = vshll.u32 %v4604_v4, 16  ;;  %v4597_v57 = vmax.f32 %v4589_v31, 0.0  ;;  %v12473_v4 = vld [vmem:[#allocation18 + $0x10] sm:$0xff]   ;;  %v12474_v55 = vld [vmem:[#allocation18 + $0x88] sm:$0xff]  }
 0x6d4   : > { %v4590_v48 = vadd.f32 %v15765_v12, %v4575_v3  ;;  %v4634_v20 = vor.u32 %v4632_v24, %v4631_v38  ;;  %v4708_v39 = vor.u32 %v4707_v5, %v4629_v43  ;;  %v4638_v59 = vrot.slane %v4636_v22, 7 }
 0x6d5   : > { %v4709_v63 = vrot.slane %v4639_v6, 1  ;;  %v4605_v13 = vpack.c.bf16 %v4597_v57, %v4597_v57  ;;  %v15786_v40 = vld [vmem:[#allocation4 + $0xc] sm:$0xff] }
 0x6d6   : > { %v4598_v18 = vmax.f32 %v4590_v48, 0.0  ;;  %v4680_v7 = vsel %vm14145_vm9, 0, %v4634_v20  ;;  %v4729_v9 = vsel %vm14816_vm7, %v4708_v39, 0  ;;  %v4641_v37 = vor.u32 %v4639_v6, %v4638_v59  ;;  %v4563_v1 = vpop.f32.mrb[44].mxu0  ;;  %v12475_v48 = vld [vmem:[#allocation18 + $0x58] sm:$0xff]  }
 0x6d7   : > { %v4710_v46 = vor.u32 %v4709_v63, %v4636_v22  ;;  %4689 = vst [vmem:[#allocation4 + $0x24] sm:$0xf] %v4680_v7  ;;  %4737 = vst [vmem:[#allocation4 + $0x2c] sm:$0xf] %v4729_v9  ;;  %v4643_v27 = vshrl.u32 %v4605_v13, 16  ;;  %v4646_v32 = vshll.u32 %v4605_v13, 16  ;;  %v4576_v52 = vadd.f32 %v4563_v1, %v15761_v41 }
 0x6d8   : > { %4699 = vst [vmem:[#allocation4 + $0x40] sm:$0xf] %v4605_v13  ;;  %v4606_v11 = vpack.c.bf16 %v4598_v18, %v4598_v18  ;;  %v4565_v2 = vpop.f32.mrb[45].mxu0  ;;  %v15789_v58 = vld [vmem:[#allocation4 + $0x18] sm:$0xff]  ;;  %v4681_v33 = vsel %vm14145_vm9, 0, %v4641_v37 }
 0x6d9   : > { %v4730_v60 = vsel %vm14816_vm7, %v4710_v46, 0  ;;  %v4566_v42 = vpop.f32.mrb[46].mxu0  ;;  %v11156_v16 = vcombine.low %v15786_v40, %v15789_v58  ;;  %v11157_v62 = vcombine.high %v15786_v40, %v15789_v58  ;;  %v12462_v44 = vld [vmem:[#allocation4 + $0x14] ss:$12 sps:$4 sm:$0xff]   ;;  %4690 = vst [vmem:[#allocation4 + $0x30] sm:$0xf] %v4681_v33  ;;  %v4591_v25 = vadd.f32 %v15765_v12, %v4576_v52 }
 0x6da   : > { %4738 = vst [vmem:[#allocation4 + $0x38] sm:$0xf] %v4730_v60  ;;  %v4645_v41 = vrot.slane %v4643_v27, 7  ;;  %v4711_v61 = vrot.slane %v4646_v32, 1  ;;  %v4650_v49 = vshrl.u32 %v4606_v11, 16  ;;  %v4653_v26 = vshll.u32 %v4606_v11, 16  ;;  %12022 = vmatprep.mubr.bf16.mxu0 %v12462_v44 }
 0x6db   : > { %4700 = vst [vmem:[#allocation4 + $0x4c] sm:$0xf] %v4606_v11  ;;  %v4568_v50 = vpop.f32.mrb[47].mxu0  ;;  %v4577_v14 = vadd.f32 %v4566_v42, %v15763_v51  ;;  %5112 = vmatprep.mubr.bf16.mxu1 %v11157_v62  ;;  %v4599_v35 = vmax.f32 %v4591_v25, 0.0  ;;  %v12476_v37 = vld [vmem:[#allocation18 + $0x18] sm:$0xff]   ;;  %v12477_v46 = vld [vmem:[#allocation18 + $0x90] sm:$0xff]  }
 0x6dc   : > { %v4648_v28 = vor.u32 %v4646_v32, %v4645_v41  ;;  %v4712_v17 = vor.u32 %v4711_v61, %v4643_v27  ;;  %v4652_v21 = vrot.slane %v4650_v49, 7  ;;  %v4713_v47 = vrot.slane %v4653_v26, 1  ;;  %5113 = vmatmul.mubr.bf16.vlgmr.msra.gmra.mrb[104].mxu1 %v11156_v16  ;;  %v12480_v2 = vld [vmem:[#allocation18 + $0x60] sm:$0xff]   ;;  %v12484_v41 = vld [vmem:[#allocation18 + $0x68] sm:$0xff]  }
 0x6dd   : > { %v4592_v45 = vadd.f32 %v15765_v12, %v4577_v14  ;;  %11867 = vmatpush3.bf16.msra.mxu1 %v12464_v23  ;;  %v4607_v56 = vpack.c.bf16 %v4599_v35, %v4599_v35  ;;  %v12482_v44 = vld [vmem:[#allocation18 + $0x20] sm:$0xff]   ;;  %v12483_v23 = vld [vmem:[#allocation18 + $0x98] sm:$0xff]   ;;  %v11193_v35 = vcombine.high %v15680_v8, %v15786_v40 }
 0x6de   : > { %v4682_v54 = vsel %vm14145_vm9, 0, %v4648_v28  ;;  %v4731_v36 = vsel %vm14816_vm7, %v4712_v17, 0  ;;  %v4655_v0 = vor.u32 %v4653_v26, %v4652_v21  ;;  %v4714_v51 = vor.u32 %v4713_v47, %v4650_v49  ;;  %11868 = vmatprep.subr.bf16.mxu1 %v12466_v15  ;;  %v15810_v38 = vld [vmem:[#allocation4 + $0x24] sm:$0xff]  ;;  %v12486_v61 = vld [vmem:[#allocation18 + $0xa0] sm:$0xff]   ;;  %v12494_v47 = vld [vmem:[#allocation18 + $0x78] sm:$0xff]  }
 0x6df   : > { %4691 = vst [vmem:[#allocation4 + $0x3c] sm:$0xf] %v4682_v54  ;;  %4739 = vst [vmem:[#allocation4 + $0x44] sm:$0xf] %v4731_v36  ;;  %v4600_v43 = vmax.f32 %v4592_v45, 0.0  ;;  %v4657_v31 = vshrl.u32 %v4607_v56, 16 }
 0x6e0   : > { %v4683_v24 = vsel %vm14145_vm9, 0, %v4655_v0  ;;  %v4732_v12 = vsel %vm14816_vm7, %v4714_v51, 0  ;;  %v4660_v3 = vshll.u32 %v4607_v56, 16  ;;  %4701 = vst [vmem:[#allocation4 + $0x58] sm:$0xf] %v4607_v56  ;;  %v15812_v5 = vld [vmem:[#allocation4 + $0x30] sm:$0xff]  ;;  %v11192_v0 = vcombine.low %v15680_v8, %v15786_v40 }
 0x6e1   : > { %4692 = vst [vmem:[#allocation4 + $0x48] sm:$0xf] %v4683_v24  ;;  %4740 = vst [vmem:[#allocation4 + $0x50] sm:$0xf] %v4732_v12  ;;  %v4608_v10 = vpack.c.bf16 %v4600_v43, %v4600_v43  ;;  %11869 = vmatpush3.bf16.msra.mxu1 %v12467_v30  ;;  %v11160_v22 = vcombine.high %v15810_v38, %v15812_v5  ;;  %v12470_v6 = vld [vmem:[#allocation4 + $0x2c] ss:$12 sps:$4 sm:$0xff]   ;;  %v11159_v57 = vcombine.low %v15810_v38, %v15812_v5 }
 0x6e2   : > { %11870 = vmatprep.subr.bf16.mxu1 %v12471_v53  ;;  %v4659_v20 = vrot.slane %v4657_v31, 7  ;;  %v4715_v39 = vrot.slane %v4660_v3, 1  ;;  %12023 = vmatmul.mubr.bf16.vlgmr.msra.gmra.mrb[48].mxu0 %v12470_v6  ;;  %v12489_v49 = vld [vmem:[#allocation18 + $0x70] sm:$0xff]   ;;  %v12493_v21 = vld [vmem:[#allocation18 + $0xa8] sm:$0xff]   ;;  %v12495_v45 = vld [vmem:[#allocation18 + $0x38] sm:$0xff]   ;;  %v15849_v56 = vcombine.high %v15789_v58, %v15810_v38 }
 0x6e3   : > { %v4664_v59 = vshrl.u32 %v4608_v10, 16  ;;  %v4667_v63 = vshll.u32 %v4608_v10, 16  ;;  %4702 = vst [vmem:[#allocation4 + $0x64] sm:$0xf] %v4608_v10  ;;  %5120 = vmatprep.mubr.bf16.mxu1 %v11160_v22  ;;  %12031 = vmatpush3.bf16.msra.mxu0 %v15756_v34  ;;  %v12491_v28 = vld [vmem:[#allocation18 + $0x30] sm:$0xff]   ;;  %v12497_v54 = vld [vmem:[#allocation18 + $0x1c0] sm:$0xff]  }
 0x6e4   : > { %v4662_v13 = vor.u32 %v4660_v3, %v4659_v20  ;;  %v4716_v18 = vor.u32 %v4715_v39, %v4657_v31  ;;  %5121 = vmatmul.mubr.bf16.gmra.mrb[108].mxu1 %v11159_v57  ;;  %12032 = vmatprep.subr.bf16.mxu0 %v12474_v55  ;;  %v12492_v17 = vld [vmem:[#allocation4 + $0x8] ss:$12 sps:$4 sm:$0xff]   ;;  %v12498_v36 = vld [vmem:[#allocation18 + $0x180] sm:$0xff]   ;;  %v11195_v31 = vcombine.low %v15789_v58, %v15810_v38 }
 0x6e5   : > { %v4666_v7 = vrot.slane %v4664_v59, 7  ;;  %v4717_v9 = vrot.slane %v4667_v63, 1  ;;  %11871 = vmatpush3.bf16.msra.mxu1 %v12473_v4  ;;  %v12496_v30 = vld [vmem:[#allocation18 + $0xb0] sm:$0xff]   ;;  %v12500_v51 = vld [vmem:[#allocation18 + $0xb8] sm:$0xff]   ;;  %v12501_v53 = vld [vmem:[#allocation18 + $0x1c8] sm:$0xff]  }
 0x6e6   : > { %v4684_v1 = vsel %vm14145_vm9, 0, %v4662_v13  ;;  %v4733_v27 = vsel %vm14816_vm7, %v4716_v18, 0  ;;  %11872 = vmatprep.subr.bf16.mxu1 %v12475_v48  ;;  %v15823_v52 = vld [vmem:[#allocation4 + $0x3c] sm:$0xff]  ;;  %v12506_v12 = vld [vmem:[#allocation18 + $0x1d0] sm:$0xff]   ;;  %v12505_v4 = vld [vmem:[#allocation4 + $0x38] ss:$12 sps:$4 sm:$0xff]  }
 0x6e7   : > { %v4669_v32 = vor.u32 %v4667_v63, %v4666_v7  ;;  %v4718_v11 = vor.u32 %v4717_v9, %v4664_v59  ;;  %4693 = vst [vmem:[#allocation4 + $0x54] sm:$0xf] %v4684_v1  ;;  %4741 = vst [vmem:[#allocation4 + $0x5c] sm:$0xf] %v4733_v27  ;;  %12033 = vmatpush3.bf16.msra.mxu0 %v12474_v55  ;;  %v12502_v43 = vld [vmem:[#allocation18 + $0x188] sm:$0xff]   ;;  %v12504_v24 = vld [vmem:[#allocation18 + $0x200] sm:$0xff]   ;;  %v11199_v10 = vcombine.high %v15812_v5, %v15823_v52 }
 0x6e8   : > { %v15825_v34 = vld [vmem:[#allocation4 + $0x48] sm:$0xff]  ;;  %v12479_v33 = vld [vmem:[#allocation4 + $0x44] ss:$12 sps:$4 sm:$0xff]   ;;  %12034 = vmatprep.subr.bf16.mxu0 %v12477_v46  ;;  %v12515_v57 = vld [vmem:[#allocation18 + $0x1e0] sm:$0xff]   ;;  %v11198_v39 = vcombine.low %v15812_v5, %v15823_v52 }
 0x6e9   : > { %v4685_v60 = vsel %vm14145_vm9, 0, %v4669_v32  ;;  %v4734_v42 = vsel %vm14816_vm7, %v4718_v11, 0  ;;  %v11163_v16 = vcombine.high %v15823_v52, %v15825_v34  ;;  %v11162_v62 = vcombine.low %v15823_v52, %v15825_v34  ;;  %11873 = vmatpush3.bf16.msra.mxu1 %v12476_v37  ;;  %12026 = vmatprep.mubr.bf16.mxu0 %v12479_v33  ;;  %v12503_v8 = vld [vmem:[#allocation4 + $0x20] ss:$12 sps:$4 sm:$0xff]   ;;  %v12511_v3 = vld [vmem:[#allocation18 + $0x1d8] sm:$0xff]  }
 0x6ea   : > { %4694 = vst [vmem:[#allocation4 + $0x60] sm:$0xf] %v4685_v60  ;;  %4742 = vst [vmem:[#allocation4 + $0x68] sm:$0xf] %v4734_v42  ;;  %11874 = vmatprep.subr.bf16.mxu1 %v12480_v2  ;;  %v12510_v40 = vld [vmem:[#allocation18 + $0x208] sm:$0xff]   ;;  %v12508_v55 = vld [vmem:[#allocation18 + $0x190] sm:$0xff]  }
 0x6eb   : > { %5128 = vmatprep.mubr.bf16.mxu1 %v11163_v16  ;;  %12035 = vmatpush3.bf16.msra.mxu0 %v12477_v46  ;;  %v12514_v22 = vld [vmem:[#allocation18 + $0x210] sm:$0xff]   ;;  %v12512_v6 = vld [vmem:[#allocation18 + $0x198] sm:$0xff]   ;;  %v12518_v38 = vld [vmem:[#allocation18 + $0x1a0] sm:$0xff]  }
 0x6ec   : > { %5129 = vmatmul.mubr.bf16.gmra.mrb[112].mxu1 %v11162_v62  ;;  %12036 = vmatprep.subr.bf16.mxu0 %v12483_v23  ;;  %v12520_v20 = vld [vmem:[#allocation18 + $0x218] sm:$0xff]   ;;  %v12516_v58 = vld [vmem:[#allocation4 + $0x20] ss:$12 sps:$4 sm:$0xff]  }
 0x6ed   : > { %11875 = vmatpush3.bf16.msra.mxu1 %v12482_v44  ;;  %v12521_v59 = vld [vmem:[#allocation18 + $0x1e8] sm:$0xff]   ;;  %v12523_v13 = vld [vmem:[#allocation18 + $0x220] sm:$0xff]   ;;  %v12524_v7 = vld [vmem:[#allocation18 + $0x1f0] sm:$0xff]  }
 0x6ee   : > { %11876 = vmatprep.subr.bf16.mxu1 %v12484_v41  ;;  %v15835_v26 = vld [vmem:[#allocation4 + $0x54] sm:$0xff]  ;;  %v12513_v48 = vld [vmem:[#allocation4 + $0x50] ss:$12 sps:$4 sm:$0xff]   ;;  %v12522_v18 = vld [vmem:[#allocation18 + $0x1a8] sm:$0xff]  }
 0x6ef   : > { %12037 = vmatpush3.bf16.msra.mxu0 %v12483_v23  ;;  %v11202_v63 = vcombine.high %v15825_v34, %v15835_v26  ;;  %v12527_v9 = vld [vmem:[#allocation18 + $0x228] sm:$0xff]   ;;  %v12526_v37 = vld [vmem:[#allocation18 + $0x1b0] sm:$0xff]   ;;  %v11201_v5 = vcombine.low %v15825_v34, %v15835_v26  ;;  %v12528_v46 = vld [vmem:[#allocation18 + $0x1f8] sm:$0xff]  }
 0x6f0   : > { %12038 = vmatprep.subr.bf16.mxu0 %v12486_v61  ;;  %v12530_v1 = vld [vmem:[#allocation18 + $0x230] sm:$0xff]   ;;  %v12529_v27 = vld [vmem:[#allocation18 + $0x1b8] sm:$0xff]  }
 0x6f1   : > { %v15837_v50 = vld [vmem:[#allocation4 + $0x60] sm:$0xff]  ;;  %v12488_v15 = vld [vmem:[#allocation4 + $0x5c] ss:$12 sps:$4 sm:$0xff]   ;;  %11877 = vmatpush3.bf16.msra.mxu1 %v12485_v29  ;;  %v12531_v32 = vld [vmem:[#allocation18 + $0x238] sm:$0xff]  }
 0x6f2   : > { %v11166_v25 = vcombine.high %v15835_v26, %v15837_v50  ;;  %v11165_v14 = vcombine.low %v15835_v26, %v15837_v50  ;;  %12027 = vmatmul.mubr.bf16.gmra.mrb[52].mxu0 %v12488_v15  ;;  %11878 = vmatprep.subr.bf16.mxu1 %v12489_v49  ;;  %v12532_v11 = vld [vmem:[#allocation4 + $0x38] ss:$12 sps:$4 sm:$0xff]   ;;  %v12533_v52 = vld [vmem:[#allocation4 + $0x50] ss:$12 sps:$4 sm:$0xff]   ;;  %v12534_v2 = vld [vmem:[#allocation4 + $0x68] ss:$12 sps:$4 sm:$0xff]  }
 0x6f3   : > { %12046 = vmatprep.mubr.bf16.mxu0 %v12492_v17  ;;  %12039 = vmatpush3.bf16.msra.mxu0 %v12486_v61  ;;  %v13217_v34 = vld [vmem:[#allocation2] sm:$0xff] }
 0x6f4   : > { %5136 = vmatprep.mubr.bf16.mxu1 %v11166_v25  ;;  %12040 = vmatprep.subr.bf16.mxu0 %v12493_v21  ;;  %v11238_v33 = vcombine.high %v15837_v50, %v13217_v34  ;;  %v11237_v60 = vcombine.low %v15837_v50, %v13217_v34 }
 0x6f5   : > { %5137 = vmatmul.mubr.bf16.gmra.mrb[116].mxu1 %v11165_v14 }
 0x6f6   : > { %11879 = vmatpush3.bf16.msra.mxu1 %v12491_v28  ;;  %5450 = vmatprep.mubr.bf16.mxu1 %v11193_v35 }
 0x6f7   : > { %11880 = vmatprep.subr.bf16.mxu1 %v12494_v47  ;;  %12041 = vmatpush3.bf16.msra.mxu0 %v12493_v21 }
 0x6f8   : > { %12042 = vmatprep.subr.bf16.mxu0 %v12496_v30 }
 0x6fa   : > { %11881 = vmatpush3.bf16.msra.mxu1 %v12495_v45 }
 0x6fb   : > { %11918 = vmatprep.subr.bf16.mxu1 %v12497_v54  ;;  %12043 = vmatpush3.bf16.msra.mxu0 %v12496_v30 }
 0x6fc   : > { %12044 = vmatprep.subr.bf16.mxu0 %v12500_v51 }
 0x6fd   : > { %5451 = vmatmul.mubr.bf16.vlgmr.msra.gmra.mrb[120].mxu1 %v11192_v0 }
 0x6fe   : > { %11919 = vmatpush3.bf16.msra.mxu1 %v12498_v36  ;;  %5458 = vmatprep.mubr.bf16.mxu1 %v15849_v56 }
 0x6ff   : > { %11920 = vmatprep.subr.bf16.mxu1 %v12501_v53  ;;  %12045 = vmatpush3.bf16.msra.mxu0 %v12500_v51 }
 0x700   : > { %12054 = vmatprep.subr.bf16.mxu0 %v12504_v24 }
 0x702   : > { %11921 = vmatpush3.bf16.msra.mxu1 %v12502_v43  ;;  %12047 = vmatmul.mubr.bf16.vlgmr.msra.gmra.mrb[48].mxu0 %v12503_v8 }
 0x703   : > { %11922 = vmatprep.subr.bf16.mxu1 %v12506_v12  ;;  %12050 = vmatprep.mubr.bf16.mxu0 %v12505_v4  ;;  %v12537_v12 = vld [vmem:[#allocation21 + $0x184] ss:$8 sps:$4 sm:$0xff]  }
 0x704   : > { %12055 = vmatpush3.bf16.msra.mxu0 %v12504_v24  ;;  %v12535_v24 = vld [vmem:[#allocation21 + $0x180] ss:$8 sps:$4 sm:$0xff]  }
 0x705   : > { %5459 = vmatmul.mubr.bf16.gmra.mrb[124].mxu1 %v11195_v31  ;;  %12056 = vmatprep.subr.bf16.mxu0 %v12510_v40 }
 0x706   : > { %11923 = vmatpush3.bf16.msra.mxu1 %v12508_v55  ;;  %5466 = vmatprep.mubr.bf16.mxu1 %v11199_v10 }
 0x707   : > { %11924 = vmatprep.subr.bf16.mxu1 %v12511_v3 }
 0x708   : > { %12057 = vmatpush3.bf16.msra.mxu0 %v12510_v40  ;;  %v12540_v40 = vld [vmem:[#allocation21 + $0x194] ss:$8 sps:$4 sm:$0xff]  }
 0x709   : > { %12058 = vmatprep.subr.bf16.mxu0 %v12514_v22 }
 0x70a   : > { %11925 = vmatpush3.bf16.msra.mxu1 %v12512_v6  ;;  %12051 = vmatmul.mubr.bf16.gmra.mrb[52].mxu0 %v12513_v48 }
 0x70b   : > { %11926 = vmatprep.subr.bf16.mxu1 %v12515_v57  ;;  %12070 = vmatprep.mubr.bf16.mxu0 %v12516_v58 }
 0x70c   : > { %12059 = vmatpush3.bf16.msra.mxu0 %v12514_v22 }
 0x70d   : > { %5467 = vmatmul.mubr.bf16.gmra.mrb[128].mxu1 %v11198_v39  ;;  %12060 = vmatprep.subr.bf16.mxu0 %v12520_v20 }
 0x70e   : > { %11927 = vmatpush3.bf16.msra.mxu1 %v12518_v38  ;;  %5474 = vmatprep.mubr.bf16.mxu1 %v11202_v63 }
 0x70f   : > { %11928 = vmatprep.subr.bf16.mxu1 %v12521_v59 }
 0x710   : > { %12061 = vmatpush3.bf16.msra.mxu0 %v12520_v20 }
 0x711   : > { %12062 = vmatprep.subr.bf16.mxu0 %v12523_v13 }
 0x712   : > { %11929 = vmatpush3.bf16.msra.mxu1 %v12522_v18 }
 0x713   : > { %11930 = vmatprep.subr.bf16.mxu1 %v12524_v7 }
 0x714   : > { %12063 = vmatpush3.bf16.msra.mxu0 %v12523_v13 }
 0x715   : > { %5475 = vmatmul.mubr.bf16.gmra.mrb[132].mxu1 %v11201_v5  ;;  %12064 = vmatprep.subr.bf16.mxu0 %v12527_v9 }
 0x716   : > { %11931 = vmatpush3.bf16.msra.mxu1 %v12526_v37  ;;  %5854 = vmatprep.mubr.bf16.mxu1 %v15849_v56 }
 0x717   : > { %11932 = vmatprep.subr.bf16.mxu1 %v12528_v46  ;;  %v12543_v46 = vld [vmem:[#allocation21 + $0x1a4] ss:$8 sps:$4 sm:$0xff]  }
 0x718   : > { %12065 = vmatpush3.bf16.msra.mxu0 %v12527_v9 }
 0x719   : > { %12066 = vmatprep.subr.bf16.mxu0 %v12530_v1 }
 0x71a   : > { %11933 = vmatpush3.bf16.msra.mxu1 %v12529_v27  ;;  %v12546_v27 = vld [vmem:[#allocation21 + $0x1b4] ss:$8 sps:$4 sm:$0xff]  }
 0x71b   : > { %7098 = vmatprep.subr.bf16.mxu1 %v12537_v12 }
 0x71c   : > { %12067 = vmatpush3.bf16.msra.mxu0 %v12530_v1 }
 0x71d   : > { %5855 = vmatmul.mubr.bf16.vlgmr.msra.gmra.mrb[136].mxu1 %v11195_v31  ;;  %12068 = vmatprep.subr.bf16.mxu0 %v12531_v32  ;;  %v12538_v31 = vld [vmem:[#allocation21 + $0x190] ss:$8 sps:$4 sm:$0xff]  }
 0x71e   : > { %5862 = vmatprep.mubr.bf16.mxu1 %v11199_v10  ;;  %7099 = vmatpush1.bf16.msra.mxu1 %v12535_v24  ;;  %v12556_v24 = vld [vmem:[#allocation21 + $0x1f0] ss:$8 sps:$4 sm:$0xff]  }
 0x71f   : > { %7100 = vmatprep.subr.bf16.mxu1 %v12540_v40 }
 0x720   : > { %12069 = vmatpush3.bf16.msra.mxu0 %v12531_v32 }
 0x722   : > { %7101 = vmatpush1.bf16.msra.mxu1 %v12538_v31 }
 0x723   : > { %12071 = vmatmul.mubr.bf16.vlgmr.msra.gmra.mrb[48].mxu0 %v12532_v11  ;;  %7102 = vmatprep.subr.bf16.mxu1 %v12543_v46 }
 0x724   : > { %12074 = vmatprep.mubr.bf16.mxu0 %v12533_v52 }
 0x725   : > { %5863 = vmatmul.mubr.bf16.gmra.mrb[140].mxu1 %v11198_v39 }
 0x726   : > { %5870 = vmatprep.mubr.bf16.mxu1 %v11202_v63 }
 0x72b   : > { %12075 = vmatmul.mubr.bf16.gmra.mrb[52].mxu0 %v12534_v2  ;;  %v12544_v2 = vld [vmem:[#allocation21 + $0x1b0] ss:$8 sps:$4 sm:$0xff]  }
 0x72d   : > { %5871 = vmatmul.mubr.bf16.gmra.mrb[144].mxu1 %v11201_v5  ;;  %v12541_v5 = vld [vmem:[#allocation21 + $0x1a0] ss:$8 sps:$4 sm:$0xff]  }
 0x72e   : > { %5878 = vmatprep.mubr.bf16.mxu1 %v11238_v33  ;;  %7103 = vmatpush1.bf16.msra.mxu1 %v12541_v5  ;;  %v12549_v33 = vld [vmem:[#allocation21 + $0x1c4] ss:$8 sps:$4 sm:$0xff]  }
 0x72f   : > { %7104 = vmatprep.subr.bf16.mxu1 %v12546_v27 }
 0x732   : > { %7105 = vmatpush1.bf16.msra.mxu1 %v12544_v2 }
 0x733   : > { %7106 = vmatprep.subr.bf16.mxu1 %v12549_v33 }
 0x735   : > { %5879 = vmatmul.mubr.bf16.gmra.mrb[148].mxu1 %v11237_v60 }
 0x7af   : > { %v11830_v42 = vpop.f32.mrb[104].mxu1 }
 0x7b0   : > { %v11831_v16 = vpop.f32.mrb[105].mxu1 }
 0x7b1   : > { %v11832_v62 = vadd.f32 %v11831_v16, %v11830_v42  ;;  %v11833_v44 = vpop.f32.mrb[106].mxu1 }
 0x7b2   : > { %v11834_v23 = vpop.f32.mrb[107].mxu1 }
 0x7b3   : > { %v11835_v41 = vadd.f32 %v11834_v23, %v11833_v44  ;;  %v12552_v44 = vld [vmem:[#allocation21 + $0x1d4] ss:$8 sps:$4 sm:$0xff]  }
 0x7b7   : > { %v11836_v29 = vpop.f32.mrb[108].mxu1 }
 0x7b8   : > { %v11837_v61 = vpop.f32.mrb[109].mxu1 }
 0x7b9   : > { %v11838_v49 = vadd.f32 %v11837_v61, %v11836_v29  ;;  %v11839_v26 = vpop.f32.mrb[110].mxu1 }
 0x7ba   : > { %v11840_v15 = vpop.f32.mrb[111].mxu1 }
 0x7bb   : > { %v11841_v25 = vadd.f32 %v11840_v15, %v11839_v26  ;;  %v12555_v15 = vld [vmem:[#allocation21 + $0x1e4] ss:$8 sps:$4 sm:$0xff]  }
 0x7bf   : > { %v11842_v14 = vpop.f32.mrb[112].mxu1 }
 0x7c0   : > { %v11843_v28 = vpop.f32.mrb[113].mxu1 }
 0x7c1   : > { %v11844_v17 = vadd.f32 %v11843_v28, %v11842_v14  ;;  %v11845_v21 = vpop.f32.mrb[114].mxu1 }
 0x7c2   : > { %v11846_v47 = vpop.f32.mrb[115].mxu1 }
 0x7c3   : > { %v11847_v35 = vadd.f32 %v11846_v47, %v11845_v21  ;;  %v12553_v21 = vld [vmem:[#allocation21 + $0x1e0] ss:$8 sps:$4 sm:$0xff]  }
 0x7c8   : > { %v11848_v50 = vpop.f32.mrb[116].mxu1 }
 0x7c9   : > { %v11849_v45 = vpop.f32.mrb[117].mxu1 }
 0x7ca   : > { %v11850_v30 = vadd.f32 %v11849_v45, %v11848_v50  ;;  %v11851_v54 = vpop.f32.mrb[118].mxu1  ;;  %v12558_v50 = vld [vmem:[#allocation21 + $0x1f4] ss:$8 sps:$4 sm:$0xff]  }
 0x7cb   : > { %v11852_v36 = vpop.f32.mrb[119].mxu1 }
 0x7cc   : > { %v11853_v0 = vadd.f32 %v11852_v36, %v11851_v54 }
 0x7d0   : > { %v11882_v51 = vpop.f32.mrb[120].mxu1 }
 0x7d1   : > { %v11883_v53 = vpop.f32.mrb[121].mxu1 }
 0x7d2   : > { %v11884_v56 = vadd.f32 %v11883_v53, %v11882_v51  ;;  %v11885_v43 = vpop.f32.mrb[122].mxu1 }
 0x7d3   : > { %v11886_v8 = vpop.f32.mrb[123].mxu1 }
 0x7d4   : > { %v12081_v4 = vadd.f32 %v11884_v56, %v11832_v62  ;;  %v11887_v55 = vadd.f32 %v11886_v8, %v11885_v43  ;;  %v12547_v62 = vld [vmem:[#allocation21 + $0x1c0] ss:$8 sps:$4 sm:$0xff]   ;;  %v12561_v8 = vld [vmem:[#allocation21 + $0x204] ss:$8 sps:$4 sm:$0xff]  }
 0x7d5   : > { %7107 = vmatpush1.bf16.msra.mxu1 %v12547_v62  ;;  %v12562_v62 = vld [vmem:[#allocation21 + $0x210] ss:$8 sps:$4 sm:$0xff]  }
 0x7d6   : > { %v12087_v3 = vadd.f32 %v11887_v55, %v11835_v41  ;;  %7108 = vmatprep.subr.bf16.mxu1 %v12552_v44 }
 0x7d8   : > { %v11888_v10 = vpop.f32.mrb[124].mxu1 }
 0x7d9   : > { %v11889_v22 = vpop.f32.mrb[125].mxu1 }
 0x7da   : > { %v11890_v6 = vadd.f32 %v11889_v22, %v11888_v10  ;;  %v11891_v57 = vpop.f32.mrb[126].mxu1  ;;  %v16529_v10 = vld [vmem:[#allocation68_spill] sm:$0xff] }
 0x7db   : > { %v11892_v48 = vpop.f32.mrb[127].mxu1 }
 0x7dc   : > { %v15865_v20 = vadd.f32 %v11890_v6, %v11838_v49  ;;  %v11893_v58 = vadd.f32 %v11892_v48, %v11891_v57  ;;  %v12550_v49 = vld [vmem:[#allocation21 + $0x1d0] ss:$8 sps:$4 sm:$0xff]  }
 0x7dd   : > { %7109 = vmatpush1.bf16.msra.mxu1 %v12550_v49  ;;  %v12567_v49 = vld [vmem:[#allocation21 + $0x224] ss:$8 sps:$4 sm:$0xff]  }
 0x7de   : > { %v15867_v38 = vadd.f32 %v11893_v58, %v11841_v25  ;;  %7110 = vmatprep.subr.bf16.mxu1 %v12555_v15  ;;  %v12559_v58 = vld [vmem:[#allocation21 + $0x200] ss:$8 sps:$4 sm:$0xff]  }
 0x7e0   : > { %v11894_v39 = vpop.f32.mrb[128].mxu1 }
 0x7e1   : > { %v11895_v59 = vpop.f32.mrb[129].mxu1  ;;  %7111 = vmatpush1.bf16.msra.mxu1 %v12553_v21 }
 0x7e2   : > { %v11896_v63 = vadd.f32 %v11895_v59, %v11894_v39  ;;  %v11897_v13 = vpop.f32.mrb[130].mxu1  ;;  %7112 = vmatprep.subr.bf16.mxu1 %v12558_v50 }
 0x7e3   : > { %v11898_v18 = vpop.f32.mrb[131].mxu1 }
 0x7e4   : > { %v15869_v7 = vadd.f32 %v11896_v63, %v11844_v17  ;;  %v11899_v9 = vadd.f32 %v11898_v18, %v11897_v13  ;;  %v12564_v63 = vld [vmem:[#allocation21 + $0x214] ss:$8 sps:$4 sm:$0xff]  }
 0x7e5   : > { %7113 = vmatpush1.bf16.msra.mxu1 %v12556_v24 }
 0x7e6   : > { %v15871_v37 = vadd.f32 %v11899_v9, %v11847_v35  ;;  %v15877_v35 = vld [vmem:[#allocation19] ss:$0 sm:$0xff]  ;;  %7114 = vmatprep.subr.bf16.mxu1 %v12561_v8 }
 0x7e8   : > { %v11900_v1 = vpop.f32.mrb[132].mxu1 }
 0x7e9   : > { %v11901_v32 = vpop.f32.mrb[133].mxu1  ;;  %7115 = vmatpush1.bf16.msra.mxu1 %v12559_v58 }
 0x7ea   : > { %v11902_v11 = vadd.f32 %v11901_v32, %v11900_v1  ;;  %v11903_v52 = vpop.f32.mrb[134].mxu1  ;;  %7116 = vmatprep.subr.bf16.mxu1 %v12564_v63 }
 0x7eb   : > { %v11904_v34 = vpop.f32.mrb[135].mxu1 }
 0x7ec   : > { %v15873_v60 = vadd.f32 %v11902_v11, %v11850_v30  ;;  %v11905_v42 = vadd.f32 %v11904_v34, %v11903_v52 }
 0x7ed   : > { %7117 = vmatpush1.bf16.msra.mxu1 %v12562_v62 }
 0x7ee   : > { %v15875_v16 = vadd.f32 %v11905_v42, %v11853_v0  ;;  %7118 = vmatprep.subr.bf16.mxu1 %v12567_v49 }
 0x7f0   : > { %v11934_v23 = vpop.f32.mrb[136].mxu1 }
 0x7f1   : > { %v11935_v41 = vpop.f32.mrb[137].mxu1 }
 0x7f2   : > { %v11936_v29 = vadd.f32 %v11935_v41, %v11934_v23  ;;  %v11937_v61 = vpop.f32.mrb[138].mxu1 }
 0x7f3   : > { %v11938_v26 = vpop.f32.mrb[139].mxu1 }
 0x7f4   : > { %v11939_v25 = vadd.f32 %v11938_v26, %v11937_v61  ;;  %v12082_v14 = vadd.f32 %v12081_v4, %v11936_v29 }
 0x7f6   : > { %v12072_v28 = vpop.f32.mrb[48].mxu0  ;;  %v12088_v17 = vadd.f32 %v12087_v3, %v11939_v25 }
 0x7f7   : > { %v5921_v47 = vpop.f32.mrb[49].mxu0 }
 0x7f8   : > { %v12083_v45 = vadd.f32 %v12082_v14, %v5921_v47  ;;  %v11940_v30 = vpop.f32.mrb[140].mxu1  ;;  %v12073_v54 = vpop.f32.mrb[50].mxu0 }
 0x7f9   : > { %v11941_v36 = vpop.f32.mrb[141].mxu1  ;;  %v5924_v0 = vpop.f32.mrb[51].mxu0 }
 0x7fa   : > { %v5967_v51 = vadd.f32 %v12083_v45, %v15877_v35  ;;  %v11942_v53 = vadd.f32 %v11941_v36, %v11940_v30  ;;  %v12089_v56 = vadd.f32 %v12088_v17, %v5924_v0  ;;  %v11943_v43 = vpop.f32.mrb[142].mxu1  ;;  %v12565_v36 = vld [vmem:[#allocation21 + $0x220] ss:$8 sps:$4 sm:$0xff]  }
 0x7fb   : > { %v11944_v12 = vpop.f32.mrb[143].mxu1  ;;  %7119 = vmatpush1.bf16.msra.mxu1 %v12565_v36 }
 0x7fc   : > { %v5975_v40 = vmax.f32 %v5967_v51, 0.0  ;;  %v12079_v4 = vadd.f32 %v15865_v20, %v11942_v53  ;;  %v5968_v55 = vadd.f32 %v12089_v56, %v15877_v35  ;;  %v11945_v31 = vadd.f32 %v11944_v12, %v11943_v43  ;;  %v12570_v43 = vld [vmem:[#allocation21 + $0x234] ss:$8 sps:$4 sm:$0xff]  }
 0x7fd   : > { %7120 = vmatprep.subr.bf16.mxu1 %v12570_v43 }
 0x7fe   : > { %v5991_v3 = vcombine.high %v5975_v40, %v5975_v40  ;;  %v5998_v22 = vrot.slane %v5975_v40, %v16529_v10  ;;  %v12080_v6 = vadd.f32 %v12079_v4, %v12072_v28  ;;  %v5976_v57 = vmax.f32 %v5968_v55, 0.0  ;;  %v15883_v48 = vpop.f32.mrb[52].mxu0 }
 0x7ff   : > { %v12085_v39 = vadd.f32 %v15867_v38, %v11945_v31  ;;  %v15886_v59 = vpop.f32.mrb[53].mxu0 }
 0x800   : > { %v6005_v20 = vrot.slane %v5991_v3, %v16529_v10  ;;  %v6006_v13 = vcombine.high %v5998_v22, %v5998_v22  ;;  %v5969_v18 = vadd.f32 %v12080_v6, %v15877_v35  ;;  %v11946_v9 = vpop.f32.mrb[144].mxu1  ;;  %v15890_v5 = vpop.f32.mrb[54].mxu0  ;;  %v6160_v46 = vsel %vm6159_vm3, %v5998_v22, -inf }
 0x801   : > { %v6008_v1 = vcombine.high %v5976_v57, %v5976_v57  ;;  %v6015_v27 = vrot.slane %v5976_v57, %v16529_v10  ;;  %v12086_v32 = vadd.f32 %v12085_v39, %v12073_v54  ;;  %v11947_v11 = vpop.f32.mrb[145].mxu1  ;;  %v15894_v38 = vpop.f32.mrb[55].mxu0 }
 0x802   : > { %v6007_v52 = vcombine.high %v6005_v20, %v6005_v20  ;;  %v6169_v2 = vsel %vm6159_vm3, %v6006_v13, -inf  ;;  %v6178_v34 = vsel %vm6159_vm3, %v6005_v20, -inf  ;;  %v5977_v33 = vmax.f32 %v5969_v18, 0.0  ;;  %v15898_v42 = vpop.f32.mrb[146].mxu1  ;;  %v12568_v13 = vld [vmem:[#allocation21 + $0x230] ss:$8 sps:$4 sm:$0xff]  }
 0x803   : > { %v6022_v44 = vrot.slane %v6008_v1, %v16529_v10  ;;  %v6023_v23 = vcombine.high %v6015_v27, %v6015_v27  ;;  %v6161_v41 = vsel %vm6159_vm3, %v6015_v27, -inf  ;;  %v5970_v29 = vadd.f32 %v12086_v32, %v15877_v35  ;;  %v15903_v61 = vpop.f32.mrb[147].mxu1  ;;  %7121 = vmatpush1.bf16.msra.mxu1 %v12568_v13 }
 0x804   : > { %v6187_v26 = vsel %vm6159_vm3, %v6007_v52, -inf  ;;  %v6025_v15 = vcombine.high %v5977_v33, %v5977_v33  ;;  %v6032_v25 = vrot.slane %v5977_v33, %v16529_v10  ;;  %v6162_v14 = vmax.f32 %v6160_v46, %v6161_v41  ;;  %v12573_v52 = vld [vmem:[#allocation21 + $0x244] ss:$8 sps:$4 sm:$0xff]  }
 0x805   : > { %v6024_v28 = vcombine.high %v6022_v44, %v6022_v44  ;;  %v6170_v17 = vsel %vm6159_vm3, %v6023_v23, -inf  ;;  %v6179_v21 = vsel %vm6159_vm3, %v6022_v44, -inf  ;;  %v5978_v47 = vmax.f32 %v5970_v29, 0.0  ;;  %7122 = vmatprep.subr.bf16.mxu1 %v12573_v52 }
 0x806   : > { %v6039_v50 = vrot.slane %v6025_v15, %v16529_v10  ;;  %v6040_v45 = vcombine.high %v6032_v25, %v6032_v25  ;;  %v6196_v30 = vsel %vm6159_vm3, %v6032_v25, -inf  ;;  %v6163_v54 = vrot.slane %v6162_v14, 4  ;;  %v12571_v15 = vld [vmem:[#allocation21 + $0x240] ss:$8 sps:$4 sm:$0xff]  }
 0x807   : > { %v6171_v0 = vmax.f32 %v6169_v2, %v6170_v17  ;;  %v6180_v51 = vmax.f32 %v6178_v34, %v6179_v21  ;;  %v6188_v53 = vsel %vm6159_vm3, %v6024_v28, -inf  ;;  %v6042_v56 = vcombine.high %v5978_v47, %v5978_v47  ;;  %v12576_v21 = vld [vmem:[#allocation21 + $0x254] ss:$8 sps:$4 sm:$0xff]   ;;  %7123 = vmatpush1.bf16.msra.mxu1 %v12571_v15 }
 0x808   : > { %v6041_v24 = vcombine.high %v6039_v50, %v6039_v50  ;;  %v6205_v12 = vsel %vm6159_vm3, %v6040_v45, -inf  ;;  %v6214_v8 = vsel %vm6159_vm3, %v6039_v50, -inf  ;;  %v6164_v40 = vmax.f32 %v6162_v14, %v6163_v54  ;;  %v15914_v4 = vpop.f32.mrb[148].mxu1  ;;  %7124 = vmatprep.subr.bf16.mxu1 %v12576_v21 }
 0x809   : > { %v6172_v55 = vrot.slane %v6171_v0, 4  ;;  %v6181_v31 = vrot.slane %v6180_v51, 4  ;;  %v6189_v3 = vmax.f32 %v6187_v26, %v6188_v53  ;;  %v6049_v22 = vrot.slane %v5978_v47, %v16529_v10  ;;  %v15917_v6 = vpop.f32.mrb[149].mxu1 }
 0x80a   : > { %v6223_v57 = vsel %vm6159_vm3, %v6041_v24, -inf  ;;  %v6165_v58 = vrot.slane %v6164_v40, 2  ;;  %v6056_v39 = vrot.slane %v6042_v56, %v16529_v10  ;;  %v15921_v63 = vadd.f32 %v11947_v11, %v11946_v9  ;;  %v15923_v20 = vpop.f32.mrb[150].mxu1 }
 0x80b   : > { %v6173_v18 = vmax.f32 %v6171_v0, %v6172_v55  ;;  %v6182_v46 = vmax.f32 %v6180_v51, %v6181_v31  ;;  %v6190_v1 = vrot.slane %v6189_v3, 4  ;;  %v6057_v27 = vcombine.high %v6049_v22, %v6049_v22  ;;  %v15925_v32 = vpop.f32.mrb[151].mxu1 }
 0x80c   : > { %v6166_v2 = vmax.f32 %v6164_v40, %v6165_v58  ;;  %v6058_v34 = vcombine.high %v6056_v39, %v6056_v39  ;;  %v6197_v33 = vsel %vm6159_vm3, %v6049_v22, -inf  ;;  %v6215_v62 = vsel %vm6159_vm3, %v6056_v39, -inf  ;;  %v12579_v22 = vld [vmem:[#allocation21 + $0x264] ss:$8 sps:$4 sm:$0xff]  }
 0x80d   : > { %v6174_v9 = vrot.slane %v6173_v18, 2  ;;  %v6183_v11 = vrot.slane %v6182_v46, 2  ;;  %v6191_v44 = vmax.f32 %v6189_v3, %v6190_v1  ;;  %v6198_v23 = vmax.f32 %v6196_v30, %v6197_v33  ;;  %v12577_v33 = vld [vmem:[#allocation21 + $0x260] ss:$8 sps:$4 sm:$0xff]  }
 0x80e   : > { %v6167_v41 = vrot.slane %v6166_v2, 1  ;;  %v6206_v29 = vsel %vm6159_vm3, %v6057_v27, -inf  ;;  %v6216_v49 = vmax.f32 %v6214_v8, %v6215_v62  ;;  %v6224_v26 = vsel %vm6159_vm3, %v6058_v34, -inf  ;;  %v12574_v8 = vld [vmem:[#allocation21 + $0x250] ss:$8 sps:$4 sm:$0xff]  }
 0x80f   : > { %v6175_v25 = vmax.f32 %v6173_v18, %v6174_v9  ;;  %v6184_v14 = vmax.f32 %v6182_v46, %v6183_v11  ;;  %v6192_v28 = vrot.slane %v6191_v44, 2  ;;  %v6199_v17 = vrot.slane %v6198_v23, 4  ;;  %7125 = vmatpush1.bf16.msra.mxu1 %v12574_v8 }
 0x810   : > { %v6168_v47 = vmax.f32 %v6166_v2, %v6167_v41  ;;  %v6207_v50 = vmax.f32 %v6205_v12, %v6206_v29  ;;  %v6217_v45 = vrot.slane %v6216_v49, 4  ;;  %v6225_v54 = vmax.f32 %v6223_v57, %v6224_v26  ;;  %7126 = vmatprep.subr.bf16.mxu1 %v12579_v22 }
 0x811   : > { %v6176_v30 = vrot.slane %v6175_v25, 1  ;;  %v6185_v36 = vrot.slane %v6184_v14, 1  ;;  %v6193_v0 = vmax.f32 %v6191_v44, %v6192_v28  ;;  %v6200_v51 = vmax.f32 %v6198_v23, %v6199_v17  ;;  %v12582_v23 = vld [vmem:[#allocation21 + $0x274] ss:$8 sps:$4 sm:$0xff]  }
 0x812   : > { %v6304_v53 = vpack.c.bf16 %v6168_v47, %v6168_v47  ;;  %v6208_v56 = vrot.slane %v6207_v50, 4  ;;  %v6218_v43 = vmax.f32 %v6216_v49, %v6217_v45  ;;  %v6226_v24 = vrot.slane %v6225_v54, 4  ;;  %v12580_v45 = vld [vmem:[#allocation21 + $0x270] ss:$8 sps:$4 sm:$0xff]  }
 0x813   : > { %v6177_v40 = vmax.f32 %v6175_v25, %v6176_v30  ;;  %v6186_v55 = vmax.f32 %v6184_v14, %v6185_v36  ;;  %v6194_v31 = vrot.slane %v6193_v0, 1  ;;  %v6201_v3 = vrot.slane %v6200_v51, 2  ;;  %7127 = vmatpush1.bf16.msra.mxu1 %v12577_v33 }
 0x814   : > { %v6335_v58 = vunpack.c.l.b16 %v6304_v53  ;;  %v6382_v12 = vrot.slane %v6304_v53, %v16529_v10  ;;  %v6209_v57 = vmax.f32 %v6207_v50, %v6208_v56  ;;  %v6219_v39 = vrot.slane %v6218_v43, 2  ;;  %7128 = vmatprep.subr.bf16.mxu1 %v12582_v23  ;;  %v12591_v53 = vld [vmem:[#allocation21 + $0x284] ss:$8 sps:$4 sm:$0xff]  }
 0x815   : > { %v6195_v13 = vmax.f32 %v6193_v0, %v6194_v31  ;;  %v6305_v18 = vpack.c.bf16 %v6177_v40, %v6177_v40  ;;  %v6306_v46 = vpack.c.bf16 %v6186_v55, %v6186_v55  ;;  %v6202_v1 = vmax.f32 %v6200_v51, %v6201_v3  ;;  %v13219_v51 = vld [vmem:[#allocation2] sm:$0xff] }
 0x816   : > { %v6494_v27 = vrot.slane %v6382_v12, %v16529_v10  ;;  %v6210_v52 = vrot.slane %v6209_v57, 2  ;;  %v6220_v2 = vmax.f32 %v6218_v43, %v6219_v39  ;;  %v6227_v34 = vmax.f32 %v6225_v54, %v6226_v24 }
 0x817   : > { %v6307_v62 = vpack.c.bf16 %v6195_v13, %v6195_v13  ;;  %v6336_v9 = vunpack.c.l.b16 %v6305_v18  ;;  %v6337_v11 = vunpack.c.l.b16 %v6306_v46  ;;  %v6389_v44 = vrot.slane %v6305_v18, %v16529_v10  ;;  %7129 = vmatpush1.bf16.msra.mxu1 %v12580_v45 }
 0x818   : > { %v6396_v41 = vrot.slane %v6306_v46, %v16529_v10  ;;  %v6600_v29 = vunpack.c.l.b16 %v6494_v27  ;;  %v6203_v49 = vrot.slane %v6202_v1, 1  ;;  %v6211_v26 = vmax.f32 %v6209_v57, %v6210_v52  ;;  %7141 = vmatprep.subr.bf16.mxu1 %v12591_v53 }
 0x819   : > { %v6347_v15 = vsel %vm3503_vm12, %v6336_v9, %v6335_v58  ;;  %v6403_v25 = vrot.slane %v6307_v62, %v16529_v10  ;;  %v6501_v14 = vrot.slane %v6389_v44, %v16529_v10  ;;  %v6680_v28 = vunpack.c.l.b16 %v6307_v62 }
 0x81a   : > { %v6348_v17 = vsel %vm3505_vm14, %v6337_v11, %v6347_v15  ;;  %v6508_v21 = vrot.slane %v6396_v41, %v16529_v10  ;;  %v6684_v47 = vsel %vm3735_vm13, %v6337_v11, %v6336_v9  ;;  %v6204_v50 = vmax.f32 %v6202_v1, %v6203_v49 }
 0x81b   : > { %v6355_v54 = vpack.c.b16 %v6348_v17, %v6348_v17  ;;  %v6515_v30 = vrot.slane %v6403_v25, %v16529_v10  ;;  %v6601_v36 = vunpack.c.l.b16 %v6501_v14  ;;  %v6685_v0 = vsel %vm3503_vm12, %v6680_v28, %v6684_v47 }
 0x81c   : > { %v6602_v56 = vunpack.c.l.b16 %v6508_v21  ;;  %v6692_v43 = vpack.c.b16 %v6685_v0, %v6685_v0  ;;  %v6212_v24 = vrot.slane %v6211_v26, 1  ;;  %v6221_v8 = vrot.slane %v6220_v2, 1 }
 0x81d   : > { %v6363_v40 = vsel %vm14145_vm9, 0, %v6355_v54  ;;  %v6603_v55 = vunpack.c.l.b16 %v6515_v30  ;;  %v6616_v31 = vrot.slane %v6601_v36, 7  ;;  %v6228_v3 = vrot.slane %v6227_v34, 2 }
 0x81e   : > { %6368 = vst [vmem:[#allocation5 + $0x6] sm:$0x3] %v6363_v40  ;;  %v6618_v22 = vrot.slane %v6602_v56, 6  ;;  %v6703_v58 = vsel %vm15945_vm0, %v6692_v43, 0  ;;  %v6213_v12 = vmax.f32 %v6211_v26, %v6212_v24  ;;  %v6222_v57 = vmax.f32 %v6220_v2, %v6221_v8 }
 0x81f   : > { %v6617_v39 = vsel %vm3735_vm13, %v6616_v31, %v6600_v29  ;;  %v6620_v13 = vrot.slane %v6603_v55, 5  ;;  %6707 = vst [vmem:[#allocation5 + $0xa] sm:$0x3] %v6703_v58  ;;  %v6229_v18 = vmax.f32 %v6227_v34, %v6228_v3  ;;  %v6308_v46 = vpack.c.bf16 %v6204_v50, %v6204_v50 }
 0x820   : > { %v6619_v1 = vsel %vm3503_vm12, %v6618_v22, %v6617_v39  ;;  %v6309_v27 = vpack.c.bf16 %v6213_v12, %v6213_v12  ;;  %v6310_v52 = vpack.c.bf16 %v6222_v57, %v6222_v57  ;;  %v12094_v33 = vadd.f32 %v15869_v7, %v15921_v63 }
 0x821   : > { %v6621_v62 = vsel %vm3505_vm14, %v6620_v13, %v6619_v1  ;;  %v6230_v9 = vrot.slane %v6229_v18, 1  ;;  %v6338_v11 = vunpack.c.l.b16 %v6308_v46  ;;  %v6410_v2 = vrot.slane %v6308_v46, %v16529_v10 }
 0x822   : > { %v6640_v44 = vpack.c.b16 %v6621_v62, %v6621_v62  ;;  %v6339_v23 = vunpack.c.l.b16 %v6309_v27  ;;  %v6340_v41 = vunpack.c.l.b16 %v6310_v52  ;;  %v6417_v34 = vrot.slane %v6309_v27, %v16529_v10 }
 0x823   : > { %v6231_v29 = vmax.f32 %v6229_v18, %v6230_v9  ;;  %v6424_v49 = vrot.slane %v6310_v52, %v16529_v10  ;;  %v6522_v26 = vrot.slane %v6410_v2, %v16529_v10  ;;  %v12095_v15 = vadd.f32 %v12094_v33, %v15886_v59 }
 0x824   : > { %11265 = vst.sshfl [vmem:[#allocation5 + $0x8] sm:$0x3 pattern:$0x76325410] %v6640_v44  ;;  %v6349_v7 = vsel %vm3503_vm12, %v6339_v23, %v6338_v11  ;;  %v6529_v63 = vrot.slane %v6417_v34, %v16529_v10  ;;  %v6686_v25 = vsel %vm3735_vm13, %v6340_v41, %v6339_v23  ;;  %v11951_v14 = vadd.f32 %v15903_v61, %v15898_v42 }
 0x825   : > { %v6311_v28 = vpack.c.bf16 %v6231_v29, %v6231_v29  ;;  %v6350_v17 = vsel %vm3505_vm14, %v6340_v41, %v6349_v7  ;;  %v6536_v21 = vrot.slane %v6424_v49, %v16529_v10  ;;  %v6604_v47 = vunpack.c.l.b16 %v6522_v26 }
 0x826   : > { %v6356_v50 = vpack.c.b16 %v6350_v17, %v6350_v17  ;;  %v6605_v45 = vunpack.c.l.b16 %v6529_v63  ;;  %v5971_v59 = vadd.f32 %v12095_v15, %v15877_v35  ;;  %v12100_v54 = vadd.f32 %v15871_v37, %v11951_v14 }
 0x827   : > { %v6431_v30 = vrot.slane %v6311_v28, %v16529_v10  ;;  %v6606_v36 = vunpack.c.l.b16 %v6536_v21  ;;  %v6681_v0 = vunpack.c.l.b16 %v6311_v28  ;;  %v11954_v53 = vadd.f32 %v15917_v6, %v15914_v4 }
 0x828   : > { %v6364_v42 = vsel %vm14145_vm9, 0, %v6356_v50  ;;  %v6622_v61 = vrot.slane %v6605_v45, 7  ;;  %v5979_v56 = vmax.f32 %v5971_v59, 0.0  ;;  %v12101_v43 = vadd.f32 %v12100_v54, %v15894_v38 }
 0x829   : > { %6369 = vst [vmem:[#allocation5 + $0xc] sm:$0x3] %v6364_v42  ;;  %v6543_v24 = vrot.slane %v6431_v30, %v16529_v10  ;;  %v6624_v8 = vrot.slane %v6606_v36, 6  ;;  %v6687_v37 = vsel %vm3503_vm12, %v6681_v0, %v6686_v25  ;;  %v12091_v40 = vadd.f32 %v15873_v60, %v11954_v53 }
 0x82a   : > { %v6623_v55 = vsel %vm3735_vm13, %v6622_v61, %v6604_v47  ;;  %v6693_v31 = vpack.c.b16 %v6687_v37, %v6687_v37  ;;  %v6059_v3 = vcombine.high %v5979_v56, %v5979_v56  ;;  %v6066_v4 = vrot.slane %v5979_v56, %v16529_v10 }
 0x82b   : > { %v6607_v6 = vunpack.c.l.b16 %v6543_v24  ;;  %v6625_v22 = vsel %vm3503_vm12, %v6624_v8, %v6623_v55  ;;  %v5972_v58 = vadd.f32 %v12101_v43, %v15877_v35  ;;  %v12092_v38 = vadd.f32 %v12091_v40, %v15883_v48 }
 0x82c   : > { %v6704_v12 = vsel %vm15945_vm0, %v6693_v31, 0  ;;  %v6073_v57 = vrot.slane %v6059_v3, %v16529_v10  ;;  %v11957_v18 = vadd.f32 %v15925_v32, %v15923_v20  ;;  %v6074_v46 = vcombine.high %v6066_v4, %v6066_v4 }
 0x82d   : > { %v6626_v39 = vrot.slane %v6607_v6, 5  ;;  %6708 = vst [vmem:[#allocation5 + $0x10] sm:$0x3] %v6704_v12  ;;  %v5980_v60 = vmax.f32 %v5972_v58, 0.0  ;;  %v5973_v13 = vadd.f32 %v12092_v38, %v15877_v35  ;;  %v6232_v9 = vsel %vm6159_vm3, %v6066_v4, -inf }
 0x82e   : > { %v6075_v62 = vcombine.high %v6073_v57, %v6073_v57  ;;  %v12097_v11 = vadd.f32 %v15875_v16, %v11957_v18  ;;  %v6241_v20 = vsel %vm6159_vm3, %v6074_v46, -inf  ;;  %v6250_v32 = vsel %vm6159_vm3, %v6073_v57, -inf }
 0x82f   : > { %v6627_v1 = vsel %vm3505_vm14, %v6626_v39, %v6625_v22  ;;  %v6076_v27 = vcombine.high %v5980_v60, %v5980_v60  ;;  %v6083_v52 = vrot.slane %v5980_v60, %v16529_v10  ;;  %v5981_v48 = vmax.f32 %v5973_v13, 0.0 }
 0x830   : > { %v6641_v33 = vpack.c.b16 %v6627_v1, %v6627_v1  ;;  %v12098_v29 = vadd.f32 %v12097_v11, %v15890_v5  ;;  %v6259_v14 = vsel %vm6159_vm3, %v6075_v62, -inf }
 0x831   : > { %v6090_v2 = vrot.slane %v6076_v27, %v16529_v10  ;;  %v6091_v44 = vcombine.high %v6083_v52, %v6083_v52  ;;  %v6233_v23 = vsel %vm6159_vm3, %v6083_v52, -inf  ;;  %v6093_v41 = vcombine.high %v5981_v48, %v5981_v48 }
 0x832   : > { %11266 = vst.sshfl [vmem:[#allocation5 + $0xe] sm:$0x3 pattern:$0x76325410] %v6641_v33  ;;  %v6234_v34 = vmax.f32 %v6232_v9, %v6233_v23  ;;  %v6100_v16 = vrot.slane %v5981_v48, %v16529_v10  ;;  %v5974_v59 = vadd.f32 %v12098_v29, %v15877_v35 }
 0x833   : > { %v6092_v49 = vcombine.high %v6090_v2, %v6090_v2  ;;  %v6242_v26 = vsel %vm6159_vm3, %v6091_v44, -inf  ;;  %v6251_v15 = vsel %vm6159_vm3, %v6090_v2, -inf  ;;  %v6107_v17 = vrot.slane %v6093_v41, %v16529_v10 }
 0x834   : > { %v6235_v7 = vrot.slane %v6234_v34, 4  ;;  %v6243_v63 = vmax.f32 %v6241_v20, %v6242_v26  ;;  %v6252_v25 = vmax.f32 %v6250_v32, %v6251_v15  ;;  %v6108_v45 = vcombine.high %v6100_v16, %v6100_v16 }
 0x835   : > { %v6260_v28 = vsel %vm6159_vm3, %v6092_v49, -inf  ;;  %v6109_v53 = vcombine.high %v6107_v17, %v6107_v17  ;;  %v6268_v42 = vsel %vm6159_vm3, %v6100_v16, -inf  ;;  %v5982_v61 = vmax.f32 %v5974_v59, 0.0 }
 0x836   : > { %v6236_v21 = vmax.f32 %v6234_v34, %v6235_v7  ;;  %v6244_v47 = vrot.slane %v6243_v63, 4  ;;  %v6253_v50 = vrot.slane %v6252_v25, 4  ;;  %v6261_v5 = vmax.f32 %v6259_v14, %v6260_v28 }
 0x837   : > { %v6277_v37 = vsel %vm6159_vm3, %v6108_v45, -inf  ;;  %v6286_v40 = vsel %vm6159_vm3, %v6107_v17, -inf  ;;  %v6110_v55 = vcombine.high %v5982_v61, %v5982_v61  ;;  %v6117_v31 = vrot.slane %v5982_v61, %v16529_v10 }
 0x838   : > { %v6237_v54 = vrot.slane %v6236_v21, 2  ;;  %v6245_v30 = vmax.f32 %v6243_v63, %v6244_v47  ;;  %v6254_v36 = vmax.f32 %v6252_v25, %v6253_v50  ;;  %v6262_v0 = vrot.slane %v6261_v5, 4 }
 0x839   : > { %v16013_v22 = vsel %vm6159_vm3, %v6109_v53, -inf  ;;  %v6124_v58 = vrot.slane %v6110_v55, %v16529_v10  ;;  %v6125_v38 = vcombine.high %v6117_v31, %v6117_v31  ;;  %v6269_v12 = vsel %vm6159_vm3, %v6117_v31, -inf }
 0x83a   : > { %v6238_v56 = vmax.f32 %v6236_v21, %v6237_v54  ;;  %v6246_v43 = vrot.slane %v6245_v30, 2  ;;  %v6255_v24 = vrot.slane %v6254_v36, 2  ;;  %v6263_v8 = vmax.f32 %v6261_v5, %v6262_v0 }
 0x83b   : > { %v6126_v18 = vcombine.high %v6124_v58, %v6124_v58  ;;  %v6270_v46 = vmax.f32 %v6268_v42, %v6269_v12  ;;  %v6278_v1 = vsel %vm6159_vm3, %v6125_v38, -inf  ;;  %v6287_v27 = vsel %vm6159_vm3, %v6124_v58, -inf }
 0x83c   : > { %v6239_v35 = vrot.slane %v6238_v56, 1  ;;  %v6247_v3 = vmax.f32 %v6245_v30, %v6246_v43  ;;  %v6256_v4 = vmax.f32 %v6254_v36, %v6255_v24  ;;  %v6264_v6 = vrot.slane %v6263_v8, 2 }
 0x83d   : > { %v6271_v9 = vrot.slane %v6270_v46, 4  ;;  %v6279_v11 = vmax.f32 %v6277_v37, %v6278_v1  ;;  %v6288_v2 = vmax.f32 %v6286_v40, %v6287_v27  ;;  %v6296_v44 = vsel %vm6159_vm3, %v6126_v18, -inf }
 0x83e   : > { %v6240_v57 = vmax.f32 %v6238_v56, %v6239_v35  ;;  %v6248_v39 = vrot.slane %v6247_v3, 1  ;;  %v6257_v60 = vrot.slane %v6256_v4, 1  ;;  %v6265_v13 = vmax.f32 %v6263_v8, %v6264_v6 }
 0x83f   : > { %v6272_v29 = vmax.f32 %v6270_v46, %v6271_v9  ;;  %v6280_v49 = vrot.slane %v6279_v11, 4  ;;  %v6289_v26 = vrot.slane %v6288_v2, 4  ;;  %v6297_v12 = vmax.f32 %v16013_v22, %v6296_v44 }
 0x840   : > { %v6249_v52 = vmax.f32 %v6247_v3, %v6248_v39  ;;  %v6258_v48 = vmax.f32 %v6256_v4, %v6257_v60  ;;  %v6266_v33 = vrot.slane %v6265_v13, 1  ;;  %v6312_v62 = vpack.c.bf16 %v6240_v57, %v6240_v57 }
 0x841   : > { %v6273_v28 = vrot.slane %v6272_v29, 2  ;;  %v6281_v17 = vmax.f32 %v6279_v11, %v6280_v49  ;;  %v6290_v55 = vmax.f32 %v6288_v2, %v6289_v26  ;;  %v6298_v46 = vrot.slane %v6297_v12, 4 }
 0x842   : > { %v6267_v23 = vmax.f32 %v6265_v13, %v6266_v33  ;;  %v6313_v41 = vpack.c.bf16 %v6249_v52, %v6249_v52  ;;  %v6314_v20 = vpack.c.bf16 %v6258_v48, %v6258_v48  ;;  %v6341_v32 = vunpack.c.l.b16 %v6312_v62 }
 0x843   : > { %v6438_v34 = vrot.slane %v6312_v62, %v16529_v10  ;;  %v6274_v43 = vmax.f32 %v6272_v29, %v6273_v28  ;;  %v6282_v24 = vrot.slane %v6281_v17, 2  ;;  %v6291_v38 = vrot.slane %v6290_v55, 2 }
 0x844   : > { %v6315_v15 = vpack.c.bf16 %v6267_v23, %v6267_v23  ;;  %v6342_v16 = vunpack.c.l.b16 %v6313_v41  ;;  %v6343_v7 = vunpack.c.l.b16 %v6314_v20  ;;  %v6445_v63 = vrot.slane %v6313_v41, %v16529_v10 }
 0x845   : > { %v6452_v25 = vrot.slane %v6314_v20, %v16529_v10  ;;  %v6550_v14 = vrot.slane %v6438_v34, %v16529_v10  ;;  %v6275_v3 = vrot.slane %v6274_v43, 1  ;;  %v6283_v4 = vmax.f32 %v6281_v17, %v6282_v24 }
 0x846   : > { %v6351_v21 = vsel %vm3503_vm12, %v6342_v16, %v6341_v32  ;;  %v6459_v47 = vrot.slane %v6315_v15, %v16529_v10  ;;  %v6557_v50 = vrot.slane %v6445_v63, %v16529_v10  ;;  %v6682_v5 = vunpack.c.l.b16 %v6315_v15 }
 0x847   : > { %v6352_v45 = vsel %vm3505_vm14, %v6343_v7, %v6351_v21  ;;  %v6564_v59 = vrot.slane %v6452_v25, %v16529_v10  ;;  %v6608_v54 = vunpack.c.l.b16 %v6550_v14  ;;  %v6688_v30 = vsel %vm3735_vm13, %v6343_v7, %v6342_v16  ;;  %v12616_v7 = vld [vmem:[#allocation5] ss:$6 sps:$4 sm:$0xff]  }
 0x848   : > { %v6357_v36 = vpack.c.b16 %v6352_v45, %v6352_v45  ;;  %v6571_v0 = vrot.slane %v6459_v47, %v16529_v10  ;;  %v6609_v53 = vunpack.c.l.b16 %v6557_v50  ;;  %v6689_v42 = vsel %vm3503_vm12, %v6682_v5, %v6688_v30 }
 0x849   : > { %v6610_v61 = vunpack.c.l.b16 %v6564_v59  ;;  %v6694_v56 = vpack.c.b16 %v6689_v42, %v6689_v42  ;;  %v6276_v39 = vmax.f32 %v6274_v43, %v6275_v3  ;;  %v6284_v60 = vrot.slane %v6283_v4, 1  ;;  %v12583_v3 = vld [vmem:[#allocation5 + $0x6] ss:$6 sps:$4 sm:$0xff]  }
 0x84a   : > { %v6365_v8 = vsel %vm14145_vm9, 0, %v6357_v36  ;;  %v6611_v37 = vunpack.c.l.b16 %v6571_v0  ;;  %v6628_v40 = vrot.slane %v6609_v53, 7  ;;  %v6292_v18 = vmax.f32 %v6290_v55, %v6291_v38 }
 0x84b   : > { %6370 = vst [vmem:[#allocation5 + $0x12] sm:$0x3] %v6365_v8  ;;  %v6630_v31 = vrot.slane %v6610_v61, 6  ;;  %v6705_v35 = vsel %vm15945_vm0, %v6694_v56, 0  ;;  %v6285_v27 = vmax.f32 %v6283_v4, %v6284_v60  ;;  %v6316_v52 = vpack.c.bf16 %v6276_v39, %v6276_v39  ;;  %v12589_v60 = vld [vmem:[#allocation21 + $0x280] ss:$8 sps:$4 sm:$0xff]  }
 0x84c   : > { %v6629_v6 = vsel %vm3735_vm13, %v6628_v40, %v6608_v54  ;;  %v6632_v58 = vrot.slane %v6611_v37, 5  ;;  %6709 = vst [vmem:[#allocation5 + $0x16] sm:$0x3] %v6705_v35  ;;  %v6293_v48 = vrot.slane %v6292_v18, 1  ;;  %v6299_v33 = vmax.f32 %v6297_v12, %v6298_v46  ;;  %v12594_v46 = vld [vmem:[#allocation21 + $0x294] ss:$8 sps:$4 sm:$0xff]  }
 0x84d   : > { %v6631_v57 = vsel %vm3503_vm12, %v6630_v31, %v6629_v6  ;;  %v6317_v62 = vpack.c.bf16 %v6285_v27, %v6285_v27  ;;  %v6466_v9 = vrot.slane %v6316_v52, %v16529_v10  ;;  %v6344_v22 = vunpack.c.l.b16 %v6316_v52  ;;  %v12592_v27 = vld [vmem:[#allocation21 + $0x290] ss:$8 sps:$4 sm:$0xff]  }
 0x84e   : > { %v6633_v13 = vsel %vm3505_vm14, %v6632_v58, %v6631_v57  ;;  %v6294_v11 = vmax.f32 %v6292_v18, %v6293_v48  ;;  %v6300_v2 = vrot.slane %v6299_v33, 2  ;;  %v16056_v36 = vrot.slane %v12616_v7, %v16529_v10  ;;  %v16077_v52 = vld [vmem:[#allocation2] sm:$0xff]  ;;  %v12597_v48 = vld [vmem:[#allocation21 + $0x2a4] ss:$8 sps:$4 sm:$0xff]  }
 0x84f   : > { %v6642_v1 = vpack.c.b16 %v6633_v13, %v6633_v13  ;;  %v6345_v44 = vunpack.c.l.b16 %v6317_v62  ;;  %v6473_v23 = vrot.slane %v6317_v62, %v16529_v10  ;;  %v6578_v34 = vrot.slane %v6466_v9, %v16529_v10  ;;  %v12600_v62 = vld [vmem:[#allocation21 + $0x2b4] ss:$8 sps:$4 sm:$0xff]   ;;  %v12598_v9 = vld [vmem:[#allocation21 + $0x2b0] ss:$8 sps:$4 sm:$0xff]  }
 0x850   : > { %v6301_v41 = vmax.f32 %v6299_v33, %v6300_v2  ;;  %v6318_v20 = vpack.c.bf16 %v6294_v11, %v6294_v11  ;;  %v6830_v58 = vrot.slane %v12583_v3, %v16529_v10  ;;  %v12595_v33 = vld [vmem:[#allocation21 + $0x2a0] ss:$8 sps:$4 sm:$0xff]   ;;  %v12603_v11 = vld [vmem:[#allocation21 + $0x2c4] ss:$8 sps:$4 sm:$0xff]  }
 0x851   : > { %11267 = vst.sshfl [vmem:[#allocation5 + $0x14] sm:$0x3 pattern:$0x76325410] %v6642_v1  ;;  %v6353_v32 = vsel %vm3503_vm12, %v6345_v44, %v6344_v22  ;;  %v6585_v29 = vrot.slane %v6473_v23, %v16529_v10  ;;  %v6612_v47 = vunpack.c.l.b16 %v6578_v34  ;;  %v12601_v2 = vld [vmem:[#allocation21 + $0x2c0] ss:$8 sps:$4 sm:$0xff]  }
 0x852   : > { %v6302_v49 = vrot.slane %v6301_v41, 1  ;;  %v6346_v26 = vunpack.c.l.b16 %v6318_v20  ;;  %v6480_v15 = vrot.slane %v6318_v20, %v16529_v10  ;;  %v12606_v22 = vld [vmem:[#allocation21 + $0x2d4] ss:$8 sps:$4 sm:$0xff]   ;;  %v12609_v23 = vld [vmem:[#allocation21 + $0x2e4] ss:$8 sps:$4 sm:$0xff]  }
 0x853   : > { %v6613_v16 = vunpack.c.l.b16 %v6585_v29  ;;  %v12585_v34 = vld [vmem:[#allocation5 + $0xa] ss:$6 sps:$4 sm:$0x33]   ;;  %v12610_v29 = vld [vmem:[#allocation21 + $0x2f0] ss:$8 sps:$4 sm:$0xff]  }
 0x854   : > { %v6303_v63 = vmax.f32 %v6301_v41, %v6302_v49  ;;  %v6354_v25 = vsel %vm3505_vm14, %v6346_v26, %v6353_v32  ;;  %v6592_v14 = vrot.slane %v6480_v15, %v16529_v10  ;;  %v6690_v28 = vsel %vm3735_vm13, %v6346_v26, %v6345_v44  ;;  %v12604_v44 = vld [vmem:[#allocation21 + $0x2d0] ss:$8 sps:$4 sm:$0xff]   ;;  %v12607_v41 = vld [vmem:[#allocation21 + $0x2e0] ss:$8 sps:$4 sm:$0xff]   ;;  %v12612_v32 = vld [vmem:[#allocation21 + $0x2f4] ss:$8 sps:$4 sm:$0xff]  }
 0x855   : > { %v6358_v21 = vpack.c.b16 %v6354_v25, %v6354_v25  ;;  %v6634_v50 = vrot.slane %v6613_v16, 7  ;;  %v12615_v26 = vld [vmem:[#allocation21 + $0x4] ss:$8 sps:$4 sm:$0xff]   ;;  %v6837_v15 = vrot.slane %v12585_v34, %v16529_v10  ;;  %v12613_v16 = vld [vmem:[#allocation21] ss:$8 sps:$4 sm:$0xff]  }
 0x856   : > { %v6319_v5 = vpack.c.bf16 %v6303_v63, %v6303_v63  ;;  %v6614_v45 = vunpack.c.l.b16 %v6592_v14  ;;  %v12624_v63 = vld [vmem:[#allocation21 + $0x14] ss:$8 sps:$4 sm:$0xff]   ;;  %v12622_v14 = vld [vmem:[#allocation21 + $0x10] ss:$8 sps:$4 sm:$0xff]   ;;  %v12655_v3 = vld [vmem:[#allocation21 + $0xc0] ss:$8 sps:$4 sm:$0xff]  }
 0x857   : > { %v6366_v54 = vsel %vm14145_vm9, 0, %v6358_v21  ;;  %v6635_v30 = vsel %vm3735_vm13, %v6634_v50, %v6612_v47  ;;  %v12630_v21 = vld [vmem:[#allocation21 + $0x34] ss:$8 sps:$4 sm:$0xff]   ;;  %v12628_v47 = vld [vmem:[#allocation21 + $0x30] ss:$8 sps:$4 sm:$0xff]  }
 0x858   : > { %v12619_v17 = vld [vmem:[#allocation5 + $0xc] ss:$6 sps:$4 sm:$0xff]   ;;  %6371 = vst [vmem:[#allocation5 + $0x18] sm:$0x3] %v6366_v54  ;;  %v6487_v0 = vrot.slane %v6319_v5, %v16529_v10  ;;  %v6636_v53 = vrot.slane %v6614_v45, 6  ;;  %v6683_v42 = vunpack.c.l.b16 %v6319_v5 }
 0x859   : > { %v16050_v59 = vrot.slane %v12619_v17, %v16529_v10  ;;  %v12694_v6 = vld [vmem:[#allocation5 + $0xc] ss:$6 sps:$4 sm:$0xff]   ;;  %v12636_v45 = vld [vmem:[#allocation21 + $0x54] ss:$8 sps:$4 sm:$0xff]  }
 0x85a   : > { %v6599_v56 = vrot.slane %v6487_v0, %v16529_v10  ;;  %v6637_v43 = vsel %vm3503_vm12, %v6636_v53, %v6635_v30  ;;  %v6691_v24 = vsel %vm3503_vm12, %v6683_v42, %v6690_v28  ;;  %v16070_v13 = vrot.slane %v12694_v6, %v16529_v10  ;;  %v12627_v28 = vld [vmem:[#allocation21 + $0x24] ss:$8 sps:$4 sm:$0xff]   ;;  %v12625_v17 = vld [vmem:[#allocation21 + $0x20] ss:$8 sps:$4 sm:$0xff]   ;;  %v12634_v54 = vld [vmem:[#allocation21 + $0x50] ss:$8 sps:$4 sm:$0xff]  }
 0x85b   : > { %v7220_v61 = vcombine.low %v16056_v36, %v16050_v59  ;;  %v6695_v8 = vpack.c.b16 %v6691_v24, %v6691_v24  ;;  %v7221_v25 = vcombine.high %v16056_v36, %v16050_v59  ;;  %v12633_v50 = vld [vmem:[#allocation21 + $0x44] ss:$8 sps:$4 sm:$0xff]   ;;  %v12631_v5 = vld [vmem:[#allocation21 + $0x40] ss:$8 sps:$4 sm:$0xff]   ;;  %v12642_v53 = vld [vmem:[#allocation21 + $0x74] ss:$8 sps:$4 sm:$0xff]  }
 0x85c   : > { %v6615_v37 = vunpack.c.l.b16 %v6599_v56  ;;  %v12639_v30 = vld [vmem:[#allocation21 + $0x64] ss:$8 sps:$4 sm:$0xff]   ;;  %v12637_v0 = vld [vmem:[#allocation21 + $0x60] ss:$8 sps:$4 sm:$0xff]   ;;  %v12640_v42 = vld [vmem:[#allocation21 + $0x70] ss:$8 sps:$4 sm:$0xff]  }
 0x85d   : > { %v6706_v40 = vsel %vm15945_vm0, %v6695_v8, 0  ;;  %v12645_v56 = vld [vmem:[#allocation21 + $0x84] ss:$8 sps:$4 sm:$0xff]   ;;  %v12648_v24 = vld [vmem:[#allocation21 + $0x94] ss:$8 sps:$4 sm:$0xff]  }
 0x85e   : > { %v6638_v55 = vrot.slane %v6615_v37, 5  ;;  %6710 = vst [vmem:[#allocation5 + $0x1c] sm:$0x3] %v6706_v40  ;;  %v12646_v8 = vld [vmem:[#allocation21 + $0x90] ss:$8 sps:$4 sm:$0xff]  }
 0x85f   : > { %v12651_v37 = vld [vmem:[#allocation21 + $0xa4] ss:$8 sps:$4 sm:$0xff]   ;;  %v12649_v40 = vld [vmem:[#allocation21 + $0xa0] ss:$8 sps:$4 sm:$0xff]   ;;  %v12658_v6 = vld [vmem:[#allocation21 + $0xd0] ss:$8 sps:$4 sm:$0xff]  }
 0x860   : > { %v6639_v31 = vsel %vm3505_vm14, %v6638_v55, %v6637_v43  ;;  %v12643_v43 = vld [vmem:[#allocation21 + $0x80] ss:$8 sps:$4 sm:$0xff]   ;;  %v12654_v55 = vld [vmem:[#allocation21 + $0xb4] ss:$8 sps:$4 sm:$0xff]   ;;  %v12676_v36 = vld [vmem:[#allocation21 + $0x130] ss:$8 sps:$4 sm:$0xff]  }
 0x861   : > { %v6643_v35 = vpack.c.b16 %v6639_v31, %v6639_v31  ;;  %v12652_v31 = vld [vmem:[#allocation21 + $0xb0] ss:$8 sps:$4 sm:$0xff]   ;;  %v12784_v59 = vld [vmem:[#allocation24 + $0x520] ss:$8 sps:$4 sm:$0xff]  }
 0x862   : > { %v12798_v34 = vld [vmem:[#allocation24 + $0x544] ss:$8 sps:$4 sm:$0xff]  }
 0x863   : > { %11268 = vst.sshfl [vmem:[#allocation5 + $0x1a] sm:$0x3 pattern:$0x76325410] %v6643_v35  ;;  %v12657_v35 = vld [vmem:[#allocation21 + $0xc4] ss:$8 sps:$4 sm:$0xff]  }
 0x865   : > { %v12588_v20 = vld [vmem:[#allocation5 + $0x16] ss:$6 sps:$4 sm:$0x33]  }
 0x866   : > { %v6851_v49 = vrot.slane %v12588_v20, %v16529_v10  ;;  %v12679_v20 = vld [vmem:[#allocation21 + $0x140] ss:$8 sps:$4 sm:$0xff]  }
 0x868   : > { %v6854_v7 = vcombine.low %v6837_v15, %v6851_v49  ;;  %v12682_v49 = vld [vmem:[#allocation21 + $0x150] ss:$8 sps:$4 sm:$0xff]  }
 0x869   : > { %v12804_v15 = vld [vmem:[#allocation24 + $0x554] ss:$8 sps:$4 sm:$0xff]  }
 0x86a   : > { %v12586_v4 = vld [vmem:[#allocation5 + $0x12] ss:$6 sps:$4 sm:$0xff]  }
 0x86b   : > { %v6844_v38 = vrot.slane %v12586_v4, %v16529_v10  ;;  %v12697_v12 = vld [vmem:[#allocation5 + $0x18] ss:$6 sps:$4 sm:$0xff]  }
 0x86c   : > { %v16073_v18 = vrot.slane %v12697_v12, %v16529_v10  ;;  %v12660_v4 = vld [vmem:[#allocation21 + $0xd4] ss:$8 sps:$4 sm:$0xff]  }
 0x86d   : > { %v6852_v57 = vcombine.low %v6830_v58, %v6844_v38  ;;  %v6853_v39 = vcombine.high %v6830_v58, %v6844_v38  ;;  %v12663_v58 = vld [vmem:[#allocation21 + $0xe4] ss:$8 sps:$4 sm:$0xff]   ;;  %v12661_v38 = vld [vmem:[#allocation21 + $0xe0] ss:$8 sps:$4 sm:$0xff]   ;;  %v12666_v12 = vld [vmem:[#allocation21 + $0xf4] ss:$8 sps:$4 sm:$0xff]  }
 0x86e   : > { %v7642_v1 = vcombine.low %v16070_v13, %v16073_v18 }
 0x86f   : > { %7130 = vmatprep.mubr.bf16.mxu1 %v6853_v39  ;;  %v12669_v39 = vld [vmem:[#allocation21 + $0x104] ss:$8 sps:$4 sm:$0xff]  }
 0x870   : > { %7131 = vmatmul.mubr.bf16.vlgmr.msra.gmra.mrb[152].mxu1 %v6852_v57  ;;  %v12664_v57 = vld [vmem:[#allocation21 + $0xf0] ss:$8 sps:$4 sm:$0xff]  }
 0x871   : > { %7142 = vmatpush1.bf16.msra.mxu1 %v12589_v60  ;;  %7173 = vmatprep.mubr.bf16.mxu1 %v16077_v52  ;;  %v12667_v60 = vld [vmem:[#allocation21 + $0x100] ss:$8 sps:$4 sm:$0xff]  }
 0x872   : > { %7143 = vmatprep.subr.bf16.mxu1 %v12594_v46  ;;  %v12672_v46 = vld [vmem:[#allocation21 + $0x114] ss:$8 sps:$4 sm:$0xff]  }
 0x875   : > { %7144 = vmatpush1.bf16.msra.mxu1 %v12592_v27  ;;  %v12772_v27 = vld [vmem:[#allocation24 + $0x500] ss:$8 sps:$4 sm:$0xff]  }
 0x876   : > { %7145 = vmatprep.subr.bf16.mxu1 %v12597_v48  ;;  %v12670_v48 = vld [vmem:[#allocation21 + $0x110] ss:$8 sps:$4 sm:$0xff]  }
 0x879   : > { %7146 = vmatpush1.bf16.msra.mxu1 %v12595_v33  ;;  %v12774_v33 = vld [vmem:[#allocation24 + $0x504] ss:$8 sps:$4 sm:$0xff]  }
 0x87a   : > { %7147 = vmatprep.subr.bf16.mxu1 %v12600_v62  ;;  %v12675_v62 = vld [vmem:[#allocation21 + $0x124] ss:$8 sps:$4 sm:$0xff]   ;;  %9123 = vmatprep.subr.bf16.mxu0 %v12774_v33 }
 0x87b   : > { %9124 = vmatpush1.bf16.msra.mxu0 %v12772_v27  ;;  %v12732_v27 = vld [vmem:[#allocation21 + $0x3b4] ss:$8 sps:$4 sm:$0xff]   ;;  %v12735_v33 = vld [vmem:[#allocation21 + $0x3c4] ss:$8 sps:$4 sm:$0xff]  }
 0x87d   : > { %7148 = vmatpush1.bf16.msra.mxu1 %v12598_v9  ;;  %v12780_v9 = vld [vmem:[#allocation24 + $0x514] ss:$8 sps:$4 sm:$0xff]  }
 0x87e   : > { %7149 = vmatprep.subr.bf16.mxu1 %v12603_v11  ;;  %v12778_v11 = vld [vmem:[#allocation24 + $0x510] ss:$8 sps:$4 sm:$0xff]   ;;  %9125 = vmatprep.subr.bf16.mxu0 %v12780_v9 }
 0x87f   : > { %9126 = vmatpush1.bf16.msra.mxu0 %v12778_v11  ;;  %v12738_v9 = vld [vmem:[#allocation21 + $0x3d4] ss:$8 sps:$4 sm:$0xff]   ;;  %v12736_v11 = vld [vmem:[#allocation21 + $0x3d0] ss:$8 sps:$4 sm:$0xff]  }
 0x881   : > { %7150 = vmatpush1.bf16.msra.mxu1 %v12601_v2  ;;  %v12673_v2 = vld [vmem:[#allocation21 + $0x120] ss:$8 sps:$4 sm:$0xff]  }
 0x882   : > { %7151 = vmatprep.subr.bf16.mxu1 %v12606_v22  ;;  %v12678_v22 = vld [vmem:[#allocation21 + $0x134] ss:$8 sps:$4 sm:$0xff]  }
 0x885   : > { %7152 = vmatpush1.bf16.msra.mxu1 %v12604_v44  ;;  %v12786_v44 = vld [vmem:[#allocation24 + $0x524] ss:$8 sps:$4 sm:$0xff]  }
 0x886   : > { %7153 = vmatprep.subr.bf16.mxu1 %v12609_v23  ;;  %9127 = vmatprep.subr.bf16.mxu0 %v12786_v44  ;;  %v12792_v23 = vld [vmem:[#allocation24 + $0x534] ss:$8 sps:$4 sm:$0xff]  }
 0x887   : > { %9128 = vmatpush1.bf16.msra.mxu0 %v12784_v59  ;;  %v12744_v44 = vld [vmem:[#allocation21 + $0x3f4] ss:$8 sps:$4 sm:$0xff]   ;;  %v12742_v59 = vld [vmem:[#allocation21 + $0x3f0] ss:$8 sps:$4 sm:$0xff]  }
 0x888   : > { %9129 = vmatprep.subr.bf16.mxu0 %v12792_v23  ;;  %v12750_v23 = vld [vmem:[#allocation21 + $0x414] ss:$8 sps:$4 sm:$0xff]  }
 0x889   : > { %7154 = vmatpush1.bf16.msra.mxu1 %v12607_v41  ;;  %v12790_v41 = vld [vmem:[#allocation24 + $0x530] ss:$8 sps:$4 sm:$0xff]  }
 0x88a   : > { %7155 = vmatprep.subr.bf16.mxu1 %v12612_v32  ;;  %v12684_v32 = vld [vmem:[#allocation21 + $0x154] ss:$8 sps:$4 sm:$0xff]  }
 0x88b   : > { %9130 = vmatpush1.bf16.msra.mxu0 %v12790_v41  ;;  %v12748_v41 = vld [vmem:[#allocation21 + $0x410] ss:$8 sps:$4 sm:$0xff]  }
 0x88c   : > { %9131 = vmatprep.subr.bf16.mxu0 %v12798_v34  ;;  %v12756_v34 = vld [vmem:[#allocation21 + $0x434] ss:$8 sps:$4 sm:$0xff]  }
 0x88d   : > { %7156 = vmatpush1.bf16.msra.mxu1 %v12610_v29  ;;  %v12796_v29 = vld [vmem:[#allocation24 + $0x540] ss:$8 sps:$4 sm:$0xff]  }
 0x88e   : > { %7466 = vmatprep.subr.bf16.mxu1 %v12615_v26  ;;  %v12687_v26 = vld [vmem:[#allocation21 + $0x164] ss:$8 sps:$4 sm:$0xff]  }
 0x88f   : > { %9132 = vmatpush1.bf16.msra.mxu0 %v12796_v29  ;;  %v12754_v29 = vld [vmem:[#allocation21 + $0x430] ss:$8 sps:$4 sm:$0xff]  }
 0x890   : > { %7174 = vmatmul.mubr.bf16.vlgmr.msra.gmra.mrb[152].mxu1 %v6854_v7  ;;  %v12621_v7 = vld [vmem:[#allocation5 + $0x10] ss:$6 sps:$4 sm:$0x33]   ;;  %9133 = vmatprep.subr.bf16.mxu0 %v12804_v15  ;;  %v12762_v15 = vld [vmem:[#allocation21 + $0x454] ss:$8 sps:$4 sm:$0xff]  }
 0x891   : > { %7467 = vmatpush1.bf16.msra.mxu1 %v12613_v16  ;;  %7498 = vmatprep.mubr.bf16.mxu1 %v7221_v25  ;;  %v12802_v16 = vld [vmem:[#allocation24 + $0x550] ss:$8 sps:$4 sm:$0xff]  }
 0x892   : > { %7468 = vmatprep.subr.bf16.mxu1 %v12624_v63  ;;  %v12685_v63 = vld [vmem:[#allocation21 + $0x160] ss:$8 sps:$4 sm:$0xff]   ;;  %v12690_v25 = vld [vmem:[#allocation21 + $0x174] ss:$8 sps:$4 sm:$0xff]  }
 0x893   : > { %9134 = vmatpush1.bf16.msra.mxu0 %v12802_v16  ;;  %v12699_v16 = vld [vmem:[#allocation5 + $0x1c] ss:$6 sps:$4 sm:$0x33]  }
 0x895   : > { %7469 = vmatpush1.bf16.msra.mxu1 %v12622_v14  ;;  %v12810_v14 = vld [vmem:[#allocation24 + $0x564] ss:$8 sps:$4 sm:$0xff]  }
 0x896   : > { %7470 = vmatprep.subr.bf16.mxu1 %v12627_v28  ;;  %v12618_v28 = vld [vmem:[#allocation5 + $0x4] ss:$6 sps:$4 sm:$0x33]   ;;  %9135 = vmatprep.subr.bf16.mxu0 %v12810_v14  ;;  %v7641_v14 = vrot.slane %v12699_v16, %v16529_v10 }
 0x899   : > { %7471 = vmatpush1.bf16.msra.mxu1 %v12625_v17  ;;  %v12808_v17 = vld [vmem:[#allocation24 + $0x560] ss:$8 sps:$4 sm:$0xff]  }
 0x89a   : > { %7472 = vmatprep.subr.bf16.mxu1 %v12630_v21  ;;  %v12688_v21 = vld [vmem:[#allocation21 + $0x170] ss:$8 sps:$4 sm:$0xff]   ;;  %9136 = vmatpush1.bf16.msra.mxu0 %v12808_v17 }
 0x89d   : > { %7473 = vmatpush1.bf16.msra.mxu1 %v12628_v47  ;;  %v7219_v47 = vrot.slane %v12621_v7, %v16529_v10  ;;  %v12768_v7 = vld [vmem:[#allocation21 + $0x474] ss:$8 sps:$4 sm:$0xff]  }
 0x89e   : > { %7474 = vmatprep.subr.bf16.mxu1 %v12633_v50  ;;  %v12693_v50 = vld [vmem:[#allocation21 + $0x304] ss:$8 sps:$4 sm:$0xff]  }
 0x8a1   : > { %7475 = vmatpush1.bf16.msra.mxu1 %v12631_v5  ;;  %v12816_v5 = vld [vmem:[#allocation24 + $0x574] ss:$8 sps:$4 sm:$0xff]  }
 0x8a2   : > { %7476 = vmatprep.subr.bf16.mxu1 %v12636_v45  ;;  %v7205_v45 = vrot.slane %v12618_v28, %v16529_v10  ;;  %9137 = vmatprep.subr.bf16.mxu0 %v12816_v5  ;;  %v12771_v28 = vld [vmem:[#allocation24 + $0x304] ss:$8 sps:$4 sm:$0xff]   ;;  %v12775_v5 = vld [vmem:[#allocation24 + $0x310] ss:$8 sps:$4 sm:$0xff]  }
 0x8a5   : > { %7477 = vmatpush1.bf16.msra.mxu1 %v12634_v54  ;;  %v12814_v54 = vld [vmem:[#allocation24 + $0x570] ss:$8 sps:$4 sm:$0xff]  }
 0x8a6   : > { %7478 = vmatprep.subr.bf16.mxu1 %v12639_v30  ;;  %v12691_v30 = vld [vmem:[#allocation21 + $0x300] ss:$8 sps:$4 sm:$0xff]   ;;  %9138 = vmatpush1.bf16.msra.mxu0 %v12814_v54 }
 0x8a7   : > { %v12781_v54 = vld [vmem:[#allocation24 + $0x320] ss:$8 sps:$4 sm:$0xff]  }
 0x8a9   : > { %7479 = vmatpush1.bf16.msra.mxu1 %v12637_v0  ;;  %v7222_v0 = vcombine.low %v7205_v45, %v7219_v47  ;;  %v12783_v45 = vld [vmem:[#allocation24 + $0x324] ss:$8 sps:$4 sm:$0xff]  }
 0x8aa   : > { %7480 = vmatprep.subr.bf16.mxu1 %v12642_v53  ;;  %v12702_v53 = vld [vmem:[#allocation21 + $0x314] ss:$8 sps:$4 sm:$0xff]  }
 0x8ad   : > { %7481 = vmatpush1.bf16.msra.mxu1 %v12640_v42  ;;  %v7643_v42 = vcombine.high %v16070_v13, %v16073_v18  ;;  %v12760_v13 = vld [vmem:[#allocation21 + $0x450] ss:$8 sps:$4 sm:$0xff]   ;;  %v12765_v18 = vld [vmem:[#allocation21 + $0x464] ss:$8 sps:$4 sm:$0xff]  }
 0x8ae   : > { %7482 = vmatprep.subr.bf16.mxu1 %v12645_v56  ;;  %v12700_v56 = vld [vmem:[#allocation21 + $0x310] ss:$8 sps:$4 sm:$0xff]  }
 0x8b1   : > { %7483 = vmatpush1.bf16.msra.mxu1 %v12643_v43  ;;  %v12705_v43 = vld [vmem:[#allocation21 + $0x324] ss:$8 sps:$4 sm:$0xff]  }
 0x8b2   : > { %7484 = vmatprep.subr.bf16.mxu1 %v12648_v24  ;;  %v12703_v24 = vld [vmem:[#allocation21 + $0x320] ss:$8 sps:$4 sm:$0xff]  }
 0x8b5   : > { %7485 = vmatpush1.bf16.msra.mxu1 %v12646_v8  ;;  %v12708_v8 = vld [vmem:[#allocation21 + $0x334] ss:$8 sps:$4 sm:$0xff]  }
 0x8b6   : > { %7486 = vmatprep.subr.bf16.mxu1 %v12651_v37  ;;  %v12706_v37 = vld [vmem:[#allocation21 + $0x330] ss:$8 sps:$4 sm:$0xff]  }
 0x8b9   : > { %7487 = vmatpush1.bf16.msra.mxu1 %v12649_v40  ;;  %v12711_v40 = vld [vmem:[#allocation21 + $0x344] ss:$8 sps:$4 sm:$0xff]  }
 0x8ba   : > { %7488 = vmatprep.subr.bf16.mxu1 %v12654_v55  ;;  %v12709_v55 = vld [vmem:[#allocation21 + $0x340] ss:$8 sps:$4 sm:$0xff]  }
 0x8bd   : > { %7489 = vmatpush1.bf16.msra.mxu1 %v12652_v31  ;;  %v12714_v31 = vld [vmem:[#allocation21 + $0x354] ss:$8 sps:$4 sm:$0xff]  }
 0x8be   : > { %7490 = vmatprep.subr.bf16.mxu1 %v12657_v35  ;;  %v12712_v35 = vld [vmem:[#allocation21 + $0x350] ss:$8 sps:$4 sm:$0xff]  }
 0x8c1   : > { %7491 = vmatpush1.bf16.msra.mxu1 %v12655_v3  ;;  %v12717_v3 = vld [vmem:[#allocation21 + $0x364] ss:$8 sps:$4 sm:$0xff]  }
 0x8c2   : > { %7492 = vmatprep.subr.bf16.mxu1 %v12660_v4  ;;  %v12715_v4 = vld [vmem:[#allocation21 + $0x360] ss:$8 sps:$4 sm:$0xff]  }
 0x8c5   : > { %7493 = vmatpush1.bf16.msra.mxu1 %v12658_v6  ;;  %v12720_v6 = vld [vmem:[#allocation21 + $0x374] ss:$8 sps:$4 sm:$0xff]  }
 0x8c6   : > { %7494 = vmatprep.subr.bf16.mxu1 %v12663_v58  ;;  %v12718_v58 = vld [vmem:[#allocation21 + $0x370] ss:$8 sps:$4 sm:$0xff]  }
 0x8c9   : > { %7495 = vmatpush1.bf16.msra.mxu1 %v12661_v38  ;;  %v12723_v38 = vld [vmem:[#allocation21 + $0x384] ss:$8 sps:$4 sm:$0xff]  }
 0x8ca   : > { %7496 = vmatprep.subr.bf16.mxu1 %v12666_v12  ;;  %v12721_v12 = vld [vmem:[#allocation21 + $0x380] ss:$8 sps:$4 sm:$0xff]  }
 0x8cd   : > { %7497 = vmatpush1.bf16.msra.mxu1 %v12664_v57  ;;  %v12726_v57 = vld [vmem:[#allocation21 + $0x394] ss:$8 sps:$4 sm:$0xff]  }
 0x8ce   : > { %7509 = vmatprep.subr.bf16.mxu1 %v12669_v39  ;;  %v12724_v39 = vld [vmem:[#allocation21 + $0x390] ss:$8 sps:$4 sm:$0xff]  }
 0x8d0   : > { %7499 = vmatmul.mubr.bf16.vlgmr.msra.gmra.mrb[152].mxu1 %v7220_v61  ;;  %v12681_v61 = vld [vmem:[#allocation21 + $0x144] ss:$8 sps:$4 sm:$0xff]  }
 0x8d1   : > { %7510 = vmatpush1.bf16.msra.mxu1 %v12667_v60  ;;  %7541 = vmatprep.mubr.bf16.mxu1 %v16077_v52  ;;  %v12729_v60 = vld [vmem:[#allocation21 + $0x3a4] ss:$8 sps:$4 sm:$0xff]  }
 0x8d2   : > { %7511 = vmatprep.subr.bf16.mxu1 %v12672_v46  ;;  %v12727_v46 = vld [vmem:[#allocation21 + $0x3a0] ss:$8 sps:$4 sm:$0xff]  }
 0x8d5   : > { %7512 = vmatpush1.bf16.msra.mxu1 %v12670_v48  ;;  %v12730_v48 = vld [vmem:[#allocation21 + $0x3b0] ss:$8 sps:$4 sm:$0xff]  }
 0x8d6   : > { %7513 = vmatprep.subr.bf16.mxu1 %v12675_v62  ;;  %v12733_v62 = vld [vmem:[#allocation21 + $0x3c0] ss:$8 sps:$4 sm:$0xff]  }
 0x8d9   : > { %7514 = vmatpush1.bf16.msra.mxu1 %v12673_v2  ;;  %v12741_v2 = vld [vmem:[#allocation21 + $0x3e4] ss:$8 sps:$4 sm:$0xff]  }
 0x8da   : > { %7515 = vmatprep.subr.bf16.mxu1 %v12678_v22  ;;  %v12739_v22 = vld [vmem:[#allocation21 + $0x3e0] ss:$8 sps:$4 sm:$0xff]  }
 0x8dd   : > { %7516 = vmatpush1.bf16.msra.mxu1 %v12676_v36  ;;  %v12747_v36 = vld [vmem:[#allocation21 + $0x404] ss:$8 sps:$4 sm:$0xff]  }
 0x8de   : > { %7517 = vmatprep.subr.bf16.mxu1 %v12681_v61  ;;  %v12745_v61 = vld [vmem:[#allocation21 + $0x400] ss:$8 sps:$4 sm:$0xff]  }
 0x8e1   : > { %7518 = vmatpush1.bf16.msra.mxu1 %v12679_v20  ;;  %v12753_v20 = vld [vmem:[#allocation21 + $0x424] ss:$8 sps:$4 sm:$0xff]  }
 0x8e2   : > { %7519 = vmatprep.subr.bf16.mxu1 %v12684_v32  ;;  %v12751_v32 = vld [vmem:[#allocation21 + $0x420] ss:$8 sps:$4 sm:$0xff]  }
 0x8e5   : > { %7520 = vmatpush1.bf16.msra.mxu1 %v12682_v49  ;;  %v12759_v49 = vld [vmem:[#allocation21 + $0x444] ss:$8 sps:$4 sm:$0xff]  }
 0x8e6   : > { %7521 = vmatprep.subr.bf16.mxu1 %v12687_v26  ;;  %v12757_v26 = vld [vmem:[#allocation21 + $0x440] ss:$8 sps:$4 sm:$0xff]  }
 0x8e9   : > { %7522 = vmatpush1.bf16.msra.mxu1 %v12685_v63  ;;  %v12696_v63 = vld [vmem:[#allocation5 + $0x10] ss:$6 sps:$4 sm:$0x33]  }
 0x8ea   : > { %7523 = vmatprep.subr.bf16.mxu1 %v12690_v25  ;;  %v12766_v25 = vld [vmem:[#allocation21 + $0x470] ss:$8 sps:$4 sm:$0xff]   ;;  %v7627_v17 = vrot.slane %v12696_v63, %v16529_v10 }
 0x8ec   : > { %v7644_v47 = vcombine.low %v7627_v17, %v7641_v14 }
 0x8ed   : > { %7524 = vmatpush1.bf16.msra.mxu1 %v12688_v21  ;;  %v12769_v21 = vld [vmem:[#allocation24 + $0x300] ss:$8 sps:$4 sm:$0xff]  }
 0x8ee   : > { %7888 = vmatprep.subr.bf16.mxu1 %v12693_v50  ;;  %v12777_v50 = vld [vmem:[#allocation24 + $0x314] ss:$8 sps:$4 sm:$0xff]  }
 0x8f0   : > { %7542 = vmatmul.mubr.bf16.vlgmr.msra.gmra.mrb[152].mxu1 %v7222_v0  ;;  %v12787_v0 = vld [vmem:[#allocation24 + $0x330] ss:$8 sps:$4 sm:$0xff]  }
 0x8f1   : > { %7889 = vmatpush1.bf16.msra.mxu1 %v12691_v30  ;;  %7920 = vmatprep.mubr.bf16.mxu1 %v7643_v42  ;;  %v12789_v30 = vld [vmem:[#allocation24 + $0x334] ss:$8 sps:$4 sm:$0xff]   ;;  %v12793_v42 = vld [vmem:[#allocation24 + $0x340] ss:$8 sps:$4 sm:$0xff]  }
 0x8f2   : > { %7890 = vmatprep.subr.bf16.mxu1 %v12702_v53  ;;  %v12795_v53 = vld [vmem:[#allocation24 + $0x344] ss:$8 sps:$4 sm:$0xff]  }
 0x8f5   : > { %7891 = vmatpush1.bf16.msra.mxu1 %v12700_v56  ;;  %v12801_v56 = vld [vmem:[#allocation24 + $0x354] ss:$8 sps:$4 sm:$0xff]  }
 0x8f6   : > { %7892 = vmatprep.subr.bf16.mxu1 %v12705_v43  ;;  %v12799_v43 = vld [vmem:[#allocation24 + $0x350] ss:$8 sps:$4 sm:$0xff]  }
 0x8f9   : > { %7893 = vmatpush1.bf16.msra.mxu1 %v12703_v24  ;;  %v12807_v24 = vld [vmem:[#allocation24 + $0x364] ss:$8 sps:$4 sm:$0xff]  }
 0x8fa   : > { %7894 = vmatprep.subr.bf16.mxu1 %v12708_v8  ;;  %v12805_v8 = vld [vmem:[#allocation24 + $0x360] ss:$8 sps:$4 sm:$0xff]  }
 0x8fd   : > { %7895 = vmatpush1.bf16.msra.mxu1 %v12706_v37  ;;  %v12813_v37 = vld [vmem:[#allocation24 + $0x374] ss:$8 sps:$4 sm:$0xff]  }
 0x8fe   : > { %7896 = vmatprep.subr.bf16.mxu1 %v12711_v40  ;;  %v12811_v40 = vld [vmem:[#allocation24 + $0x370] ss:$8 sps:$4 sm:$0xff]  }
 0x901   : > { %7897 = vmatpush1.bf16.msra.mxu1 %v12709_v55  ;;  %v12817_v55 = vld [vmem:[#allocation24 + $0x380] ss:$8 sps:$4 sm:$0xff]  }
 0x902   : > { %7898 = vmatprep.subr.bf16.mxu1 %v12714_v31  ;;  %v12819_v31 = vld [vmem:[#allocation24 + $0x384] ss:$8 sps:$4 sm:$0xff]  }
 0x905   : > { %7899 = vmatpush1.bf16.msra.mxu1 %v12712_v35  ;;  %v12820_v35 = vld [vmem:[#allocation24 + $0x580] ss:$8 sps:$4 sm:$0xff]  }
 0x906   : > { %7900 = vmatprep.subr.bf16.mxu1 %v12717_v3  ;;  %v12822_v3 = vld [vmem:[#allocation24 + $0x584] ss:$8 sps:$4 sm:$0xff]  }
 0x907   : > { %9139 = vmatprep.subr.bf16.mxu0 %v12822_v3 }
 0x908   : > { %9140 = vmatpush1.bf16.msra.mxu0 %v12820_v35 }
 0x909   : > { %7901 = vmatpush1.bf16.msra.mxu1 %v12715_v4  ;;  %v12825_v4 = vld [vmem:[#allocation24 + $0x394] ss:$8 sps:$4 sm:$0xff]  }
 0x90a   : > { %7902 = vmatprep.subr.bf16.mxu1 %v12720_v6  ;;  %v12828_v6 = vld [vmem:[#allocation24 + $0x594] ss:$8 sps:$4 sm:$0xff]  }
 0x90b   : > { %9141 = vmatprep.subr.bf16.mxu0 %v12828_v6 }
 0x90d   : > { %7903 = vmatpush1.bf16.msra.mxu1 %v12718_v58  ;;  %v12823_v58 = vld [vmem:[#allocation24 + $0x390] ss:$8 sps:$4 sm:$0xff]  }
 0x90e   : > { %7904 = vmatprep.subr.bf16.mxu1 %v12723_v38  ;;  %v12826_v38 = vld [vmem:[#allocation24 + $0x590] ss:$8 sps:$4 sm:$0xff]  }
 0x90f   : > { %9142 = vmatpush1.bf16.msra.mxu0 %v12826_v38 }
 0x911   : > { %7905 = vmatpush1.bf16.msra.mxu1 %v12721_v12  ;;  %v12831_v12 = vld [vmem:[#allocation24 + $0x3a4] ss:$8 sps:$4 sm:$0xff]  }
 0x912   : > { %7906 = vmatprep.subr.bf16.mxu1 %v12726_v57  ;;  %v12834_v57 = vld [vmem:[#allocation24 + $0x5a4] ss:$8 sps:$4 sm:$0xff]  }
 0x913   : > { %9143 = vmatprep.subr.bf16.mxu0 %v12834_v57 }
 0x915   : > { %7907 = vmatpush1.bf16.msra.mxu1 %v12724_v39  ;;  %v12829_v39 = vld [vmem:[#allocation24 + $0x3a0] ss:$8 sps:$4 sm:$0xff]  }
 0x916   : > { %7908 = vmatprep.subr.bf16.mxu1 %v12729_v60  ;;  %v12832_v60 = vld [vmem:[#allocation24 + $0x5a0] ss:$8 sps:$4 sm:$0xff]  }
 0x917   : > { %9144 = vmatpush1.bf16.msra.mxu0 %v12832_v60 }
 0x919   : > { %7909 = vmatpush1.bf16.msra.mxu1 %v12727_v46  ;;  %v12837_v46 = vld [vmem:[#allocation24 + $0x3b4] ss:$8 sps:$4 sm:$0xff]  }
 0x91a   : > { %7910 = vmatprep.subr.bf16.mxu1 %v12732_v27  ;;  %v12840_v27 = vld [vmem:[#allocation24 + $0x5b4] ss:$8 sps:$4 sm:$0xff]  }
 0x91b   : > { %9145 = vmatprep.subr.bf16.mxu0 %v12840_v27 }
 0x91d   : > { %7911 = vmatpush1.bf16.msra.mxu1 %v12730_v48  ;;  %v12835_v48 = vld [vmem:[#allocation24 + $0x3b0] ss:$8 sps:$4 sm:$0xff]  }
 0x91e   : > { %7912 = vmatprep.subr.bf16.mxu1 %v12735_v33  ;;  %v12838_v33 = vld [vmem:[#allocation24 + $0x5b0] ss:$8 sps:$4 sm:$0xff]  }
 0x91f   : > { %9146 = vmatpush1.bf16.msra.mxu0 %v12838_v33 }
 0x921   : > { %7913 = vmatpush1.bf16.msra.mxu1 %v12733_v62  ;;  %v12843_v62 = vld [vmem:[#allocation24 + $0x3c4] ss:$8 sps:$4 sm:$0xff]  }
 0x922   : > { %7914 = vmatprep.subr.bf16.mxu1 %v12738_v9  ;;  %v12846_v9 = vld [vmem:[#allocation24 + $0x5c4] ss:$8 sps:$4 sm:$0xff]  }
 0x923   : > { %9147 = vmatprep.subr.bf16.mxu0 %v12846_v9 }
 0x925   : > { %7915 = vmatpush1.bf16.msra.mxu1 %v12736_v11  ;;  %v12841_v11 = vld [vmem:[#allocation24 + $0x3c0] ss:$8 sps:$4 sm:$0xff]  }
 0x926   : > { %7916 = vmatprep.subr.bf16.mxu1 %v12741_v2  ;;  %v12844_v2 = vld [vmem:[#allocation24 + $0x5c0] ss:$8 sps:$4 sm:$0xff]  }
 0x927   : > { %9148 = vmatpush1.bf16.msra.mxu0 %v12844_v2 }
 0x929   : > { %7917 = vmatpush1.bf16.msra.mxu1 %v12739_v22  ;;  %v12849_v22 = vld [vmem:[#allocation24 + $0x3d4] ss:$8 sps:$4 sm:$0xff]  }
 0x92a   : > { %7918 = vmatprep.subr.bf16.mxu1 %v12744_v44  ;;  %v12852_v44 = vld [vmem:[#allocation24 + $0x5d4] ss:$8 sps:$4 sm:$0xff]  }
 0x92b   : > { %9149 = vmatprep.subr.bf16.mxu0 %v12852_v44 }
 0x92d   : > { %7919 = vmatpush1.bf16.msra.mxu1 %v12742_v59  ;;  %v12847_v59 = vld [vmem:[#allocation24 + $0x3d0] ss:$8 sps:$4 sm:$0xff]  }
 0x92e   : > { %7931 = vmatprep.subr.bf16.mxu1 %v12747_v36  ;;  %v12850_v36 = vld [vmem:[#allocation24 + $0x5d0] ss:$8 sps:$4 sm:$0xff]  }
 0x92f   : > { %9150 = vmatpush1.bf16.msra.mxu0 %v12850_v36 }
 0x930   : > { %7921 = vmatmul.mubr.bf16.vlgmr.msra.gmra.mrb[152].mxu1 %v7642_v1  ;;  %v12763_v1 = vld [vmem:[#allocation21 + $0x460] ss:$8 sps:$4 sm:$0xff]  }
 0x931   : > { %7932 = vmatpush1.bf16.msra.mxu1 %v12745_v61  ;;  %7963 = vmatprep.mubr.bf16.mxu1 %v16077_v52  ;;  %v12855_v61 = vld [vmem:[#allocation24 + $0x3e4] ss:$8 sps:$4 sm:$0xff]  }
 0x932   : > { %7933 = vmatprep.subr.bf16.mxu1 %v12750_v23  ;;  %v12858_v23 = vld [vmem:[#allocation24 + $0x5e4] ss:$8 sps:$4 sm:$0xff]  }
 0x933   : > { %9151 = vmatprep.subr.bf16.mxu0 %v12858_v23 }
 0x935   : > { %7934 = vmatpush1.bf16.msra.mxu1 %v12748_v41  ;;  %v12853_v41 = vld [vmem:[#allocation24 + $0x3e0] ss:$8 sps:$4 sm:$0xff]  }
 0x936   : > { %7935 = vmatprep.subr.bf16.mxu1 %v12753_v20  ;;  %v12856_v20 = vld [vmem:[#allocation24 + $0x5e0] ss:$8 sps:$4 sm:$0xff]  }
 0x937   : > { %9152 = vmatpush1.bf16.msra.mxu0 %v12856_v20 }
 0x939   : > { %7936 = vmatpush1.bf16.msra.mxu1 %v12751_v32  ;;  %v12861_v32 = vld [vmem:[#allocation24 + $0x3f4] ss:$8 sps:$4 sm:$0xff]  }
 0x93a   : > { %7937 = vmatprep.subr.bf16.mxu1 %v12756_v34  ;;  %v12864_v34 = vld [vmem:[#allocation24 + $0x5f4] ss:$8 sps:$4 sm:$0xff]  }
 0x93b   : > { %9153 = vmatprep.subr.bf16.mxu0 %v12864_v34 }
 0x93d   : > { %7938 = vmatpush1.bf16.msra.mxu1 %v12754_v29  ;;  %v12859_v29 = vld [vmem:[#allocation24 + $0x3f0] ss:$8 sps:$4 sm:$0xff]  }
 0x93e   : > { %7939 = vmatprep.subr.bf16.mxu1 %v12759_v49  ;;  %v12862_v49 = vld [vmem:[#allocation24 + $0x5f0] ss:$8 sps:$4 sm:$0xff]  }
 0x93f   : > { %9154 = vmatpush1.bf16.msra.mxu0 %v12862_v49 }
 0x941   : > { %7940 = vmatpush1.bf16.msra.mxu1 %v12757_v26  ;;  %v12869_v26 = vld [vmem:[#allocation24 + $0x404] ss:$8 sps:$4 sm:$0xff]  }
 0x942   : > { %7941 = vmatprep.subr.bf16.mxu1 %v12762_v15  ;;  %v12874_v15 = vld [vmem:[#allocation24 + $0x4] ss:$8 sps:$4 sm:$0xff]  }
 0x943   : > { %9714 = vmatprep.subr.bf16.mxu0 %v12874_v15 }
 0x945   : > { %7942 = vmatpush1.bf16.msra.mxu1 %v12760_v13  ;;  %v16532_v13 = vld [vmem:[#allocation67_spill] sm:$0xff] }
 0x946   : > { %7943 = vmatprep.subr.bf16.mxu1 %v12765_v18  ;;  %v7982_v18 = vsub.s32 0, %v16532_v13  ;;  %v7986_v16 = vsub.s32 1, %v16532_v13 }
 0x949   : > { %7944 = vmatpush1.bf16.msra.mxu1 %v12763_v1  ;;  %v7978_v1 = vld [vmem:[#allocation22] sm:$0x3] }
 0x94a   : > { %7945 = vmatprep.subr.bf16.mxu1 %v12768_v7  ;;  %v7983_v7 = vrot.slane %v7978_v1, %v7982_v18  ;;  %v7987_v63 = vrot.slane %v7978_v1, %v7986_v16 }
 0x94d   : > { %7946 = vmatpush1.bf16.msra.mxu1 %v12766_v25 }
 0x94e   : > { %9037 = vmatprep.subr.bf16.mxu1 %v12771_v28 }
 0x950   : > { %7964 = vmatmul.mubr.bf16.vlgmr.msra.gmra.mrb[152].mxu1 %v7644_v47 }
 0x951   : > { %9038 = vmatpush1.bf16.msra.mxu1 %v12769_v21 }
 0x952   : > { %9039 = vmatprep.subr.bf16.mxu1 %v12777_v50 }
 0x955   : > { %9040 = vmatpush1.bf16.msra.mxu1 %v12775_v5 }
 0x956   : > { %9041 = vmatprep.subr.bf16.mxu1 %v12783_v45 }
 0x959   : > { %9042 = vmatpush1.bf16.msra.mxu1 %v12781_v54 }
 0x95a   : > { %9043 = vmatprep.subr.bf16.mxu1 %v12789_v30 }
 0x95d   : > { %9044 = vmatpush1.bf16.msra.mxu1 %v12787_v0 }
 0x95e   : > { %9045 = vmatprep.subr.bf16.mxu1 %v12795_v53 }
 0x961   : > { %9046 = vmatpush1.bf16.msra.mxu1 %v12793_v42 }
 0x962   : > { %9047 = vmatprep.subr.bf16.mxu1 %v12801_v56 }
 0x965   : > { %9048 = vmatpush1.bf16.msra.mxu1 %v12799_v43 }
 0x966   : > { %9049 = vmatprep.subr.bf16.mxu1 %v12807_v24 }
 0x969   : > { %9050 = vmatpush1.bf16.msra.mxu1 %v12805_v8 }
 0x96a   : > { %9051 = vmatprep.subr.bf16.mxu1 %v12813_v37 }
 0x96d   : > { %9052 = vmatpush1.bf16.msra.mxu1 %v12811_v40 }
 0x96e   : > { %9053 = vmatprep.subr.bf16.mxu1 %v12819_v31 }
 0x971   : > { %9054 = vmatpush1.bf16.msra.mxu1 %v12817_v55 }
 0x972   : > { %9055 = vmatprep.subr.bf16.mxu1 %v12825_v4 }
 0x975   : > { %9056 = vmatpush1.bf16.msra.mxu1 %v12823_v58 }
 0x976   : > { %9057 = vmatprep.subr.bf16.mxu1 %v12831_v12 }
 0x979   : > { %9058 = vmatpush1.bf16.msra.mxu1 %v12829_v39 }
 0x97a   : > { %9059 = vmatprep.subr.bf16.mxu1 %v12837_v46 }
 0x97d   : > { %9060 = vmatpush1.bf16.msra.mxu1 %v12835_v48 }
 0x97e   : > { %9061 = vmatprep.subr.bf16.mxu1 %v12843_v62 }
 0x981   : > { %9062 = vmatpush1.bf16.msra.mxu1 %v12841_v11 }
 0x982   : > { %9063 = vmatprep.subr.bf16.mxu1 %v12849_v22 }
 0x985   : > { %9064 = vmatpush1.bf16.msra.mxu1 %v12847_v59 }
 0x986   : > { %9065 = vmatprep.subr.bf16.mxu1 %v12855_v61 }
 0x989   : > { %9066 = vmatpush1.bf16.msra.mxu1 %v12853_v41 }
 0x98a   : > { %9067 = vmatprep.subr.bf16.mxu1 %v12861_v32 }
 0x98d   : > { %9068 = vmatpush1.bf16.msra.mxu1 %v12859_v29 }
 0x98e   : > { %9080 = vmatprep.subr.bf16.mxu1 %v12869_v26 }
 0xa23   : > { %v7965_v25 = vpop.f32.mrb[152].mxu1 }
 0xa24   : > { %v7990_v14 = vadd.f32 %v7983_v7, %v7965_v25  ;;  %v7967_v28 = vpop.f32.mrb[153].mxu1 }
 0xa25   : > { %v7991_v17 = vadd.f32 %v7987_v63, %v7967_v28  ;;  %v7969_v21 = vpop.f32.mrb[154].mxu1 }
 0xa26   : > { %v7994_v47 = vmax.f32 %v7990_v14, 0.0  ;;  %v7992_v50 = vadd.f32 %v7983_v7, %v7969_v21  ;;  %v7971_v5 = vpop.f32.mrb[155].mxu1 }
 0xa27   : > { %v7995_v45 = vmax.f32 %v7991_v17, 0.0  ;;  %v7993_v54 = vadd.f32 %v7987_v63, %v7971_v5 }
 0xa28   : > { %v7996_v30 = vmax.f32 %v7992_v50, 0.0 }
 0xa29   : > { %v8002_v0 = vcombine.low %v7994_v47, %v7995_v45  ;;  %v8003_v53 = vcombine.high %v7994_v47, %v7995_v45  ;;  %v11413_v42 = vcombine.low %v7995_v45, %v7995_v45  ;;  %v11414_v56 = vcombine.high %v7995_v45, %v7995_v45 }
 0xa2a   : > { %v7997_v43 = vmax.f32 %v7993_v54, 0.0 }
 0xa2b   : > { %v8018_v24 = vpack.c.bf16 %v8002_v0, %v8002_v0  ;;  %v8019_v8 = vpack.c.bf16 %v11413_v42, %v11413_v42  ;;  %v8020_v37 = vpack.c.bf16 %v8003_v53, %v8003_v53  ;;  %v8021_v40 = vpack.c.bf16 %v11414_v56, %v11414_v56 }
 0xa2c   : > { %v11421_v55 = vpack.c.bf16 %v11413_v42, %v8002_v0  ;;  %v11422_v31 = vpack.c.bf16 %v11414_v56, %v8003_v53  ;;  %v8004_v35 = vcombine.low %v7996_v30, %v7997_v43  ;;  %v16104_v3 = vcombine.high %v7996_v30, %v7997_v43 }
 0xa2d   : > { %v8032_v4 = vshrl.u32 %v8018_v24, 16  ;;  %v8035_v6 = vshll.u32 %v8018_v24, 16  ;;  %v8039_v58 = vshrl.u32 %v8019_v8, 16  ;;  %v8042_v38 = vshll.u32 %v8019_v8, 16 }
 0xa2e   : > { %v8046_v12 = vshrl.u32 %v8020_v37, 16  ;;  %v8049_v57 = vshll.u32 %v8020_v37, 16  ;;  %v8053_v39 = vshrl.u32 %v8021_v40, 16  ;;  %v8056_v60 = vshll.u32 %v8021_v40, 16 }
 0xa2f   : > { %11425 = vst.sshfl [vmem:[#allocation6 + $0x10] sm:$0x33 pattern:$0x76325410] %v11421_v55  ;;  %v8034_v46 = vrot.slane %v8032_v4, 7  ;;  %v8041_v27 = vrot.slane %v8039_v58, 7  ;;  %v11415_v28 = vcombine.low %v7997_v43, %v7997_v43  ;;  %v11416_v21 = vcombine.high %v7997_v43, %v7997_v43 }
 0xa30   : > { %11426 = vst.sshfl [vmem:[#allocation6 + $0x1c] sm:$0x33 pattern:$0x76325410] %v11422_v31  ;;  %v8200_v48 = vrot.slane %v8035_v6, 1  ;;  %v8202_v33 = vrot.slane %v8042_v38, 1  ;;  %v8022_v47 = vpack.c.bf16 %v8004_v35, %v8004_v35  ;;  %v8024_v50 = vpack.c.bf16 %v16104_v3, %v16104_v3 }
 0xa31   : > { %v8048_v62 = vrot.slane %v8046_v12, 7  ;;  %v8055_v9 = vrot.slane %v8053_v39, 7  ;;  %v8204_v11 = vrot.slane %v8049_v57, 1  ;;  %v8206_v2 = vrot.slane %v8056_v60, 1 }
 0xa32   : > { %v8037_v22 = vor.u32 %v8035_v6, %v8034_v46  ;;  %v8044_v44 = vor.u32 %v8042_v38, %v8041_v27  ;;  %v8201_v59 = vor.u32 %v8200_v48, %v8032_v4  ;;  %v8203_v36 = vor.u32 %v8202_v33, %v8039_v58 }
 0xa33   : > { %v8051_v61 = vor.u32 %v8049_v57, %v8048_v62  ;;  %v8058_v23 = vor.u32 %v8056_v60, %v8055_v9  ;;  %v8205_v41 = vor.u32 %v8204_v11, %v8046_v12  ;;  %v8207_v20 = vor.u32 %v8206_v2, %v8053_v39 }
 0xa34   : > { %v8095_v32 = vsel %vm14145_vm9, 0, %v8037_v22  ;;  %v8096_v34 = vsel %vm14145_vm9, 0, %v8044_v44  ;;  %v8224_v29 = vsel %vm15945_vm0, %v8201_v59, 0  ;;  %v8225_v49 = vsel %vm15945_vm0, %v8203_v36, 0 }
 0xa35   : > { %v8097_v26 = vsel %vm14145_vm9, 0, %v8051_v61  ;;  %v8098_v15 = vsel %vm14145_vm9, 0, %v8058_v23  ;;  %v8111_v1 = vcombine.low %v8095_v32, %v8096_v34  ;;  %v8226_v7 = vsel %vm15945_vm0, %v8205_v41, 0 }
 0xa36   : > { %v8119_v63 = vcombine.low %v8097_v26, %v8098_v15  ;;  %v8227_v25 = vsel %vm15945_vm0, %v8207_v20, 0  ;;  %v8240_v14 = vcombine.low %v8224_v29, %v8225_v49  ;;  %v8023_v5 = vpack.c.bf16 %v11415_v28, %v11415_v28 }
 0xa37   : > { %11417 = vst.sshfl [vmem:[#allocation6 + $0xc] sm:$0x33 pattern:$0x76325410] %v8111_v1  ;;  %v8248_v17 = vcombine.low %v8226_v7, %v8227_v25  ;;  %v11423_v45 = vpack.c.bf16 %v11415_v28, %v8004_v35  ;;  %v8025_v54 = vpack.c.bf16 %v11416_v21, %v11416_v21  ;;  %v8060_v30 = vshrl.u32 %v8022_v47, 16 }
 0xa38   : > { %11418 = vst.sshfl [vmem:[#allocation6 + $0x18] sm:$0x33 pattern:$0x76325410] %v8119_v63  ;;  %v8063_v0 = vshll.u32 %v8022_v47, 16  ;;  %v8074_v53 = vshrl.u32 %v8024_v50, 16  ;;  %v11424_v8 = vpack.c.bf16 %v11416_v21, %v16104_v3 }
 0xa39   : > { %11429 = vst.sshfl [vmem:[#allocation6 + $0x14] sm:$0x33 pattern:$0x76325410] %v8240_v14  ;;  %v8067_v42 = vshrl.u32 %v8023_v5, 16  ;;  %v8070_v56 = vshll.u32 %v8023_v5, 16 }
 0xa3a   : > { %11430 = vst.sshfl [vmem:[#allocation6 + $0x20] sm:$0x33 pattern:$0x76325410] %v8248_v17  ;;  %v8077_v24 = vshll.u32 %v8024_v50, 16  ;;  %v8062_v43 = vrot.slane %v8060_v30, 7 }
 0xa3b   : > { %11427 = vst.sshfl [vmem:[#allocation6 + $0x28] sm:$0x33 pattern:$0x76325410] %v11423_v45  ;;  %v8076_v37 = vrot.slane %v8074_v53, 7  ;;  %v8081_v40 = vshrl.u32 %v8025_v54, 16 }
 0xa3c   : > { %v8084_v55 = vshll.u32 %v8025_v54, 16  ;;  %v8069_v31 = vrot.slane %v8067_v42, 7  ;;  %11428 = vst.sshfl [vmem:[#allocation6 + $0x34] sm:$0x33 pattern:$0x76325410] %v11424_v8  ;;  %v8065_v58 = vor.u32 %v8063_v0, %v8062_v43 }
 0xa3d   : > { %v8208_v4 = vrot.slane %v8063_v0, 1  ;;  %v8210_v6 = vrot.slane %v8070_v56, 1  ;;  %v8212_v35 = vrot.slane %v8077_v24, 1  ;;  %v8079_v38 = vor.u32 %v8077_v24, %v8076_v37 }
 0xa3e   : > { %v8083_v12 = vrot.slane %v8081_v40, 7  ;;  %v8214_v57 = vrot.slane %v8084_v55, 1  ;;  %v8072_v39 = vor.u32 %v8070_v56, %v8069_v31  ;;  %v8099_v3 = vsel %vm14145_vm9, 0, %v8065_v58  ;;  %v8384_v20 = vld [vmem:[#allocation6 + $0xc] sm:$0xff] }
 0xa3f   : > { %v8209_v60 = vor.u32 %v8208_v4, %v8060_v30  ;;  %v8211_v46 = vor.u32 %v8210_v6, %v8067_v42  ;;  %v8213_v27 = vor.u32 %v8212_v35, %v8074_v53  ;;  %v8101_v33 = vsel %vm14145_vm9, 0, %v8079_v38  ;;  %v8386_v32 = vld [vmem:[#allocation6 + $0x18] sm:$0xff]  ;;  %v12867_v58 = vld [vmem:[#allocation24 + $0x400] ss:$8 sps:$4 sm:$0xff]  }
 0xa40   : > { %v8086_v48 = vor.u32 %v8084_v55, %v8083_v12  ;;  %v8215_v62 = vor.u32 %v8214_v57, %v8081_v40  ;;  %v8100_v9 = vsel %vm14145_vm9, 0, %v8072_v39  ;;  %v8497_v29 = vcombine.low %v8384_v20, %v8386_v32  ;;  %v13020_v19 = vld [vmem:[#allocation6 + $0x8] ss:$12 sps:$4 sm:$0xff]  }
 0xa41   : > { %v8228_v11 = vsel %vm15945_vm0, %v8209_v60, 0  ;;  %v8229_v2 = vsel %vm15945_vm0, %v8211_v46, 0  ;;  %v8230_v22 = vsel %vm15945_vm0, %v8213_v27, 0  ;;  %v8127_v59 = vcombine.low %v8099_v3, %v8100_v9  ;;  %v12870_v34 = vld [vmem:[#allocation6 + $0x14] ss:$12 sps:$4 sm:$0xff]  }
 0xa42   : > { %v8102_v44 = vsel %vm14145_vm9, 0, %v8086_v48  ;;  %v8231_v36 = vsel %vm15945_vm0, %v8215_v62, 0  ;;  %v8256_v61 = vcombine.low %v8228_v11, %v8229_v2  ;;  %v8498_v49 = vcombine.high %v8384_v20, %v8386_v32  ;;  %v12872_v40 = vld [vmem:[#allocation24] ss:$8 sps:$4 sm:$0xff]   ;;  %v12880_v60 = vld [vmem:[#allocation24 + $0x414] ss:$8 sps:$4 sm:$0xff]  }
 0xa43   : > { %v8135_v23 = vcombine.low %v8101_v33, %v8102_v44  ;;  %v8264_v41 = vcombine.low %v8230_v22, %v8231_v36  ;;  %11419 = vst.sshfl [vmem:[#allocation6 + $0x24] sm:$0x33 pattern:$0x76325410] %v8127_v59  ;;  %v9174_v26 = vcombine.low %v16077_v52, %v8384_v20  ;;  %v8541_v1 = vrot.slane %v12870_v34, %v16529_v10  ;;  %v12883_v3 = vld [vmem:[#allocation24 + $0x14] ss:$8 sps:$4 sm:$0xff]  }
 0xa44   : > { %11431 = vst.sshfl [vmem:[#allocation6 + $0x2c] sm:$0x33 pattern:$0x76325410] %v8256_v61  ;;  %v9175_v7 = vcombine.high %v13219_v51, %v8384_v20  ;;  %v8507_v25 = vrot.slane %v8497_v29, %v16529_v10  ;;  %v16145_v28 = vrot.slane %v8498_v49, %v16529_v10  ;;  %v16171_v31 = vrot.slane %v13020_v19, %v16529_v10  ;;  %v12881_v11 = vld [vmem:[#allocation24 + $0x10] ss:$8 sps:$4 sm:$0xff]  }
 0xa45   : > { %11420 = vst.sshfl [vmem:[#allocation6 + $0x30] sm:$0x33 pattern:$0x76325410] %v8135_v23  ;;  %v16148_v5 = vrot.slane %v9174_v26, %v16529_v10  ;;  %v12878_v44 = vld [vmem:[#allocation24 + $0x410] ss:$8 sps:$4 sm:$0xff]  }
 0xa46   : > { %11432 = vst.sshfl [vmem:[#allocation6 + $0x38] sm:$0x33 pattern:$0x76325410] %v8264_v41  ;;  %v16168_v55 = vrot.slane %v9175_v7, %v16529_v10  ;;  %v12889_v59 = vld [vmem:[#allocation24 + $0x24] ss:$8 sps:$4 sm:$0xff]  }
 0xa47   : > { %v12886_v23 = vld [vmem:[#allocation24 + $0x424] ss:$8 sps:$4 sm:$0xff]   ;;  %v12884_v20 = vld [vmem:[#allocation24 + $0x420] ss:$8 sps:$4 sm:$0xff]   ;;  %v12892_v34 = vld [vmem:[#allocation24 + $0x434] ss:$8 sps:$4 sm:$0xff]  }
 0xa48   : > { %v12893_v29 = vld [vmem:[#allocation24 + $0x30] ss:$8 sps:$4 sm:$0xff]   ;;  %v12901_v26 = vld [vmem:[#allocation24 + $0x44] ss:$8 sps:$4 sm:$0xff]   ;;  %v12904_v7 = vld [vmem:[#allocation24 + $0x454] ss:$8 sps:$4 sm:$0xff]  }
 0xa49   : > { %v12890_v49 = vld [vmem:[#allocation24 + $0x430] ss:$8 sps:$4 sm:$0xff]   ;;  %v12898_v19 = vld [vmem:[#allocation24 + $0x444] ss:$8 sps:$4 sm:$0xff]  }
 0xa4a   : > { %v8388_v15 = vld [vmem:[#allocation6 + $0x24] sm:$0xff] }
 0xa4b   : > { %v9176_v17 = vcombine.low %v8386_v32, %v8388_v15  ;;  %v9177_v21 = vcombine.high %v8386_v32, %v8388_v15  ;;  %v13021_v52 = vld [vmem:[#allocation6 + $0x20] ss:$12 sps:$4 sm:$0xff]  }
 0xa4c   : > { %v8390_v63 = vld [vmem:[#allocation6 + $0x30] sm:$0xff]  ;;  %v16162_v24 = vrot.slane %v13021_v52, %v16529_v10  ;;  %v13166_v4 = vld [vmem:[#allocation6 + $0x20] ss:$12 sps:$4 sm:$0xff]  }
 0xa4d   : > { %v12871_v14 = vld [vmem:[#allocation6 + $0x2c] ss:$12 sps:$4 sm:$0xff]   ;;  %v8499_v47 = vcombine.low %v8388_v15, %v8390_v63  ;;  %v8500_v50 = vcombine.high %v8388_v15, %v8390_v63  ;;  %v9959_v45 = vcombine.low %v8390_v63, %v13219_v51  ;;  %v16152_v30 = vrot.slane %v9176_v17, %v16529_v10 }
 0xa4e   : > { %v8548_v54 = vrot.slane %v12871_v14, %v16529_v10  ;;  %v16155_v0 = vrot.slane %v9177_v21, %v16529_v10  ;;  %v9960_v53 = vcombine.high %v8390_v63, %v13219_v51  ;;  %v13167_v6 = vld [vmem:[#allocation6 + $0x38] ss:$12 sps:$4 sm:$0xff]   ;;  %v9226_v48 = vcombine.low %v16171_v31, %v16162_v24 }
 0xa4f   : > { %v8521_v42 = vrot.slane %v8499_v47, %v16529_v10  ;;  %v16159_v56 = vrot.slane %v8500_v50, %v16529_v10  ;;  %v16165_v8 = vrot.slane %v9959_v45, %v16529_v10  ;;  %v9207_v12 = vcombine.high %v16148_v5, %v16152_v30  ;;  %v12895_v32 = vld [vmem:[#allocation24 + $0x34] ss:$8 sps:$4 sm:$0xff]   ;;  %v12899_v15 = vld [vmem:[#allocation24 + $0x40] ss:$8 sps:$4 sm:$0xff]   ;;  %v12905_v63 = vld [vmem:[#allocation24 + $0x50] ss:$8 sps:$4 sm:$0xff]  }
 0xa50   : > { %v8549_v43 = vcombine.low %v8541_v1, %v8548_v54  ;;  %v8550_v37 = vcombine.high %v8541_v1, %v8548_v54  ;;  %v9209_v46 = vcombine.high %v16168_v55, %v16155_v0  ;;  %v9208_v27 = vcombine.low %v16168_v55, %v16155_v0  ;;  %v12896_v1 = vld [vmem:[#allocation24 + $0x440] ss:$8 sps:$4 sm:$0xff]   ;;  %v12907_v51 = vld [vmem:[#allocation24 + $0x54] ss:$8 sps:$4 sm:$0xff]   ;;  %v12913_v14 = vld [vmem:[#allocation24 + $0x64] ss:$8 sps:$4 sm:$0xff]  }
 0xa51   : > { %v8530_v35 = vcombine.high %v8507_v25, %v8521_v42  ;;  %v8529_v38 = vcombine.low %v8507_v25, %v8521_v42  ;;  %v8531_v57 = vcombine.low %v16145_v28, %v16159_v56  ;;  %v8532_v39 = vcombine.high %v16145_v28, %v16159_v56  ;;  %v12902_v25 = vld [vmem:[#allocation24 + $0x450] ss:$8 sps:$4 sm:$0xff]   ;;  %v12910_v17 = vld [vmem:[#allocation24 + $0x464] ss:$8 sps:$4 sm:$0xff]   ;;  %v12911_v21 = vld [vmem:[#allocation24 + $0x60] ss:$8 sps:$4 sm:$0xff]  }
 0xa52   : > { %9155 = vmatprep.mubr.bf16.mxu0 %v8550_v37  ;;  %v9990_v33 = vcombine.high %v16152_v30, %v16165_v8  ;;  %v9989_v62 = vcombine.low %v16152_v30, %v16165_v8  ;;  %v16190_v9 = vrot.slane %v9960_v53, %v16529_v10  ;;  %v16193_v2 = vrot.slane %v13166_v4, %v16529_v10  ;;  %v12908_v47 = vld [vmem:[#allocation24 + $0x460] ss:$8 sps:$4 sm:$0xff]   ;;  %v12919_v50 = vld [vmem:[#allocation24 + $0x74] ss:$8 sps:$4 sm:$0xff]   ;;  %v12917_v45 = vld [vmem:[#allocation24 + $0x70] ss:$8 sps:$4 sm:$0xff]  }
 0xa53   : > { %9069 = vmatprep.mubr.bf16.mxu1 %v8530_v35  ;;  %9156 = vmatmul.mubr.bf16.vlgmr.msra.gmra.mrb[56].mxu0 %v8549_v43  ;;  %v16196_v22 = vrot.slane %v13167_v6, %v16529_v10  ;;  %v12887_v10 = vld [vmem:[#allocation24 + $0x20] ss:$8 sps:$4 sm:$0xff]   ;;  %v12916_v52 = vld [vmem:[#allocation24 + $0x474] ss:$8 sps:$4 sm:$0xff]   ;;  %v12914_v54 = vld [vmem:[#allocation24 + $0x470] ss:$8 sps:$4 sm:$0xff]  }
 0xa54   : > { %9070 = vmatmul.mubr.bf16.vlgmr.msra.gmra.mrb[156].mxu1 %v8529_v38  ;;  %9715 = vmatpush1.bf16.msra.mxu0 %v12872_v40  ;;  %v9992_v36 = vcombine.high %v16155_v0, %v16190_v9  ;;  %v9991_v61 = vcombine.low %v16155_v0, %v16190_v9  ;;  %v12925_v53 = vld [vmem:[#allocation24 + $0x84] ss:$8 sps:$4 sm:$0xff]   ;;  %v12923_v43 = vld [vmem:[#allocation24 + $0x80] ss:$8 sps:$4 sm:$0xff]   ;;  %v12931_v40 = vld [vmem:[#allocation24 + $0x94] ss:$8 sps:$4 sm:$0xff]  }
 0xa55   : > { %9081 = vmatpush1.bf16.msra.mxu1 %v12867_v58  ;;  %9112 = vmatprep.mubr.bf16.mxu1 %v8532_v39  ;;  %v10009_v41 = vcombine.low %v16193_v2, %v16196_v22  ;;  %v12922_v42 = vld [vmem:[#allocation24 + $0x484] ss:$8 sps:$4 sm:$0xff]   ;;  %v12920_v37 = vld [vmem:[#allocation24 + $0x480] ss:$8 sps:$4 sm:$0xff]   ;;  %v12928_v4 = vld [vmem:[#allocation24 + $0x494] ss:$8 sps:$4 sm:$0xff]  }
 0xa56   : > { %9746 = vmatprep.mubr.bf16.mxu0 %v9207_v12  ;;  %9082 = vmatprep.subr.bf16.mxu1 %v12880_v60  ;;  %v12929_v6 = vld [vmem:[#allocation24 + $0x90] ss:$8 sps:$4 sm:$0xff]   ;;  %v12937_v58 = vld [vmem:[#allocation24 + $0xa4] ss:$8 sps:$4 sm:$0xff]   ;;  %v12935_v12 = vld [vmem:[#allocation24 + $0xa0] ss:$8 sps:$4 sm:$0xff]  }
 0xa57   : > { %9716 = vmatprep.subr.bf16.mxu0 %v12883_v3  ;;  %v12926_v35 = vld [vmem:[#allocation24 + $0x490] ss:$8 sps:$4 sm:$0xff]   ;;  %v12934_v38 = vld [vmem:[#allocation24 + $0x4a4] ss:$8 sps:$4 sm:$0xff]   ;;  %v12932_v39 = vld [vmem:[#allocation24 + $0x4a0] ss:$8 sps:$4 sm:$0xff]  }
 0xa58   : > { %9717 = vmatpush1.bf16.msra.mxu0 %v12881_v11  ;;  %v12943_v60 = vld [vmem:[#allocation24 + $0xb4] ss:$8 sps:$4 sm:$0xff]   ;;  %v12941_v11 = vld [vmem:[#allocation24 + $0xb0] ss:$8 sps:$4 sm:$0xff]   ;;  %v13185_v9 = vld [vmem:[#allocation24 + $0x864] ss:$8 sps:$4 sm:$0xff]  }
 0xa59   : > { %9083 = vmatpush1.bf16.msra.mxu1 %v12878_v44  ;;  %9718 = vmatprep.subr.bf16.mxu0 %v12889_v59  ;;  %v12940_v3 = vld [vmem:[#allocation24 + $0x4b4] ss:$8 sps:$4 sm:$0xff]   ;;  %v12938_v44 = vld [vmem:[#allocation24 + $0x4b0] ss:$8 sps:$4 sm:$0xff]   ;;  %v12949_v59 = vld [vmem:[#allocation24 + $0xc4] ss:$8 sps:$4 sm:$0xff]  }
 0xa5a   : > { %9084 = vmatprep.subr.bf16.mxu1 %v12886_v23  ;;  %v12946_v23 = vld [vmem:[#allocation24 + $0x4c4] ss:$8 sps:$4 sm:$0xff]   ;;  %v12986_v28 = vld [vmem:[#allocation24 + $0x154] ss:$8 sps:$4 sm:$0xff]   ;;  %v12984_v56 = vld [vmem:[#allocation24 + $0x150] ss:$8 sps:$4 sm:$0xff]  }
 0xa5b   : > { %v13034_v55 = vld [vmem:[#allocation24 + $0x250] ss:$8 sps:$4 sm:$0xff]  }
 0xa5c   : > { %9719 = vmatpush1.bf16.msra.mxu0 %v12887_v10  ;;  %v12947_v10 = vld [vmem:[#allocation24 + $0xc0] ss:$8 sps:$4 sm:$0xff]   ;;  %v13130_v8 = vld [vmem:[#allocation24 + $0x750] ss:$8 sps:$4 sm:$0xff]  }
 0xa5d   : > { %9085 = vmatpush1.bf16.msra.mxu1 %v12884_v20  ;;  %9720 = vmatprep.subr.bf16.mxu0 %v12895_v32  ;;  %v12944_v20 = vld [vmem:[#allocation24 + $0x4c0] ss:$8 sps:$4 sm:$0xff]   ;;  %v12955_v32 = vld [vmem:[#allocation24 + $0xd4] ss:$8 sps:$4 sm:$0xff]   ;;  %v13180_v0 = vld [vmem:[#allocation24 + $0x850] ss:$8 sps:$4 sm:$0xff]  }
 0xa5e   : > { %9086 = vmatprep.subr.bf16.mxu1 %v12892_v34  ;;  %v12952_v34 = vld [vmem:[#allocation24 + $0x4d4] ss:$8 sps:$4 sm:$0xff]  }
 0xa60   : > { %9721 = vmatpush1.bf16.msra.mxu0 %v12893_v29  ;;  %v12953_v29 = vld [vmem:[#allocation24 + $0xd0] ss:$8 sps:$4 sm:$0xff]  }
 0xa61   : > { %9087 = vmatpush1.bf16.msra.mxu1 %v12890_v49  ;;  %9722 = vmatprep.subr.bf16.mxu0 %v12901_v26  ;;  %v12950_v49 = vld [vmem:[#allocation24 + $0x4d0] ss:$8 sps:$4 sm:$0xff]   ;;  %v12961_v26 = vld [vmem:[#allocation24 + $0xe4] ss:$8 sps:$4 sm:$0xff]  }
 0xa62   : > { %9088 = vmatprep.subr.bf16.mxu1 %v12898_v19  ;;  %v12958_v19 = vld [vmem:[#allocation24 + $0x4e4] ss:$8 sps:$4 sm:$0xff]  }
 0xa64   : > { %9723 = vmatpush1.bf16.msra.mxu0 %v12899_v15  ;;  %v12959_v15 = vld [vmem:[#allocation24 + $0xe0] ss:$8 sps:$4 sm:$0xff]  }
 0xa65   : > { %9089 = vmatpush1.bf16.msra.mxu1 %v12896_v1  ;;  %9724 = vmatprep.subr.bf16.mxu0 %v12907_v51  ;;  %v12956_v1 = vld [vmem:[#allocation24 + $0x4e0] ss:$8 sps:$4 sm:$0xff]   ;;  %v12967_v51 = vld [vmem:[#allocation24 + $0xf4] ss:$8 sps:$4 sm:$0xff]  }
 0xa66   : > { %9090 = vmatprep.subr.bf16.mxu1 %v12904_v7  ;;  %v12964_v7 = vld [vmem:[#allocation24 + $0x4f4] ss:$8 sps:$4 sm:$0xff]  }
 0xa68   : > { %9725 = vmatpush1.bf16.msra.mxu0 %v12905_v63  ;;  %v12965_v63 = vld [vmem:[#allocation24 + $0xf0] ss:$8 sps:$4 sm:$0xff]  }
 0xa69   : > { %9091 = vmatpush1.bf16.msra.mxu1 %v12902_v25  ;;  %9726 = vmatprep.subr.bf16.mxu0 %v12913_v14  ;;  %v12962_v25 = vld [vmem:[#allocation24 + $0x4f0] ss:$8 sps:$4 sm:$0xff]   ;;  %v12970_v14 = vld [vmem:[#allocation24 + $0x104] ss:$8 sps:$4 sm:$0xff]  }
 0xa6a   : > { %9092 = vmatprep.subr.bf16.mxu1 %v12910_v17  ;;  %v12968_v17 = vld [vmem:[#allocation24 + $0x100] ss:$8 sps:$4 sm:$0xff]  }
 0xa6c   : > { %9727 = vmatpush1.bf16.msra.mxu0 %v12911_v21  ;;  %v9206_v21 = vcombine.low %v16148_v5, %v16152_v30  ;;  %v12978_v5 = vld [vmem:[#allocation24 + $0x130] ss:$8 sps:$4 sm:$0xff]   ;;  %v13132_v30 = vld [vmem:[#allocation24 + $0x754] ss:$8 sps:$4 sm:$0xff]  }
 0xa6d   : > { %9093 = vmatpush1.bf16.msra.mxu1 %v12908_v47  ;;  %9728 = vmatprep.subr.bf16.mxu0 %v12919_v50  ;;  %v12974_v47 = vld [vmem:[#allocation24 + $0x114] ss:$8 sps:$4 sm:$0xff]   ;;  %v12972_v50 = vld [vmem:[#allocation24 + $0x110] ss:$8 sps:$4 sm:$0xff]  }
 0xa6e   : > { %9094 = vmatprep.subr.bf16.mxu1 %v12916_v52  ;;  %v12977_v52 = vld [vmem:[#allocation24 + $0x124] ss:$8 sps:$4 sm:$0xff]  }
 0xa70   : > { %9729 = vmatpush1.bf16.msra.mxu0 %v12917_v45  ;;  %v12975_v45 = vld [vmem:[#allocation24 + $0x120] ss:$8 sps:$4 sm:$0xff]  }
 0xa71   : > { %9095 = vmatpush1.bf16.msra.mxu1 %v12914_v54  ;;  %9730 = vmatprep.subr.bf16.mxu0 %v12925_v53  ;;  %v12980_v54 = vld [vmem:[#allocation24 + $0x134] ss:$8 sps:$4 sm:$0xff]   ;;  %v12983_v53 = vld [vmem:[#allocation24 + $0x144] ss:$8 sps:$4 sm:$0xff]  }
 0xa72   : > { %9096 = vmatprep.subr.bf16.mxu1 %v12922_v42  ;;  %v12981_v42 = vld [vmem:[#allocation24 + $0x140] ss:$8 sps:$4 sm:$0xff]  }
 0xa74   : > { %9731 = vmatpush1.bf16.msra.mxu0 %v12923_v43  ;;  %v12992_v43 = vld [vmem:[#allocation24 + $0x174] ss:$8 sps:$4 sm:$0xff]  }
 0xa75   : > { %9097 = vmatpush1.bf16.msra.mxu1 %v12920_v37  ;;  %9732 = vmatprep.subr.bf16.mxu0 %v12931_v40  ;;  %v12990_v37 = vld [vmem:[#allocation24 + $0x170] ss:$8 sps:$4 sm:$0xff]   ;;  %v12995_v40 = vld [vmem:[#allocation24 + $0x184] ss:$8 sps:$4 sm:$0xff]  }
 0xa76   : > { %9098 = vmatprep.subr.bf16.mxu1 %v12928_v4  ;;  %v12993_v4 = vld [vmem:[#allocation24 + $0x180] ss:$8 sps:$4 sm:$0xff]  }
 0xa78   : > { %9733 = vmatpush1.bf16.msra.mxu0 %v12929_v6  ;;  %v12998_v6 = vld [vmem:[#allocation24 + $0x194] ss:$8 sps:$4 sm:$0xff]  }
 0xa79   : > { %9099 = vmatpush1.bf16.msra.mxu1 %v12926_v35  ;;  %9734 = vmatprep.subr.bf16.mxu0 %v12937_v58  ;;  %v12996_v35 = vld [vmem:[#allocation24 + $0x190] ss:$8 sps:$4 sm:$0xff]   ;;  %v13001_v58 = vld [vmem:[#allocation24 + $0x1a4] ss:$8 sps:$4 sm:$0xff]  }
 0xa7a   : > { %9100 = vmatprep.subr.bf16.mxu1 %v12934_v38  ;;  %v12999_v38 = vld [vmem:[#allocation24 + $0x1a0] ss:$8 sps:$4 sm:$0xff]  }
 0xa7c   : > { %9735 = vmatpush1.bf16.msra.mxu0 %v12935_v12  ;;  %v13004_v12 = vld [vmem:[#allocation24 + $0x1b4] ss:$8 sps:$4 sm:$0xff]  }
 0xa7d   : > { %9101 = vmatpush1.bf16.msra.mxu1 %v12932_v39  ;;  %9736 = vmatprep.subr.bf16.mxu0 %v12943_v60  ;;  %v13002_v39 = vld [vmem:[#allocation24 + $0x1b0] ss:$8 sps:$4 sm:$0xff]   ;;  %v13007_v60 = vld [vmem:[#allocation24 + $0x1c4] ss:$8 sps:$4 sm:$0xff]  }
 0xa7e   : > { %9102 = vmatprep.subr.bf16.mxu1 %v12940_v3  ;;  %v13005_v3 = vld [vmem:[#allocation24 + $0x1c0] ss:$8 sps:$4 sm:$0xff]  }
 0xa80   : > { %9737 = vmatpush1.bf16.msra.mxu0 %v12941_v11  ;;  %v13010_v11 = vld [vmem:[#allocation24 + $0x1d4] ss:$8 sps:$4 sm:$0xff]  }
 0xa81   : > { %9103 = vmatpush1.bf16.msra.mxu1 %v12938_v44  ;;  %9738 = vmatprep.subr.bf16.mxu0 %v12949_v59  ;;  %v13008_v44 = vld [vmem:[#allocation24 + $0x1d0] ss:$8 sps:$4 sm:$0xff]   ;;  %v13013_v59 = vld [vmem:[#allocation24 + $0x1e4] ss:$8 sps:$4 sm:$0xff]  }
 0xa82   : > { %9104 = vmatprep.subr.bf16.mxu1 %v12946_v23  ;;  %v13011_v23 = vld [vmem:[#allocation24 + $0x1e0] ss:$8 sps:$4 sm:$0xff]  }
 0xa84   : > { %9739 = vmatpush1.bf16.msra.mxu0 %v12947_v10  ;;  %v13016_v10 = vld [vmem:[#allocation24 + $0x1f4] ss:$8 sps:$4 sm:$0xff]  }
 0xa85   : > { %9105 = vmatpush1.bf16.msra.mxu1 %v12944_v20  ;;  %9740 = vmatprep.subr.bf16.mxu0 %v12955_v32  ;;  %v13014_v20 = vld [vmem:[#allocation24 + $0x1f0] ss:$8 sps:$4 sm:$0xff]   ;;  %v13019_v32 = vld [vmem:[#allocation24 + $0x204] ss:$8 sps:$4 sm:$0xff]  }
 0xa86   : > { %9106 = vmatprep.subr.bf16.mxu1 %v12952_v34  ;;  %v13017_v34 = vld [vmem:[#allocation24 + $0x200] ss:$8 sps:$4 sm:$0xff]  }
 0xa88   : > { %9741 = vmatpush1.bf16.msra.mxu0 %v12953_v29  ;;  %v13024_v29 = vld [vmem:[#allocation24 + $0x214] ss:$8 sps:$4 sm:$0xff]  }
 0xa89   : > { %9107 = vmatpush1.bf16.msra.mxu1 %v12950_v49  ;;  %9742 = vmatprep.subr.bf16.mxu0 %v12961_v26  ;;  %v9227_v49 = vcombine.high %v16171_v31, %v16162_v24  ;;  %v13022_v26 = vld [vmem:[#allocation24 + $0x210] ss:$8 sps:$4 sm:$0xff]   ;;  %v13084_v24 = vld [vmem:[#allocation24 + $0x654] ss:$8 sps:$4 sm:$0xff]  }
 0xa8a   : > { %9108 = vmatprep.subr.bf16.mxu1 %v12958_v19  ;;  %v13027_v19 = vld [vmem:[#allocation24 + $0x224] ss:$8 sps:$4 sm:$0xff]   ;;  %v13082_v31 = vld [vmem:[#allocation24 + $0x650] ss:$8 sps:$4 sm:$0xff]  }
 0xa8c   : > { %9743 = vmatpush1.bf16.msra.mxu0 %v12959_v15  ;;  %v13025_v15 = vld [vmem:[#allocation24 + $0x220] ss:$8 sps:$4 sm:$0xff]  }
 0xa8d   : > { %9109 = vmatpush1.bf16.msra.mxu1 %v12956_v1  ;;  %9744 = vmatprep.subr.bf16.mxu0 %v12967_v51  ;;  %v13030_v1 = vld [vmem:[#allocation24 + $0x234] ss:$8 sps:$4 sm:$0xff]   ;;  %v13028_v51 = vld [vmem:[#allocation24 + $0x230] ss:$8 sps:$4 sm:$0xff]  }
 0xa8e   : > { %9110 = vmatprep.subr.bf16.mxu1 %v12964_v7  ;;  %v13033_v7 = vld [vmem:[#allocation24 + $0x244] ss:$8 sps:$4 sm:$0xff]  }
 0xa90   : > { %9745 = vmatpush1.bf16.msra.mxu0 %v12965_v63  ;;  %v13031_v63 = vld [vmem:[#allocation24 + $0x240] ss:$8 sps:$4 sm:$0xff]  }
 0xa91   : > { %9111 = vmatpush1.bf16.msra.mxu1 %v12962_v25  ;;  %9757 = vmatprep.subr.bf16.mxu0 %v12970_v14  ;;  %v13036_v25 = vld [vmem:[#allocation24 + $0x254] ss:$8 sps:$4 sm:$0xff]   ;;  %v13037_v14 = vld [vmem:[#allocation24 + $0x260] ss:$8 sps:$4 sm:$0xff]  }
 0xa93   : > { %9747 = vmatmul.mubr.bf16.vlgmr.msra.gmra.mrb[56].mxu0 %v9206_v21  ;;  %v13040_v21 = vld [vmem:[#allocation24 + $0x270] ss:$8 sps:$4 sm:$0xff]  }
 0xa94   : > { %9113 = vmatmul.mubr.bf16.vlgmr.msra.gmra.mrb[156].mxu1 %v8531_v57  ;;  %9758 = vmatpush1.bf16.msra.mxu0 %v12968_v17  ;;  %v12989_v57 = vld [vmem:[#allocation24 + $0x164] ss:$8 sps:$4 sm:$0xff]   ;;  %v13042_v17 = vld [vmem:[#allocation24 + $0x274] ss:$8 sps:$4 sm:$0xff]  }
 0xa95   : > { %9789 = vmatprep.mubr.bf16.mxu0 %v9209_v46  ;;  %9759 = vmatprep.subr.bf16.mxu0 %v12974_v47  ;;  %v12987_v46 = vld [vmem:[#allocation24 + $0x160] ss:$8 sps:$4 sm:$0xff]   ;;  %v13045_v47 = vld [vmem:[#allocation24 + $0x284] ss:$8 sps:$4 sm:$0xff]  }
 0xa98   : > { %9760 = vmatpush1.bf16.msra.mxu0 %v12972_v50  ;;  %v13043_v50 = vld [vmem:[#allocation24 + $0x280] ss:$8 sps:$4 sm:$0xff]  }
 0xa99   : > { %9761 = vmatprep.subr.bf16.mxu0 %v12977_v52  ;;  %v13048_v52 = vld [vmem:[#allocation24 + $0x294] ss:$8 sps:$4 sm:$0xff]  }
 0xa9c   : > { %9762 = vmatpush1.bf16.msra.mxu0 %v12975_v45  ;;  %v13046_v45 = vld [vmem:[#allocation24 + $0x290] ss:$8 sps:$4 sm:$0xff]  }
 0xa9d   : > { %9763 = vmatprep.subr.bf16.mxu0 %v12980_v54  ;;  %v13051_v54 = vld [vmem:[#allocation24 + $0x2a4] ss:$8 sps:$4 sm:$0xff]  }
 0xaa0   : > { %9764 = vmatpush1.bf16.msra.mxu0 %v12978_v5  ;;  %v13049_v5 = vld [vmem:[#allocation24 + $0x2a0] ss:$8 sps:$4 sm:$0xff]  }
 0xaa1   : > { %9765 = vmatprep.subr.bf16.mxu0 %v12983_v53  ;;  %v13054_v53 = vld [vmem:[#allocation24 + $0x2b4] ss:$8 sps:$4 sm:$0xff]  }
 0xaa4   : > { %9766 = vmatpush1.bf16.msra.mxu0 %v12981_v42  ;;  %v13052_v42 = vld [vmem:[#allocation24 + $0x2b0] ss:$8 sps:$4 sm:$0xff]  }
 0xaa5   : > { %9767 = vmatprep.subr.bf16.mxu0 %v12986_v28  ;;  %v13057_v28 = vld [vmem:[#allocation24 + $0x2c4] ss:$8 sps:$4 sm:$0xff]  }
 0xaa8   : > { %9768 = vmatpush1.bf16.msra.mxu0 %v12984_v56  ;;  %v13055_v56 = vld [vmem:[#allocation24 + $0x2c0] ss:$8 sps:$4 sm:$0xff]  }
 0xaa9   : > { %9769 = vmatprep.subr.bf16.mxu0 %v12989_v57  ;;  %v13060_v57 = vld [vmem:[#allocation24 + $0x2d4] ss:$8 sps:$4 sm:$0xff]  }
 0xaac   : > { %9770 = vmatpush1.bf16.msra.mxu0 %v12987_v46  ;;  %v13058_v46 = vld [vmem:[#allocation24 + $0x2d0] ss:$8 sps:$4 sm:$0xff]  }
 0xaad   : > { %9771 = vmatprep.subr.bf16.mxu0 %v12992_v43  ;;  %v13063_v43 = vld [vmem:[#allocation24 + $0x2e4] ss:$8 sps:$4 sm:$0xff]  }
 0xab0   : > { %9772 = vmatpush1.bf16.msra.mxu0 %v12990_v37  ;;  %v13061_v37 = vld [vmem:[#allocation24 + $0x2e0] ss:$8 sps:$4 sm:$0xff]  }
 0xab1   : > { %9773 = vmatprep.subr.bf16.mxu0 %v12995_v40  ;;  %v13066_v40 = vld [vmem:[#allocation24 + $0x2f4] ss:$8 sps:$4 sm:$0xff]  }
 0xab4   : > { %9774 = vmatpush1.bf16.msra.mxu0 %v12993_v4  ;;  %v13064_v4 = vld [vmem:[#allocation24 + $0x2f0] ss:$8 sps:$4 sm:$0xff]  }
 0xab5   : > { %9775 = vmatprep.subr.bf16.mxu0 %v12998_v6  ;;  %v13069_v6 = vld [vmem:[#allocation24 + $0x604] ss:$8 sps:$4 sm:$0xff]  }
 0xab8   : > { %9776 = vmatpush1.bf16.msra.mxu0 %v12996_v35  ;;  %v13067_v35 = vld [vmem:[#allocation24 + $0x600] ss:$8 sps:$4 sm:$0xff]  }
 0xab9   : > { %9777 = vmatprep.subr.bf16.mxu0 %v13001_v58  ;;  %v13072_v58 = vld [vmem:[#allocation24 + $0x614] ss:$8 sps:$4 sm:$0xff]  }
 0xabc   : > { %9778 = vmatpush1.bf16.msra.mxu0 %v12999_v38  ;;  %v13070_v38 = vld [vmem:[#allocation24 + $0x610] ss:$8 sps:$4 sm:$0xff]  }
 0xabd   : > { %9779 = vmatprep.subr.bf16.mxu0 %v13004_v12  ;;  %v13075_v12 = vld [vmem:[#allocation24 + $0x624] ss:$8 sps:$4 sm:$0xff]  }
 0xac0   : > { %9780 = vmatpush1.bf16.msra.mxu0 %v13002_v39  ;;  %v13073_v39 = vld [vmem:[#allocation24 + $0x620] ss:$8 sps:$4 sm:$0xff]  }
 0xac1   : > { %9781 = vmatprep.subr.bf16.mxu0 %v13007_v60  ;;  %v13078_v60 = vld [vmem:[#allocation24 + $0x634] ss:$8 sps:$4 sm:$0xff]  }
 0xac4   : > { %9782 = vmatpush1.bf16.msra.mxu0 %v13005_v3  ;;  %v13076_v3 = vld [vmem:[#allocation24 + $0x630] ss:$8 sps:$4 sm:$0xff]  }
 0xac5   : > { %9783 = vmatprep.subr.bf16.mxu0 %v13010_v11  ;;  %v13081_v11 = vld [vmem:[#allocation24 + $0x644] ss:$8 sps:$4 sm:$0xff]  }
 0xac8   : > { %9784 = vmatpush1.bf16.msra.mxu0 %v13008_v44  ;;  %v13079_v44 = vld [vmem:[#allocation24 + $0x640] ss:$8 sps:$4 sm:$0xff]  }
 0xac9   : > { %9785 = vmatprep.subr.bf16.mxu0 %v13013_v59  ;;  %v13090_v59 = vld [vmem:[#allocation24 + $0x674] ss:$8 sps:$4 sm:$0xff]  }
 0xacc   : > { %9786 = vmatpush1.bf16.msra.mxu0 %v13011_v23  ;;  %v13088_v23 = vld [vmem:[#allocation24 + $0x670] ss:$8 sps:$4 sm:$0xff]  }
 0xacd   : > { %9787 = vmatprep.subr.bf16.mxu0 %v13016_v10  ;;  %v13093_v10 = vld [vmem:[#allocation24 + $0x684] ss:$8 sps:$4 sm:$0xff]  }
 0xad0   : > { %9788 = vmatpush1.bf16.msra.mxu0 %v13014_v20  ;;  %v13091_v20 = vld [vmem:[#allocation24 + $0x680] ss:$8 sps:$4 sm:$0xff]  }
 0xad1   : > { %9800 = vmatprep.subr.bf16.mxu0 %v13019_v32  ;;  %v13096_v32 = vld [vmem:[#allocation24 + $0x694] ss:$8 sps:$4 sm:$0xff]  }
 0xad3   : > { %9790 = vmatmul.mubr.bf16.vlgmr.msra.gmra.mrb[56].mxu0 %v9208_v27  ;;  %v13039_v27 = vld [vmem:[#allocation24 + $0x264] ss:$8 sps:$4 sm:$0xff]  }
 0xad4   : > { %9801 = vmatpush1.bf16.msra.mxu0 %v13017_v34  ;;  %9832 = vmatprep.mubr.bf16.mxu0 %v9227_v49  ;;  %v13094_v34 = vld [vmem:[#allocation24 + $0x690] ss:$8 sps:$4 sm:$0xff]   ;;  %v13097_v49 = vld [vmem:[#allocation24 + $0x6a0] ss:$8 sps:$4 sm:$0xff]  }
 0xad5   : > { %9802 = vmatprep.subr.bf16.mxu0 %v13024_v29  ;;  %v13099_v29 = vld [vmem:[#allocation24 + $0x6a4] ss:$8 sps:$4 sm:$0xff]  }
 0xad8   : > { %9803 = vmatpush1.bf16.msra.mxu0 %v13022_v26  ;;  %v13102_v26 = vld [vmem:[#allocation24 + $0x6b4] ss:$8 sps:$4 sm:$0xff]  }
 0xad9   : > { %9804 = vmatprep.subr.bf16.mxu0 %v13027_v19  ;;  %v13100_v19 = vld [vmem:[#allocation24 + $0x6b0] ss:$8 sps:$4 sm:$0xff]  }
 0xadc   : > { %9805 = vmatpush1.bf16.msra.mxu0 %v13025_v15  ;;  %v13105_v15 = vld [vmem:[#allocation24 + $0x6c4] ss:$8 sps:$4 sm:$0xff]  }
 0xadd   : > { %9806 = vmatprep.subr.bf16.mxu0 %v13030_v1  ;;  %v13103_v1 = vld [vmem:[#allocation24 + $0x6c0] ss:$8 sps:$4 sm:$0xff]  }
 0xae0   : > { %9807 = vmatpush1.bf16.msra.mxu0 %v13028_v51  ;;  %v13108_v51 = vld [vmem:[#allocation24 + $0x6d4] ss:$8 sps:$4 sm:$0xff]  }
 0xae1   : > { %9808 = vmatprep.subr.bf16.mxu0 %v13033_v7  ;;  %v13106_v7 = vld [vmem:[#allocation24 + $0x6d0] ss:$8 sps:$4 sm:$0xff]  }
 0xae4   : > { %9809 = vmatpush1.bf16.msra.mxu0 %v13031_v63  ;;  %v13111_v63 = vld [vmem:[#allocation24 + $0x6e4] ss:$8 sps:$4 sm:$0xff]  }
 0xae5   : > { %9810 = vmatprep.subr.bf16.mxu0 %v13036_v25  ;;  %v13109_v25 = vld [vmem:[#allocation24 + $0x6e0] ss:$8 sps:$4 sm:$0xff]  }
 0xae8   : > { %9811 = vmatpush1.bf16.msra.mxu0 %v13034_v55  ;;  %v13114_v55 = vld [vmem:[#allocation24 + $0x6f4] ss:$8 sps:$4 sm:$0xff]  }
 0xae9   : > { %9812 = vmatprep.subr.bf16.mxu0 %v13039_v27  ;;  %v13112_v27 = vld [vmem:[#allocation24 + $0x6f0] ss:$8 sps:$4 sm:$0xff]  }
 0xaec   : > { %9813 = vmatpush1.bf16.msra.mxu0 %v13037_v14  ;;  %v13117_v14 = vld [vmem:[#allocation24 + $0x704] ss:$8 sps:$4 sm:$0xff]  }
 0xaed   : > { %9814 = vmatprep.subr.bf16.mxu0 %v13042_v17  ;;  %v13115_v17 = vld [vmem:[#allocation24 + $0x700] ss:$8 sps:$4 sm:$0xff]  }
 0xaf0   : > { %9815 = vmatpush1.bf16.msra.mxu0 %v13040_v21  ;;  %v13120_v21 = vld [vmem:[#allocation24 + $0x714] ss:$8 sps:$4 sm:$0xff]  }
 0xaf1   : > { %9816 = vmatprep.subr.bf16.mxu0 %v13045_v47  ;;  %v13118_v47 = vld [vmem:[#allocation24 + $0x710] ss:$8 sps:$4 sm:$0xff]  }
 0xaf4   : > { %9817 = vmatpush1.bf16.msra.mxu0 %v13043_v50  ;;  %v13123_v50 = vld [vmem:[#allocation24 + $0x724] ss:$8 sps:$4 sm:$0xff]  }
 0xaf5   : > { %9818 = vmatprep.subr.bf16.mxu0 %v13048_v52  ;;  %v13121_v52 = vld [vmem:[#allocation24 + $0x720] ss:$8 sps:$4 sm:$0xff]  }
 0xaf8   : > { %9819 = vmatpush1.bf16.msra.mxu0 %v13046_v45  ;;  %v13126_v45 = vld [vmem:[#allocation24 + $0x734] ss:$8 sps:$4 sm:$0xff]  }
 0xaf9   : > { %9820 = vmatprep.subr.bf16.mxu0 %v13051_v54  ;;  %v13124_v54 = vld [vmem:[#allocation24 + $0x730] ss:$8 sps:$4 sm:$0xff]  }
 0xafc   : > { %9821 = vmatpush1.bf16.msra.mxu0 %v13049_v5  ;;  %v13129_v5 = vld [vmem:[#allocation24 + $0x744] ss:$8 sps:$4 sm:$0xff]  }
 0xafd   : > { %9822 = vmatprep.subr.bf16.mxu0 %v13054_v53  ;;  %v13127_v53 = vld [vmem:[#allocation24 + $0x740] ss:$8 sps:$4 sm:$0xff]  }
 0xb00   : > { %9823 = vmatpush1.bf16.msra.mxu0 %v13052_v42 }
 0xb01   : > { %9824 = vmatprep.subr.bf16.mxu0 %v13057_v28  ;;  %v13133_v28 = vld [vmem:[#allocation24 + $0x760] ss:$8 sps:$4 sm:$0xff]  }
 0xb04   : > { %9825 = vmatpush1.bf16.msra.mxu0 %v13055_v56 }
 0xb05   : > { %9826 = vmatprep.subr.bf16.mxu0 %v13060_v57  ;;  %v13138_v57 = vld [vmem:[#allocation24 + $0x774] ss:$8 sps:$4 sm:$0xff]  }
 0xb08   : > { %9827 = vmatpush1.bf16.msra.mxu0 %v13058_v46 }
 0xb09   : > { %9828 = vmatprep.subr.bf16.mxu0 %v13063_v43  ;;  %v13136_v43 = vld [vmem:[#allocation24 + $0x770] ss:$8 sps:$4 sm:$0xff]  }
 0xb0c   : > { %9829 = vmatpush1.bf16.msra.mxu0 %v13061_v37  ;;  %v13141_v37 = vld [vmem:[#allocation24 + $0x784] ss:$8 sps:$4 sm:$0xff]  }
 0xb0d   : > { %9830 = vmatprep.subr.bf16.mxu0 %v13066_v40  ;;  %v13139_v40 = vld [vmem:[#allocation24 + $0x780] ss:$8 sps:$4 sm:$0xff]  }
 0xb10   : > { %9831 = vmatpush1.bf16.msra.mxu0 %v13064_v4  ;;  %v13144_v4 = vld [vmem:[#allocation24 + $0x794] ss:$8 sps:$4 sm:$0xff]  }
 0xb11   : > { %10497 = vmatprep.subr.bf16.mxu0 %v13069_v6  ;;  %v13142_v6 = vld [vmem:[#allocation24 + $0x790] ss:$8 sps:$4 sm:$0xff]  }
 0xb13   : > { %9833 = vmatmul.mubr.bf16.vlgmr.msra.gmra.mrb[56].mxu0 %v9226_v48  ;;  %v13087_v48 = vld [vmem:[#allocation24 + $0x664] ss:$8 sps:$4 sm:$0xff]  }
 0xb14   : > { %10498 = vmatpush1.bf16.msra.mxu0 %v13067_v35  ;;  %10529 = vmatprep.mubr.bf16.mxu0 %v9990_v33  ;;  %v13085_v33 = vld [vmem:[#allocation24 + $0x660] ss:$8 sps:$4 sm:$0xff]   ;;  %v13147_v35 = vld [vmem:[#allocation24 + $0x7a4] ss:$8 sps:$4 sm:$0xff]  }
 0xb15   : > { %10499 = vmatprep.subr.bf16.mxu0 %v13072_v58  ;;  %v13145_v58 = vld [vmem:[#allocation24 + $0x7a0] ss:$8 sps:$4 sm:$0xff]  }
 0xb18   : > { %10500 = vmatpush1.bf16.msra.mxu0 %v13070_v38  ;;  %v13150_v38 = vld [vmem:[#allocation24 + $0x7b4] ss:$8 sps:$4 sm:$0xff]  }
 0xb19   : > { %10501 = vmatprep.subr.bf16.mxu0 %v13075_v12  ;;  %v13148_v12 = vld [vmem:[#allocation24 + $0x7b0] ss:$8 sps:$4 sm:$0xff]  }
 0xb1c   : > { %10502 = vmatpush1.bf16.msra.mxu0 %v13073_v39  ;;  %v13153_v39 = vld [vmem:[#allocation24 + $0x7c4] ss:$8 sps:$4 sm:$0xff]  }
 0xb1d   : > { %10503 = vmatprep.subr.bf16.mxu0 %v13078_v60  ;;  %v13151_v60 = vld [vmem:[#allocation24 + $0x7c0] ss:$8 sps:$4 sm:$0xff]  }
 0xb20   : > { %10504 = vmatpush1.bf16.msra.mxu0 %v13076_v3  ;;  %v13156_v3 = vld [vmem:[#allocation24 + $0x7d4] ss:$8 sps:$4 sm:$0xff]  }
 0xb21   : > { %10505 = vmatprep.subr.bf16.mxu0 %v13081_v11  ;;  %v13154_v11 = vld [vmem:[#allocation24 + $0x7d0] ss:$8 sps:$4 sm:$0xff]  }
 0xb24   : > { %10506 = vmatpush1.bf16.msra.mxu0 %v13079_v44  ;;  %v13159_v44 = vld [vmem:[#allocation24 + $0x7e4] ss:$8 sps:$4 sm:$0xff]  }
 0xb25   : > { %10507 = vmatprep.subr.bf16.mxu0 %v13084_v24  ;;  %v13157_v24 = vld [vmem:[#allocation24 + $0x7e0] ss:$8 sps:$4 sm:$0xff]  }
 0xb28   : > { %10508 = vmatpush1.bf16.msra.mxu0 %v13082_v31  ;;  %v13162_v31 = vld [vmem:[#allocation24 + $0x7f4] ss:$8 sps:$4 sm:$0xff]  }
 0xb29   : > { %10509 = vmatprep.subr.bf16.mxu0 %v13087_v48  ;;  %v13160_v48 = vld [vmem:[#allocation24 + $0x7f0] ss:$8 sps:$4 sm:$0xff]  }
 0xb2c   : > { %10510 = vmatpush1.bf16.msra.mxu0 %v13085_v33  ;;  %v13165_v33 = vld [vmem:[#allocation24 + $0x804] ss:$8 sps:$4 sm:$0xff]  }
 0xb2d   : > { %10511 = vmatprep.subr.bf16.mxu0 %v13090_v59  ;;  %v13163_v59 = vld [vmem:[#allocation24 + $0x800] ss:$8 sps:$4 sm:$0xff]  }
 0xb30   : > { %10512 = vmatpush1.bf16.msra.mxu0 %v13088_v23  ;;  %v13170_v23 = vld [vmem:[#allocation24 + $0x814] ss:$8 sps:$4 sm:$0xff]  }
 0xb31   : > { %10513 = vmatprep.subr.bf16.mxu0 %v13093_v10  ;;  %v10010_v10 = vcombine.high %v16193_v2, %v16196_v22 }
 0xb34   : > { %10514 = vmatpush1.bf16.msra.mxu0 %v13091_v20  ;;  %v13168_v20 = vld [vmem:[#allocation24 + $0x810] ss:$8 sps:$4 sm:$0xff]  }
 0xb35   : > { %10515 = vmatprep.subr.bf16.mxu0 %v13096_v32  ;;  %v13173_v32 = vld [vmem:[#allocation24 + $0x824] ss:$8 sps:$4 sm:$0xff]  }
 0xb38   : > { %10516 = vmatpush1.bf16.msra.mxu0 %v13094_v34  ;;  %v13171_v34 = vld [vmem:[#allocation24 + $0x820] ss:$8 sps:$4 sm:$0xff]  }
 0xb39   : > { %10517 = vmatprep.subr.bf16.mxu0 %v13099_v29  ;;  %v13176_v29 = vld [vmem:[#allocation24 + $0x834] ss:$8 sps:$4 sm:$0xff]  }
 0xb3c   : > { %10518 = vmatpush1.bf16.msra.mxu0 %v13097_v49  ;;  %v13174_v49 = vld [vmem:[#allocation24 + $0x830] ss:$8 sps:$4 sm:$0xff]  }
 0xb3d   : > { %10519 = vmatprep.subr.bf16.mxu0 %v13102_v26  ;;  %v13179_v26 = vld [vmem:[#allocation24 + $0x844] ss:$8 sps:$4 sm:$0xff]  }
 0xb40   : > { %10520 = vmatpush1.bf16.msra.mxu0 %v13100_v19  ;;  %v13177_v19 = vld [vmem:[#allocation24 + $0x840] ss:$8 sps:$4 sm:$0xff]  }
 0xb41   : > { %10521 = vmatprep.subr.bf16.mxu0 %v13105_v15  ;;  %v13182_v15 = vld [vmem:[#allocation24 + $0x854] ss:$8 sps:$4 sm:$0xff]  }
 0xb44   : > { %10522 = vmatpush1.bf16.msra.mxu0 %v13103_v1  ;;  %v13188_v1 = vld [vmem:[#allocation24 + $0x874] ss:$8 sps:$4 sm:$0xff]  }
 0xb45   : > { %10523 = vmatprep.subr.bf16.mxu0 %v13108_v51  ;;  %v13186_v51 = vld [vmem:[#allocation24 + $0x870] ss:$8 sps:$4 sm:$0xff]  }
 0xb48   : > { %10524 = vmatpush1.bf16.msra.mxu0 %v13106_v7  ;;  %v13191_v7 = vld [vmem:[#allocation24 + $0x884] ss:$8 sps:$4 sm:$0xff]  }
 0xb49   : > { %10525 = vmatprep.subr.bf16.mxu0 %v13111_v63  ;;  %v13189_v63 = vld [vmem:[#allocation24 + $0x880] ss:$8 sps:$4 sm:$0xff]  }
 0xb4c   : > { %10526 = vmatpush1.bf16.msra.mxu0 %v13109_v25  ;;  %v13194_v25 = vld [vmem:[#allocation24 + $0x894] ss:$8 sps:$4 sm:$0xff]  }
 0xb4d   : > { %10527 = vmatprep.subr.bf16.mxu0 %v13114_v55  ;;  %v13192_v55 = vld [vmem:[#allocation24 + $0x890] ss:$8 sps:$4 sm:$0xff]  }
 0xb50   : > { %10528 = vmatpush1.bf16.msra.mxu0 %v13112_v27  ;;  %v13197_v27 = vld [vmem:[#allocation24 + $0x8a4] ss:$8 sps:$4 sm:$0xff]  }
 0xb51   : > { %10540 = vmatprep.subr.bf16.mxu0 %v13117_v14  ;;  %v13195_v14 = vld [vmem:[#allocation24 + $0x8a0] ss:$8 sps:$4 sm:$0xff]  }
 0xb53   : > { %10530 = vmatmul.mubr.bf16.vlgmr.msra.gmra.mrb[56].mxu0 %v9989_v62  ;;  %v13135_v62 = vld [vmem:[#allocation24 + $0x764] ss:$8 sps:$4 sm:$0xff]  }
 0xb54   : > { %10541 = vmatpush1.bf16.msra.mxu0 %v13115_v17  ;;  %10572 = vmatprep.mubr.bf16.mxu0 %v9992_v36  ;;  %v13200_v17 = vld [vmem:[#allocation24 + $0x8b4] ss:$8 sps:$4 sm:$0xff]  }
 0xb55   : > { %10542 = vmatprep.subr.bf16.mxu0 %v13120_v21  ;;  %v13198_v21 = vld [vmem:[#allocation24 + $0x8b0] ss:$8 sps:$4 sm:$0xff]  }
 0xb58   : > { %10543 = vmatpush1.bf16.msra.mxu0 %v13118_v47  ;;  %v13203_v47 = vld [vmem:[#allocation24 + $0x8c4] ss:$8 sps:$4 sm:$0xff]  }
 0xb59   : > { %10544 = vmatprep.subr.bf16.mxu0 %v13123_v50  ;;  %v13201_v50 = vld [vmem:[#allocation24 + $0x8c0] ss:$8 sps:$4 sm:$0xff]  }
 0xb5c   : > { %10545 = vmatpush1.bf16.msra.mxu0 %v13121_v52  ;;  %v13206_v52 = vld [vmem:[#allocation24 + $0x8d4] ss:$8 sps:$4 sm:$0xff]  }
 0xb5d   : > { %10546 = vmatprep.subr.bf16.mxu0 %v13126_v45  ;;  %v13204_v45 = vld [vmem:[#allocation24 + $0x8d0] ss:$8 sps:$4 sm:$0xff]  }
 0xb60   : > { %10547 = vmatpush1.bf16.msra.mxu0 %v13124_v54  ;;  %v13209_v54 = vld [vmem:[#allocation24 + $0x8e4] ss:$8 sps:$4 sm:$0xff]  }
 0xb61   : > { %10548 = vmatprep.subr.bf16.mxu0 %v13129_v5  ;;  %v13207_v5 = vld [vmem:[#allocation24 + $0x8e0] ss:$8 sps:$4 sm:$0xff]  }
 0xb64   : > { %10549 = vmatpush1.bf16.msra.mxu0 %v13127_v53  ;;  %v13212_v53 = vld [vmem:[#allocation24 + $0x8f4] ss:$8 sps:$4 sm:$0xff]  }
 0xb65   : > { %10550 = vmatprep.subr.bf16.mxu0 %v13132_v30  ;;  %v13210_v30 = vld [vmem:[#allocation24 + $0x8f0] ss:$8 sps:$4 sm:$0xff]  }
 0xb67   : > { %v16229_v36 = vpop.f32.mrb[156].mxu1 }
 0xb68   : > { %v16231_v42 = vpop.f32.mrb[157].mxu1  ;;  %10551 = vmatpush1.bf16.msra.mxu0 %v13130_v8  ;;  %v10630_v8 = vld [vmem:[#allocation25] sm:$0x3] }
 0xb69   : > { %v16233_v56 = vpop.f32.mrb[158].mxu1  ;;  %10552 = vmatprep.subr.bf16.mxu0 %v13135_v62  ;;  %v10635_v62 = vrot.slane %v10630_v8, %v7982_v18 }
 0xb6a   : > { %v16235_v46 = vpop.f32.mrb[159].mxu1 }
 0xb6c   : > { %10553 = vmatpush1.bf16.msra.mxu0 %v13133_v28 }
 0xb6d   : > { %10554 = vmatprep.subr.bf16.mxu0 %v13138_v57  ;;  %v10639_v57 = vrot.slane %v10630_v8, %v7986_v16 }
 0xb70   : > { %10555 = vmatpush1.bf16.msra.mxu0 %v13136_v43 }
 0xb71   : > { %10556 = vmatprep.subr.bf16.mxu0 %v13141_v37 }
 0xb74   : > { %10557 = vmatpush1.bf16.msra.mxu0 %v13139_v40 }
 0xb75   : > { %10558 = vmatprep.subr.bf16.mxu0 %v13144_v4 }
 0xb78   : > { %10559 = vmatpush1.bf16.msra.mxu0 %v13142_v6 }
 0xb79   : > { %10560 = vmatprep.subr.bf16.mxu0 %v13147_v35 }
 0xb7c   : > { %10561 = vmatpush1.bf16.msra.mxu0 %v13145_v58 }
 0xb7d   : > { %10562 = vmatprep.subr.bf16.mxu0 %v13150_v38 }
 0xb80   : > { %10563 = vmatpush1.bf16.msra.mxu0 %v13148_v12 }
 0xb81   : > { %10564 = vmatprep.subr.bf16.mxu0 %v13153_v39 }
 0xb84   : > { %10565 = vmatpush1.bf16.msra.mxu0 %v13151_v60 }
 0xb85   : > { %10566 = vmatprep.subr.bf16.mxu0 %v13156_v3 }
 0xb88   : > { %10567 = vmatpush1.bf16.msra.mxu0 %v13154_v11 }
 0xb89   : > { %10568 = vmatprep.subr.bf16.mxu0 %v13159_v44 }
 0xb8c   : > { %10569 = vmatpush1.bf16.msra.mxu0 %v13157_v24 }
 0xb8d   : > { %10570 = vmatprep.subr.bf16.mxu0 %v13162_v31 }
 0xb90   : > { %10571 = vmatpush1.bf16.msra.mxu0 %v13160_v48 }
 0xb91   : > { %10583 = vmatprep.subr.bf16.mxu0 %v13165_v33 }
 0xb93   : > { %10573 = vmatmul.mubr.bf16.vlgmr.msra.gmra.mrb[56].mxu0 %v9991_v61  ;;  %v13183_v61 = vld [vmem:[#allocation24 + $0x860] ss:$8 sps:$4 sm:$0xff]  }
 0xb94   : > { %10584 = vmatpush1.bf16.msra.mxu0 %v13163_v59  ;;  %10615 = vmatprep.mubr.bf16.mxu0 %v10010_v10 }
 0xb95   : > { %10585 = vmatprep.subr.bf16.mxu0 %v13170_v23 }
 0xb98   : > { %10586 = vmatpush1.bf16.msra.mxu0 %v13168_v20 }
 0xb99   : > { %10587 = vmatprep.subr.bf16.mxu0 %v13173_v32 }
 0xb9c   : > { %10588 = vmatpush1.bf16.msra.mxu0 %v13171_v34 }
 0xb9d   : > { %10589 = vmatprep.subr.bf16.mxu0 %v13176_v29 }
 0xba0   : > { %10590 = vmatpush1.bf16.msra.mxu0 %v13174_v49 }
 0xba1   : > { %10591 = vmatprep.subr.bf16.mxu0 %v13179_v26 }
 0xba4   : > { %10592 = vmatpush1.bf16.msra.mxu0 %v13177_v19 }
 0xba5   : > { %10593 = vmatprep.subr.bf16.mxu0 %v13182_v15 }
 0xba8   : > { %10594 = vmatpush1.bf16.msra.mxu0 %v13180_v0 }
 0xba9   : > { %10595 = vmatprep.subr.bf16.mxu0 %v13185_v9 }
 0xbac   : > { %10596 = vmatpush1.bf16.msra.mxu0 %v13183_v61 }
 0xbad   : > { %10597 = vmatprep.subr.bf16.mxu0 %v13188_v1  ;;  %v13668_v1 = vmov 1966171168  }
 0xbb0   : > { %10598 = vmatpush1.bf16.msra.mxu0 %v13186_v51  ;;  %v10700_v51 = vunpack.c.l.s4 %v13668_v1 }
 0xbb1   : > { %10599 = vmatprep.subr.bf16.mxu0 %v13191_v7 }
 0xbb4   : > { %10600 = vmatpush1.bf16.msra.mxu0 %v13189_v63 }
 0xbb5   : > { %10601 = vmatprep.subr.bf16.mxu0 %v13194_v25 }
 0xbb8   : > { %10602 = vmatpush1.bf16.msra.mxu0 %v13192_v55 }
 0xbb9   : > { %10603 = vmatprep.subr.bf16.mxu0 %v13197_v27  ;;  %v10701_v27 = vunpack.c.0.s8 %v10700_v51 }
 0xbbc   : > { %10604 = vmatpush1.bf16.msra.mxu0 %v13195_v14 }
 0xbbd   : > { %10605 = vmatprep.subr.bf16.mxu0 %v13200_v17 }
 0xbc0   : > { %10606 = vmatpush1.bf16.msra.mxu0 %v13198_v21 }
 0xbc1   : > { %10607 = vmatprep.subr.bf16.mxu0 %v13203_v47 }
 0xbc4   : > { %10608 = vmatpush1.bf16.msra.mxu0 %v13201_v50  ;;  %v10704_v50 = vsub.s32 %v10701_v27, %v16532_v13 }
 0xbc5   : > { %10609 = vmatprep.subr.bf16.mxu0 %v13206_v52 }
 0xbc8   : > { %10610 = vmatpush1.bf16.msra.mxu0 %v13204_v45 }
 0xbc9   : > { %10611 = vmatprep.subr.bf16.mxu0 %v13209_v54  ;;  %v16533_v54 = vlaneseq }
 0xbcb   : > { %vm10716_vm9 = vcmp.lt.s32.totalorder %v16533_v54, 256 }
 0xbcc   : > { %10612 = vmatpush1.bf16.msra.mxu0 %v13207_v5 }
 0xbcd   : > { %10613 = vmatprep.subr.bf16.mxu0 %v13212_v53 }
 0xbd0   : > { %10614 = vmatpush1.bf16.msra.mxu0 %v13210_v30 }
 0xbd3   : > { %10616 = vmatmul.mubr.bf16.vlgmr.msra.gmra.mrb[56].mxu0 %v10009_v41 }
 0xca6   : > { %v10617_v28 = vpop.f32.mrb[56].mxu0 }
 0xca7   : > { %v12102_v43 = vadd.f32 %v10617_v28, %v16229_v36  ;;  %v10619_v37 = vpop.f32.mrb[57].mxu0 }
 0xca8   : > { %v12103_v40 = vadd.f32 %v10619_v37, %v16231_v42  ;;  %v10621_v4 = vpop.f32.mrb[58].mxu0 }
 0xca9   : > { %v10642_v6 = vadd.f32 %v12102_v43, %v10635_v62  ;;  %v12104_v35 = vadd.f32 %v10621_v4, %v16233_v56  ;;  %v10623_v58 = vpop.f32.mrb[59].mxu0 }
 0xcaa   : > { %v10643_v2 = vadd.f32 %v12103_v40, %v10639_v57  ;;  %v12105_v22 = vadd.f32 %v10623_v58, %v16235_v46 }
 0xcab   : > { %v10646_v41 = vmax.f32 %v10642_v6, 0.0  ;;  %v10644_v38 = vadd.f32 %v12104_v35, %v10635_v62 }
 0xcac   : > { %v10647_v18 = vmax.f32 %v10643_v2, 0.0  ;;  %v10645_v12 = vadd.f32 %v12105_v22, %v10639_v57 }
 0xcad   : > { %v10648_v39 = vmax.f32 %v10644_v38, 0.0 }
 0xcae   : > { %v10654_v60 = vcombine.low %v10646_v41, %v10647_v18  ;;  %v10655_v16 = vcombine.high %v10646_v41, %v10647_v18  ;;  %v11721_v3 = vcombine.low %v10647_v18, %v10647_v18  ;;  %v11722_v36 = vcombine.high %v10647_v18, %v10647_v18 }
 0xcaf   : > { %v10649_v11 = vmax.f32 %v10645_v12, 0.0 }
 0xcb0   : > { %v10670_v56 = vsel %vm3385_vm2, %v10654_v60, -inf  ;;  %v10671_v48 = vsel %vm3385_vm2, %v10655_v16, -inf  ;;  %v10683_v46 = vsel %vm3385_vm2, %v11721_v3, -inf  ;;  %v10684_v33 = vsel %vm3385_vm2, %v11722_v36, -inf }
 0xcb1   : > { %v10656_v44 = vcombine.low %v10648_v39, %v10649_v11  ;;  %v10657_v42 = vcombine.high %v10648_v39, %v10649_v11  ;;  %v11723_v24 = vcombine.low %v10649_v11, %v10649_v11  ;;  %v11724_v31 = vcombine.high %v10649_v11, %v10649_v11 }
 0xcb3   : > { %v10672_v59 = vsel %vm3385_vm2, %v10656_v44, -inf  ;;  %v10674_v23 = vsel %vm3385_vm2, %v10657_v42, -inf  ;;  %v10685_v10 = vsel %vm3385_vm2, %v11723_v24, -inf  ;;  %v10687_v20 = vsel %vm3385_vm2, %v11724_v31, -inf }
 0xcb4   : > { %v10673_v32 = vmax.f32 %v10670_v56, %v10672_v59  ;;  %v10675_v34 = vmax.f32 %v10671_v48, %v10674_v23  ;;  %v10686_v29 = vmax.f32 %v10683_v46, %v10685_v10  ;;  %v10688_v49 = vmax.f32 %v10684_v33, %v10687_v20 }
 0xcb6   : > { %v10676_v26 = vmax.f32 %v10673_v32, %v10675_v34  ;;  %v10689_v19 = vmax.f32 %v10686_v29, %v10688_v49 }
 0xcb8   : > { %v10677_v15 = vrot.slane %v10676_v26, 4  ;;  %v10690_v0 = vrot.slane %v10689_v19, 4 }
 0xcba   : > { %v10678_v9 = vmax.f32 %v10676_v26, %v10677_v15  ;;  %v10691_v61 = vmax.f32 %v10689_v19, %v10690_v0 }
 0xcbc   : > { %v10679_v7 = vrot.slane %v10678_v9, 2  ;;  %v10692_v63 = vrot.slane %v10691_v61, 2 }
 0xcbe   : > { %v10680_v25 = vmax.f32 %v10678_v9, %v10679_v7  ;;  %v10693_v55 = vmax.f32 %v10691_v61, %v10692_v63 }
 0xcc0   : > { %v10681_v14 = vrot.slane %v10680_v25, 1  ;;  %v10694_v17 = vrot.slane %v10693_v55, 1 }
 0xcc2   : > { %v10682_v21 = vmax.f32 %v10680_v25, %v10681_v14  ;;  %v10695_v47 = vmax.f32 %v10693_v55, %v10694_v17 }
 0xcc4   : > { %v10698_v52 = vcombine.low %v10682_v21, %v10695_v47 }
 0xcc6   : > { %v10705_v45 = vrot.slane %v10698_v52, %v10704_v50 }
 0xcc8   : > { %v10712_v5 = vrot.slane %v10705_v45, %v10704_v50 }
 0xcca   : > { %10718 = vst.msk [vmem:[%s596_s25] sm:$0x3] %vm10716_vm9, %v10712_v5 }
 0xccb   : > { %13569 = shalt.err (!%p13566_p3)
}
 0xccc   : > { %s13570_s20 = scalar_lea.hbm %s16268_s28, 32  ;;  %s13574_s21 = scalar_lea.hbm %s16534_s24, 64 }
 0xccd   : > { %p13571_p4 = scmp.ne.s32.totalorder %s16268_s28, %s13570_s20  ;;  %p13575_p11 = scmp.lt.u32.totalorder %s16268_s28, %s16534_s24 }
 0xcce   : > { %p13576_p13 = scmp.lt.u32.totalorder %s13574_s21, %s13570_s20  ;;  %p13578_p0 = scmp.lt.u32.totalorder %s13570_s20, %s16268_s28 }
 0xccf   : > { %p13572_p7 = pnand %p13571_p4, %p16535_p6 }
 0xcd0   : > { %p13577_p1 = por %p13576_p13, %p13575_p11 }
 0xcd1   : > { %p13573_p8 = pneg %p13572_p7 }
 0xcd2   : > { %p13579_p5 = por %p13578_p0, %p13577_p1 }
 0xcd4   : > { %p13580_p9 = pnand %p13579_p5, %p13573_p8 }
 0xcd6   : > { %13583 = shalt.err (!%p13580_p9)
}
 0xcd7   : > { %12218 = dma.vmem_to_hbm [thread:$0]  (%p16535_p6), %s16270_s1, 32, %s16268_s28, %s10720_s15  }
 0xcd8 PF: > { %s16536_s22 = sld [smem:[#allocation38_spill]]  ;;  %s16537_s13 = sld [smem:[#allocation36_spill]] }
 0xcd9   : > { %s16538_s17 = sld [smem:[#allocation41_spill]] }
 0xcde   : > { %p12285_p12 = scmp.ge.s32.totalorder %s16536_s22, 2  ;;  %s10746_s25 = sand.u32 1, %s16537_s13  }
 0xcdf   : > { %p16539_p10 = scmp.ne.s32.totalorder %s16538_s17, 0  ;;  %s10747_s6 = scalar_lea.sflag [#allocation9], %s10746_s25 }
 0xce1   : > { %p12258_p2 = pnand %p12285_p12, %p16539_p10 }
 0xce3   : > { %13629 = dma.done.wait (!%p12258_p2), %s10747_s6, 32  }
 0xce4   : > { %13631 = vsyncadd (!%p12258_p2), %s10747_s6, 4294967264  ;;  %s16540_s28 = sld [smem:[#allocation39_spill]]  ;;  %s16541_s2 = sld [smem:[#allocation37_spill]] }
 0xce5   : > { %s16542_s27 = sld [smem:[#allocation40_spill]]  ;;  %s16543_s25 = smov %s13638_s26 }
 0xcea   : > { %p30_p3 = scmp.ge.s32.totalorder %s16540_s28, 4   ;;  %s16544_s26 = smov %s16541_s2 }
 0xcec   :  { %32 = sbr.rel (!%p30_p3) target bundleno = 16 (0x10), region = 178 }
 0xcf3   :  { %10752 = vsyncpa [#allocation8], 1 }
 0xcf4   :  { %10754 = vsyncpa [#allocation8 + $0x1], 1 }
 0xcf5   :  { %10755 = vsyncpa [#allocation11], 1 }
 0xcf6   :  { %10756 = vsyncpa [#allocation14], 1 }
 0xcf7   :  { %10757 = vsyncpa [#allocation17], 1 }
 0xcf8   :  { %10758 = vsyncpa [#allocation20], 1 }
 0xcf9   :  { %10759 = vsyncpa [#allocation23], 1 }
 0xcfa   :  { %10760 = vsyncpa [#allocation26], 1 }
 0xcfb   :  { %10761 = vsyncpa [#allocation9], 1 }
 0xcfc   :  { %10763 = vsyncpa [#allocation9 + $0x1], 1 }

</bundles_post_ra>
